<compile_context>
chip_gen: v7x
topology: tpu7x:2x2x1
jax: 0.10.0
libtpu: 0.0.40
codegen_flags: <defaults>
</compile_context>

<pallas_src>
import functools

import jax
import jax.numpy as jnp
from jax.experimental import pallas as pl
from jax.experimental.pallas import tpu as pltpu


def _round_up(x, m):
    return ((x + m - 1) // m) * m


def _pad_dim(d, unit, cap):
    p = _round_up(d, unit)
    return p if p <= cap else _round_up(d, cap)


# ---------------------------------------------------------------------------
# Pallas kernels
# ---------------------------------------------------------------------------
def _matmul_kernel(a_ref, b_ref, bias_ref, o_ref, acc_ref, *, act):
    """bf16 (TM,TK)x(TK,TN) MXU matmul, f32 accumulator, bias(+ReLU) epilogue."""
    @pl.when(pl.program_id(2) == 0)
    def _():
        acc_ref[...] = jnp.zeros_like(acc_ref)

    acc_ref[...] += jnp.dot(a_ref[...], b_ref[...],
                            preferred_element_type=jnp.float32)

    @pl.when(pl.program_id(2) == pl.num_programs(2) - 1)
    def _():
        out = acc_ref[...] + bias_ref[...]
        if act == "relu":
            out = jnp.maximum(out, 0.0)
        o_ref[...] = out.astype(o_ref.dtype)


def _conv_direct_kernel(x_ref, w_ref, b_ref, o_ref, *, kh, kw, Wp, act):
    """Stride-1 conv on one batch element, taps accumulated in VMEM.

    x_ref: (1, Hp*Wp, Cin) bf16 flattened padded image
    w_ref: (kh, kw, Cin, Cout) bf16, b_ref: (1, Cout) f32
    o_ref: (1, R, Cout) with R = oh*Wp - kw + 1 (rows j>=ow are garbage,
           cropped by the wrapper).
    """
    R = o_ref.shape[1]
    cout = o_ref.shape[2]
    acc = jnp.zeros((R, cout), jnp.float32)
    for di in range(kh):
        for dj in range(kw):
            off = di * Wp + dj
            xs = x_ref[0, off:off + R, :]            # static ref slice (no copy)
            acc = acc + jnp.dot(xs, w_ref[di, dj],
                                preferred_element_type=jnp.float32)
    out = acc + b_ref[...]
    if act == "relu":
        out = jnp.maximum(out, 0.0)
    o_ref[0] = out.astype(o_ref.dtype)


def _lstm_gate_kernel(gd_ref, gs_ref, c_ref, c_out_ref, h_out_ref, *, hd):
    """Fused ConvLSTM gates: (dynamic + static) pre-activations, sliced in-kernel."""
    g = gd_ref[...] + gs_ref[...]
    i = jax.nn.sigmoid(g[:, 0 * hd:1 * hd])
    f = jax.nn.sigmoid(g[:, 1 * hd:2 * hd])
    o = jax.nn.sigmoid(g[:, 2 * hd:3 * hd])
    gg = jnp.tanh(g[:, 3 * hd:4 * hd])
    c_new = f * c_ref[...] + i * gg
    c_out_ref[...] = c_new
    h_out_ref[...] = o * jnp.tanh(c_new)


def _latent_kernel(q_ref, p_ref, eps_ref, z_ref, kl_ref, *, zd):
    """Reparameterized sample + Normal/Normal KL; mu/logvar sliced in-kernel."""
    mu_q = q_ref[:, :zd]
    lv_q = q_ref[:, zd:]
    mu_p = p_ref[:, :zd]
    lv_p = p_ref[:, zd:]
    z_ref[...] = mu_q + jnp.exp(0.5 * lv_q) * eps_ref[...]
    var_q = jnp.exp(lv_q)
    var_p = jnp.exp(lv_p)
    kl_ref[...] = 0.5 * (lv_p - lv_q + (var_q + (mu_q - mu_p) ** 2) / var_p
                         - 1.0)


# ---------------------------------------------------------------------------
# Pallas wrappers
# ---------------------------------------------------------------------------
def matmul_bias_act(a, wm, bm, n_out, act="none"):
    """(M,K) @ pre-padded bf16 (Kp,Np) + bias (+ReLU); returns (M, n_out) f32."""
    M, K = a.shape
    Kp, Np = wm.shape
    # shape-aware tiles: collapse the k grid when K is small, size TM to M.
    if M <= 512:
        TM = max(_round_up(M, 16), 16)
        Mp = TM
    else:
        TM = 256
        Mp = _round_up(M, TM)
    TK = min(Kp, 2048)
    TN = min(Np, 512)
    a_p = jnp.pad(a.astype(jnp.bfloat16), ((0, Mp - M), (0, Kp - K)))
    grid = (Mp // TM, Np // TN, Kp // TK)
    out = pl.pallas_call(
        functools.partial(_matmul_kernel, act=act),
        out_shape=jax.ShapeDtypeStruct((Mp, Np), jnp.float32),
        grid_spec=pltpu.PrefetchScalarGridSpec(
            num_scalar_prefetch=0,
            grid=grid,
            in_specs=[
                pl.BlockSpec((TM, TK), lambda i, j, k: (i, k)),
                pl.BlockSpec((TK, TN), lambda i, j, k: (k, j)),
                pl.BlockSpec((1, TN), lambda i, j, k: (0, j)),
            ],
            out_specs=pl.BlockSpec((TM, TN), lambda i, j, k: (i, j)),
            scratch_shapes=[pltpu.VMEM((TM, TN), jnp.float32)],
        ),
        compiler_params=pltpu.CompilerParams(
            dimension_semantics=("parallel", "parallel", "arbitrary")),
        cost_estimate=pl.CostEstimate(
            flops=2 * Mp * Np * Kp, transcendentals=0,
            bytes_accessed=Mp * Kp * 2 + Kp * Np * 2 + Mp * Np * 4),
    )(a_p, wm, bm)
    return out[:M, :n_out]


def im2col(x, kh, kw, stride, pad):
    """x: [n,H,W,C] -> patches [n*oh*ow, kh*kw*C]. Only used for stride==kernel
    (non-overlapping, no data duplication) and 1x1 convs."""
    if pad:
        x = jnp.pad(x, ((0, 0), (pad, pad), (pad, pad), (0, 0)))
    n, H, W, C = x.shape
    oh = (H - kh) // stride + 1
    ow = (W - kw) // stride + 1
    cols = []
    for i in range(kh):
        for j in range(kw):
            cols.append(x[:, i:i + (oh - 1) * stride + 1:stride,
                          j:j + (ow - 1) * stride + 1:stride, :])
    patches = jnp.concatenate(cols, axis=-1)
    return patches.reshape(n * oh * ow, kh * kw * C), oh, ow


def conv2d_mm(x, p, stride, pad=0, act="none"):
    """Conv via im2col + MXU matmul (stride==kernel or 1x1 convs only)."""
    patches, oh, ow = im2col(x, p["kh"], p["kw"], stride, pad)
    y = matmul_bias_act(patches, p["wm"], p["bm"], p["cout"], act=act)
    return y.reshape(x.shape[0], oh, ow, p["cout"])


def conv2d_direct(x, p, pad, act="none"):
    """Stride-1 conv, taps accumulated inside a Pallas kernel (no im2col)."""
    kh, kw, cout = p["kh"], p["kw"], p["cout"]
    if pad:
        x = jnp.pad(x, ((0, 0), (pad, pad), (pad, pad), (0, 0)))
    n, Hp, Wp, cin = x.shape
    oh, ow = Hp - kh + 1, Wp - kw + 1
    R = oh * Wp - kw + 1
    xf = x.reshape(n, Hp * Wp, cin).astype(jnp.bfloat16)
    y = pl.pallas_call(
        functools.partial(_conv_direct_kernel, kh=kh, kw=kw, Wp=Wp, act=act),
        out_shape=jax.ShapeDtypeStruct((n, R, cout), jnp.float32),
        grid_spec=pltpu.PrefetchScalarGridSpec(
            num_scalar_prefetch=0,
            grid=(n,),
            in_specs=[
                pl.BlockSpec((1, Hp * Wp, cin), lambda b: (b, 0, 0)),
                pl.BlockSpec((kh, kw, cin, cout), lambda b: (0, 0, 0, 0)),
                pl.BlockSpec((1, cout), lambda b: (0, 0)),
            ],
            out_specs=pl.BlockSpec((1, R, cout), lambda b: (b, 0, 0)),
        ),
        compiler_params=pltpu.CompilerParams(
            dimension_semantics=("parallel",)),
        cost_estimate=pl.CostEstimate(
            flops=2 * n * R * cout * kh * kw * cin, transcendentals=0,
            bytes_accessed=(n * Hp * Wp * cin * 2 + kh * kw * cin * cout * 2
                            + n * R * cout * 4)),
    )(xf, p["w"], p["b"])
    # drop the (kw-1) wrap-around garbage columns
    y = jnp.pad(y, ((0, 0), (0, oh * Wp - R), (0, 0)))
    y = y.reshape(n, oh, Wp, cout)[:, :, :ow, :]
    return y


def conv_transpose_s(x, p, scale):
    """Transposed conv with kernel == stride == scale (non-overlapping)."""
    n, h, w, cin = x.shape
    cout = p["cout"]
    y = matmul_bias_act(x.reshape(n * h * w, cin), p["wm"], p["bm"], p["n_full"])
    y = y.reshape(n, h, w, scale, scale, cout)
    y = y.transpose(0, 1, 3, 2, 4, 5).reshape(n, h * scale, w * scale, cout)
    return y


def lstm_gate_update(gates_dyn, gates_static, c):
    """Fused gate nonlinearity + cell/hidden update (row-tiled grid)."""
    n, H, W, hd4 = gates_dyn.shape
    hd = c.shape[-1]
    M = n * H * W
    TR = min(_round_up(M, 8), 1024)
    Mp = _round_up(M, TR)

    def prep(t, cdim):
        return jnp.pad(t.reshape(M, cdim), ((0, Mp - M), (0, 0)))

    c_new, h_new = pl.pallas_call(
        functools.partial(_lstm_gate_kernel, hd=hd),
        out_shape=(jax.ShapeDtypeStruct((Mp, hd), jnp.float32),
                   jax.ShapeDtypeStruct((Mp, hd), jnp.float32)),
        grid_spec=pltpu.PrefetchScalarGridSpec(
            num_scalar_prefetch=0,
            grid=(Mp // TR,),
            in_specs=[pl.BlockSpec((TR, hd4), lambda i: (i, 0)),
                      pl.BlockSpec((TR, hd4), lambda i: (i, 0)),
                      pl.BlockSpec((TR, hd), lambda i: (i, 0))],
            out_specs=[pl.BlockSpec((TR, hd), lambda i: (i, 0)),
                       pl.BlockSpec((TR, hd), lambda i: (i, 0))],
        ),
        compiler_params=pltpu.CompilerParams(
            dimension_semantics=("parallel",)),
    )(prep(gates_dyn, hd4), prep(gates_static, hd4), prep(c, hd))
    return (h_new[:M].reshape(n, H, W, hd), c_new[:M].reshape(n, H, W, hd))


def latent_sample_and_kl(q, p, eps, z_dim):
    n, H, W, _ = q.shape
    M = n * H * W
    TR = min(_round_up(M, 8), 1024)
    Mp = _round_up(M, TR)

    def prep(t):
        return jnp.pad(t.reshape(M, t.shape[-1]), ((0, Mp - M), (0, 0)))

    z, kl = pl.pallas_call(
        functools.partial(_latent_kernel, zd=z_dim),
        out_shape=(jax.ShapeDtypeStruct((Mp, z_dim), jnp.float32),
                   jax.ShapeDtypeStruct((Mp, z_dim), jnp.float32)),
        grid_spec=pltpu.PrefetchScalarGridSpec(
            num_scalar_prefetch=0,
            grid=(Mp // TR,),
            in_specs=[pl.BlockSpec((TR, 2 * z_dim), lambda i: (i, 0)),
                      pl.BlockSpec((TR, 2 * z_dim), lambda i: (i, 0)),
                      pl.BlockSpec((TR, z_dim), lambda i: (i, 0))],
            out_specs=[pl.BlockSpec((TR, z_dim), lambda i: (i, 0)),
                       pl.BlockSpec((TR, z_dim), lambda i: (i, 0))],
        ),
        compiler_params=pltpu.CompilerParams(
            dimension_semantics=("parallel",)),
    )(prep(q), prep(p), prep(eps))
    return (z[:M].reshape(n, H, W, z_dim), kl[:M].reshape(n, H, W, z_dim))


# ---------------------------------------------------------------------------
# Parameter init (weights pre-reshaped / pre-padded / bf16-cast ONCE).
# Static metadata (kh/kw/cout/...) stays as Python ints; the forward closes
# over these dicts (they are never traced).
# ---------------------------------------------------------------------------
def _mm_conv_param(key, kh, kw, cin, cout):
    scale = float((kh * kw * cin) ** -0.5)
    w = jax.random.uniform(key, (kh, kw, cin, cout), jnp.float32, -scale, scale)
    K = kh * kw * cin
    Kp = _pad_dim(K, 128, 2048)
    Np = _pad_dim(cout, 128, 512)
    wm = jnp.zeros((Kp, Np), jnp.bfloat16)
    wm = wm.at[:K, :cout].set(w.reshape(K, cout).astype(jnp.bfloat16))
    bm = jnp.zeros((1, Np), jnp.float32)
    return {"kh": kh, "kw": kw, "cout": cout, "wm": wm, "bm": bm}


def _direct_conv_param(key, kh, kw, cin, cout):
    scale = float((kh * kw * cin) ** -0.5)
    w = jax.random.uniform(key, (kh, kw, cin, cout), jnp.float32, -scale, scale)
    return {"kh": kh, "kw": kw, "cout": cout,
            "w": w.astype(jnp.bfloat16),
            "b": jnp.zeros((1, cout), jnp.float32)}


def _split_direct_conv_param(key, kh, kw, cin_static, cin_dyn, cout):
    """One ConvLSTM-core conv split along cin into (static, dynamic) parts.

    The bias lives in the static part; the dynamic part uses zero bias so that
    static+dynamic pre-activations sum to the full conv.
    """
    cin = cin_static + cin_dyn
    scale = float((kh * kw * cin) ** -0.5)
    w = jax.random.uniform(key, (kh, kw, cin, cout), jnp.float32, -scale, scale)
    w = w.astype(jnp.bfloat16)
    p_static = {"kh": kh, "kw": kw, "cout": cout,
                "w": w[:, :, :cin_static, :],
                "b": jnp.zeros((1, cout), jnp.float32)}
    p_dyn = {"kh": kh, "kw": kw, "cout": cout,
             "w": w[:, :, cin_static:, :],
             "b": jnp.zeros((1, cout), jnp.float32)}
    return p_static, p_dyn


def _convT_param(key, cin, s, cout):
    scale = float(cin ** -0.5)
    w = jax.random.uniform(key, (cin, s, s, cout), jnp.float32, -scale, scale)
    b = jnp.zeros((cout,), jnp.float32)
    N = s * s * cout
    Kp = _pad_dim(cin, 128, 2048)
    Np = _pad_dim(N, 128, 512)
    wm = jnp.zeros((Kp, Np), jnp.bfloat16)
    wm = wm.at[:cin, :N].set(w.reshape(cin, N).astype(jnp.bfloat16))
    bm = jnp.zeros((1, Np), jnp.float32).at[0, :N].set(jnp.tile(b, s * s))
    return {"cout": cout, "n_full": N, "s": s, "wm": wm, "bm": bm}


def init_representation_params(key, c_dim, r_dim):
    ks = jax.random.split(key, 7)
    k = r_dim
    return {
        "conv1": _mm_conv_param(ks[0], 2, 2, c_dim, k),
        "conv_s1": _mm_conv_param(ks[1], 2, 2, k, k),
        "conv2": _direct_conv_param(ks[2], 3, 3, k, k // 2),
        "conv3": _mm_conv_param(ks[3], 2, 2, k // 2, k),
        "conv4": _direct_conv_param(ks[4], 3, 3, k, k // 2),
        "conv5": _direct_conv_param(ks[5], 3, 3, k // 2, k),
        "conv6": _mm_conv_param(ks[6], 1, 1, k, k),
    }


def init_generator_params(key, c_dim, r_dim, z_dim, h_dim, scale=4):
    ks = jax.random.split(key, 7)
    inf_s, inf_d = _split_direct_conv_param(ks[1], 5, 5,
                                            c_dim + r_dim, 2 * h_dim, 4 * h_dim)
    gen_s, gen_d = _split_direct_conv_param(ks[4], 5, 5,
                                            r_dim, z_dim + h_dim, 4 * h_dim)
    return {
        "downsample": _mm_conv_param(ks[0], scale, scale, c_dim, c_dim),
        "inf_core_static": inf_s, "inf_core_dyn": inf_d,
        "posterior": _direct_conv_param(ks[2], 5, 5, h_dim, 2 * z_dim),
        "prior": _direct_conv_param(ks[3], 5, 5, h_dim, 2 * z_dim),
        "gen_core_static": gen_s, "gen_core_dyn": gen_d,
        "upsample": _convT_param(ks[5], h_dim, scale, h_dim),
        "obs": _mm_conv_param(ks[6], 1, 1, h_dim, c_dim),
    }


# ---------------------------------------------------------------------------
# Model forward
# ---------------------------------------------------------------------------
def representation_forward(params, x):  # x: NHWC
    h1 = conv2d_mm(x, params["conv1"], stride=2, act="relu")
    s1 = conv2d_mm(h1, params["conv_s1"], stride=2, act="relu")
    h2 = conv2d_direct(h1, params["conv2"], pad=1, act="relu")
    h3 = conv2d_mm(h2, params["conv3"], stride=2, act="relu") + s1
    h4 = conv2d_direct(h3, params["conv4"], pad=1, act="relu")
    h5 = conv2d_direct(h4, params["conv5"], pad=1, act="relu") + h3
    h6 = conv2d_mm(h5, params["conv6"], stride=1, act="relu")
    return jnp.mean(h6, axis=(1, 2))  # pooled representation [n, r_dim]


def generator_forward(params, x, r, key, z_dim, h_dim, L, scale=4):
    n, H, W, _ = x.shape
    Hq, Wq = H // scale, W // scale
    r_b = jnp.broadcast_to(r.reshape(n, 1, 1, -1), (n, Hq, Wq, r.shape[-1]))
    x_ds = conv2d_mm(x, params["downsample"], stride=scale)

    # step-invariant ConvLSTM gate pre-activations (computed once, reused L times)
    inf_static = conv2d_direct(jnp.concatenate([x_ds, r_b], axis=-1),
                               params["inf_core_static"], pad=2)
    gen_static = conv2d_direct(r_b, params["gen_core_static"], pad=2)

    h_g = jnp.zeros((n, Hq, Wq, h_dim), jnp.float32)
    c_g = jnp.zeros_like(h_g)
    h_e = jnp.zeros_like(h_g)
    c_e = jnp.zeros_like(h_g)
    u = jnp.zeros((n, H, W, h_dim), jnp.float32)
    kl = jnp.zeros((n, Hq, Wq, z_dim), jnp.float32)

    for _ in range(L):
        key, sub = jax.random.split(key)
        # inference core (dynamic channels: h_g, h_e)
        inf_dyn = conv2d_direct(jnp.concatenate([h_g, h_e], axis=-1),
                                params["inf_core_dyn"], pad=2)
        h_e, c_e = lstm_gate_update(inf_dyn, inf_static, c_e)
        # posterior / prior densities and latent sample + KL
        q = conv2d_direct(h_e, params["posterior"], pad=2)
        p = conv2d_direct(h_g, params["prior"], pad=2)
        eps = jax.random.normal(sub, (n, Hq, Wq, z_dim), jnp.float32)
        z, kl_l = latent_sample_and_kl(q, p, eps, z_dim)
        kl = kl + kl_l
        # generator core (dynamic channels: z, h_g)
        gen_dyn = conv2d_direct(jnp.concatenate([z, h_g], axis=-1),
                                params["gen_core_dyn"], pad=2)
        h_g, c_g = lstm_gate_update(gen_dyn, gen_static, c_g)
        # canvas update
        u = u + conv_transpose_s(h_g, params["upsample"], scale)

    x_mu = conv2d_mm(u, params["obs"], stride=1, pad=0)
    return x_mu, kl


def make_forward(rep_params, gen_params, z_dim, h_dim, L):
    """Build a jitted forward.  Params (incl. Python-int metadata) are captured
    by closure so the static ints never become tracers."""

    def fwd(x_nchw, key):
        x = jnp.transpose(x_nchw, (0, 2, 3, 1)).astype(jnp.float32)  # -> NHWC
        r = representation_forward(rep_params, x)
        x_mu, kl = generator_forward(gen_params, x, r, key, z_dim, h_dim, L)
        x_mu_nchw = jnp.transpose(x_mu, (0, 3, 1, 2))
        kl_nchw = jnp.transpose(kl, (0, 3, 1, 2))
        r_out = r.reshape(r.shape[0], r.shape[1], 1, 1)
        return x_mu_nchw, r_out, kl_nchw

    return jax.jit(fwd)


class VAE:
    """Single-image VAE version of GQN (forward only)."""

    def __init__(self, c_dim, r_dim, z_dim=3, h_dim=128, l=8,
                 key=jax.random.PRNGKey(42)):
        self.c_dim, self.r_dim = c_dim, r_dim
        self.z_dim, self.h_dim, self.l = z_dim, h_dim, l
        k1, k2 = jax.random.split(key)
        self.rep_params = init_representation_params(k1, c_dim, r_dim)
        self.gen_params = init_generator_params(k2, c_dim, r_dim, z_dim, h_dim)
        self._fwd = make_forward(self.rep_params, self.gen_params,
                                 z_dim, h_dim, l)

    def forward(self, x_nchw, key):
        return self._fwd(x_nchw, key)


if __name__ == "__main__":
    key = jax.random.PRNGKey(0)
    kx, kp, ks = jax.random.split(key, 3)

    b, c_dim, Himg, Wimg = 2, 3, 16, 16
    r_dim, z_dim, h_dim, L = 32, 3, 32, 2  # small shapes for the example

    x = jax.random.normal(kx, (b, c_dim, Himg, Wimg), jnp.float32)
    model = VAE(c_dim, r_dim, z_dim=z_dim, h_dim=h_dim, l=L, key=kp)

    x_mu, r, kl = model.forward(x, ks)
    jax.block_until_ready((x_mu, r, kl))

    assert x_mu.shape == (b, c_dim, Himg, Wimg)
    assert r.shape == (b, r_dim, 1, 1)
    assert kl.shape == (b, z_dim, Himg // 4, Wimg // 4)
    assert bool(jnp.all(jnp.isfinite(x_mu))) and bool(jnp.all(jnp.isfinite(kl)))
    print("KERNEL_OK")
</pallas_src>

<mosaic_0001>
module attributes {stable_mosaic.version = 11 : i64} {
  func.func @_matmul_kernel(%arg0: i32, %arg1: i32, %arg2: i32, %arg3: memref<32x128xbf16, #tpu.memory_space<vmem>>, %arg4: memref<128x128xbf16, #tpu.memory_space<vmem>>, %arg5: memref<1x128xf32, #tpu.memory_space<vmem>>, %arg6: memref<32x128xf32, #tpu.memory_space<vmem>>, %arg7: memref<32x128xf32, #tpu.memory_space<vmem>>) attributes {dimension_semantics = [#tpu.dimension_semantics<parallel>, #tpu.dimension_semantics<parallel>, #tpu.dimension_semantics<arbitrary>], iteration_bounds = array<i64: 1, 1, 1>, scalar_prefetch = 0 : i64, scratch_operands = 1 : i64, tpu.core_type = #tpu.core_type<tc>, window_params = [{transform_indices = @transform_0, window_bounds = array<i64: 32, 128>}, {transform_indices = @transform_1, window_bounds = array<i64: 128, 128>}, {transform_indices = @transform_2, window_bounds = array<i64: 1, 128>}, {transform_indices = @transform_3, window_bounds = array<i64: 32, 128>}]} {
    %c0_i32 = arith.constant 0 : i32
    %0 = arith.cmpi eq, %arg2, %c0_i32 : i32
    %1 = arith.extui %0 : i1 to i32
    %c0_i32_0 = arith.constant 0 : i32
    %2 = arith.cmpi ne, %1, %c0_i32_0 : i32
    scf.if %2 {
      %cst_10 = arith.constant 0.000000e+00 : f32
      %12 = vector.broadcast %cst_10 : f32 to vector<32x128xf32>
      %c0_11 = arith.constant 0 : index
      %c0_12 = arith.constant 0 : index
      %13 = vector.load %arg7[%c0_11, %c0_12] : memref<32x128xf32, #tpu.memory_space<vmem>>, vector<32x128xf32>
      tpu.vector_store %arg7[%c0_11, %c0_12], %12 {strides = array<i32>} : memref<32x128xf32, #tpu.memory_space<vmem>>, vector<32x128xf32>,
    } else {
    }
    %c0 = arith.constant 0 : index
    %c0_1 = arith.constant 0 : index
    %3 = vector.load %arg7[%c0, %c0_1] : memref<32x128xf32, #tpu.memory_space<vmem>>, vector<32x128xf32>
    %c0_2 = arith.constant 0 : index
    %c0_3 = arith.constant 0 : index
    %4 = vector.load %arg3[%c0_2, %c0_3] : memref<32x128xbf16, #tpu.memory_space<vmem>>, vector<32x128xbf16>
    %c0_4 = arith.constant 0 : index
    %c0_5 = arith.constant 0 : index
    %5 = vector.load %arg4[%c0_4, %c0_5] : memref<128x128xbf16, #tpu.memory_space<vmem>>, vector<128x128xbf16>
    %cst = arith.constant dense<0.000000e+00> : vector<32x128xf32>
    %6 = tpu.matmul %4, %5, %cst {dimension_numbers = #tpu.dot_dimension_numbers<[1], [0], [0], [1], [0, 0, 1, 1], [], []>} : vector<32x128xbf16>, vector<128x128xbf16>, vector<32x128xf32> -> vector<32x128xf32>
    %7 = arith.addf %3, %6 : vector<32x128xf32>
    %c0_6 = arith.constant 0 : index
    %c0_7 = arith.constant 0 : index
    %8 = vector.load %arg7[%c0_6, %c0_7] : memref<32x128xf32, #tpu.memory_space<vmem>>, vector<32x128xf32>
    tpu.vector_store %arg7[%c0_6, %c0_7], %7 {strides = array<i32>} : memref<32x128xf32, #tpu.memory_space<vmem>>, vector<32x128xf32>,
    %c0_i32_8 = arith.constant 0 : i32
    %9 = arith.cmpi eq, %arg2, %c0_i32_8 : i32
    %10 = arith.extui %9 : i1 to i32
    %c0_i32_9 = arith.constant 0 : i32
    %11 = arith.cmpi ne, %10, %c0_i32_9 : i32
    scf.if %11 {
      %c0_10 = arith.constant 0 : index
      %c0_11 = arith.constant 0 : index
      %12 = vector.load %arg7[%c0_10, %c0_11] : memref<32x128xf32, #tpu.memory_space<vmem>>, vector<32x128xf32>
      %c0_12 = arith.constant 0 : index
      %c0_13 = arith.constant 0 : index
      %13 = vector.load %arg5[%c0_12, %c0_13] : memref<1x128xf32, #tpu.memory_space<vmem>>, vector<1x128xf32>
      %14 = vector.broadcast %13 : vector<1x128xf32> to vector<32x128xf32>
      %15 = arith.addf %12, %14 : vector<32x128xf32>
      %c0_14 = arith.constant 0 : index
      %c0_15 = arith.constant 0 : index
      %16 = vector.load %arg6[%c0_14, %c0_15] : memref<32x128xf32, #tpu.memory_space<vmem>>, vector<32x128xf32>
      tpu.vector_store %arg6[%c0_14, %c0_15], %15 {strides = array<i32>} : memref<32x128xf32, #tpu.memory_space<vmem>>, vector<32x128xf32>,
    } else {
    }
    return
  }
  func.func @transform_0(%arg0: i32, %arg1: i32, %arg2: i32) -> (i32, i32) {
    %c0_i32 = arith.constant 0 : i32
    return %arg0, %arg2 : i32, i32
  }
  func.func @transform_1(%arg0: i32, %arg1: i32, %arg2: i32) -> (i32, i32) {
    %c0_i32 = arith.constant 0 : i32
    return %arg2, %arg1 : i32, i32
  }
  func.func @transform_2(%arg0: i32, %arg1: i32, %arg2: i32) -> (i32, i32) {
    %c0_i32 = arith.constant 0 : i32
    %c0_i32_0 = arith.constant 0 : i32
    return %c0_i32, %arg1 : i32, i32
  }
  func.func @transform_3(%arg0: i32, %arg1: i32, %arg2: i32) -> (i32, i32) {
    %c0_i32 = arith.constant 0 : i32
    return %arg0, %arg1 : i32, i32
  }
}

module attributes {stable_mosaic.version = 11 : i64} {
  func.func @_matmul_kernel(%arg0: i32, %arg1: i32, %arg2: i32, %arg3: memref<128x128xbf16, #tpu.memory_space<vmem>>, %arg4: memref<128x128xbf16, #tpu.memory_space<vmem>>, %arg5: memref<1x128xf32, #tpu.memory_space<vmem>>, %arg6: memref<128x128xf32, #tpu.memory_space<vmem>>, %arg7: memref<128x128xf32, #tpu.memory_space<vmem>>) attributes {dimension_semantics = [#tpu.dimension_semantics<parallel>, #tpu.dimension_semantics<parallel>, #tpu.dimension_semantics<arbitrary>], iteration_bounds = array<i64: 1, 1, 1>, scalar_prefetch = 0 : i64, scratch_operands = 1 : i64, tpu.core_type = #tpu.core_type<tc>, window_params = [{transform_indices = @transform_0, window_bounds = array<i64: 128, 128>}, {transform_indices = @transform_1, window_bounds = array<i64: 128, 128>}, {transform_indices = @transform_2, window_bounds = array<i64: 1, 128>}, {transform_indices = @transform_3, window_bounds = array<i64: 128, 128>}]} {
    %c0_i32 = arith.constant 0 : i32
    %0 = arith.cmpi eq, %arg2, %c0_i32 : i32
    %1 = arith.extui %0 : i1 to i32
    %c0_i32_0 = arith.constant 0 : i32
    %2 = arith.cmpi ne, %1, %c0_i32_0 : i32
    scf.if %2 {
      %cst_10 = arith.constant 0.000000e+00 : f32
      %12 = vector.broadcast %cst_10 : f32 to vector<128x128xf32>
      %c0_11 = arith.constant 0 : index
      %c0_12 = arith.constant 0 : index
      %13 = vector.load %arg7[%c0_11, %c0_12] : memref<128x128xf32, #tpu.memory_space<vmem>>, vector<128x128xf32>
      tpu.vector_store %arg7[%c0_11, %c0_12], %12 {strides = array<i32>} : memref<128x128xf32, #tpu.memory_space<vmem>>, vector<128x128xf32>,
    } else {
    }
    %c0 = arith.constant 0 : index
    %c0_1 = arith.constant 0 : index
    %3 = vector.load %arg7[%c0, %c0_1] : memref<128x128xf32, #tpu.memory_space<vmem>>, vector<128x128xf32>
    %c0_2 = arith.constant 0 : index
    %c0_3 = arith.constant 0 : index
    %4 = vector.load %arg3[%c0_2, %c0_3] : memref<128x128xbf16, #tpu.memory_space<vmem>>, vector<128x128xbf16>
    %c0_4 = arith.constant 0 : index
    %c0_5 = arith.constant 0 : index
    %5 = vector.load %arg4[%c0_4, %c0_5] : memref<128x128xbf16, #tpu.memory_space<vmem>>, vector<128x128xbf16>
    %cst = arith.constant dense<0.000000e+00> : vector<128x128xf32>
    %6 = tpu.matmul %4, %5, %cst {dimension_numbers = #tpu.dot_dimension_numbers<[1], [0], [0], [1], [0, 0, 1, 1], [], []>} : vector<128x128xbf16>, vector<128x128xbf16>, vector<128x128xf32> -> vector<128x128xf32>
    %7 = arith.addf %3, %6 : vector<128x128xf32>
    %c0_6 = arith.constant 0 : index
    %c0_7 = arith.constant 0 : index
    %8 = vector.load %arg7[%c0_6, %c0_7] : memref<128x128xf32, #tpu.memory_space<vmem>>, vector<128x128xf32>
    tpu.vector_store %arg7[%c0_6, %c0_7], %7 {strides = array<i32>} : memref<128x128xf32, #tpu.memory_space<vmem>>, vector<128x128xf32>,
    %c0_i32_8 = arith.constant 0 : i32
    %9 = arith.cmpi eq, %arg2, %c0_i32_8 : i32
    %10 = arith.extui %9 : i1 to i32
    %c0_i32_9 = arith.constant 0 : i32
    %11 = arith.cmpi ne, %10, %c0_i32_9 : i32
    scf.if %11 {
      %c0_10 = arith.constant 0 : index
      %c0_11 = arith.constant 0 : index
      %12 = vector.load %arg7[%c0_10, %c0_11] : memref<128x128xf32, #tpu.memory_space<vmem>>, vector<128x128xf32>
      %c0_12 = arith.constant 0 : index
      %c0_13 = arith.constant 0 : index
      %13 = vector.load %arg5[%c0_12, %c0_13] : memref<1x128xf32, #tpu.memory_space<vmem>>, vector<1x128xf32>
      %14 = vector.broadcast %13 : vector<1x128xf32> to vector<128x128xf32>
      %15 = arith.addf %12, %14 : vector<128x128xf32>
      %cst_14 = arith.constant 0.000000e+00 : f32
      %16 = vector.broadcast %cst_14 : f32 to vector<128x128xf32>
      %17 = arith.maximumf %15, %16 : vector<128x128xf32>
      %c0_15 = arith.constant 0 : index
      %c0_16 = arith.constant 0 : index
      %18 = vector.load %arg6[%c0_15, %c0_16] : memref<128x128xf32, #tpu.memory_space<vmem>>, vector<128x128xf32>
      tpu.vector_store %arg6[%c0_15, %c0_16], %17 {strides = array<i32>} : memref<128x128xf32, #tpu.memory_space<vmem>>, vector<128x128xf32>,
    } else {
    }
    return
  }
  func.func @transform_0(%arg0: i32, %arg1: i32, %arg2: i32) -> (i32, i32) {
    %c0_i32 = arith.constant 0 : i32
    return %arg0, %arg2 : i32, i32
  }
  func.func @transform_1(%arg0: i32, %arg1: i32, %arg2: i32) -> (i32, i32) {
    %c0_i32 = arith.constant 0 : i32
    return %arg2, %arg1 : i32, i32
  }
  func.func @transform_2(%arg0: i32, %arg1: i32, %arg2: i32) -> (i32, i32) {
    %c0_i32 = arith.constant 0 : i32
    %c0_i32_0 = arith.constant 0 : i32
    return %c0_i32, %arg1 : i32, i32
  }
  func.func @transform_3(%arg0: i32, %arg1: i32, %arg2: i32) -> (i32, i32) {
    %c0_i32 = arith.constant 0 : i32
    return %arg0, %arg1 : i32, i32
  }
}

module attributes {stable_mosaic.version = 11 : i64} {
  func.func @_conv_direct_kernel(%arg0: i32, %arg1: memref<1x100x32xbf16, #tpu.memory_space<vmem>>, %arg2: memref<3x3x32x16xbf16, #tpu.memory_space<vmem>>, %arg3: memref<1x16xf32, #tpu.memory_space<vmem>>, %arg4: memref<1x78x16xf32, #tpu.memory_space<vmem>>) attributes {dimension_semantics = [#tpu.dimension_semantics<parallel>], iteration_bounds = array<i64: 2>, scalar_prefetch = 0 : i64, scratch_operands = 0 : i64, tpu.core_type = #tpu.core_type<tc>, window_params = [{transform_indices = @transform_0, window_bounds = array<i64: 1, 100, 32>}, {pipeline_mode = #tpu.pipeline_mode<synchronous>, transform_indices = @transform_1, window_bounds = array<i64: 3, 3, 32, 16>}, {pipeline_mode = #tpu.pipeline_mode<synchronous>, transform_indices = @transform_2, window_bounds = array<i64: 1, 16>}, {transform_indices = @transform_3, window_bounds = array<i64: 1, 78, 16>}]} {
    %cst = arith.constant 0.000000e+00 : f32
    %0 = vector.broadcast %cst : f32 to vector<78x16xf32>
    %c0 = arith.constant 0 : index
    %c0_0 = arith.constant 0 : index
    %c0_1 = arith.constant 0 : index
    %1 = vector.load %arg1[%c0, %c0_0, %c0_1] : memref<1x100x32xbf16, #tpu.memory_space<vmem>>, vector<1x78x32xbf16>
    %2 = vector.shape_cast %1 : vector<1x78x32xbf16> to vector<78x32xbf16>
    %c0_2 = arith.constant 0 : index
    %c0_3 = arith.constant 0 : index
    %c0_4 = arith.constant 0 : index
    %c0_5 = arith.constant 0 : index
    %3 = vector.load %arg2[%c0_2, %c0_3, %c0_4, %c0_5] : memref<3x3x32x16xbf16, #tpu.memory_space<vmem>>, vector<1x1x32x16xbf16>
    %4 = vector.shape_cast %3 : vector<1x1x32x16xbf16> to vector<32x16xbf16>
    %cst_6 = arith.constant dense<0.000000e+00> : vector<78x16xf32>
    %5 = tpu.matmul %2, %4, %cst_6 {dimension_numbers = #tpu.dot_dimension_numbers<[1], [0], [0], [1], [0, 0, 1, 1], [], []>} : vector<78x32xbf16>, vector<32x16xbf16>, vector<78x16xf32> -> vector<78x16xf32>
    %6 = arith.addf %0, %5 : vector<78x16xf32>
    %c0_7 = arith.constant 0 : index
    %c1 = arith.constant 1 : index
    %c0_8 = arith.constant 0 : index
    %7 = vector.load %arg1[%c0_7, %c1, %c0_8] : memref<1x100x32xbf16, #tpu.memory_space<vmem>>, vector<1x78x32xbf16>
    %8 = vector.shape_cast %7 : vector<1x78x32xbf16> to vector<78x32xbf16>
    %c0_9 = arith.constant 0 : index
    %c1_10 = arith.constant 1 : index
    %c0_11 = arith.constant 0 : index
    %c0_12 = arith.constant 0 : index
    %9 = vector.load %arg2[%c0_9, %c1_10, %c0_11, %c0_12] : memref<3x3x32x16xbf16, #tpu.memory_space<vmem>>, vector<1x1x32x16xbf16>
    %10 = vector.shape_cast %9 : vector<1x1x32x16xbf16> to vector<32x16xbf16>
    %cst_13 = arith.constant dense<0.000000e+00> : vector<78x16xf32>
    %11 = tpu.matmul %8, %10, %cst_13 {dimension_numbers = #tpu.dot_dimension_numbers<[1], [0], [0], [1], [0, 0, 1, 1], [], []>} : vector<78x32xbf16>, vector<32x16xbf16>, vector<78x16xf32> -> vector<78x16xf32>
    %12 = arith.addf %6, %11 : vector<78x16xf32>
    %c0_14 = arith.constant 0 : index
    %c2 = arith.constant 2 : index
    %c0_15 = arith.constant 0 : index
    %13 = vector.load %arg1[%c0_14, %c2, %c0_15] : memref<1x100x32xbf16, #tpu.memory_space<vmem>>, vector<1x78x32xbf16>
    %14 = vector.shape_cast %13 : vector<1x78x32xbf16> to vector<78x32xbf16>
    %c0_16 = arith.constant 0 : index
    %c2_17 = arith.constant 2 : index
    %c0_18 = arith.constant 0 : index
    %c0_19 = arith.constant 0 : index
    %15 = vector.load %arg2[%c0_16, %c2_17, %c0_18, %c0_19] : memref<3x3x32x16xbf16, #tpu.memory_space<vmem>>, vector<1x1x32x16xbf16>
    %16 = vector.shape_cast %15 : vector<1x1x32x16xbf16> to vector<32x16xbf16>
    %cst_20 = arith.constant dense<0.000000e+00> : vector<78x16xf32>
    %17 = tpu.matmul %14, %16, %cst_20 {dimension_numbers = #tpu.dot_dimension_numbers<[1], [0], [0], [1], [0, 0, 1, 1], [], []>} : vector<78x32xbf16>, vector<32x16xbf16>, vector<78x16xf32> -> vector<78x16xf32>
    %18 = arith.addf %12, %17 : vector<78x16xf32>
    %c0_21 = arith.constant 0 : index
    %c10 = arith.constant 10 : index
    %c0_22 = arith.constant 0 : index
    %19 = vector.load %arg1[%c0_21, %c10, %c0_22] : memref<1x100x32xbf16, #tpu.memory_space<vmem>>, vector<1x78x32xbf16>
    %20 = vector.shape_cast %19 : vector<1x78x32xbf16> to vector<78x32xbf16>
    %c1_23 = arith.constant 1 : index
    %c0_24 = arith.constant 0 : index
    %c0_25 = arith.constant 0 : index
    %c0_26 = arith.constant 0 : index
    %21 = vector.load %arg2[%c1_23, %c0_24, %c0_25, %c0_26] : memref<3x3x32x16xbf16, #tpu.memory_space<vmem>>, vector<1x1x32x16xbf16>
    %22 = vector.shape_cast %21 : vector<1x1x32x16xbf16> to vector<32x16xbf16>
    %cst_27 = arith.constant dense<0.000000e+00> : vector<78x16xf32>
    %23 = tpu.matmul %20, %22, %cst_27 {dimension_numbers = #tpu.dot_dimension_numbers<[1], [0], [0], [1], [0, 0, 1, 1], [], []>} : vector<78x32xbf16>, vector<32x16xbf16>, vector<78x16xf32> -> vector<78x16xf32>
    %24 = arith.addf %18, %23 : vector<78x16xf32>
    %c0_28 = arith.constant 0 : index
    %c11 = arith.constant 11 : index
    %c0_29 = arith.constant 0 : index
    %25 = vector.load %arg1[%c0_28, %c11, %c0_29] : memref<1x100x32xbf16, #tpu.memory_space<vmem>>, vector<1x78x32xbf16>
    %26 = vector.shape_cast %25 : vector<1x78x32xbf16> to vector<78x32xbf16>
    %c1_30 = arith.constant 1 : index
    %c1_31 = arith.constant 1 : index
    %c0_32 = arith.constant 0 : index
    %c0_33 = arith.constant 0 : index
    %27 = vector.load %arg2[%c1_30, %c1_31, %c0_32, %c0_33] : memref<3x3x32x16xbf16, #tpu.memory_space<vmem>>, vector<1x1x32x16xbf16>
    %28 = vector.shape_cast %27 : vector<1x1x32x16xbf16> to vector<32x16xbf16>
    %cst_34 = arith.constant dense<0.000000e+00> : vector<78x16xf32>
    %29 = tpu.matmul %26, %28, %cst_34 {dimension_numbers = #tpu.dot_dimension_numbers<[1], [0], [0], [1], [0, 0, 1, 1], [], []>} : vector<78x32xbf16>, vector<32x16xbf16>, vector<78x16xf32> -> vector<78x16xf32>
    %30 = arith.addf %24, %29 : vector<78x16xf32>
    %c0_35 = arith.constant 0 : index
    %c12 = arith.constant 12 : index
    %c0_36 = arith.constant 0 : index
    %31 = vector.load %arg1[%c0_35, %c12, %c0_36] : memref<1x100x32xbf16, #tpu.memory_space<vmem>>, vector<1x78x32xbf16>
    %32 = vector.shape_cast %31 : vector<1x78x32xbf16> to vector<78x32xbf16>
    %c1_37 = arith.constant 1 : index
    %c2_38 = arith.constant 2 : index
    %c0_39 = arith.constant 0 : index
    %c0_40 = arith.constant 0 : index
    %33 = vector.load %arg2[%c1_37, %c2_38, %c0_39, %c0_40] : memref<3x3x32x16xbf16, #tpu.memory_space<vmem>>, vector<1x1x32x16xbf16>
    %34 = vector.shape_cast %33 : vector<1x1x32x16xbf16> to vector<32x16xbf16>
    %cst_41 = arith.constant dense<0.000000e+00> : vector<78x16xf32>
    %35 = tpu.matmul %32, %34, %cst_41 {dimension_numbers = #tpu.dot_dimension_numbers<[1], [0], [0], [1], [0, 0, 1, 1], [], []>} : vector<78x32xbf16>, vector<32x16xbf16>, vector<78x16xf32> -> vector<78x16xf32>
    %36 = arith.addf %30, %35 : vector<78x16xf32>
    %c0_42 = arith.constant 0 : index
    %c20 = arith.constant 20 : index
    %c0_43 = arith.constant 0 : index
    %37 = vector.load %arg1[%c0_42, %c20, %c0_43] : memref<1x100x32xbf16, #tpu.memory_space<vmem>>, vector<1x78x32xbf16>
    %38 = vector.shape_cast %37 : vector<1x78x32xbf16> to vector<78x32xbf16>
    %c2_44 = arith.constant 2 : index
    %c0_45 = arith.constant 0 : index
    %c0_46 = arith.constant 0 : index
    %c0_47 = arith.constant 0 : index
    %39 = vector.load %arg2[%c2_44, %c0_45, %c0_46, %c0_47] : memref<3x3x32x16xbf16, #tpu.memory_space<vmem>>, vector<1x1x32x16xbf16>
    %40 = vector.shape_cast %39 : vector<1x1x32x16xbf16> to vector<32x16xbf16>
    %cst_48 = arith.constant dense<0.000000e+00> : vector<78x16xf32>
    %41 = tpu.matmul %38, %40, %cst_48 {dimension_numbers = #tpu.dot_dimension_numbers<[1], [0], [0], [1], [0, 0, 1, 1], [], []>} : vector<78x32xbf16>, vector<32x16xbf16>, vector<78x16xf32> -> vector<78x16xf32>
    %42 = arith.addf %36, %41 : vector<78x16xf32>
    %c0_49 = arith.constant 0 : index
    %c21 = arith.constant 21 : index
    %c0_50 = arith.constant 0 : index
    %43 = vector.load %arg1[%c0_49, %c21, %c0_50] : memref<1x100x32xbf16, #tpu.memory_space<vmem>>, vector<1x78x32xbf16>
    %44 = vector.shape_cast %43 : vector<1x78x32xbf16> to vector<78x32xbf16>
    %c2_51 = arith.constant 2 : index
    %c1_52 = arith.constant 1 : index
    %c0_53 = arith.constant 0 : index
    %c0_54 = arith.constant 0 : index
    %45 = vector.load %arg2[%c2_51, %c1_52, %c0_53, %c0_54] : memref<3x3x32x16xbf16, #tpu.memory_space<vmem>>, vector<1x1x32x16xbf16>
    %46 = vector.shape_cast %45 : vector<1x1x32x16xbf16> to vector<32x16xbf16>
    %cst_55 = arith.constant dense<0.000000e+00> : vector<78x16xf32>
    %47 = tpu.matmul %44, %46, %cst_55 {dimension_numbers = #tpu.dot_dimension_numbers<[1], [0], [0], [1], [0, 0, 1, 1], [], []>} : vector<78x32xbf16>, vector<32x16xbf16>, vector<78x16xf32> -> vector<78x16xf32>
    %48 = arith.addf %42, %47 : vector<78x16xf32>
    %c0_56 = arith.constant 0 : index
    %c22 = arith.constant 22 : index
    %c0_57 = arith.constant 0 : index
    %49 = vector.load %arg1[%c0_56, %c22, %c0_57] : memref<1x100x32xbf16, #tpu.memory_space<vmem>>, vector<1x78x32xbf16>
    %50 = vector.shape_cast %49 : vector<1x78x32xbf16> to vector<78x32xbf16>
    %c2_58 = arith.constant 2 : index
    %c2_59 = arith.constant 2 : index
    %c0_60 = arith.constant 0 : index
    %c0_61 = arith.constant 0 : index
    %51 = vector.load %arg2[%c2_58, %c2_59, %c0_60, %c0_61] : memref<3x3x32x16xbf16, #tpu.memory_space<vmem>>, vector<1x1x32x16xbf16>
    %52 = vector.shape_cast %51 : vector<1x1x32x16xbf16> to vector<32x16xbf16>
    %cst_62 = arith.constant dense<0.000000e+00> : vector<78x16xf32>
    %53 = tpu.matmul %50, %52, %cst_62 {dimension_numbers = #tpu.dot_dimension_numbers<[1], [0], [0], [1], [0, 0, 1, 1], [], []>} : vector<78x32xbf16>, vector<32x16xbf16>, vector<78x16xf32> -> vector<78x16xf32>
    %54 = arith.addf %48, %53 : vector<78x16xf32>
    %c0_63 = arith.constant 0 : index
    %c0_64 = arith.constant 0 : index
    %55 = vector.load %arg3[%c0_63, %c0_64] : memref<1x16xf32, #tpu.memory_space<vmem>>, vector<1x16xf32>
    %56 = vector.broadcast %55 : vector<1x16xf32> to vector<78x16xf32>
    %57 = arith.addf %54, %56 : vector<78x16xf32>
    %cst_65 = arith.constant 0.000000e+00 : f32
    %58 = vector.broadcast %cst_65 : f32 to vector<78x16xf32>
    %59 = arith.maximumf %57, %58 : vector<78x16xf32>
    %c0_66 = arith.constant 0 : index
    %c0_67 = arith.constant 0 : index
    %c0_68 = arith.constant 0 : index
    %60 = vector.load %arg4[%c0_66, %c0_67, %c0_68] : memref<1x78x16xf32, #tpu.memory_space<vmem>>, vector<1x78x16xf32>
    %61 = vector.shape_cast %60 : vector<1x78x16xf32> to vector<78x16xf32>
    %62 = vector.shape_cast %59 : vector<78x16xf32> to vector<1x78x16xf32>
    tpu.vector_store %arg4[%c0_66, %c0_67, %c0_68], %62 {strides = array<i32>} : memref<1x78x16xf32, #tpu.memory_space<vmem>>, vector<1x78x16xf32>,
    return
  }
  func.func @transform_0(%arg0: i32) -> (i32, i32, i32) {
    %c0_i32 = arith.constant 0 : i32
    %c0_i32_0 = arith.constant 0 : i32
    %c0_i32_1 = arith.constant 0 : i32
    return %arg0, %c0_i32, %c0_i32_0 : i32, i32, i32
  }
  func.func @transform_1(%arg0: i32) -> (i32, i32, i32, i32) {
    %c0_i32 = arith.constant 0 : i32
    %c0_i32_0 = arith.constant 0 : i32
    %c0_i32_1 = arith.constant 0 : i32
    %c0_i32_2 = arith.constant 0 : i32
    %c0_i32_3 = arith.constant 0 : i32
    return %c0_i32, %c0_i32_0, %c0_i32_1, %c0_i32_2 : i32, i32, i32, i32
  }
  func.func @transform_2(%arg0: i32) -> (i32, i32) {
    %c0_i32 = arith.constant 0 : i32
    %c0_i32_0 = arith.constant 0 : i32
    %c0_i32_1 = arith.constant 0 : i32
    return %c0_i32, %c0_i32_0 : i32, i32
  }
  func.func @transform_3(%arg0: i32) -> (i32, i32, i32) {
    %c0_i32 = arith.constant 0 : i32
    %c0_i32_0 = arith.constant 0 : i32
    %c0_i32_1 = arith.constant 0 : i32
    return %arg0, %c0_i32, %c0_i32_0 : i32, i32, i32
  }
}

module attributes {stable_mosaic.version = 11 : i64} {
  func.func @_matmul_kernel(%arg0: i32, %arg1: i32, %arg2: i32, %arg3: memref<32x128xbf16, #tpu.memory_space<vmem>>, %arg4: memref<128x128xbf16, #tpu.memory_space<vmem>>, %arg5: memref<1x128xf32, #tpu.memory_space<vmem>>, %arg6: memref<32x128xf32, #tpu.memory_space<vmem>>, %arg7: memref<32x128xf32, #tpu.memory_space<vmem>>) attributes {dimension_semantics = [#tpu.dimension_semantics<parallel>, #tpu.dimension_semantics<parallel>, #tpu.dimension_semantics<arbitrary>], iteration_bounds = array<i64: 1, 1, 1>, scalar_prefetch = 0 : i64, scratch_operands = 1 : i64, tpu.core_type = #tpu.core_type<tc>, window_params = [{transform_indices = @transform_0, window_bounds = array<i64: 32, 128>}, {transform_indices = @transform_1, window_bounds = array<i64: 128, 128>}, {transform_indices = @transform_2, window_bounds = array<i64: 1, 128>}, {transform_indices = @transform_3, window_bounds = array<i64: 32, 128>}]} {
    %c0_i32 = arith.constant 0 : i32
    %0 = arith.cmpi eq, %arg2, %c0_i32 : i32
    %1 = arith.extui %0 : i1 to i32
    %c0_i32_0 = arith.constant 0 : i32
    %2 = arith.cmpi ne, %1, %c0_i32_0 : i32
    scf.if %2 {
      %cst_10 = arith.constant 0.000000e+00 : f32
      %12 = vector.broadcast %cst_10 : f32 to vector<32x128xf32>
      %c0_11 = arith.constant 0 : index
      %c0_12 = arith.constant 0 : index
      %13 = vector.load %arg7[%c0_11, %c0_12] : memref<32x128xf32, #tpu.memory_space<vmem>>, vector<32x128xf32>
      tpu.vector_store %arg7[%c0_11, %c0_12], %12 {strides = array<i32>} : memref<32x128xf32, #tpu.memory_space<vmem>>, vector<32x128xf32>,
    } else {
    }
    %c0 = arith.constant 0 : index
    %c0_1 = arith.constant 0 : index
    %3 = vector.load %arg7[%c0, %c0_1] : memref<32x128xf32, #tpu.memory_space<vmem>>, vector<32x128xf32>
    %c0_2 = arith.constant 0 : index
    %c0_3 = arith.constant 0 : index
    %4 = vector.load %arg3[%c0_2, %c0_3] : memref<32x128xbf16, #tpu.memory_space<vmem>>, vector<32x128xbf16>
    %c0_4 = arith.constant 0 : index
    %c0_5 = arith.constant 0 : index
    %5 = vector.load %arg4[%c0_4, %c0_5] : memref<128x128xbf16, #tpu.memory_space<vmem>>, vector<128x128xbf16>
    %cst = arith.constant dense<0.000000e+00> : vector<32x128xf32>
    %6 = tpu.matmul %4, %5, %cst {dimension_numbers = #tpu.dot_dimension_numbers<[1], [0], [0], [1], [0, 0, 1, 1], [], []>} : vector<32x128xbf16>, vector<128x128xbf16>, vector<32x128xf32> -> vector<32x128xf32>
    %7 = arith.addf %3, %6 : vector<32x128xf32>
    %c0_6 = arith.constant 0 : index
    %c0_7 = arith.constant 0 : index
    %8 = vector.load %arg7[%c0_6, %c0_7] : memref<32x128xf32, #tpu.memory_space<vmem>>, vector<32x128xf32>
    tpu.vector_store %arg7[%c0_6, %c0_7], %7 {strides = array<i32>} : memref<32x128xf32, #tpu.memory_space<vmem>>, vector<32x128xf32>,
    %c0_i32_8 = arith.constant 0 : i32
    %9 = arith.cmpi eq, %arg2, %c0_i32_8 : i32
    %10 = arith.extui %9 : i1 to i32
    %c0_i32_9 = arith.constant 0 : i32
    %11 = arith.cmpi ne, %10, %c0_i32_9 : i32
    scf.if %11 {
      %c0_10 = arith.constant 0 : index
      %c0_11 = arith.constant 0 : index
      %12 = vector.load %arg7[%c0_10, %c0_11] : memref<32x128xf32, #tpu.memory_space<vmem>>, vector<32x128xf32>
      %c0_12 = arith.constant 0 : index
      %c0_13 = arith.constant 0 : index
      %13 = vector.load %arg5[%c0_12, %c0_13] : memref<1x128xf32, #tpu.memory_space<vmem>>, vector<1x128xf32>
      %14 = vector.broadcast %13 : vector<1x128xf32> to vector<32x128xf32>
      %15 = arith.addf %12, %14 : vector<32x128xf32>
      %cst_14 = arith.constant 0.000000e+00 : f32
      %16 = vector.broadcast %cst_14 : f32 to vector<32x128xf32>
      %17 = arith.maximumf %15, %16 : vector<32x128xf32>
      %c0_15 = arith.constant 0 : index
      %c0_16 = arith.constant 0 : index
      %18 = vector.load %arg6[%c0_15, %c0_16] : memref<32x128xf32, #tpu.memory_space<vmem>>, vector<32x128xf32>
      tpu.vector_store %arg6[%c0_15, %c0_16], %17 {strides = array<i32>} : memref<32x128xf32, #tpu.memory_space<vmem>>, vector<32x128xf32>,
    } else {
    }
    return
  }
  func.func @transform_0(%arg0: i32, %arg1: i32, %arg2: i32) -> (i32, i32) {
    %c0_i32 = arith.constant 0 : i32
    return %arg0, %arg2 : i32, i32
  }
  func.func @transform_1(%arg0: i32, %arg1: i32, %arg2: i32) -> (i32, i32) {
    %c0_i32 = arith.constant 0 : i32
    return %arg2, %arg1 : i32, i32
  }
  func.func @transform_2(%arg0: i32, %arg1: i32, %arg2: i32) -> (i32, i32) {
    %c0_i32 = arith.constant 0 : i32
    %c0_i32_0 = arith.constant 0 : i32
    return %c0_i32, %arg1 : i32, i32
  }
  func.func @transform_3(%arg0: i32, %arg1: i32, %arg2: i32) -> (i32, i32) {
    %c0_i32 = arith.constant 0 : i32
    return %arg0, %arg1 : i32, i32
  }
}

module attributes {stable_mosaic.version = 11 : i64} {
  func.func @_conv_direct_kernel(%arg0: i32, %arg1: memref<1x64x32xbf16, #tpu.memory_space<vmem>>, %arg2: memref<5x5x32x6xbf16, #tpu.memory_space<vmem>>, %arg3: memref<1x6xf32, #tpu.memory_space<vmem>>, %arg4: memref<1x28x6xf32, #tpu.memory_space<vmem>>) attributes {dimension_semantics = [#tpu.dimension_semantics<parallel>], iteration_bounds = array<i64: 2>, scalar_prefetch = 0 : i64, scratch_operands = 0 : i64, tpu.core_type = #tpu.core_type<tc>, window_params = [{transform_indices = @transform_0, window_bounds = array<i64: 1, 64, 32>}, {pipeline_mode = #tpu.pipeline_mode<synchronous>, transform_indices = @transform_1, window_bounds = array<i64: 5, 5, 32, 6>}, {pipeline_mode = #tpu.pipeline_mode<synchronous>, transform_indices = @transform_2, window_bounds = array<i64: 1, 6>}, {transform_indices = @transform_3, window_bounds = array<i64: 1, 28, 6>}]} {
    %cst = arith.constant 0.000000e+00 : f32
    %0 = vector.broadcast %cst : f32 to vector<28x6xf32>
    %c0 = arith.constant 0 : index
    %c0_0 = arith.constant 0 : index
    %c0_1 = arith.constant 0 : index
    %1 = vector.load %arg1[%c0, %c0_0, %c0_1] : memref<1x64x32xbf16, #tpu.memory_space<vmem>>, vector<1x28x32xbf16>
    %2 = vector.shape_cast %1 : vector<1x28x32xbf16> to vector<28x32xbf16>
    %c0_2 = arith.constant 0 : index
    %c0_3 = arith.constant 0 : index
    %c0_4 = arith.constant 0 : index
    %c0_5 = arith.constant 0 : index
    %3 = vector.load %arg2[%c0_2, %c0_3, %c0_4, %c0_5] : memref<5x5x32x6xbf16, #tpu.memory_space<vmem>>, vector<1x1x32x6xbf16>
    %4 = vector.shape_cast %3 : vector<1x1x32x6xbf16> to vector<32x6xbf16>
    %cst_6 = arith.constant dense<0.000000e+00> : vector<28x6xf32>
    %5 = tpu.matmul %2, %4, %cst_6 {dimension_numbers = #tpu.dot_dimension_numbers<[1], [0], [0], [1], [0, 0, 1, 1], [], []>} : vector<28x32xbf16>, vector<32x6xbf16>, vector<28x6xf32> -> vector<28x6xf32>
    %6 = arith.addf %0, %5 : vector<28x6xf32>
    %c0_7 = arith.constant 0 : index
    %c1 = arith.constant 1 : index
    %c0_8 = arith.constant 0 : index
    %7 = vector.load %arg1[%c0_7, %c1, %c0_8] : memref<1x64x32xbf16, #tpu.memory_space<vmem>>, vector<1x28x32xbf16>
    %8 = vector.shape_cast %7 : vector<1x28x32xbf16> to vector<28x32xbf16>
    %c0_9 = arith.constant 0 : index
    %c1_10 = arith.constant 1 : index
    %c0_11 = arith.constant 0 : index
    %c0_12 = arith.constant 0 : index
    %9 = vector.load %arg2[%c0_9, %c1_10, %c0_11, %c0_12] : memref<5x5x32x6xbf16, #tpu.memory_space<vmem>>, vector<1x1x32x6xbf16>
    %10 = vector.shape_cast %9 : vector<1x1x32x6xbf16> to vector<32x6xbf16>
    %cst_13 = arith.constant dense<0.000000e+00> : vector<28x6xf32>
    %11 = tpu.matmul %8, %10, %cst_13 {dimension_numbers = #tpu.dot_dimension_numbers<[1], [0], [0], [1], [0, 0, 1, 1], [], []>} : vector<28x32xbf16>, vector<32x6xbf16>, vector<28x6xf32> -> vector<28x6xf32>
    %12 = arith.addf %6, %11 : vector<28x6xf32>
    %c0_14 = arith.constant 0 : index
    %c2 = arith.constant 2 : index
    %c0_15 = arith.constant 0 : index
    %13 = vector.load %arg1[%c0_14, %c2, %c0_15] : memref<1x64x32xbf16, #tpu.memory_space<vmem>>, vector<1x28x32xbf16>
    %14 = vector.shape_cast %13 : vector<1x28x32xbf16> to vector<28x32xbf16>
    %c0_16 = arith.constant 0 : index
    %c2_17 = arith.constant 2 : index
    %c0_18 = arith.constant 0 : index
    %c0_19 = arith.constant 0 : index
    %15 = vector.load %arg2[%c0_16, %c2_17, %c0_18, %c0_19] : memref<5x5x32x6xbf16, #tpu.memory_space<vmem>>, vector<1x1x32x6xbf16>
    %16 = vector.shape_cast %15 : vector<1x1x32x6xbf16> to vector<32x6xbf16>
    %cst_20 = arith.constant dense<0.000000e+00> : vector<28x6xf32>
    %17 = tpu.matmul %14, %16, %cst_20 {dimension_numbers = #tpu.dot_dimension_numbers<[1], [0], [0], [1], [0, 0, 1, 1], [], []>} : vector<28x32xbf16>, vector<32x6xbf16>, vector<28x6xf32> -> vector<28x6xf32>
    %18 = arith.addf %12, %17 : vector<28x6xf32>
    %c0_21 = arith.constant 0 : index
    %c3 = arith.constant 3 : index
    %c0_22 = arith.constant 0 : index
    %19 = vector.load %arg1[%c0_21, %c3, %c0_22] : memref<1x64x32xbf16, #tpu.memory_space<vmem>>, vector<1x28x32xbf16>
    %20 = vector.shape_cast %19 : vector<1x28x32xbf16> to vector<28x32xbf16>
    %c0_23 = arith.constant 0 : index
    %c3_24 = arith.constant 3 : index
    %c0_25 = arith.constant 0 : index
    %c0_26 = arith.constant 0 : index
    %21 = vector.load %arg2[%c0_23, %c3_24, %c0_25, %c0_26] : memref<5x5x32x6xbf16, #tpu.memory_space<vmem>>, vector<1x1x32x6xbf16>
    %22 = vector.shape_cast %21 : vector<1x1x32x6xbf16> to vector<32x6xbf16>
    %cst_27 = arith.constant dense<0.000000e+00> : vector<28x6xf32>
    %23 = tpu.matmul %20, %22, %cst_27 {dimension_numbers = #tpu.dot_dimension_numbers<[1], [0], [0], [1], [0, 0, 1, 1], [], []>} : vector<28x32xbf16>, vector<32x6xbf16>, vector<28x6xf32> -> vector<28x6xf32>
    %24 = arith.addf %18, %23 : vector<28x6xf32>
    %c0_28 = arith.constant 0 : index
    %c4 = arith.constant 4 : index
    %c0_29 = arith.constant 0 : index
    %25 = vector.load %arg1[%c0_28, %c4, %c0_29] : memref<1x64x32xbf16, #tpu.memory_space<vmem>>, vector<1x28x32xbf16>
    %26 = vector.shape_cast %25 : vector<1x28x32xbf16> to vector<28x32xbf16>
    %c0_30 = arith.constant 0 : index
    %c4_31 = arith.constant 4 : index
    %c0_32 = arith.constant 0 : index
    %c0_33 = arith.constant 0 : index
    %27 = vector.load %arg2[%c0_30, %c4_31, %c0_32, %c0_33] : memref<5x5x32x6xbf16, #tpu.memory_space<vmem>>, vector<1x1x32x6xbf16>
    %28 = vector.shape_cast %27 : vector<1x1x32x6xbf16> to vector<32x6xbf16>
    %cst_34 = arith.constant dense<0.000000e+00> : vector<28x6xf32>
    %29 = tpu.matmul %26, %28, %cst_34 {dimension_numbers = #tpu.dot_dimension_numbers<[1], [0], [0], [1], [0, 0, 1, 1], [], []>} : vector<28x32xbf16>, vector<32x6xbf16>, vector<28x6xf32> -> vector<28x6xf32>
    %30 = arith.addf %24, %29 : vector<28x6xf32>
    %c0_35 = arith.constant 0 : index
    %c8 = arith.constant 8 : index
    %c0_36 = arith.constant 0 : index
    %31 = vector.load %arg1[%c0_35, %c8, %c0_36] : memref<1x64x32xbf16, #tpu.memory_space<vmem>>, vector<1x28x32xbf16>
    %32 = vector.shape_cast %31 : vector<1x28x32xbf16> to vector<28x32xbf16>
    %c1_37 = arith.constant 1 : index
    %c0_38 = arith.constant 0 : index
    %c0_39 = arith.constant 0 : index
    %c0_40 = arith.constant 0 : index
    %33 = vector.load %arg2[%c1_37, %c0_38, %c0_39, %c0_40] : memref<5x5x32x6xbf16, #tpu.memory_space<vmem>>, vector<1x1x32x6xbf16>
    %34 = vector.shape_cast %33 : vector<1x1x32x6xbf16> to vector<32x6xbf16>
    %cst_41 = arith.constant dense<0.000000e+00> : vector<28x6xf32>
    %35 = tpu.matmul %32, %34, %cst_41 {dimension_numbers = #tpu.dot_dimension_numbers<[1], [0], [0], [1], [0, 0, 1, 1], [], []>} : vector<28x32xbf16>, vector<32x6xbf16>, vector<28x6xf32> -> vector<28x6xf32>
    %36 = arith.addf %30, %35 : vector<28x6xf32>
    %c0_42 = arith.constant 0 : index
    %c9 = arith.constant 9 : index
    %c0_43 = arith.constant 0 : index
    %37 = vector.load %arg1[%c0_42, %c9, %c0_43] : memref<1x64x32xbf16, #tpu.memory_space<vmem>>, vector<1x28x32xbf16>
    %38 = vector.shape_cast %37 : vector<1x28x32xbf16> to vector<28x32xbf16>
    %c1_44 = arith.constant 1 : index
    %c1_45 = arith.constant 1 : index
    %c0_46 = arith.constant 0 : index
    %c0_47 = arith.constant 0 : index
    %39 = vector.load %arg2[%c1_44, %c1_45, %c0_46, %c0_47] : memref<5x5x32x6xbf16, #tpu.memory_space<vmem>>, vector<1x1x32x6xbf16>
    %40 = vector.shape_cast %39 : vector<1x1x32x6xbf16> to vector<32x6xbf16>
    %cst_48 = arith.constant dense<0.000000e+00> : vector<28x6xf32>
    %41 = tpu.matmul %38, %40, %cst_48 {dimension_numbers = #tpu.dot_dimension_numbers<[1], [0], [0], [1], [0, 0, 1, 1], [], []>} : vector<28x32xbf16>, vector<32x6xbf16>, vector<28x6xf32> -> vector<28x6xf32>
    %42 = arith.addf %36, %41 : vector<28x6xf32>
    %c0_49 = arith.constant 0 : index
    %c10 = arith.constant 10 : index
    %c0_50 = arith.constant 0 : index
    %43 = vector.load %arg1[%c0_49, %c10, %c0_50] : memref<1x64x32xbf16, #tpu.memory_space<vmem>>, vector<1x28x32xbf16>
    %44 = vector.shape_cast %43 : vector<1x28x32xbf16> to vector<28x32xbf16>
    %c1_51 = arith.constant 1 : index
    %c2_52 = arith.constant 2 : index
    %c0_53 = arith.constant 0 : index
    %c0_54 = arith.constant 0 : index
    %45 = vector.load %arg2[%c1_51, %c2_52, %c0_53, %c0_54] : memref<5x5x32x6xbf16, #tpu.memory_space<vmem>>, vector<1x1x32x6xbf16>
    %46 = vector.shape_cast %45 : vector<1x1x32x6xbf16> to vector<32x6xbf16>
    %cst_55 = arith.constant dense<0.000000e+00> : vector<28x6xf32>
    %47 = tpu.matmul %44, %46, %cst_55 {dimension_numbers = #tpu.dot_dimension_numbers<[1], [0], [0], [1], [0, 0, 1, 1], [], []>} : vector<28x32xbf16>, vector<32x6xbf16>, vector<28x6xf32> -> vector<28x6xf32>
    %48 = arith.addf %42, %47 : vector<28x6xf32>
    %c0_56 = arith.constant 0 : index
    %c11 = arith.constant 11 : index
    %c0_57 = arith.constant 0 : index
    %49 = vector.load %arg1[%c0_56, %c11, %c0_57] : memref<1x64x32xbf16, #tpu.memory_space<vmem>>, vector<1x28x32xbf16>
    %50 = vector.shape_cast %49 : vector<1x28x32xbf16> to vector<28x32xbf16>
    %c1_58 = arith.constant 1 : index
    %c3_59 = arith.constant 3 : index
    %c0_60 = arith.constant 0 : index
    %c0_61 = arith.constant 0 : index
    %51 = vector.load %arg2[%c1_58, %c3_59, %c0_60, %c0_61] : memref<5x5x32x6xbf16, #tpu.memory_space<vmem>>, vector<1x1x32x6xbf16>
    %52 = vector.shape_cast %51 : vector<1x1x32x6xbf16> to vector<32x6xbf16>
    %cst_62 = arith.constant dense<0.000000e+00> : vector<28x6xf32>
    %53 = tpu.matmul %50, %52, %cst_62 {dimension_numbers = #tpu.dot_dimension_numbers<[1], [0], [0], [1], [0, 0, 1, 1], [], []>} : vector<28x32xbf16>, vector<32x6xbf16>, vector<28x6xf32> -> vector<28x6xf32>
    %54 = arith.addf %48, %53 : vector<28x6xf32>
    %c0_63 = arith.constant 0 : index
    %c12 = arith.constant 12 : index
    %c0_64 = arith.constant 0 : index
    %55 = vector.load %arg1[%c0_63, %c12, %c0_64] : memref<1x64x32xbf16, #tpu.memory_space<vmem>>, vector<1x28x32xbf16>
    %56 = vector.shape_cast %55 : vector<1x28x32xbf16> to vector<28x32xbf16>
    %c1_65 = arith.constant 1 : index
    %c4_66 = arith.constant 4 : index
    %c0_67 = arith.constant 0 : index
    %c0_68 = arith.constant 0 : index
    %57 = vector.load %arg2[%c1_65, %c4_66, %c0_67, %c0_68] : memref<5x5x32x6xbf16, #tpu.memory_space<vmem>>, vector<1x1x32x6xbf16>
    %58 = vector.shape_cast %57 : vector<1x1x32x6xbf16> to vector<32x6xbf16>
    %cst_69 = arith.constant dense<0.000000e+00> : vector<28x6xf32>
    %59 = tpu.matmul %56, %58, %cst_69 {dimension_numbers = #tpu.dot_dimension_numbers<[1], [0], [0], [1], [0, 0, 1, 1], [], []>} : vector<28x32xbf16>, vector<32x6xbf16>, vector<28x6xf32> -> vector<28x6xf32>
    %60 = arith.addf %54, %59 : vector<28x6xf32>
    %c0_70 = arith.constant 0 : index
    %c16 = arith.constant 16 : index
    %c0_71 = arith.constant 0 : index
    %61 = vector.load %arg1[%c0_70, %c16, %c0_71] : memref<1x64x32xbf16, #tpu.memory_space<vmem>>, vector<1x28x32xbf16>
    %62 = vector.shape_cast %61 : vector<1x28x32xbf16> to vector<28x32xbf16>
    %c2_72 = arith.constant 2 : index
    %c0_73 = arith.constant 0 : index
    %c0_74 = arith.constant 0 : index
    %c0_75 = arith.constant 0 : index
    %63 = vector.load %arg2[%c2_72, %c0_73, %c0_74, %c0_75] : memref<5x5x32x6xbf16, #tpu.memory_space<vmem>>, vector<1x1x32x6xbf16>
    %64 = vector.shape_cast %63 : vector<1x1x32x6xbf16> to vector<32x6xbf16>
    %cst_76 = arith.constant dense<0.000000e+00> : vector<28x6xf32>
    %65 = tpu.matmul %62, %64, %cst_76 {dimension_numbers = #tpu.dot_dimension_numbers<[1], [0], [0], [1], [0, 0, 1, 1], [], []>} : vector<28x32xbf16>, vector<32x6xbf16>, vector<28x6xf32> -> vector<28x6xf32>
    %66 = arith.addf %60, %65 : vector<28x6xf32>
    %c0_77 = arith.constant 0 : index
    %c17 = arith.constant 17 : index
    %c0_78 = arith.constant 0 : index
    %67 = vector.load %arg1[%c0_77, %c17, %c0_78] : memref<1x64x32xbf16, #tpu.memory_space<vmem>>, vector<1x28x32xbf16>
    %68 = vector.shape_cast %67 : vector<1x28x32xbf16> to vector<28x32xbf16>
    %c2_79 = arith.constant 2 : index
    %c1_80 = arith.constant 1 : index
    %c0_81 = arith.constant 0 : index
    %c0_82 = arith.constant 0 : index
    %69 = vector.load %arg2[%c2_79, %c1_80, %c0_81, %c0_82] : memref<5x5x32x6xbf16, #tpu.memory_space<vmem>>, vector<1x1x32x6xbf16>
    %70 = vector.shape_cast %69 : vector<1x1x32x6xbf16> to vector<32x6xbf16>
    %cst_83 = arith.constant dense<0.000000e+00> : vector<28x6xf32>
    %71 = tpu.matmul %68, %70, %cst_83 {dimension_numbers = #tpu.dot_dimension_numbers<[1], [0], [0], [1], [0, 0, 1, 1], [], []>} : vector<28x32xbf16>, vector<32x6xbf16>, vector<28x6xf32> -> vector<28x6xf32>
    %72 = arith.addf %66, %71 : vector<28x6xf32>
    %c0_84 = arith.constant 0 : index
    %c18 = arith.constant 18 : index
    %c0_85 = arith.constant 0 : index
    %73 = vector.load %arg1[%c0_84, %c18, %c0_85] : memref<1x64x32xbf16, #tpu.memory_space<vmem>>, vector<1x28x32xbf16>
    %74 = vector.shape_cast %73 : vector<1x28x32xbf16> to vector<28x32xbf16>
    %c2_86 = arith.constant 2 : index
    %c2_87 = arith.constant 2 : index
    %c0_88 = arith.constant 0 : index
    %c0_89 = arith.constant 0 : index
    %75 = vector.load %arg2[%c2_86, %c2_87, %c0_88, %c0_89] : memref<5x5x32x6xbf16, #tpu.memory_space<vmem>>, vector<1x1x32x6xbf16>
    %76 = vector.shape_cast %75 : vector<1x1x32x6xbf16> to vector<32x6xbf16>
    %cst_90 = arith.constant dense<0.000000e+00> : vector<28x6xf32>
    %77 = tpu.matmul %74, %76, %cst_90 {dimension_numbers = #tpu.dot_dimension_numbers<[1], [0], [0], [1], [0, 0, 1, 1], [], []>} : vector<28x32xbf16>, vector<32x6xbf16>, vector<28x6xf32> -> vector<28x6xf32>
    %78 = arith.addf %72, %77 : vector<28x6xf32>
    %c0_91 = arith.constant 0 : index
    %c19 = arith.constant 19 : index
    %c0_92 = arith.constant 0 : index
    %79 = vector.load %arg1[%c0_91, %c19, %c0_92] : memref<1x64x32xbf16, #tpu.memory_space<vmem>>, vector<1x28x32xbf16>
    %80 = vector.shape_cast %79 : vector<1x28x32xbf16> to vector<28x32xbf16>
    %c2_93 = arith.constant 2 : index
    %c3_94 = arith.constant 3 : index
    %c0_95 = arith.constant 0 : index
    %c0_96 = arith.constant 0 : index
    %81 = vector.load %arg2[%c2_93, %c3_94, %c0_95, %c0_96] : memref<5x5x32x6xbf16, #tpu.memory_space<vmem>>, vector<1x1x32x6xbf16>
    %82 = vector.shape_cast %81 : vector<1x1x32x6xbf16> to vector<32x6xbf16>
    %cst_97 = arith.constant dense<0.000000e+00> : vector<28x6xf32>
    %83 = tpu.matmul %80, %82, %cst_97 {dimension_numbers = #tpu.dot_dimension_numbers<[1], [0], [0], [1], [0, 0, 1, 1], [], []>} : vector<28x32xbf16>, vector<32x6xbf16>, vector<28x6xf32> -> vector<28x6xf32>
    %84 = arith.addf %78, %83 : vector<28x6xf32>
    %c0_98 = arith.constant 0 : index
    %c20 = arith.constant 20 : index
    %c0_99 = arith.constant 0 : index
    %85 = vector.load %arg1[%c0_98, %c20, %c0_99] : memref<1x64x32xbf16, #tpu.memory_space<vmem>>, vector<1x28x32xbf16>
    %86 = vector.shape_cast %85 : vector<1x28x32xbf16> to vector<28x32xbf16>
    %c2_100 = arith.constant 2 : index
    %c4_101 = arith.constant 4 : index
    %c0_102 = arith.constant 0 : index
    %c0_103 = arith.constant 0 : index
    %87 = vector.load %arg2[%c2_100, %c4_101, %c0_102, %c0_103] : memref<5x5x32x6xbf16, #tpu.memory_space<vmem>>, vector<1x1x32x6xbf16>
    %88 = vector.shape_cast %87 : vector<1x1x32x6xbf16> to vector<32x6xbf16>
    %cst_104 = arith.constant dense<0.000000e+00> : vector<28x6xf32>
    %89 = tpu.matmul %86, %88, %cst_104 {dimension_numbers = #tpu.dot_dimension_numbers<[1], [0], [0], [1], [0, 0, 1, 1], [], []>} : vector<28x32xbf16>, vector<32x6xbf16>, vector<28x6xf32> -> vector<28x6xf32>
    %90 = arith.addf %84, %89 : vector<28x6xf32>
    %c0_105 = arith.constant 0 : index
    %c24 = arith.constant 24 : index
    %c0_106 = arith.constant 0 : index
    %91 = vector.load %arg1[%c0_105, %c24, %c0_106] : memref<1x64x32xbf16, #tpu.memory_space<vmem>>, vector<1x28x32xbf16>
    %92 = vector.shape_cast %91 : vector<1x28x32xbf16> to vector<28x32xbf16>
    %c3_107 = arith.constant 3 : index
    %c0_108 = arith.constant 0 : index
    %c0_109 = arith.constant 0 : index
    %c0_110 = arith.constant 0 : index
    %93 = vector.load %arg2[%c3_107, %c0_108, %c0_109, %c0_110] : memref<5x5x32x6xbf16, #tpu.memory_space<vmem>>, vector<1x1x32x6xbf16>
    %94 = vector.shape_cast %93 : vector<1x1x32x6xbf16> to vector<32x6xbf16>
    %cst_111 = arith.constant dense<0.000000e+00> : vector<28x6xf32>
    %95 = tpu.matmul %92, %94, %cst_111 {dimension_numbers = #tpu.dot_dimension_numbers<[1], [0], [0], [1], [0, 0, 1, 1], [], []>} : vector<28x32xbf16>, vector<32x6xbf16>, vector<28x6xf32> -> vector<28x6xf32>
    %96 = arith.addf %90, %95 : vector<28x6xf32>
    %c0_112 = arith.constant 0 : index
    %c25 = arith.constant 25 : index
    %c0_113 = arith.constant 0 : index
    %97 = vector.load %arg1[%c0_112, %c25, %c0_113] : memref<1x64x32xbf16, #tpu.memory_space<vmem>>, vector<1x28x32xbf16>
    %98 = vector.shape_cast %97 : vector<1x28x32xbf16> to vector<28x32xbf16>
    %c3_114 = arith.constant 3 : index
    %c1_115 = arith.constant 1 : index
    %c0_116 = arith.constant 0 : index
    %c0_117 = arith.constant 0 : index
    %99 = vector.load %arg2[%c3_114, %c1_115, %c0_116, %c0_117] : memref<5x5x32x6xbf16, #tpu.memory_space<vmem>>, vector<1x1x32x6xbf16>
    %100 = vector.shape_cast %99 : vector<1x1x32x6xbf16> to vector<32x6xbf16>
    %cst_118 = arith.constant dense<0.000000e+00> : vector<28x6xf32>
    %101 = tpu.matmul %98, %100, %cst_118 {dimension_numbers = #tpu.dot_dimension_numbers<[1], [0], [0], [1], [0, 0, 1, 1], [], []>} : vector<28x32xbf16>, vector<32x6xbf16>, vector<28x6xf32> -> vector<28x6xf32>
    %102 = arith.addf %96, %101 : vector<28x6xf32>
    %c0_119 = arith.constant 0 : index
    %c26 = arith.constant 26 : index
    %c0_120 = arith.constant 0 : index
    %103 = vector.load %arg1[%c0_119, %c26, %c0_120] : memref<1x64x32xbf16, #tpu.memory_space<vmem>>, vector<1x28x32xbf16>
    %104 = vector.shape_cast %103 : vector<1x28x32xbf16> to vector<28x32xbf16>
    %c3_121 = arith.constant 3 : index
    %c2_122 = arith.constant 2 : index
    %c0_123 = arith.constant 0 : index
    %c0_124 = arith.constant 0 : index
    %105 = vector.load %arg2[%c3_121, %c2_122, %c0_123, %c0_124] : memref<5x5x32x6xbf16, #tpu.memory_space<vmem>>, vector<1x1x32x6xbf16>
    %106 = vector.shape_cast %105 : vector<1x1x32x6xbf16> to vector<32x6xbf16>
    %cst_125 = arith.constant dense<0.000000e+00> : vector<28x6xf32>
    %107 = tpu.matmul %104, %106, %cst_125 {dimension_numbers = #tpu.dot_dimension_numbers<[1], [0], [0], [1], [0, 0, 1, 1], [], []>} : vector<28x32xbf16>, vector<32x6xbf16>, vector<28x6xf32> -> vector<28x6xf32>
    %108 = arith.addf %102, %107 : vector<28x6xf32>
    %c0_126 = arith.constant 0 : index
    %c27 = arith.constant 27 : index
    %c0_127 = arith.constant 0 : index
    %109 = vector.load %arg1[%c0_126, %c27, %c0_127] : memref<1x64x32xbf16, #tpu.memory_space<vmem>>, vector<1x28x32xbf16>
    %110 = vector.shape_cast %109 : vector<1x28x32xbf16> to vector<28x32xbf16>
    %c3_128 = arith.constant 3 : index
    %c3_129 = arith.constant 3 : index
    %c0_130 = arith.constant 0 : index
    %c0_131 = arith.constant 0 : index
    %111 = vector.load %arg2[%c3_128, %c3_129, %c0_130, %c0_131] : memref<5x5x32x6xbf16, #tpu.memory_space<vmem>>, vector<1x1x32x6xbf16>
    %112 = vector.shape_cast %111 : vector<1x1x32x6xbf16> to vector<32x6xbf16>
    %cst_132 = arith.constant dense<0.000000e+00> : vector<28x6xf32>
    %113 = tpu.matmul %110, %112, %cst_132 {dimension_numbers = #tpu.dot_dimension_numbers<[1], [0], [0], [1], [0, 0, 1, 1], [], []>} : vector<28x32xbf16>, vector<32x6xbf16>, vector<28x6xf32> -> vector<28x6xf32>
    %114 = arith.addf %108, %113 : vector<28x6xf32>
    %c0_133 = arith.constant 0 : index
    %c28 = arith.constant 28 : index
    %c0_134 = arith.constant 0 : index
    %115 = vector.load %arg1[%c0_133, %c28, %c0_134] : memref<1x64x32xbf16, #tpu.memory_space<vmem>>, vector<1x28x32xbf16>
    %116 = vector.shape_cast %115 : vector<1x28x32xbf16> to vector<28x32xbf16>
    %c3_135 = arith.constant 3 : index
    %c4_136 = arith.constant 4 : index
    %c0_137 = arith.constant 0 : index
    %c0_138 = arith.constant 0 : index
    %117 = vector.load %arg2[%c3_135, %c4_136, %c0_137, %c0_138] : memref<5x5x32x6xbf16, #tpu.memory_space<vmem>>, vector<1x1x32x6xbf16>
    %118 = vector.shape_cast %117 : vector<1x1x32x6xbf16> to vector<32x6xbf16>
    %cst_139 = arith.constant dense<0.000000e+00> : vector<28x6xf32>
    %119 = tpu.matmul %116, %118, %cst_139 {dimension_numbers = #tpu.dot_dimension_numbers<[1], [0], [0], [1], [0, 0, 1, 1], [], []>} : vector<28x32xbf16>, vector<32x6xbf16>, vector<28x6xf32> -> vector<28x6xf32>
    %120 = arith.addf %114, %119 : vector<28x6xf32>
    %c0_140 = arith.constant 0 : index
    %c32 = arith.constant 32 : index
    %c0_141 = arith.constant 0 : index
    %121 = vector.load %arg1[%c0_140, %c32, %c0_141] : memref<1x64x32xbf16, #tpu.memory_space<vmem>>, vector<1x28x32xbf16>
    %122 = vector.shape_cast %121 : vector<1x28x32xbf16> to vector<28x32xbf16>
    %c4_142 = arith.constant 4 : index
    %c0_143 = arith.constant 0 : index
    %c0_144 = arith.constant 0 : index
    %c0_145 = arith.constant 0 : index
    %123 = vector.load %arg2[%c4_142, %c0_143, %c0_144, %c0_145] : memref<5x5x32x6xbf16, #tpu.memory_space<vmem>>, vector<1x1x32x6xbf16>
    %124 = vector.shape_cast %123 : vector<1x1x32x6xbf16> to vector<32x6xbf16>
    %cst_146 = arith.constant dense<0.000000e+00> : vector<28x6xf32>
    %125 = tpu.matmul %122, %124, %cst_146 {dimension_numbers = #tpu.dot_dimension_numbers<[1], [0], [0], [1], [0, 0, 1, 1], [], []>} : vector<28x32xbf16>, vector<32x6xbf16>, vector<28x6xf32> -> vector<28x6xf32>
    %126 = arith.addf %120, %125 : vector<28x6xf32>
    %c0_147 = arith.constant 0 : index
    %c33 = arith.constant 33 : index
    %c0_148 = arith.constant 0 : index
    %127 = vector.load %arg1[%c0_147, %c33, %c0_148] : memref<1x64x32xbf16, #tpu.memory_space<vmem>>, vector<1x28x32xbf16>
    %128 = vector.shape_cast %127 : vector<1x28x32xbf16> to vector<28x32xbf16>
    %c4_149 = arith.constant 4 : index
    %c1_150 = arith.constant 1 : index
    %c0_151 = arith.constant 0 : index
    %c0_152 = arith.constant 0 : index
    %129 = vector.load %arg2[%c4_149, %c1_150, %c0_151, %c0_152] : memref<5x5x32x6xbf16, #tpu.memory_space<vmem>>, vector<1x1x32x6xbf16>
    %130 = vector.shape_cast %129 : vector<1x1x32x6xbf16> to vector<32x6xbf16>
    %cst_153 = arith.constant dense<0.000000e+00> : vector<28x6xf32>
    %131 = tpu.matmul %128, %130, %cst_153 {dimension_numbers = #tpu.dot_dimension_numbers<[1], [0], [0], [1], [0, 0, 1, 1], [], []>} : vector<28x32xbf16>, vector<32x6xbf16>, vector<28x6xf32> -> vector<28x6xf32>
    %132 = arith.addf %126, %131 : vector<28x6xf32>
    %c0_154 = arith.constant 0 : index
    %c34 = arith.constant 34 : index
    %c0_155 = arith.constant 0 : index
    %133 = vector.load %arg1[%c0_154, %c34, %c0_155] : memref<1x64x32xbf16, #tpu.memory_space<vmem>>, vector<1x28x32xbf16>
    %134 = vector.shape_cast %133 : vector<1x28x32xbf16> to vector<28x32xbf16>
    %c4_156 = arith.constant 4 : index
    %c2_157 = arith.constant 2 : index
    %c0_158 = arith.constant 0 : index
    %c0_159 = arith.constant 0 : index
    %135 = vector.load %arg2[%c4_156, %c2_157, %c0_158, %c0_159] : memref<5x5x32x6xbf16, #tpu.memory_space<vmem>>, vector<1x1x32x6xbf16>
    %136 = vector.shape_cast %135 : vector<1x1x32x6xbf16> to vector<32x6xbf16>
    %cst_160 = arith.constant dense<0.000000e+00> : vector<28x6xf32>
    %137 = tpu.matmul %134, %136, %cst_160 {dimension_numbers = #tpu.dot_dimension_numbers<[1], [0], [0], [1], [0, 0, 1, 1], [], []>} : vector<28x32xbf16>, vector<32x6xbf16>, vector<28x6xf32> -> vector<28x6xf32>
    %138 = arith.addf %132, %137 : vector<28x6xf32>
    %c0_161 = arith.constant 0 : index
    %c35 = arith.constant 35 : index
    %c0_162 = arith.constant 0 : index
    %139 = vector.load %arg1[%c0_161, %c35, %c0_162] : memref<1x64x32xbf16, #tpu.memory_space<vmem>>, vector<1x28x32xbf16>
    %140 = vector.shape_cast %139 : vector<1x28x32xbf16> to vector<28x32xbf16>
    %c4_163 = arith.constant 4 : index
    %c3_164 = arith.constant 3 : index
    %c0_165 = arith.constant 0 : index
    %c0_166 = arith.constant 0 : index
    %141 = vector.load %arg2[%c4_163, %c3_164, %c0_165, %c0_166] : memref<5x5x32x6xbf16, #tpu.memory_space<vmem>>, vector<1x1x32x6xbf16>
    %142 = vector.shape_cast %141 : vector<1x1x32x6xbf16> to vector<32x6xbf16>
    %cst_167 = arith.constant dense<0.000000e+00> : vector<28x6xf32>
    %143 = tpu.matmul %140, %142, %cst_167 {dimension_numbers = #tpu.dot_dimension_numbers<[1], [0], [0], [1], [0, 0, 1, 1], [], []>} : vector<28x32xbf16>, vector<32x6xbf16>, vector<28x6xf32> -> vector<28x6xf32>
    %144 = arith.addf %138, %143 : vector<28x6xf32>
    %c0_168 = arith.constant 0 : index
    %c36 = arith.constant 36 : index
    %c0_169 = arith.constant 0 : index
    %145 = vector.load %arg1[%c0_168, %c36, %c0_169] : memref<1x64x32xbf16, #tpu.memory_space<vmem>>, vector<1x28x32xbf16>
    %146 = vector.shape_cast %145 : vector<1x28x32xbf16> to vector<28x32xbf16>
    %c4_170 = arith.constant 4 : index
    %c4_171 = arith.constant 4 : index
    %c0_172 = arith.constant 0 : index
    %c0_173 = arith.constant 0 : index
    %147 = vector.load %arg2[%c4_170, %c4_171, %c0_172, %c0_173] : memref<5x5x32x6xbf16, #tpu.memory_space<vmem>>, vector<1x1x32x6xbf16>
    %148 = vector.shape_cast %147 : vector<1x1x32x6xbf16> to vector<32x6xbf16>
    %cst_174 = arith.constant dense<0.000000e+00> : vector<28x6xf32>
    %149 = tpu.matmul %146, %148, %cst_174 {dimension_numbers = #tpu.dot_dimension_numbers<[1], [0], [0], [1], [0, 0, 1, 1], [], []>} : vector<28x32xbf16>, vector<32x6xbf16>, vector<28x6xf32> -> vector<28x6xf32>
    %150 = arith.addf %144, %149 : vector<28x6xf32>
    %c0_175 = arith.constant 0 : index
    %c0_176 = arith.constant 0 : index
    %151 = vector.load %arg3[%c0_175, %c0_176] : memref<1x6xf32, #tpu.memory_space<vmem>>, vector<1x6xf32>
    %152 = vector.broadcast %151 : vector<1x6xf32> to vector<28x6xf32>
    %153 = arith.addf %150, %152 : vector<28x6xf32>
    %c0_177 = arith.constant 0 : index
    %c0_178 = arith.constant 0 : index
    %c0_179 = arith.constant 0 : index
    %154 = vector.load %arg4[%c0_177, %c0_178, %c0_179] : memref<1x28x6xf32, #tpu.memory_space<vmem>>, vector<1x28x6xf32>
    %155 = vector.shape_cast %154 : vector<1x28x6xf32> to vector<28x6xf32>
    %156 = vector.shape_cast %153 : vector<28x6xf32> to vector<1x28x6xf32>
    tpu.vector_store %arg4[%c0_177, %c0_178, %c0_179], %156 {strides = array<i32>} : memref<1x28x6xf32, #tpu.memory_space<vmem>>, vector<1x28x6xf32>,
    return
  }
  func.func @transform_0(%arg0: i32) -> (i32, i32, i32) {
    %c0_i32 = arith.constant 0 : i32
    %c0_i32_0 = arith.constant 0 : i32
    %c0_i32_1 = arith.constant 0 : i32
    return %arg0, %c0_i32, %c0_i32_0 : i32, i32, i32
  }
  func.func @transform_1(%arg0: i32) -> (i32, i32, i32, i32) {
    %c0_i32 = arith.constant 0 : i32
    %c0_i32_0 = arith.constant 0 : i32
    %c0_i32_1 = arith.constant 0 : i32
    %c0_i32_2 = arith.constant 0 : i32
    %c0_i32_3 = arith.constant 0 : i32
    return %c0_i32, %c0_i32_0, %c0_i32_1, %c0_i32_2 : i32, i32, i32, i32
  }
  func.func @transform_2(%arg0: i32) -> (i32, i32) {
    %c0_i32 = arith.constant 0 : i32
    %c0_i32_0 = arith.constant 0 : i32
    %c0_i32_1 = arith.constant 0 : i32
    return %c0_i32, %c0_i32_0 : i32, i32
  }
  func.func @transform_3(%arg0: i32) -> (i32, i32, i32) {
    %c0_i32 = arith.constant 0 : i32
    %c0_i32_0 = arith.constant 0 : i32
    %c0_i32_1 = arith.constant 0 : i32
    return %arg0, %c0_i32, %c0_i32_0 : i32, i32, i32
  }
}

module attributes {stable_mosaic.version = 11 : i64} {
  func.func @_conv_direct_kernel(%arg0: i32, %arg1: memref<1x64x64xbf16, #tpu.memory_space<vmem>>, %arg2: memref<5x5x64x128xbf16, #tpu.memory_space<vmem>>, %arg3: memref<1x128xf32, #tpu.memory_space<vmem>>, %arg4: memref<1x28x128xf32, #tpu.memory_space<vmem>>) attributes {dimension_semantics = [#tpu.dimension_semantics<parallel>], iteration_bounds = array<i64: 2>, scalar_prefetch = 0 : i64, scratch_operands = 0 : i64, tpu.core_type = #tpu.core_type<tc>, window_params = [{transform_indices = @transform_0, window_bounds = array<i64: 1, 64, 64>}, {pipeline_mode = #tpu.pipeline_mode<synchronous>, transform_indices = @transform_1, window_bounds = array<i64: 5, 5, 64, 128>}, {pipeline_mode = #tpu.pipeline_mode<synchronous>, transform_indices = @transform_2, window_bounds = array<i64: 1, 128>}, {transform_indices = @transform_3, window_bounds = array<i64: 1, 28, 128>}]} {
    %cst = arith.constant 0.000000e+00 : f32
    %0 = vector.broadcast %cst : f32 to vector<28x128xf32>
    %c0 = arith.constant 0 : index
    %c0_0 = arith.constant 0 : index
    %c0_1 = arith.constant 0 : index
    %1 = vector.load %arg1[%c0, %c0_0, %c0_1] : memref<1x64x64xbf16, #tpu.memory_space<vmem>>, vector<1x28x64xbf16>
    %2 = vector.shape_cast %1 : vector<1x28x64xbf16> to vector<28x64xbf16>
    %c0_2 = arith.constant 0 : index
    %c0_3 = arith.constant 0 : index
    %c0_4 = arith.constant 0 : index
    %c0_5 = arith.constant 0 : index
    %3 = vector.load %arg2[%c0_2, %c0_3, %c0_4, %c0_5] : memref<5x5x64x128xbf16, #tpu.memory_space<vmem>>, vector<1x1x64x128xbf16>
    %4 = vector.shape_cast %3 : vector<1x1x64x128xbf16> to vector<64x128xbf16>
    %cst_6 = arith.constant dense<0.000000e+00> : vector<28x128xf32>
    %5 = tpu.matmul %2, %4, %cst_6 {dimension_numbers = #tpu.dot_dimension_numbers<[1], [0], [0], [1], [0, 0, 1, 1], [], []>} : vector<28x64xbf16>, vector<64x128xbf16>, vector<28x128xf32> -> vector<28x128xf32>
    %6 = arith.addf %0, %5 : vector<28x128xf32>
    %c0_7 = arith.constant 0 : index
    %c1 = arith.constant 1 : index
    %c0_8 = arith.constant 0 : index
    %7 = vector.load %arg1[%c0_7, %c1, %c0_8] : memref<1x64x64xbf16, #tpu.memory_space<vmem>>, vector<1x28x64xbf16>
    %8 = vector.shape_cast %7 : vector<1x28x64xbf16> to vector<28x64xbf16>
    %c0_9 = arith.constant 0 : index
    %c1_10 = arith.constant 1 : index
    %c0_11 = arith.constant 0 : index
    %c0_12 = arith.constant 0 : index
    %9 = vector.load %arg2[%c0_9, %c1_10, %c0_11, %c0_12] : memref<5x5x64x128xbf16, #tpu.memory_space<vmem>>, vector<1x1x64x128xbf16>
    %10 = vector.shape_cast %9 : vector<1x1x64x128xbf16> to vector<64x128xbf16>
    %cst_13 = arith.constant dense<0.000000e+00> : vector<28x128xf32>
    %11 = tpu.matmul %8, %10, %cst_13 {dimension_numbers = #tpu.dot_dimension_numbers<[1], [0], [0], [1], [0, 0, 1, 1], [], []>} : vector<28x64xbf16>, vector<64x128xbf16>, vector<28x128xf32> -> vector<28x128xf32>
    %12 = arith.addf %6, %11 : vector<28x128xf32>
    %c0_14 = arith.constant 0 : index
    %c2 = arith.constant 2 : index
    %c0_15 = arith.constant 0 : index
    %13 = vector.load %arg1[%c0_14, %c2, %c0_15] : memref<1x64x64xbf16, #tpu.memory_space<vmem>>, vector<1x28x64xbf16>
    %14 = vector.shape_cast %13 : vector<1x28x64xbf16> to vector<28x64xbf16>
    %c0_16 = arith.constant 0 : index
    %c2_17 = arith.constant 2 : index
    %c0_18 = arith.constant 0 : index
    %c0_19 = arith.constant 0 : index
    %15 = vector.load %arg2[%c0_16, %c2_17, %c0_18, %c0_19] : memref<5x5x64x128xbf16, #tpu.memory_space<vmem>>, vector<1x1x64x128xbf16>
    %16 = vector.shape_cast %15 : vector<1x1x64x128xbf16> to vector<64x128xbf16>
    %cst_20 = arith.constant dense<0.000000e+00> : vector<28x128xf32>
    %17 = tpu.matmul %14, %16, %cst_20 {dimension_numbers = #tpu.dot_dimension_numbers<[1], [0], [0], [1], [0, 0, 1, 1], [], []>} : vector<28x64xbf16>, vector<64x128xbf16>, vector<28x128xf32> -> vector<28x128xf32>
    %18 = arith.addf %12, %17 : vector<28x128xf32>
    %c0_21 = arith.constant 0 : index
    %c3 = arith.constant 3 : index
    %c0_22 = arith.constant 0 : index
    %19 = vector.load %arg1[%c0_21, %c3, %c0_22] : memref<1x64x64xbf16, #tpu.memory_space<vmem>>, vector<1x28x64xbf16>
    %20 = vector.shape_cast %19 : vector<1x28x64xbf16> to vector<28x64xbf16>
    %c0_23 = arith.constant 0 : index
    %c3_24 = arith.constant 3 : index
    %c0_25 = arith.constant 0 : index
    %c0_26 = arith.constant 0 : index
    %21 = vector.load %arg2[%c0_23, %c3_24, %c0_25, %c0_26] : memref<5x5x64x128xbf16, #tpu.memory_space<vmem>>, vector<1x1x64x128xbf16>
    %22 = vector.shape_cast %21 : vector<1x1x64x128xbf16> to vector<64x128xbf16>
    %cst_27 = arith.constant dense<0.000000e+00> : vector<28x128xf32>
    %23 = tpu.matmul %20, %22, %cst_27 {dimension_numbers = #tpu.dot_dimension_numbers<[1], [0], [0], [1], [0, 0, 1, 1], [], []>} : vector<28x64xbf16>, vector<64x128xbf16>, vector<28x128xf32> -> vector<28x128xf32>
    %24 = arith.addf %18, %23 : vector<28x128xf32>
    %c0_28 = arith.constant 0 : index
    %c4 = arith.constant 4 : index
    %c0_29 = arith.constant 0 : index
    %25 = vector.load %arg1[%c0_28, %c4, %c0_29] : memref<1x64x64xbf16, #tpu.memory_space<vmem>>, vector<1x28x64xbf16>
    %26 = vector.shape_cast %25 : vector<1x28x64xbf16> to vector<28x64xbf16>
    %c0_30 = arith.constant 0 : index
    %c4_31 = arith.constant 4 : index
    %c0_32 = arith.constant 0 : index
    %c0_33 = arith.constant 0 : index
    %27 = vector.load %arg2[%c0_30, %c4_31, %c0_32, %c0_33] : memref<5x5x64x128xbf16, #tpu.memory_space<vmem>>, vector<1x1x64x128xbf16>
    %28 = vector.shape_cast %27 : vector<1x1x64x128xbf16> to vector<64x128xbf16>
    %cst_34 = arith.constant dense<0.000000e+00> : vector<28x128xf32>
    %29 = tpu.matmul %26, %28, %cst_34 {dimension_numbers = #tpu.dot_dimension_numbers<[1], [0], [0], [1], [0, 0, 1, 1], [], []>} : vector<28x64xbf16>, vector<64x128xbf16>, vector<28x128xf32> -> vector<28x128xf32>
    %30 = arith.addf %24, %29 : vector<28x128xf32>
    %c0_35 = arith.constant 0 : index
    %c8 = arith.constant 8 : index
    %c0_36 = arith.constant 0 : index
    %31 = vector.load %arg1[%c0_35, %c8, %c0_36] : memref<1x64x64xbf16, #tpu.memory_space<vmem>>, vector<1x28x64xbf16>
    %32 = vector.shape_cast %31 : vector<1x28x64xbf16> to vector<28x64xbf16>
    %c1_37 = arith.constant 1 : index
    %c0_38 = arith.constant 0 : index
    %c0_39 = arith.constant 0 : index
    %c0_40 = arith.constant 0 : index
    %33 = vector.load %arg2[%c1_37, %c0_38, %c0_39, %c0_40] : memref<5x5x64x128xbf16, #tpu.memory_space<vmem>>, vector<1x1x64x128xbf16>
    %34 = vector.shape_cast %33 : vector<1x1x64x128xbf16> to vector<64x128xbf16>
    %cst_41 = arith.constant dense<0.000000e+00> : vector<28x128xf32>
    %35 = tpu.matmul %32, %34, %cst_41 {dimension_numbers = #tpu.dot_dimension_numbers<[1], [0], [0], [1], [0, 0, 1, 1], [], []>} : vector<28x64xbf16>, vector<64x128xbf16>, vector<28x128xf32> -> vector<28x128xf32>
    %36 = arith.addf %30, %35 : vector<28x128xf32>
    %c0_42 = arith.constant 0 : index
    %c9 = arith.constant 9 : index
    %c0_43 = arith.constant 0 : index
    %37 = vector.load %arg1[%c0_42, %c9, %c0_43] : memref<1x64x64xbf16, #tpu.memory_space<vmem>>, vector<1x28x64xbf16>
    %38 = vector.shape_cast %37 : vector<1x28x64xbf16> to vector<28x64xbf16>
    %c1_44 = arith.constant 1 : index
    %c1_45 = arith.constant 1 : index
    %c0_46 = arith.constant 0 : index
    %c0_47 = arith.constant 0 : index
    %39 = vector.load %arg2[%c1_44, %c1_45, %c0_46, %c0_47] : memref<5x5x64x128xbf16, #tpu.memory_space<vmem>>, vector<1x1x64x128xbf16>
    %40 = vector.shape_cast %39 : vector<1x1x64x128xbf16> to vector<64x128xbf16>
    %cst_48 = arith.constant dense<0.000000e+00> : vector<28x128xf32>
    %41 = tpu.matmul %38, %40, %cst_48 {dimension_numbers = #tpu.dot_dimension_numbers<[1], [0], [0], [1], [0, 0, 1, 1], [], []>} : vector<28x64xbf16>, vector<64x128xbf16>, vector<28x128xf32> -> vector<28x128xf32>
    %42 = arith.addf %36, %41 : vector<28x128xf32>
    %c0_49 = arith.constant 0 : index
    %c10 = arith.constant 10 : index
    %c0_50 = arith.constant 0 : index
    %43 = vector.load %arg1[%c0_49, %c10, %c0_50] : memref<1x64x64xbf16, #tpu.memory_space<vmem>>, vector<1x28x64xbf16>
    %44 = vector.shape_cast %43 : vector<1x28x64xbf16> to vector<28x64xbf16>
    %c1_51 = arith.constant 1 : index
    %c2_52 = arith.constant 2 : index
    %c0_53 = arith.constant 0 : index
    %c0_54 = arith.constant 0 : index
    %45 = vector.load %arg2[%c1_51, %c2_52, %c0_53, %c0_54] : memref<5x5x64x128xbf16, #tpu.memory_space<vmem>>, vector<1x1x64x128xbf16>
    %46 = vector.shape_cast %45 : vector<1x1x64x128xbf16> to vector<64x128xbf16>
    %cst_55 = arith.constant dense<0.000000e+00> : vector<28x128xf32>
    %47 = tpu.matmul %44, %46, %cst_55 {dimension_numbers = #tpu.dot_dimension_numbers<[1], [0], [0], [1], [0, 0, 1, 1], [], []>} : vector<28x64xbf16>, vector<64x128xbf16>, vector<28x128xf32> -> vector<28x128xf32>
    %48 = arith.addf %42, %47 : vector<28x128xf32>
    %c0_56 = arith.constant 0 : index
    %c11 = arith.constant 11 : index
    %c0_57 = arith.constant 0 : index
    %49 = vector.load %arg1[%c0_56, %c11, %c0_57] : memref<1x64x64xbf16, #tpu.memory_space<vmem>>, vector<1x28x64xbf16>
    %50 = vector.shape_cast %49 : vector<1x28x64xbf16> to vector<28x64xbf16>
    %c1_58 = arith.constant 1 : index
    %c3_59 = arith.constant 3 : index
    %c0_60 = arith.constant 0 : index
    %c0_61 = arith.constant 0 : index
    %51 = vector.load %arg2[%c1_58, %c3_59, %c0_60, %c0_61] : memref<5x5x64x128xbf16, #tpu.memory_space<vmem>>, vector<1x1x64x128xbf16>
    %52 = vector.shape_cast %51 : vector<1x1x64x128xbf16> to vector<64x128xbf16>
    %cst_62 = arith.constant dense<0.000000e+00> : vector<28x128xf32>
    %53 = tpu.matmul %50, %52, %cst_62 {dimension_numbers = #tpu.dot_dimension_numbers<[1], [0], [0], [1], [0, 0, 1, 1], [], []>} : vector<28x64xbf16>, vector<64x128xbf16>, vector<28x128xf32> -> vector<28x128xf32>
    %54 = arith.addf %48, %53 : vector<28x128xf32>
    %c0_63 = arith.constant 0 : index
    %c12 = arith.constant 12 : index
    %c0_64 = arith.constant 0 : index
    %55 = vector.load %arg1[%c0_63, %c12, %c0_64] : memref<1x64x64xbf16, #tpu.memory_space<vmem>>, vector<1x28x64xbf16>
    %56 = vector.shape_cast %55 : vector<1x28x64xbf16> to vector<28x64xbf16>
    %c1_65 = arith.constant 1 : index
    %c4_66 = arith.constant 4 : index
    %c0_67 = arith.constant 0 : index
    %c0_68 = arith.constant 0 : index
    %57 = vector.load %arg2[%c1_65, %c4_66, %c0_67, %c0_68] : memref<5x5x64x128xbf16, #tpu.memory_space<vmem>>, vector<1x1x64x128xbf16>
    %58 = vector.shape_cast %57 : vector<1x1x64x128xbf16> to vector<64x128xbf16>
    %cst_69 = arith.constant dense<0.000000e+00> : vector<28x128xf32>
    %59 = tpu.matmul %56, %58, %cst_69 {dimension_numbers = #tpu.dot_dimension_numbers<[1], [0], [0], [1], [0, 0, 1, 1], [], []>} : vector<28x64xbf16>, vector<64x128xbf16>, vector<28x128xf32> -> vector<28x128xf32>
    %60 = arith.addf %54, %59 : vector<28x128xf32>
    %c0_70 = arith.constant 0 : index
    %c16 = arith.constant 16 : index
    %c0_71 = arith.constant 0 : index
    %61 = vector.load %arg1[%c0_70, %c16, %c0_71] : memref<1x64x64xbf16, #tpu.memory_space<vmem>>, vector<1x28x64xbf16>
    %62 = vector.shape_cast %61 : vector<1x28x64xbf16> to vector<28x64xbf16>
    %c2_72 = arith.constant 2 : index
    %c0_73 = arith.constant 0 : index
    %c0_74 = arith.constant 0 : index
    %c0_75 = arith.constant 0 : index
    %63 = vector.load %arg2[%c2_72, %c0_73, %c0_74, %c0_75] : memref<5x5x64x128xbf16, #tpu.memory_space<vmem>>, vector<1x1x64x128xbf16>
    %64 = vector.shape_cast %63 : vector<1x1x64x128xbf16> to vector<64x128xbf16>
    %cst_76 = arith.constant dense<0.000000e+00> : vector<28x128xf32>
    %65 = tpu.matmul %62, %64, %cst_76 {dimension_numbers = #tpu.dot_dimension_numbers<[1], [0], [0], [1], [0, 0, 1, 1], [], []>} : vector<28x64xbf16>, vector<64x128xbf16>, vector<28x128xf32> -> vector<28x128xf32>
    %66 = arith.addf %60, %65 : vector<28x128xf32>
    %c0_77 = arith.constant 0 : index
    %c17 = arith.constant 17 : index
    %c0_78 = arith.constant 0 : index
    %67 = vector.load %arg1[%c0_77, %c17, %c0_78] : memref<1x64x64xbf16, #tpu.memory_space<vmem>>, vector<1x28x64xbf16>
    %68 = vector.shape_cast %67 : vector<1x28x64xbf16> to vector<28x64xbf16>
    %c2_79 = arith.constant 2 : index
    %c1_80 = arith.constant 1 : index
    %c0_81 = arith.constant 0 : index
    %c0_82 = arith.constant 0 : index
    %69 = vector.load %arg2[%c2_79, %c1_80, %c0_81, %c0_82] : memref<5x5x64x128xbf16, #tpu.memory_space<vmem>>, vector<1x1x64x128xbf16>
    %70 = vector.shape_cast %69 : vector<1x1x64x128xbf16> to vector<64x128xbf16>
    %cst_83 = arith.constant dense<0.000000e+00> : vector<28x128xf32>
    %71 = tpu.matmul %68, %70, %cst_83 {dimension_numbers = #tpu.dot_dimension_numbers<[1], [0], [0], [1], [0, 0, 1, 1], [], []>} : vector<28x64xbf16>, vector<64x128xbf16>, vector<28x128xf32> -> vector<28x128xf32>
    %72 = arith.addf %66, %71 : vector<28x128xf32>
    %c0_84 = arith.constant 0 : index
    %c18 = arith.constant 18 : index
    %c0_85 = arith.constant 0 : index
    %73 = vector.load %arg1[%c0_84, %c18, %c0_85] : memref<1x64x64xbf16, #tpu.memory_space<vmem>>, vector<1x28x64xbf16>
    %74 = vector.shape_cast %73 : vector<1x28x64xbf16> to vector<28x64xbf16>
    %c2_86 = arith.constant 2 : index
    %c2_87 = arith.constant 2 : index
    %c0_88 = arith.constant 0 : index
    %c0_89 = arith.constant 0 : index
    %75 = vector.load %arg2[%c2_86, %c2_87, %c0_88, %c0_89] : memref<5x5x64x128xbf16, #tpu.memory_space<vmem>>, vector<1x1x64x128xbf16>
    %76 = vector.shape_cast %75 : vector<1x1x64x128xbf16> to vector<64x128xbf16>
    %cst_90 = arith.constant dense<0.000000e+00> : vector<28x128xf32>
    %77 = tpu.matmul %74, %76, %cst_90 {dimension_numbers = #tpu.dot_dimension_numbers<[1], [0], [0], [1], [0, 0, 1, 1], [], []>} : vector<28x64xbf16>, vector<64x128xbf16>, vector<28x128xf32> -> vector<28x128xf32>
    %78 = arith.addf %72, %77 : vector<28x128xf32>
    %c0_91 = arith.constant 0 : index
    %c19 = arith.constant 19 : index
    %c0_92 = arith.constant 0 : index
    %79 = vector.load %arg1[%c0_91, %c19, %c0_92] : memref<1x64x64xbf16, #tpu.memory_space<vmem>>, vector<1x28x64xbf16>
    %80 = vector.shape_cast %79 : vector<1x28x64xbf16> to vector<28x64xbf16>
    %c2_93 = arith.constant 2 : index
    %c3_94 = arith.constant 3 : index
    %c0_95 = arith.constant 0 : index
    %c0_96 = arith.constant 0 : index
    %81 = vector.load %arg2[%c2_93, %c3_94, %c0_95, %c0_96] : memref<5x5x64x128xbf16, #tpu.memory_space<vmem>>, vector<1x1x64x128xbf16>
    %82 = vector.shape_cast %81 : vector<1x1x64x128xbf16> to vector<64x128xbf16>
    %cst_97 = arith.constant dense<0.000000e+00> : vector<28x128xf32>
    %83 = tpu.matmul %80, %82, %cst_97 {dimension_numbers = #tpu.dot_dimension_numbers<[1], [0], [0], [1], [0, 0, 1, 1], [], []>} : vector<28x64xbf16>, vector<64x128xbf16>, vector<28x128xf32> -> vector<28x128xf32>
    %84 = arith.addf %78, %83 : vector<28x128xf32>
    %c0_98 = arith.constant 0 : index
    %c20 = arith.constant 20 : index
    %c0_99 = arith.constant 0 : index
    %85 = vector.load %arg1[%c0_98, %c20, %c0_99] : memref<1x64x64xbf16, #tpu.memory_space<vmem>>, vector<1x28x64xbf16>
    %86 = vector.shape_cast %85 : vector<1x28x64xbf16> to vector<28x64xbf16>
    %c2_100 = arith.constant 2 : index
    %c4_101 = arith.constant 4 : index
    %c0_102 = arith.constant 0 : index
    %c0_103 = arith.constant 0 : index
    %87 = vector.load %arg2[%c2_100, %c4_101, %c0_102, %c0_103] : memref<5x5x64x128xbf16, #tpu.memory_space<vmem>>, vector<1x1x64x128xbf16>
    %88 = vector.shape_cast %87 : vector<1x1x64x128xbf16> to vector<64x128xbf16>
    %cst_104 = arith.constant dense<0.000000e+00> : vector<28x128xf32>
    %89 = tpu.matmul %86, %88, %cst_104 {dimension_numbers = #tpu.dot_dimension_numbers<[1], [0], [0], [1], [0, 0, 1, 1], [], []>} : vector<28x64xbf16>, vector<64x128xbf16>, vector<28x128xf32> -> vector<28x128xf32>
    %90 = arith.addf %84, %89 : vector<28x128xf32>
    %c0_105 = arith.constant 0 : index
    %c24 = arith.constant 24 : index
    %c0_106 = arith.constant 0 : index
    %91 = vector.load %arg1[%c0_105, %c24, %c0_106] : memref<1x64x64xbf16, #tpu.memory_space<vmem>>, vector<1x28x64xbf16>
    %92 = vector.shape_cast %91 : vector<1x28x64xbf16> to vector<28x64xbf16>
    %c3_107 = arith.constant 3 : index
    %c0_108 = arith.constant 0 : index
    %c0_109 = arith.constant 0 : index
    %c0_110 = arith.constant 0 : index
    %93 = vector.load %arg2[%c3_107, %c0_108, %c0_109, %c0_110] : memref<5x5x64x128xbf16, #tpu.memory_space<vmem>>, vector<1x1x64x128xbf16>
    %94 = vector.shape_cast %93 : vector<1x1x64x128xbf16> to vector<64x128xbf16>
    %cst_111 = arith.constant dense<0.000000e+00> : vector<28x128xf32>
    %95 = tpu.matmul %92, %94, %cst_111 {dimension_numbers = #tpu.dot_dimension_numbers<[1], [0], [0], [1], [0, 0, 1, 1], [], []>} : vector<28x64xbf16>, vector<64x128xbf16>, vector<28x128xf32> -> vector<28x128xf32>
    %96 = arith.addf %90, %95 : vector<28x128xf32>
    %c0_112 = arith.constant 0 : index
    %c25 = arith.constant 25 : index
    %c0_113 = arith.constant 0 : index
    %97 = vector.load %arg1[%c0_112, %c25, %c0_113] : memref<1x64x64xbf16, #tpu.memory_space<vmem>>, vector<1x28x64xbf16>
    %98 = vector.shape_cast %97 : vector<1x28x64xbf16> to vector<28x64xbf16>
    %c3_114 = arith.constant 3 : index
    %c1_115 = arith.constant 1 : index
    %c0_116 = arith.constant 0 : index
    %c0_117 = arith.constant 0 : index
    %99 = vector.load %arg2[%c3_114, %c1_115, %c0_116, %c0_117] : memref<5x5x64x128xbf16, #tpu.memory_space<vmem>>, vector<1x1x64x128xbf16>
    %100 = vector.shape_cast %99 : vector<1x1x64x128xbf16> to vector<64x128xbf16>
    %cst_118 = arith.constant dense<0.000000e+00> : vector<28x128xf32>
    %101 = tpu.matmul %98, %100, %cst_118 {dimension_numbers = #tpu.dot_dimension_numbers<[1], [0], [0], [1], [0, 0, 1, 1], [], []>} : vector<28x64xbf16>, vector<64x128xbf16>, vector<28x128xf32> -> vector<28x128xf32>
    %102 = arith.addf %96, %101 : vector<28x128xf32>
    %c0_119 = arith.constant 0 : index
    %c26 = arith.constant 26 : index
    %c0_120 = arith.constant 0 : index
    %103 = vector.load %arg1[%c0_119, %c26, %c0_120] : memref<1x64x64xbf16, #tpu.memory_space<vmem>>, vector<1x28x64xbf16>
    %104 = vector.shape_cast %103 : vector<1x28x64xbf16> to vector<28x64xbf16>
    %c3_121 = arith.constant 3 : index
    %c2_122 = arith.constant 2 : index
    %c0_123 = arith.constant 0 : index
    %c0_124 = arith.constant 0 : index
    %105 = vector.load %arg2[%c3_121, %c2_122, %c0_123, %c0_124] : memref<5x5x64x128xbf16, #tpu.memory_space<vmem>>, vector<1x1x64x128xbf16>
    %106 = vector.shape_cast %105 : vector<1x1x64x128xbf16> to vector<64x128xbf16>
    %cst_125 = arith.constant dense<0.000000e+00> : vector<28x128xf32>
    %107 = tpu.matmul %104, %106, %cst_125 {dimension_numbers = #tpu.dot_dimension_numbers<[1], [0], [0], [1], [0, 0, 1, 1], [], []>} : vector<28x64xbf16>, vector<64x128xbf16>, vector<28x128xf32> -> vector<28x128xf32>
    %108 = arith.addf %102, %107 : vector<28x128xf32>
    %c0_126 = arith.constant 0 : index
    %c27 = arith.constant 27 : index
    %c0_127 = arith.constant 0 : index
    %109 = vector.load %arg1[%c0_126, %c27, %c0_127] : memref<1x64x64xbf16, #tpu.memory_space<vmem>>, vector<1x28x64xbf16>
    %110 = vector.shape_cast %109 : vector<1x28x64xbf16> to vector<28x64xbf16>
    %c3_128 = arith.constant 3 : index
    %c3_129 = arith.constant 3 : index
    %c0_130 = arith.constant 0 : index
    %c0_131 = arith.constant 0 : index
    %111 = vector.load %arg2[%c3_128, %c3_129, %c0_130, %c0_131] : memref<5x5x64x128xbf16, #tpu.memory_space<vmem>>, vector<1x1x64x128xbf16>
    %112 = vector.shape_cast %111 : vector<1x1x64x128xbf16> to vector<64x128xbf16>
    %cst_132 = arith.constant dense<0.000000e+00> : vector<28x128xf32>
    %113 = tpu.matmul %110, %112, %cst_132 {dimension_numbers = #tpu.dot_dimension_numbers<[1], [0], [0], [1], [0, 0, 1, 1], [], []>} : vector<28x64xbf16>, vector<64x128xbf16>, vector<28x128xf32> -> vector<28x128xf32>
    %114 = arith.addf %108, %113 : vector<28x128xf32>
    %c0_133 = arith.constant 0 : index
    %c28 = arith.constant 28 : index
    %c0_134 = arith.constant 0 : index
    %115 = vector.load %arg1[%c0_133, %c28, %c0_134] : memref<1x64x64xbf16, #tpu.memory_space<vmem>>, vector<1x28x64xbf16>
    %116 = vector.shape_cast %115 : vector<1x28x64xbf16> to vector<28x64xbf16>
    %c3_135 = arith.constant 3 : index
    %c4_136 = arith.constant 4 : index
    %c0_137 = arith.constant 0 : index
    %c0_138 = arith.constant 0 : index
    %117 = vector.load %arg2[%c3_135, %c4_136, %c0_137, %c0_138] : memref<5x5x64x128xbf16, #tpu.memory_space<vmem>>, vector<1x1x64x128xbf16>
    %118 = vector.shape_cast %117 : vector<1x1x64x128xbf16> to vector<64x128xbf16>
    %cst_139 = arith.constant dense<0.000000e+00> : vector<28x128xf32>
    %119 = tpu.matmul %116, %118, %cst_139 {dimension_numbers = #tpu.dot_dimension_numbers<[1], [0], [0], [1], [0, 0, 1, 1], [], []>} : vector<28x64xbf16>, vector<64x128xbf16>, vector<28x128xf32> -> vector<28x128xf32>
    %120 = arith.addf %114, %119 : vector<28x128xf32>
    %c0_140 = arith.constant 0 : index
    %c32 = arith.constant 32 : index
    %c0_141 = arith.constant 0 : index
    %121 = vector.load %arg1[%c0_140, %c32, %c0_141] : memref<1x64x64xbf16, #tpu.memory_space<vmem>>, vector<1x28x64xbf16>
    %122 = vector.shape_cast %121 : vector<1x28x64xbf16> to vector<28x64xbf16>
    %c4_142 = arith.constant 4 : index
    %c0_143 = arith.constant 0 : index
    %c0_144 = arith.constant 0 : index
    %c0_145 = arith.constant 0 : index
    %123 = vector.load %arg2[%c4_142, %c0_143, %c0_144, %c0_145] : memref<5x5x64x128xbf16, #tpu.memory_space<vmem>>, vector<1x1x64x128xbf16>
    %124 = vector.shape_cast %123 : vector<1x1x64x128xbf16> to vector<64x128xbf16>
    %cst_146 = arith.constant dense<0.000000e+00> : vector<28x128xf32>
    %125 = tpu.matmul %122, %124, %cst_146 {dimension_numbers = #tpu.dot_dimension_numbers<[1], [0], [0], [1], [0, 0, 1, 1], [], []>} : vector<28x64xbf16>, vector<64x128xbf16>, vector<28x128xf32> -> vector<28x128xf32>
    %126 = arith.addf %120, %125 : vector<28x128xf32>
    %c0_147 = arith.constant 0 : index
    %c33 = arith.constant 33 : index
    %c0_148 = arith.constant 0 : index
    %127 = vector.load %arg1[%c0_147, %c33, %c0_148] : memref<1x64x64xbf16, #tpu.memory_space<vmem>>, vector<1x28x64xbf16>
    %128 = vector.shape_cast %127 : vector<1x28x64xbf16> to vector<28x64xbf16>
    %c4_149 = arith.constant 4 : index
    %c1_150 = arith.constant 1 : index
    %c0_151 = arith.constant 0 : index
    %c0_152 = arith.constant 0 : index
    %129 = vector.load %arg2[%c4_149, %c1_150, %c0_151, %c0_152] : memref<5x5x64x128xbf16, #tpu.memory_space<vmem>>, vector<1x1x64x128xbf16>
    %130 = vector.shape_cast %129 : vector<1x1x64x128xbf16> to vector<64x128xbf16>
    %cst_153 = arith.constant dense<0.000000e+00> : vector<28x128xf32>
    %131 = tpu.matmul %128, %130, %cst_153 {dimension_numbers = #tpu.dot_dimension_numbers<[1], [0], [0], [1], [0, 0, 1, 1], [], []>} : vector<28x64xbf16>, vector<64x128xbf16>, vector<28x128xf32> -> vector<28x128xf32>
    %132 = arith.addf %126, %131 : vector<28x128xf32>
    %c0_154 = arith.constant 0 : index
    %c34 = arith.constant 34 : index
    %c0_155 = arith.constant 0 : index
    %133 = vector.load %arg1[%c0_154, %c34, %c0_155] : memref<1x64x64xbf16, #tpu.memory_space<vmem>>, vector<1x28x64xbf16>
    %134 = vector.shape_cast %133 : vector<1x28x64xbf16> to vector<28x64xbf16>
    %c4_156 = arith.constant 4 : index
    %c2_157 = arith.constant 2 : index
    %c0_158 = arith.constant 0 : index
    %c0_159 = arith.constant 0 : index
    %135 = vector.load %arg2[%c4_156, %c2_157, %c0_158, %c0_159] : memref<5x5x64x128xbf16, #tpu.memory_space<vmem>>, vector<1x1x64x128xbf16>
    %136 = vector.shape_cast %135 : vector<1x1x64x128xbf16> to vector<64x128xbf16>
    %cst_160 = arith.constant dense<0.000000e+00> : vector<28x128xf32>
    %137 = tpu.matmul %134, %136, %cst_160 {dimension_numbers = #tpu.dot_dimension_numbers<[1], [0], [0], [1], [0, 0, 1, 1], [], []>} : vector<28x64xbf16>, vector<64x128xbf16>, vector<28x128xf32> -> vector<28x128xf32>
    %138 = arith.addf %132, %137 : vector<28x128xf32>
    %c0_161 = arith.constant 0 : index
    %c35 = arith.constant 35 : index
    %c0_162 = arith.constant 0 : index
    %139 = vector.load %arg1[%c0_161, %c35, %c0_162] : memref<1x64x64xbf16, #tpu.memory_space<vmem>>, vector<1x28x64xbf16>
    %140 = vector.shape_cast %139 : vector<1x28x64xbf16> to vector<28x64xbf16>
    %c4_163 = arith.constant 4 : index
    %c3_164 = arith.constant 3 : index
    %c0_165 = arith.constant 0 : index
    %c0_166 = arith.constant 0 : index
    %141 = vector.load %arg2[%c4_163, %c3_164, %c0_165, %c0_166] : memref<5x5x64x128xbf16, #tpu.memory_space<vmem>>, vector<1x1x64x128xbf16>
    %142 = vector.shape_cast %141 : vector<1x1x64x128xbf16> to vector<64x128xbf16>
    %cst_167 = arith.constant dense<0.000000e+00> : vector<28x128xf32>
    %143 = tpu.matmul %140, %142, %cst_167 {dimension_numbers = #tpu.dot_dimension_numbers<[1], [0], [0], [1], [0, 0, 1, 1], [], []>} : vector<28x64xbf16>, vector<64x128xbf16>, vector<28x128xf32> -> vector<28x128xf32>
    %144 = arith.addf %138, %143 : vector<28x128xf32>
    %c0_168 = arith.constant 0 : index
    %c36 = arith.constant 36 : index
    %c0_169 = arith.constant 0 : index
    %145 = vector.load %arg1[%c0_168, %c36, %c0_169] : memref<1x64x64xbf16, #tpu.memory_space<vmem>>, vector<1x28x64xbf16>
    %146 = vector.shape_cast %145 : vector<1x28x64xbf16> to vector<28x64xbf16>
    %c4_170 = arith.constant 4 : index
    %c4_171 = arith.constant 4 : index
    %c0_172 = arith.constant 0 : index
    %c0_173 = arith.constant 0 : index
    %147 = vector.load %arg2[%c4_170, %c4_171, %c0_172, %c0_173] : memref<5x5x64x128xbf16, #tpu.memory_space<vmem>>, vector<1x1x64x128xbf16>
    %148 = vector.shape_cast %147 : vector<1x1x64x128xbf16> to vector<64x128xbf16>
    %cst_174 = arith.constant dense<0.000000e+00> : vector<28x128xf32>
    %149 = tpu.matmul %146, %148, %cst_174 {dimension_numbers = #tpu.dot_dimension_numbers<[1], [0], [0], [1], [0, 0, 1, 1], [], []>} : vector<28x64xbf16>, vector<64x128xbf16>, vector<28x128xf32> -> vector<28x128xf32>
    %150 = arith.addf %144, %149 : vector<28x128xf32>
    %c0_175 = arith.constant 0 : index
    %c0_176 = arith.constant 0 : index
    %151 = vector.load %arg3[%c0_175, %c0_176] : memref<1x128xf32, #tpu.memory_space<vmem>>, vector<1x128xf32>
    %152 = vector.broadcast %151 : vector<1x128xf32> to vector<28x128xf32>
    %153 = arith.addf %150, %152 : vector<28x128xf32>
    %c0_177 = arith.constant 0 : index
    %c0_178 = arith.constant 0 : index
    %c0_179 = arith.constant 0 : index
    %154 = vector.load %arg4[%c0_177, %c0_178, %c0_179] : memref<1x28x128xf32, #tpu.memory_space<vmem>>, vector<1x28x128xf32>
    %155 = vector.shape_cast %154 : vector<1x28x128xf32> to vector<28x128xf32>
    %156 = vector.shape_cast %153 : vector<28x128xf32> to vector<1x28x128xf32>
    tpu.vector_store %arg4[%c0_177, %c0_178, %c0_179], %156 {strides = array<i32>} : memref<1x28x128xf32, #tpu.memory_space<vmem>>, vector<1x28x128xf32>,
    return
  }
  func.func @transform_0(%arg0: i32) -> (i32, i32, i32) {
    %c0_i32 = arith.constant 0 : i32
    %c0_i32_0 = arith.constant 0 : i32
    %c0_i32_1 = arith.constant 0 : i32
    return %arg0, %c0_i32, %c0_i32_0 : i32, i32, i32
  }
  func.func @transform_1(%arg0: i32) -> (i32, i32, i32, i32) {
    %c0_i32 = arith.constant 0 : i32
    %c0_i32_0 = arith.constant 0 : i32
    %c0_i32_1 = arith.constant 0 : i32
    %c0_i32_2 = arith.constant 0 : i32
    %c0_i32_3 = arith.constant 0 : i32
    return %c0_i32, %c0_i32_0, %c0_i32_1, %c0_i32_2 : i32, i32, i32, i32
  }
  func.func @transform_2(%arg0: i32) -> (i32, i32) {
    %c0_i32 = arith.constant 0 : i32
    %c0_i32_0 = arith.constant 0 : i32
    %c0_i32_1 = arith.constant 0 : i32
    return %c0_i32, %c0_i32_0 : i32, i32
  }
  func.func @transform_3(%arg0: i32) -> (i32, i32, i32) {
    %c0_i32 = arith.constant 0 : i32
    %c0_i32_0 = arith.constant 0 : i32
    %c0_i32_1 = arith.constant 0 : i32
    return %arg0, %c0_i32, %c0_i32_0 : i32, i32, i32
  }
}

module attributes {stable_mosaic.version = 11 : i64} {
  func.func @_conv_direct_kernel(%arg0: i32, %arg1: memref<1x36x16xbf16, #tpu.memory_space<vmem>>, %arg2: memref<3x3x16x32xbf16, #tpu.memory_space<vmem>>, %arg3: memref<1x32xf32, #tpu.memory_space<vmem>>, %arg4: memref<1x22x32xf32, #tpu.memory_space<vmem>>) attributes {dimension_semantics = [#tpu.dimension_semantics<parallel>], iteration_bounds = array<i64: 2>, scalar_prefetch = 0 : i64, scratch_operands = 0 : i64, tpu.core_type = #tpu.core_type<tc>, window_params = [{transform_indices = @transform_0, window_bounds = array<i64: 1, 36, 16>}, {pipeline_mode = #tpu.pipeline_mode<synchronous>, transform_indices = @transform_1, window_bounds = array<i64: 3, 3, 16, 32>}, {pipeline_mode = #tpu.pipeline_mode<synchronous>, transform_indices = @transform_2, window_bounds = array<i64: 1, 32>}, {transform_indices = @transform_3, window_bounds = array<i64: 1, 22, 32>}]} {
    %cst = arith.constant 0.000000e+00 : f32
    %0 = vector.broadcast %cst : f32 to vector<22x32xf32>
    %c0 = arith.constant 0 : index
    %c0_0 = arith.constant 0 : index
    %c0_1 = arith.constant 0 : index
    %1 = vector.load %arg1[%c0, %c0_0, %c0_1] : memref<1x36x16xbf16, #tpu.memory_space<vmem>>, vector<1x22x16xbf16>
    %2 = vector.shape_cast %1 : vector<1x22x16xbf16> to vector<22x16xbf16>
    %c0_2 = arith.constant 0 : index
    %c0_3 = arith.constant 0 : index
    %c0_4 = arith.constant 0 : index
    %c0_5 = arith.constant 0 : index
    %3 = vector.load %arg2[%c0_2, %c0_3, %c0_4, %c0_5] : memref<3x3x16x32xbf16, #tpu.memory_space<vmem>>, vector<1x1x16x32xbf16>
    %4 = vector.shape_cast %3 : vector<1x1x16x32xbf16> to vector<16x32xbf16>
    %cst_6 = arith.constant dense<0.000000e+00> : vector<22x32xf32>
    %5 = tpu.matmul %2, %4, %cst_6 {dimension_numbers = #tpu.dot_dimension_numbers<[1], [0], [0], [1], [0, 0, 1, 1], [], []>} : vector<22x16xbf16>, vector<16x32xbf16>, vector<22x32xf32> -> vector<22x32xf32>
    %6 = arith.addf %0, %5 : vector<22x32xf32>
    %c0_7 = arith.constant 0 : index
    %c1 = arith.constant 1 : index
    %c0_8 = arith.constant 0 : index
    %7 = vector.load %arg1[%c0_7, %c1, %c0_8] : memref<1x36x16xbf16, #tpu.memory_space<vmem>>, vector<1x22x16xbf16>
    %8 = vector.shape_cast %7 : vector<1x22x16xbf16> to vector<22x16xbf16>
    %c0_9 = arith.constant 0 : index
    %c1_10 = arith.constant 1 : index
    %c0_11 = arith.constant 0 : index
    %c0_12 = arith.constant 0 : index
    %9 = vector.load %arg2[%c0_9, %c1_10, %c0_11, %c0_12] : memref<3x3x16x32xbf16, #tpu.memory_space<vmem>>, vector<1x1x16x32xbf16>
    %10 = vector.shape_cast %9 : vector<1x1x16x32xbf16> to vector<16x32xbf16>
    %cst_13 = arith.constant dense<0.000000e+00> : vector<22x32xf32>
    %11 = tpu.matmul %8, %10, %cst_13 {dimension_numbers = #tpu.dot_dimension_numbers<[1], [0], [0], [1], [0, 0, 1, 1], [], []>} : vector<22x16xbf16>, vector<16x32xbf16>, vector<22x32xf32> -> vector<22x32xf32>
    %12 = arith.addf %6, %11 : vector<22x32xf32>
    %c0_14 = arith.constant 0 : index
    %c2 = arith.constant 2 : index
    %c0_15 = arith.constant 0 : index
    %13 = vector.load %arg1[%c0_14, %c2, %c0_15] : memref<1x36x16xbf16, #tpu.memory_space<vmem>>, vector<1x22x16xbf16>
    %14 = vector.shape_cast %13 : vector<1x22x16xbf16> to vector<22x16xbf16>
    %c0_16 = arith.constant 0 : index
    %c2_17 = arith.constant 2 : index
    %c0_18 = arith.constant 0 : index
    %c0_19 = arith.constant 0 : index
    %15 = vector.load %arg2[%c0_16, %c2_17, %c0_18, %c0_19] : memref<3x3x16x32xbf16, #tpu.memory_space<vmem>>, vector<1x1x16x32xbf16>
    %16 = vector.shape_cast %15 : vector<1x1x16x32xbf16> to vector<16x32xbf16>
    %cst_20 = arith.constant dense<0.000000e+00> : vector<22x32xf32>
    %17 = tpu.matmul %14, %16, %cst_20 {dimension_numbers = #tpu.dot_dimension_numbers<[1], [0], [0], [1], [0, 0, 1, 1], [], []>} : vector<22x16xbf16>, vector<16x32xbf16>, vector<22x32xf32> -> vector<22x32xf32>
    %18 = arith.addf %12, %17 : vector<22x32xf32>
    %c0_21 = arith.constant 0 : index
    %c6 = arith.constant 6 : index
    %c0_22 = arith.constant 0 : index
    %19 = vector.load %arg1[%c0_21, %c6, %c0_22] : memref<1x36x16xbf16, #tpu.memory_space<vmem>>, vector<1x22x16xbf16>
    %20 = vector.shape_cast %19 : vector<1x22x16xbf16> to vector<22x16xbf16>
    %c1_23 = arith.constant 1 : index
    %c0_24 = arith.constant 0 : index
    %c0_25 = arith.constant 0 : index
    %c0_26 = arith.constant 0 : index
    %21 = vector.load %arg2[%c1_23, %c0_24, %c0_25, %c0_26] : memref<3x3x16x32xbf16, #tpu.memory_space<vmem>>, vector<1x1x16x32xbf16>
    %22 = vector.shape_cast %21 : vector<1x1x16x32xbf16> to vector<16x32xbf16>
    %cst_27 = arith.constant dense<0.000000e+00> : vector<22x32xf32>
    %23 = tpu.matmul %20, %22, %cst_27 {dimension_numbers = #tpu.dot_dimension_numbers<[1], [0], [0], [1], [0, 0, 1, 1], [], []>} : vector<22x16xbf16>, vector<16x32xbf16>, vector<22x32xf32> -> vector<22x32xf32>
    %24 = arith.addf %18, %23 : vector<22x32xf32>
    %c0_28 = arith.constant 0 : index
    %c7 = arith.constant 7 : index
    %c0_29 = arith.constant 0 : index
    %25 = vector.load %arg1[%c0_28, %c7, %c0_29] : memref<1x36x16xbf16, #tpu.memory_space<vmem>>, vector<1x22x16xbf16>
    %26 = vector.shape_cast %25 : vector<1x22x16xbf16> to vector<22x16xbf16>
    %c1_30 = arith.constant 1 : index
    %c1_31 = arith.constant 1 : index
    %c0_32 = arith.constant 0 : index
    %c0_33 = arith.constant 0 : index
    %27 = vector.load %arg2[%c1_30, %c1_31, %c0_32, %c0_33] : memref<3x3x16x32xbf16, #tpu.memory_space<vmem>>, vector<1x1x16x32xbf16>
    %28 = vector.shape_cast %27 : vector<1x1x16x32xbf16> to vector<16x32xbf16>
    %cst_34 = arith.constant dense<0.000000e+00> : vector<22x32xf32>
    %29 = tpu.matmul %26, %28, %cst_34 {dimension_numbers = #tpu.dot_dimension_numbers<[1], [0], [0], [1], [0, 0, 1, 1], [], []>} : vector<22x16xbf16>, vector<16x32xbf16>, vector<22x32xf32> -> vector<22x32xf32>
    %30 = arith.addf %24, %29 : vector<22x32xf32>
    %c0_35 = arith.constant 0 : index
    %c8 = arith.constant 8 : index
    %c0_36 = arith.constant 0 : index
    %31 = vector.load %arg1[%c0_35, %c8, %c0_36] : memref<1x36x16xbf16, #tpu.memory_space<vmem>>, vector<1x22x16xbf16>
    %32 = vector.shape_cast %31 : vector<1x22x16xbf16> to vector<22x16xbf16>
    %c1_37 = arith.constant 1 : index
    %c2_38 = arith.constant 2 : index
    %c0_39 = arith.constant 0 : index
    %c0_40 = arith.constant 0 : index
    %33 = vector.load %arg2[%c1_37, %c2_38, %c0_39, %c0_40] : memref<3x3x16x32xbf16, #tpu.memory_space<vmem>>, vector<1x1x16x32xbf16>
    %34 = vector.shape_cast %33 : vector<1x1x16x32xbf16> to vector<16x32xbf16>
    %cst_41 = arith.constant dense<0.000000e+00> : vector<22x32xf32>
    %35 = tpu.matmul %32, %34, %cst_41 {dimension_numbers = #tpu.dot_dimension_numbers<[1], [0], [0], [1], [0, 0, 1, 1], [], []>} : vector<22x16xbf16>, vector<16x32xbf16>, vector<22x32xf32> -> vector<22x32xf32>
    %36 = arith.addf %30, %35 : vector<22x32xf32>
    %c0_42 = arith.constant 0 : index
    %c12 = arith.constant 12 : index
    %c0_43 = arith.constant 0 : index
    %37 = vector.load %arg1[%c0_42, %c12, %c0_43] : memref<1x36x16xbf16, #tpu.memory_space<vmem>>, vector<1x22x16xbf16>
    %38 = vector.shape_cast %37 : vector<1x22x16xbf16> to vector<22x16xbf16>
    %c2_44 = arith.constant 2 : index
    %c0_45 = arith.constant 0 : index
    %c0_46 = arith.constant 0 : index
    %c0_47 = arith.constant 0 : index
    %39 = vector.load %arg2[%c2_44, %c0_45, %c0_46, %c0_47] : memref<3x3x16x32xbf16, #tpu.memory_space<vmem>>, vector<1x1x16x32xbf16>
    %40 = vector.shape_cast %39 : vector<1x1x16x32xbf16> to vector<16x32xbf16>
    %cst_48 = arith.constant dense<0.000000e+00> : vector<22x32xf32>
    %41 = tpu.matmul %38, %40, %cst_48 {dimension_numbers = #tpu.dot_dimension_numbers<[1], [0], [0], [1], [0, 0, 1, 1], [], []>} : vector<22x16xbf16>, vector<16x32xbf16>, vector<22x32xf32> -> vector<22x32xf32>
    %42 = arith.addf %36, %41 : vector<22x32xf32>
    %c0_49 = arith.constant 0 : index
    %c13 = arith.constant 13 : index
    %c0_50 = arith.constant 0 : index
    %43 = vector.load %arg1[%c0_49, %c13, %c0_50] : memref<1x36x16xbf16, #tpu.memory_space<vmem>>, vector<1x22x16xbf16>
    %44 = vector.shape_cast %43 : vector<1x22x16xbf16> to vector<22x16xbf16>
    %c2_51 = arith.constant 2 : index
    %c1_52 = arith.constant 1 : index
    %c0_53 = arith.constant 0 : index
    %c0_54 = arith.constant 0 : index
    %45 = vector.load %arg2[%c2_51, %c1_52, %c0_53, %c0_54] : memref<3x3x16x32xbf16, #tpu.memory_space<vmem>>, vector<1x1x16x32xbf16>
    %46 = vector.shape_cast %45 : vector<1x1x16x32xbf16> to vector<16x32xbf16>
    %cst_55 = arith.constant dense<0.000000e+00> : vector<22x32xf32>
    %47 = tpu.matmul %44, %46, %cst_55 {dimension_numbers = #tpu.dot_dimension_numbers<[1], [0], [0], [1], [0, 0, 1, 1], [], []>} : vector<22x16xbf16>, vector<16x32xbf16>, vector<22x32xf32> -> vector<22x32xf32>
    %48 = arith.addf %42, %47 : vector<22x32xf32>
    %c0_56 = arith.constant 0 : index
    %c14 = arith.constant 14 : index
    %c0_57 = arith.constant 0 : index
    %49 = vector.load %arg1[%c0_56, %c14, %c0_57] : memref<1x36x16xbf16, #tpu.memory_space<vmem>>, vector<1x22x16xbf16>
    %50 = vector.shape_cast %49 : vector<1x22x16xbf16> to vector<22x16xbf16>
    %c2_58 = arith.constant 2 : index
    %c2_59 = arith.constant 2 : index
    %c0_60 = arith.constant 0 : index
    %c0_61 = arith.constant 0 : index
    %51 = vector.load %arg2[%c2_58, %c2_59, %c0_60, %c0_61] : memref<3x3x16x32xbf16, #tpu.memory_space<vmem>>, vector<1x1x16x32xbf16>
    %52 = vector.shape_cast %51 : vector<1x1x16x32xbf16> to vector<16x32xbf16>
    %cst_62 = arith.constant dense<0.000000e+00> : vector<22x32xf32>
    %53 = tpu.matmul %50, %52, %cst_62 {dimension_numbers = #tpu.dot_dimension_numbers<[1], [0], [0], [1], [0, 0, 1, 1], [], []>} : vector<22x16xbf16>, vector<16x32xbf16>, vector<22x32xf32> -> vector<22x32xf32>
    %54 = arith.addf %48, %53 : vector<22x32xf32>
    %c0_63 = arith.constant 0 : index
    %c0_64 = arith.constant 0 : index
    %55 = vector.load %arg3[%c0_63, %c0_64] : memref<1x32xf32, #tpu.memory_space<vmem>>, vector<1x32xf32>
    %56 = vector.broadcast %55 : vector<1x32xf32> to vector<22x32xf32>
    %57 = arith.addf %54, %56 : vector<22x32xf32>
    %cst_65 = arith.constant 0.000000e+00 : f32
    %58 = vector.broadcast %cst_65 : f32 to vector<22x32xf32>
    %59 = arith.maximumf %57, %58 : vector<22x32xf32>
    %c0_66 = arith.constant 0 : index
    %c0_67 = arith.constant 0 : index
    %c0_68 = arith.constant 0 : index
    %60 = vector.load %arg4[%c0_66, %c0_67, %c0_68] : memref<1x22x32xf32, #tpu.memory_space<vmem>>, vector<1x22x32xf32>
    %61 = vector.shape_cast %60 : vector<1x22x32xf32> to vector<22x32xf32>
    %62 = vector.shape_cast %59 : vector<22x32xf32> to vector<1x22x32xf32>
    tpu.vector_store %arg4[%c0_66, %c0_67, %c0_68], %62 {strides = array<i32>} : memref<1x22x32xf32, #tpu.memory_space<vmem>>, vector<1x22x32xf32>,
    return
  }
  func.func @transform_0(%arg0: i32) -> (i32, i32, i32) {
    %c0_i32 = arith.constant 0 : i32
    %c0_i32_0 = arith.constant 0 : i32
    %c0_i32_1 = arith.constant 0 : i32
    return %arg0, %c0_i32, %c0_i32_0 : i32, i32, i32
  }
  func.func @transform_1(%arg0: i32) -> (i32, i32, i32, i32) {
    %c0_i32 = arith.constant 0 : i32
    %c0_i32_0 = arith.constant 0 : i32
    %c0_i32_1 = arith.constant 0 : i32
    %c0_i32_2 = arith.constant 0 : i32
    %c0_i32_3 = arith.constant 0 : i32
    return %c0_i32, %c0_i32_0, %c0_i32_1, %c0_i32_2 : i32, i32, i32, i32
  }
  func.func @transform_2(%arg0: i32) -> (i32, i32) {
    %c0_i32 = arith.constant 0 : i32
    %c0_i32_0 = arith.constant 0 : i32
    %c0_i32_1 = arith.constant 0 : i32
    return %c0_i32, %c0_i32_0 : i32, i32
  }
  func.func @transform_3(%arg0: i32) -> (i32, i32, i32) {
    %c0_i32 = arith.constant 0 : i32
    %c0_i32_0 = arith.constant 0 : i32
    %c0_i32_1 = arith.constant 0 : i32
    return %arg0, %c0_i32, %c0_i32_0 : i32, i32, i32
  }
}

module attributes {stable_mosaic.version = 11 : i64} {
  func.func @_conv_direct_kernel(%arg0: i32, %arg1: memref<1x36x32xbf16, #tpu.memory_space<vmem>>, %arg2: memref<3x3x32x16xbf16, #tpu.memory_space<vmem>>, %arg3: memref<1x16xf32, #tpu.memory_space<vmem>>, %arg4: memref<1x22x16xf32, #tpu.memory_space<vmem>>) attributes {dimension_semantics = [#tpu.dimension_semantics<parallel>], iteration_bounds = array<i64: 2>, scalar_prefetch = 0 : i64, scratch_operands = 0 : i64, tpu.core_type = #tpu.core_type<tc>, window_params = [{transform_indices = @transform_0, window_bounds = array<i64: 1, 36, 32>}, {pipeline_mode = #tpu.pipeline_mode<synchronous>, transform_indices = @transform_1, window_bounds = array<i64: 3, 3, 32, 16>}, {pipeline_mode = #tpu.pipeline_mode<synchronous>, transform_indices = @transform_2, window_bounds = array<i64: 1, 16>}, {transform_indices = @transform_3, window_bounds = array<i64: 1, 22, 16>}]} {
    %cst = arith.constant 0.000000e+00 : f32
    %0 = vector.broadcast %cst : f32 to vector<22x16xf32>
    %c0 = arith.constant 0 : index
    %c0_0 = arith.constant 0 : index
    %c0_1 = arith.constant 0 : index
    %1 = vector.load %arg1[%c0, %c0_0, %c0_1] : memref<1x36x32xbf16, #tpu.memory_space<vmem>>, vector<1x22x32xbf16>
    %2 = vector.shape_cast %1 : vector<1x22x32xbf16> to vector<22x32xbf16>
    %c0_2 = arith.constant 0 : index
    %c0_3 = arith.constant 0 : index
    %c0_4 = arith.constant 0 : index
    %c0_5 = arith.constant 0 : index
    %3 = vector.load %arg2[%c0_2, %c0_3, %c0_4, %c0_5] : memref<3x3x32x16xbf16, #tpu.memory_space<vmem>>, vector<1x1x32x16xbf16>
    %4 = vector.shape_cast %3 : vector<1x1x32x16xbf16> to vector<32x16xbf16>
    %cst_6 = arith.constant dense<0.000000e+00> : vector<22x16xf32>
    %5 = tpu.matmul %2, %4, %cst_6 {dimension_numbers = #tpu.dot_dimension_numbers<[1], [0], [0], [1], [0, 0, 1, 1], [], []>} : vector<22x32xbf16>, vector<32x16xbf16>, vector<22x16xf32> -> vector<22x16xf32>
    %6 = arith.addf %0, %5 : vector<22x16xf32>
    %c0_7 = arith.constant 0 : index
    %c1 = arith.constant 1 : index
    %c0_8 = arith.constant 0 : index
    %7 = vector.load %arg1[%c0_7, %c1, %c0_8] : memref<1x36x32xbf16, #tpu.memory_space<vmem>>, vector<1x22x32xbf16>
    %8 = vector.shape_cast %7 : vector<1x22x32xbf16> to vector<22x32xbf16>
    %c0_9 = arith.constant 0 : index
    %c1_10 = arith.constant 1 : index
    %c0_11 = arith.constant 0 : index
    %c0_12 = arith.constant 0 : index
    %9 = vector.load %arg2[%c0_9, %c1_10, %c0_11, %c0_12] : memref<3x3x32x16xbf16, #tpu.memory_space<vmem>>, vector<1x1x32x16xbf16>
    %10 = vector.shape_cast %9 : vector<1x1x32x16xbf16> to vector<32x16xbf16>
    %cst_13 = arith.constant dense<0.000000e+00> : vector<22x16xf32>
    %11 = tpu.matmul %8, %10, %cst_13 {dimension_numbers = #tpu.dot_dimension_numbers<[1], [0], [0], [1], [0, 0, 1, 1], [], []>} : vector<22x32xbf16>, vector<32x16xbf16>, vector<22x16xf32> -> vector<22x16xf32>
    %12 = arith.addf %6, %11 : vector<22x16xf32>
    %c0_14 = arith.constant 0 : index
    %c2 = arith.constant 2 : index
    %c0_15 = arith.constant 0 : index
    %13 = vector.load %arg1[%c0_14, %c2, %c0_15] : memref<1x36x32xbf16, #tpu.memory_space<vmem>>, vector<1x22x32xbf16>
    %14 = vector.shape_cast %13 : vector<1x22x32xbf16> to vector<22x32xbf16>
    %c0_16 = arith.constant 0 : index
    %c2_17 = arith.constant 2 : index
    %c0_18 = arith.constant 0 : index
    %c0_19 = arith.constant 0 : index
    %15 = vector.load %arg2[%c0_16, %c2_17, %c0_18, %c0_19] : memref<3x3x32x16xbf16, #tpu.memory_space<vmem>>, vector<1x1x32x16xbf16>
    %16 = vector.shape_cast %15 : vector<1x1x32x16xbf16> to vector<32x16xbf16>
    %cst_20 = arith.constant dense<0.000000e+00> : vector<22x16xf32>
    %17 = tpu.matmul %14, %16, %cst_20 {dimension_numbers = #tpu.dot_dimension_numbers<[1], [0], [0], [1], [0, 0, 1, 1], [], []>} : vector<22x32xbf16>, vector<32x16xbf16>, vector<22x16xf32> -> vector<22x16xf32>
    %18 = arith.addf %12, %17 : vector<22x16xf32>
    %c0_21 = arith.constant 0 : index
    %c6 = arith.constant 6 : index
    %c0_22 = arith.constant 0 : index
    %19 = vector.load %arg1[%c0_21, %c6, %c0_22] : memref<1x36x32xbf16, #tpu.memory_space<vmem>>, vector<1x22x32xbf16>
    %20 = vector.shape_cast %19 : vector<1x22x32xbf16> to vector<22x32xbf16>
    %c1_23 = arith.constant 1 : index
    %c0_24 = arith.constant 0 : index
    %c0_25 = arith.constant 0 : index
    %c0_26 = arith.constant 0 : index
    %21 = vector.load %arg2[%c1_23, %c0_24, %c0_25, %c0_26] : memref<3x3x32x16xbf16, #tpu.memory_space<vmem>>, vector<1x1x32x16xbf16>
    %22 = vector.shape_cast %21 : vector<1x1x32x16xbf16> to vector<32x16xbf16>
    %cst_27 = arith.constant dense<0.000000e+00> : vector<22x16xf32>
    %23 = tpu.matmul %20, %22, %cst_27 {dimension_numbers = #tpu.dot_dimension_numbers<[1], [0], [0], [1], [0, 0, 1, 1], [], []>} : vector<22x32xbf16>, vector<32x16xbf16>, vector<22x16xf32> -> vector<22x16xf32>
    %24 = arith.addf %18, %23 : vector<22x16xf32>
    %c0_28 = arith.constant 0 : index
    %c7 = arith.constant 7 : index
    %c0_29 = arith.constant 0 : index
    %25 = vector.load %arg1[%c0_28, %c7, %c0_29] : memref<1x36x32xbf16, #tpu.memory_space<vmem>>, vector<1x22x32xbf16>
    %26 = vector.shape_cast %25 : vector<1x22x32xbf16> to vector<22x32xbf16>
    %c1_30 = arith.constant 1 : index
    %c1_31 = arith.constant 1 : index
    %c0_32 = arith.constant 0 : index
    %c0_33 = arith.constant 0 : index
    %27 = vector.load %arg2[%c1_30, %c1_31, %c0_32, %c0_33] : memref<3x3x32x16xbf16, #tpu.memory_space<vmem>>, vector<1x1x32x16xbf16>
    %28 = vector.shape_cast %27 : vector<1x1x32x16xbf16> to vector<32x16xbf16>
    %cst_34 = arith.constant dense<0.000000e+00> : vector<22x16xf32>
    %29 = tpu.matmul %26, %28, %cst_34 {dimension_numbers = #tpu.dot_dimension_numbers<[1], [0], [0], [1], [0, 0, 1, 1], [], []>} : vector<22x32xbf16>, vector<32x16xbf16>, vector<22x16xf32> -> vector<22x16xf32>
    %30 = arith.addf %24, %29 : vector<22x16xf32>
    %c0_35 = arith.constant 0 : index
    %c8 = arith.constant 8 : index
    %c0_36 = arith.constant 0 : index
    %31 = vector.load %arg1[%c0_35, %c8, %c0_36] : memref<1x36x32xbf16, #tpu.memory_space<vmem>>, vector<1x22x32xbf16>
    %32 = vector.shape_cast %31 : vector<1x22x32xbf16> to vector<22x32xbf16>
    %c1_37 = arith.constant 1 : index
    %c2_38 = arith.constant 2 : index
    %c0_39 = arith.constant 0 : index
    %c0_40 = arith.constant 0 : index
    %33 = vector.load %arg2[%c1_37, %c2_38, %c0_39, %c0_40] : memref<3x3x32x16xbf16, #tpu.memory_space<vmem>>, vector<1x1x32x16xbf16>
    %34 = vector.shape_cast %33 : vector<1x1x32x16xbf16> to vector<32x16xbf16>
    %cst_41 = arith.constant dense<0.000000e+00> : vector<22x16xf32>
    %35 = tpu.matmul %32, %34, %cst_41 {dimension_numbers = #tpu.dot_dimension_numbers<[1], [0], [0], [1], [0, 0, 1, 1], [], []>} : vector<22x32xbf16>, vector<32x16xbf16>, vector<22x16xf32> -> vector<22x16xf32>
    %36 = arith.addf %30, %35 : vector<22x16xf32>
    %c0_42 = arith.constant 0 : index
    %c12 = arith.constant 12 : index
    %c0_43 = arith.constant 0 : index
    %37 = vector.load %arg1[%c0_42, %c12, %c0_43] : memref<1x36x32xbf16, #tpu.memory_space<vmem>>, vector<1x22x32xbf16>
    %38 = vector.shape_cast %37 : vector<1x22x32xbf16> to vector<22x32xbf16>
    %c2_44 = arith.constant 2 : index
    %c0_45 = arith.constant 0 : index
    %c0_46 = arith.constant 0 : index
    %c0_47 = arith.constant 0 : index
    %39 = vector.load %arg2[%c2_44, %c0_45, %c0_46, %c0_47] : memref<3x3x32x16xbf16, #tpu.memory_space<vmem>>, vector<1x1x32x16xbf16>
    %40 = vector.shape_cast %39 : vector<1x1x32x16xbf16> to vector<32x16xbf16>
    %cst_48 = arith.constant dense<0.000000e+00> : vector<22x16xf32>
    %41 = tpu.matmul %38, %40, %cst_48 {dimension_numbers = #tpu.dot_dimension_numbers<[1], [0], [0], [1], [0, 0, 1, 1], [], []>} : vector<22x32xbf16>, vector<32x16xbf16>, vector<22x16xf32> -> vector<22x16xf32>
    %42 = arith.addf %36, %41 : vector<22x16xf32>
    %c0_49 = arith.constant 0 : index
    %c13 = arith.constant 13 : index
    %c0_50 = arith.constant 0 : index
    %43 = vector.load %arg1[%c0_49, %c13, %c0_50] : memref<1x36x32xbf16, #tpu.memory_space<vmem>>, vector<1x22x32xbf16>
    %44 = vector.shape_cast %43 : vector<1x22x32xbf16> to vector<22x32xbf16>
    %c2_51 = arith.constant 2 : index
    %c1_52 = arith.constant 1 : index
    %c0_53 = arith.constant 0 : index
    %c0_54 = arith.constant 0 : index
    %45 = vector.load %arg2[%c2_51, %c1_52, %c0_53, %c0_54] : memref<3x3x32x16xbf16, #tpu.memory_space<vmem>>, vector<1x1x32x16xbf16>
    %46 = vector.shape_cast %45 : vector<1x1x32x16xbf16> to vector<32x16xbf16>
    %cst_55 = arith.constant dense<0.000000e+00> : vector<22x16xf32>
    %47 = tpu.matmul %44, %46, %cst_55 {dimension_numbers = #tpu.dot_dimension_numbers<[1], [0], [0], [1], [0, 0, 1, 1], [], []>} : vector<22x32xbf16>, vector<32x16xbf16>, vector<22x16xf32> -> vector<22x16xf32>
    %48 = arith.addf %42, %47 : vector<22x16xf32>
    %c0_56 = arith.constant 0 : index
    %c14 = arith.constant 14 : index
    %c0_57 = arith.constant 0 : index
    %49 = vector.load %arg1[%c0_56, %c14, %c0_57] : memref<1x36x32xbf16, #tpu.memory_space<vmem>>, vector<1x22x32xbf16>
    %50 = vector.shape_cast %49 : vector<1x22x32xbf16> to vector<22x32xbf16>
    %c2_58 = arith.constant 2 : index
    %c2_59 = arith.constant 2 : index
    %c0_60 = arith.constant 0 : index
    %c0_61 = arith.constant 0 : index
    %51 = vector.load %arg2[%c2_58, %c2_59, %c0_60, %c0_61] : memref<3x3x32x16xbf16, #tpu.memory_space<vmem>>, vector<1x1x32x16xbf16>
    %52 = vector.shape_cast %51 : vector<1x1x32x16xbf16> to vector<32x16xbf16>
    %cst_62 = arith.constant dense<0.000000e+00> : vector<22x16xf32>
    %53 = tpu.matmul %50, %52, %cst_62 {dimension_numbers = #tpu.dot_dimension_numbers<[1], [0], [0], [1], [0, 0, 1, 1], [], []>} : vector<22x32xbf16>, vector<32x16xbf16>, vector<22x16xf32> -> vector<22x16xf32>
    %54 = arith.addf %48, %53 : vector<22x16xf32>
    %c0_63 = arith.constant 0 : index
    %c0_64 = arith.constant 0 : index
    %55 = vector.load %arg3[%c0_63, %c0_64] : memref<1x16xf32, #tpu.memory_space<vmem>>, vector<1x16xf32>
    %56 = vector.broadcast %55 : vector<1x16xf32> to vector<22x16xf32>
    %57 = arith.addf %54, %56 : vector<22x16xf32>
    %cst_65 = arith.constant 0.000000e+00 : f32
    %58 = vector.broadcast %cst_65 : f32 to vector<22x16xf32>
    %59 = arith.maximumf %57, %58 : vector<22x16xf32>
    %c0_66 = arith.constant 0 : index
    %c0_67 = arith.constant 0 : index
    %c0_68 = arith.constant 0 : index
    %60 = vector.load %arg4[%c0_66, %c0_67, %c0_68] : memref<1x22x16xf32, #tpu.memory_space<vmem>>, vector<1x22x16xf32>
    %61 = vector.shape_cast %60 : vector<1x22x16xf32> to vector<22x16xf32>
    %62 = vector.shape_cast %59 : vector<22x16xf32> to vector<1x22x16xf32>
    tpu.vector_store %arg4[%c0_66, %c0_67, %c0_68], %62 {strides = array<i32>} : memref<1x22x16xf32, #tpu.memory_space<vmem>>, vector<1x22x16xf32>,
    return
  }
  func.func @transform_0(%arg0: i32) -> (i32, i32, i32) {
    %c0_i32 = arith.constant 0 : i32
    %c0_i32_0 = arith.constant 0 : i32
    %c0_i32_1 = arith.constant 0 : i32
    return %arg0, %c0_i32, %c0_i32_0 : i32, i32, i32
  }
  func.func @transform_1(%arg0: i32) -> (i32, i32, i32, i32) {
    %c0_i32 = arith.constant 0 : i32
    %c0_i32_0 = arith.constant 0 : i32
    %c0_i32_1 = arith.constant 0 : i32
    %c0_i32_2 = arith.constant 0 : i32
    %c0_i32_3 = arith.constant 0 : i32
    return %c0_i32, %c0_i32_0, %c0_i32_1, %c0_i32_2 : i32, i32, i32, i32
  }
  func.func @transform_2(%arg0: i32) -> (i32, i32) {
    %c0_i32 = arith.constant 0 : i32
    %c0_i32_0 = arith.constant 0 : i32
    %c0_i32_1 = arith.constant 0 : i32
    return %c0_i32, %c0_i32_0 : i32, i32
  }
  func.func @transform_3(%arg0: i32) -> (i32, i32, i32) {
    %c0_i32 = arith.constant 0 : i32
    %c0_i32_0 = arith.constant 0 : i32
    %c0_i32_1 = arith.constant 0 : i32
    return %arg0, %c0_i32, %c0_i32_0 : i32, i32, i32
  }
}

module attributes {stable_mosaic.version = 11 : i64} {
  func.func @_conv_direct_kernel(%arg0: i32, %arg1: memref<1x64x35xbf16, #tpu.memory_space<vmem>>, %arg2: memref<5x5x35x128xbf16, #tpu.memory_space<vmem>>, %arg3: memref<1x128xf32, #tpu.memory_space<vmem>>, %arg4: memref<1x28x128xf32, #tpu.memory_space<vmem>>) attributes {dimension_semantics = [#tpu.dimension_semantics<parallel>], iteration_bounds = array<i64: 2>, scalar_prefetch = 0 : i64, scratch_operands = 0 : i64, tpu.core_type = #tpu.core_type<tc>, window_params = [{transform_indices = @transform_0, window_bounds = array<i64: 1, 64, 35>}, {pipeline_mode = #tpu.pipeline_mode<synchronous>, transform_indices = @transform_1, window_bounds = array<i64: 5, 5, 35, 128>}, {pipeline_mode = #tpu.pipeline_mode<synchronous>, transform_indices = @transform_2, window_bounds = array<i64: 1, 128>}, {transform_indices = @transform_3, window_bounds = array<i64: 1, 28, 128>}]} {
    %cst = arith.constant 0.000000e+00 : f32
    %0 = vector.broadcast %cst : f32 to vector<28x128xf32>
    %c0 = arith.constant 0 : index
    %c0_0 = arith.constant 0 : index
    %c0_1 = arith.constant 0 : index
    %1 = vector.load %arg1[%c0, %c0_0, %c0_1] : memref<1x64x35xbf16, #tpu.memory_space<vmem>>, vector<1x28x35xbf16>
    %2 = vector.shape_cast %1 : vector<1x28x35xbf16> to vector<28x35xbf16>
    %c0_2 = arith.constant 0 : index
    %c0_3 = arith.constant 0 : index
    %c0_4 = arith.constant 0 : index
    %c0_5 = arith.constant 0 : index
    %3 = vector.load %arg2[%c0_2, %c0_3, %c0_4, %c0_5] : memref<5x5x35x128xbf16, #tpu.memory_space<vmem>>, vector<1x1x35x128xbf16>
    %4 = vector.shape_cast %3 : vector<1x1x35x128xbf16> to vector<35x128xbf16>
    %cst_6 = arith.constant dense<0.000000e+00> : vector<28x128xf32>
    %5 = tpu.matmul %2, %4, %cst_6 {dimension_numbers = #tpu.dot_dimension_numbers<[1], [0], [0], [1], [0, 0, 1, 1], [], []>} : vector<28x35xbf16>, vector<35x128xbf16>, vector<28x128xf32> -> vector<28x128xf32>
    %6 = arith.addf %0, %5 : vector<28x128xf32>
    %c0_7 = arith.constant 0 : index
    %c1 = arith.constant 1 : index
    %c0_8 = arith.constant 0 : index
    %7 = vector.load %arg1[%c0_7, %c1, %c0_8] : memref<1x64x35xbf16, #tpu.memory_space<vmem>>, vector<1x28x35xbf16>
    %8 = vector.shape_cast %7 : vector<1x28x35xbf16> to vector<28x35xbf16>
    %c0_9 = arith.constant 0 : index
    %c1_10 = arith.constant 1 : index
    %c0_11 = arith.constant 0 : index
    %c0_12 = arith.constant 0 : index
    %9 = vector.load %arg2[%c0_9, %c1_10, %c0_11, %c0_12] : memref<5x5x35x128xbf16, #tpu.memory_space<vmem>>, vector<1x1x35x128xbf16>
    %10 = vector.shape_cast %9 : vector<1x1x35x128xbf16> to vector<35x128xbf16>
    %cst_13 = arith.constant dense<0.000000e+00> : vector<28x128xf32>
    %11 = tpu.matmul %8, %10, %cst_13 {dimension_numbers = #tpu.dot_dimension_numbers<[1], [0], [0], [1], [0, 0, 1, 1], [], []>} : vector<28x35xbf16>, vector<35x128xbf16>, vector<28x128xf32> -> vector<28x128xf32>
    %12 = arith.addf %6, %11 : vector<28x128xf32>
    %c0_14 = arith.constant 0 : index
    %c2 = arith.constant 2 : index
    %c0_15 = arith.constant 0 : index
    %13 = vector.load %arg1[%c0_14, %c2, %c0_15] : memref<1x64x35xbf16, #tpu.memory_space<vmem>>, vector<1x28x35xbf16>
    %14 = vector.shape_cast %13 : vector<1x28x35xbf16> to vector<28x35xbf16>
    %c0_16 = arith.constant 0 : index
    %c2_17 = arith.constant 2 : index
    %c0_18 = arith.constant 0 : index
    %c0_19 = arith.constant 0 : index
    %15 = vector.load %arg2[%c0_16, %c2_17, %c0_18, %c0_19] : memref<5x5x35x128xbf16, #tpu.memory_space<vmem>>, vector<1x1x35x128xbf16>
    %16 = vector.shape_cast %15 : vector<1x1x35x128xbf16> to vector<35x128xbf16>
    %cst_20 = arith.constant dense<0.000000e+00> : vector<28x128xf32>
    %17 = tpu.matmul %14, %16, %cst_20 {dimension_numbers = #tpu.dot_dimension_numbers<[1], [0], [0], [1], [0, 0, 1, 1], [], []>} : vector<28x35xbf16>, vector<35x128xbf16>, vector<28x128xf32> -> vector<28x128xf32>
    %18 = arith.addf %12, %17 : vector<28x128xf32>
    %c0_21 = arith.constant 0 : index
    %c3 = arith.constant 3 : index
    %c0_22 = arith.constant 0 : index
    %19 = vector.load %arg1[%c0_21, %c3, %c0_22] : memref<1x64x35xbf16, #tpu.memory_space<vmem>>, vector<1x28x35xbf16>
    %20 = vector.shape_cast %19 : vector<1x28x35xbf16> to vector<28x35xbf16>
    %c0_23 = arith.constant 0 : index
    %c3_24 = arith.constant 3 : index
    %c0_25 = arith.constant 0 : index
    %c0_26 = arith.constant 0 : index
    %21 = vector.load %arg2[%c0_23, %c3_24, %c0_25, %c0_26] : memref<5x5x35x128xbf16, #tpu.memory_space<vmem>>, vector<1x1x35x128xbf16>
    %22 = vector.shape_cast %21 : vector<1x1x35x128xbf16> to vector<35x128xbf16>
    %cst_27 = arith.constant dense<0.000000e+00> : vector<28x128xf32>
    %23 = tpu.matmul %20, %22, %cst_27 {dimension_numbers = #tpu.dot_dimension_numbers<[1], [0], [0], [1], [0, 0, 1, 1], [], []>} : vector<28x35xbf16>, vector<35x128xbf16>, vector<28x128xf32> -> vector<28x128xf32>
    %24 = arith.addf %18, %23 : vector<28x128xf32>
    %c0_28 = arith.constant 0 : index
    %c4 = arith.constant 4 : index
    %c0_29 = arith.constant 0 : index
    %25 = vector.load %arg1[%c0_28, %c4, %c0_29] : memref<1x64x35xbf16, #tpu.memory_space<vmem>>, vector<1x28x35xbf16>
    %26 = vector.shape_cast %25 : vector<1x28x35xbf16> to vector<28x35xbf16>
    %c0_30 = arith.constant 0 : index
    %c4_31 = arith.constant 4 : index
    %c0_32 = arith.constant 0 : index
    %c0_33 = arith.constant 0 : index
    %27 = vector.load %arg2[%c0_30, %c4_31, %c0_32, %c0_33] : memref<5x5x35x128xbf16, #tpu.memory_space<vmem>>, vector<1x1x35x128xbf16>
    %28 = vector.shape_cast %27 : vector<1x1x35x128xbf16> to vector<35x128xbf16>
    %cst_34 = arith.constant dense<0.000000e+00> : vector<28x128xf32>
    %29 = tpu.matmul %26, %28, %cst_34 {dimension_numbers = #tpu.dot_dimension_numbers<[1], [0], [0], [1], [0, 0, 1, 1], [], []>} : vector<28x35xbf16>, vector<35x128xbf16>, vector<28x128xf32> -> vector<28x128xf32>
    %30 = arith.addf %24, %29 : vector<28x128xf32>
    %c0_35 = arith.constant 0 : index
    %c8 = arith.constant 8 : index
    %c0_36 = arith.constant 0 : index
    %31 = vector.load %arg1[%c0_35, %c8, %c0_36] : memref<1x64x35xbf16, #tpu.memory_space<vmem>>, vector<1x28x35xbf16>
    %32 = vector.shape_cast %31 : vector<1x28x35xbf16> to vector<28x35xbf16>
    %c1_37 = arith.constant 1 : index
    %c0_38 = arith.constant 0 : index
    %c0_39 = arith.constant 0 : index
    %c0_40 = arith.constant 0 : index
    %33 = vector.load %arg2[%c1_37, %c0_38, %c0_39, %c0_40] : memref<5x5x35x128xbf16, #tpu.memory_space<vmem>>, vector<1x1x35x128xbf16>
    %34 = vector.shape_cast %33 : vector<1x1x35x128xbf16> to vector<35x128xbf16>
    %cst_41 = arith.constant dense<0.000000e+00> : vector<28x128xf32>
    %35 = tpu.matmul %32, %34, %cst_41 {dimension_numbers = #tpu.dot_dimension_numbers<[1], [0], [0], [1], [0, 0, 1, 1], [], []>} : vector<28x35xbf16>, vector<35x128xbf16>, vector<28x128xf32> -> vector<28x128xf32>
    %36 = arith.addf %30, %35 : vector<28x128xf32>
    %c0_42 = arith.constant 0 : index
    %c9 = arith.constant 9 : index
    %c0_43 = arith.constant 0 : index
    %37 = vector.load %arg1[%c0_42, %c9, %c0_43] : memref<1x64x35xbf16, #tpu.memory_space<vmem>>, vector<1x28x35xbf16>
    %38 = vector.shape_cast %37 : vector<1x28x35xbf16> to vector<28x35xbf16>
    %c1_44 = arith.constant 1 : index
    %c1_45 = arith.constant 1 : index
    %c0_46 = arith.constant 0 : index
    %c0_47 = arith.constant 0 : index
    %39 = vector.load %arg2[%c1_44, %c1_45, %c0_46, %c0_47] : memref<5x5x35x128xbf16, #tpu.memory_space<vmem>>, vector<1x1x35x128xbf16>
    %40 = vector.shape_cast %39 : vector<1x1x35x128xbf16> to vector<35x128xbf16>
    %cst_48 = arith.constant dense<0.000000e+00> : vector<28x128xf32>
    %41 = tpu.matmul %38, %40, %cst_48 {dimension_numbers = #tpu.dot_dimension_numbers<[1], [0], [0], [1], [0, 0, 1, 1], [], []>} : vector<28x35xbf16>, vector<35x128xbf16>, vector<28x128xf32> -> vector<28x128xf32>
    %42 = arith.addf %36, %41 : vector<28x128xf32>
    %c0_49 = arith.constant 0 : index
    %c10 = arith.constant 10 : index
    %c0_50 = arith.constant 0 : index
    %43 = vector.load %arg1[%c0_49, %c10, %c0_50] : memref<1x64x35xbf16, #tpu.memory_space<vmem>>, vector<1x28x35xbf16>
    %44 = vector.shape_cast %43 : vector<1x28x35xbf16> to vector<28x35xbf16>
    %c1_51 = arith.constant 1 : index
    %c2_52 = arith.constant 2 : index
    %c0_53 = arith.constant 0 : index
    %c0_54 = arith.constant 0 : index
    %45 = vector.load %arg2[%c1_51, %c2_52, %c0_53, %c0_54] : memref<5x5x35x128xbf16, #tpu.memory_space<vmem>>, vector<1x1x35x128xbf16>
    %46 = vector.shape_cast %45 : vector<1x1x35x128xbf16> to vector<35x128xbf16>
    %cst_55 = arith.constant dense<0.000000e+00> : vector<28x128xf32>
    %47 = tpu.matmul %44, %46, %cst_55 {dimension_numbers = #tpu.dot_dimension_numbers<[1], [0], [0], [1], [0, 0, 1, 1], [], []>} : vector<28x35xbf16>, vector<35x128xbf16>, vector<28x128xf32> -> vector<28x128xf32>
    %48 = arith.addf %42, %47 : vector<28x128xf32>
    %c0_56 = arith.constant 0 : index
    %c11 = arith.constant 11 : index
    %c0_57 = arith.constant 0 : index
    %49 = vector.load %arg1[%c0_56, %c11, %c0_57] : memref<1x64x35xbf16, #tpu.memory_space<vmem>>, vector<1x28x35xbf16>
    %50 = vector.shape_cast %49 : vector<1x28x35xbf16> to vector<28x35xbf16>
    %c1_58 = arith.constant 1 : index
    %c3_59 = arith.constant 3 : index
    %c0_60 = arith.constant 0 : index
    %c0_61 = arith.constant 0 : index
    %51 = vector.load %arg2[%c1_58, %c3_59, %c0_60, %c0_61] : memref<5x5x35x128xbf16, #tpu.memory_space<vmem>>, vector<1x1x35x128xbf16>
    %52 = vector.shape_cast %51 : vector<1x1x35x128xbf16> to vector<35x128xbf16>
    %cst_62 = arith.constant dense<0.000000e+00> : vector<28x128xf32>
    %53 = tpu.matmul %50, %52, %cst_62 {dimension_numbers = #tpu.dot_dimension_numbers<[1], [0], [0], [1], [0, 0, 1, 1], [], []>} : vector<28x35xbf16>, vector<35x128xbf16>, vector<28x128xf32> -> vector<28x128xf32>
    %54 = arith.addf %48, %53 : vector<28x128xf32>
    %c0_63 = arith.constant 0 : index
    %c12 = arith.constant 12 : index
    %c0_64 = arith.constant 0 : index
    %55 = vector.load %arg1[%c0_63, %c12, %c0_64] : memref<1x64x35xbf16, #tpu.memory_space<vmem>>, vector<1x28x35xbf16>
    %56 = vector.shape_cast %55 : vector<1x28x35xbf16> to vector<28x35xbf16>
    %c1_65 = arith.constant 1 : index
    %c4_66 = arith.constant 4 : index
    %c0_67 = arith.constant 0 : index
    %c0_68 = arith.constant 0 : index
    %57 = vector.load %arg2[%c1_65, %c4_66, %c0_67, %c0_68] : memref<5x5x35x128xbf16, #tpu.memory_space<vmem>>, vector<1x1x35x128xbf16>
    %58 = vector.shape_cast %57 : vector<1x1x35x128xbf16> to vector<35x128xbf16>
    %cst_69 = arith.constant dense<0.000000e+00> : vector<28x128xf32>
    %59 = tpu.matmul %56, %58, %cst_69 {dimension_numbers = #tpu.dot_dimension_numbers<[1], [0], [0], [1], [0, 0, 1, 1], [], []>} : vector<28x35xbf16>, vector<35x128xbf16>, vector<28x128xf32> -> vector<28x128xf32>
    %60 = arith.addf %54, %59 : vector<28x128xf32>
    %c0_70 = arith.constant 0 : index
    %c16 = arith.constant 16 : index
    %c0_71 = arith.constant 0 : index
    %61 = vector.load %arg1[%c0_70, %c16, %c0_71] : memref<1x64x35xbf16, #tpu.memory_space<vmem>>, vector<1x28x35xbf16>
    %62 = vector.shape_cast %61 : vector<1x28x35xbf16> to vector<28x35xbf16>
    %c2_72 = arith.constant 2 : index
    %c0_73 = arith.constant 0 : index
    %c0_74 = arith.constant 0 : index
    %c0_75 = arith.constant 0 : index
    %63 = vector.load %arg2[%c2_72, %c0_73, %c0_74, %c0_75] : memref<5x5x35x128xbf16, #tpu.memory_space<vmem>>, vector<1x1x35x128xbf16>
    %64 = vector.shape_cast %63 : vector<1x1x35x128xbf16> to vector<35x128xbf16>
    %cst_76 = arith.constant dense<0.000000e+00> : vector<28x128xf32>
    %65 = tpu.matmul %62, %64, %cst_76 {dimension_numbers = #tpu.dot_dimension_numbers<[1], [0], [0], [1], [0, 0, 1, 1], [], []>} : vector<28x35xbf16>, vector<35x128xbf16>, vector<28x128xf32> -> vector<28x128xf32>
    %66 = arith.addf %60, %65 : vector<28x128xf32>
    %c0_77 = arith.constant 0 : index
    %c17 = arith.constant 17 : index
    %c0_78 = arith.constant 0 : index
    %67 = vector.load %arg1[%c0_77, %c17, %c0_78] : memref<1x64x35xbf16, #tpu.memory_space<vmem>>, vector<1x28x35xbf16>
    %68 = vector.shape_cast %67 : vector<1x28x35xbf16> to vector<28x35xbf16>
    %c2_79 = arith.constant 2 : index
    %c1_80 = arith.constant 1 : index
    %c0_81 = arith.constant 0 : index
    %c0_82 = arith.constant 0 : index
    %69 = vector.load %arg2[%c2_79, %c1_80, %c0_81, %c0_82] : memref<5x5x35x128xbf16, #tpu.memory_space<vmem>>, vector<1x1x35x128xbf16>
    %70 = vector.shape_cast %69 : vector<1x1x35x128xbf16> to vector<35x128xbf16>
    %cst_83 = arith.constant dense<0.000000e+00> : vector<28x128xf32>
    %71 = tpu.matmul %68, %70, %cst_83 {dimension_numbers = #tpu.dot_dimension_numbers<[1], [0], [0], [1], [0, 0, 1, 1], [], []>} : vector<28x35xbf16>, vector<35x128xbf16>, vector<28x128xf32> -> vector<28x128xf32>
    %72 = arith.addf %66, %71 : vector<28x128xf32>
    %c0_84 = arith.constant 0 : index
    %c18 = arith.constant 18 : index
    %c0_85 = arith.constant 0 : index
    %73 = vector.load %arg1[%c0_84, %c18, %c0_85] : memref<1x64x35xbf16, #tpu.memory_space<vmem>>, vector<1x28x35xbf16>
    %74 = vector.shape_cast %73 : vector<1x28x35xbf16> to vector<28x35xbf16>
    %c2_86 = arith.constant 2 : index
    %c2_87 = arith.constant 2 : index
    %c0_88 = arith.constant 0 : index
    %c0_89 = arith.constant 0 : index
    %75 = vector.load %arg2[%c2_86, %c2_87, %c0_88, %c0_89] : memref<5x5x35x128xbf16, #tpu.memory_space<vmem>>, vector<1x1x35x128xbf16>
    %76 = vector.shape_cast %75 : vector<1x1x35x128xbf16> to vector<35x128xbf16>
    %cst_90 = arith.constant dense<0.000000e+00> : vector<28x128xf32>
    %77 = tpu.matmul %74, %76, %cst_90 {dimension_numbers = #tpu.dot_dimension_numbers<[1], [0], [0], [1], [0, 0, 1, 1], [], []>} : vector<28x35xbf16>, vector<35x128xbf16>, vector<28x128xf32> -> vector<28x128xf32>
    %78 = arith.addf %72, %77 : vector<28x128xf32>
    %c0_91 = arith.constant 0 : index
    %c19 = arith.constant 19 : index
    %c0_92 = arith.constant 0 : index
    %79 = vector.load %arg1[%c0_91, %c19, %c0_92] : memref<1x64x35xbf16, #tpu.memory_space<vmem>>, vector<1x28x35xbf16>
    %80 = vector.shape_cast %79 : vector<1x28x35xbf16> to vector<28x35xbf16>
    %c2_93 = arith.constant 2 : index
    %c3_94 = arith.constant 3 : index
    %c0_95 = arith.constant 0 : index
    %c0_96 = arith.constant 0 : index
    %81 = vector.load %arg2[%c2_93, %c3_94, %c0_95, %c0_96] : memref<5x5x35x128xbf16, #tpu.memory_space<vmem>>, vector<1x1x35x128xbf16>
    %82 = vector.shape_cast %81 : vector<1x1x35x128xbf16> to vector<35x128xbf16>
    %cst_97 = arith.constant dense<0.000000e+00> : vector<28x128xf32>
    %83 = tpu.matmul %80, %82, %cst_97 {dimension_numbers = #tpu.dot_dimension_numbers<[1], [0], [0], [1], [0, 0, 1, 1], [], []>} : vector<28x35xbf16>, vector<35x128xbf16>, vector<28x128xf32> -> vector<28x128xf32>
    %84 = arith.addf %78, %83 : vector<28x128xf32>
    %c0_98 = arith.constant 0 : index
    %c20 = arith.constant 20 : index
    %c0_99 = arith.constant 0 : index
    %85 = vector.load %arg1[%c0_98, %c20, %c0_99] : memref<1x64x35xbf16, #tpu.memory_space<vmem>>, vector<1x28x35xbf16>
    %86 = vector.shape_cast %85 : vector<1x28x35xbf16> to vector<28x35xbf16>
    %c2_100 = arith.constant 2 : index
    %c4_101 = arith.constant 4 : index
    %c0_102 = arith.constant 0 : index
    %c0_103 = arith.constant 0 : index
    %87 = vector.load %arg2[%c2_100, %c4_101, %c0_102, %c0_103] : memref<5x5x35x128xbf16, #tpu.memory_space<vmem>>, vector<1x1x35x128xbf16>
    %88 = vector.shape_cast %87 : vector<1x1x35x128xbf16> to vector<35x128xbf16>
    %cst_104 = arith.constant dense<0.000000e+00> : vector<28x128xf32>
    %89 = tpu.matmul %86, %88, %cst_104 {dimension_numbers = #tpu.dot_dimension_numbers<[1], [0], [0], [1], [0, 0, 1, 1], [], []>} : vector<28x35xbf16>, vector<35x128xbf16>, vector<28x128xf32> -> vector<28x128xf32>
    %90 = arith.addf %84, %89 : vector<28x128xf32>
    %c0_105 = arith.constant 0 : index
    %c24 = arith.constant 24 : index
    %c0_106 = arith.constant 0 : index
    %91 = vector.load %arg1[%c0_105, %c24, %c0_106] : memref<1x64x35xbf16, #tpu.memory_space<vmem>>, vector<1x28x35xbf16>
    %92 = vector.shape_cast %91 : vector<1x28x35xbf16> to vector<28x35xbf16>
    %c3_107 = arith.constant 3 : index
    %c0_108 = arith.constant 0 : index
    %c0_109 = arith.constant 0 : index
    %c0_110 = arith.constant 0 : index
    %93 = vector.load %arg2[%c3_107, %c0_108, %c0_109, %c0_110] : memref<5x5x35x128xbf16, #tpu.memory_space<vmem>>, vector<1x1x35x128xbf16>
    %94 = vector.shape_cast %93 : vector<1x1x35x128xbf16> to vector<35x128xbf16>
    %cst_111 = arith.constant dense<0.000000e+00> : vector<28x128xf32>
    %95 = tpu.matmul %92, %94, %cst_111 {dimension_numbers = #tpu.dot_dimension_numbers<[1], [0], [0], [1], [0, 0, 1, 1], [], []>} : vector<28x35xbf16>, vector<35x128xbf16>, vector<28x128xf32> -> vector<28x128xf32>
    %96 = arith.addf %90, %95 : vector<28x128xf32>
    %c0_112 = arith.constant 0 : index
    %c25 = arith.constant 25 : index
    %c0_113 = arith.constant 0 : index
    %97 = vector.load %arg1[%c0_112, %c25, %c0_113] : memref<1x64x35xbf16, #tpu.memory_space<vmem>>, vector<1x28x35xbf16>
    %98 = vector.shape_cast %97 : vector<1x28x35xbf16> to vector<28x35xbf16>
    %c3_114 = arith.constant 3 : index
    %c1_115 = arith.constant 1 : index
    %c0_116 = arith.constant 0 : index
    %c0_117 = arith.constant 0 : index
    %99 = vector.load %arg2[%c3_114, %c1_115, %c0_116, %c0_117] : memref<5x5x35x128xbf16, #tpu.memory_space<vmem>>, vector<1x1x35x128xbf16>
    %100 = vector.shape_cast %99 : vector<1x1x35x128xbf16> to vector<35x128xbf16>
    %cst_118 = arith.constant dense<0.000000e+00> : vector<28x128xf32>
    %101 = tpu.matmul %98, %100, %cst_118 {dimension_numbers = #tpu.dot_dimension_numbers<[1], [0], [0], [1], [0, 0, 1, 1], [], []>} : vector<28x35xbf16>, vector<35x128xbf16>, vector<28x128xf32> -> vector<28x128xf32>
    %102 = arith.addf %96, %101 : vector<28x128xf32>
    %c0_119 = arith.constant 0 : index
    %c26 = arith.constant 26 : index
    %c0_120 = arith.constant 0 : index
    %103 = vector.load %arg1[%c0_119, %c26, %c0_120] : memref<1x64x35xbf16, #tpu.memory_space<vmem>>, vector<1x28x35xbf16>
    %104 = vector.shape_cast %103 : vector<1x28x35xbf16> to vector<28x35xbf16>
    %c3_121 = arith.constant 3 : index
    %c2_122 = arith.constant 2 : index
    %c0_123 = arith.constant 0 : index
    %c0_124 = arith.constant 0 : index
    %105 = vector.load %arg2[%c3_121, %c2_122, %c0_123, %c0_124] : memref<5x5x35x128xbf16, #tpu.memory_space<vmem>>, vector<1x1x35x128xbf16>
    %106 = vector.shape_cast %105 : vector<1x1x35x128xbf16> to vector<35x128xbf16>
    %cst_125 = arith.constant dense<0.000000e+00> : vector<28x128xf32>
    %107 = tpu.matmul %104, %106, %cst_125 {dimension_numbers = #tpu.dot_dimension_numbers<[1], [0], [0], [1], [0, 0, 1, 1], [], []>} : vector<28x35xbf16>, vector<35x128xbf16>, vector<28x128xf32> -> vector<28x128xf32>
    %108 = arith.addf %102, %107 : vector<28x128xf32>
    %c0_126 = arith.constant 0 : index
    %c27 = arith.constant 27 : index
    %c0_127 = arith.constant 0 : index
    %109 = vector.load %arg1[%c0_126, %c27, %c0_127] : memref<1x64x35xbf16, #tpu.memory_space<vmem>>, vector<1x28x35xbf16>
    %110 = vector.shape_cast %109 : vector<1x28x35xbf16> to vector<28x35xbf16>
    %c3_128 = arith.constant 3 : index
    %c3_129 = arith.constant 3 : index
    %c0_130 = arith.constant 0 : index
    %c0_131 = arith.constant 0 : index
    %111 = vector.load %arg2[%c3_128, %c3_129, %c0_130, %c0_131] : memref<5x5x35x128xbf16, #tpu.memory_space<vmem>>, vector<1x1x35x128xbf16>
    %112 = vector.shape_cast %111 : vector<1x1x35x128xbf16> to vector<35x128xbf16>
    %cst_132 = arith.constant dense<0.000000e+00> : vector<28x128xf32>
    %113 = tpu.matmul %110, %112, %cst_132 {dimension_numbers = #tpu.dot_dimension_numbers<[1], [0], [0], [1], [0, 0, 1, 1], [], []>} : vector<28x35xbf16>, vector<35x128xbf16>, vector<28x128xf32> -> vector<28x128xf32>
    %114 = arith.addf %108, %113 : vector<28x128xf32>
    %c0_133 = arith.constant 0 : index
    %c28 = arith.constant 28 : index
    %c0_134 = arith.constant 0 : index
    %115 = vector.load %arg1[%c0_133, %c28, %c0_134] : memref<1x64x35xbf16, #tpu.memory_space<vmem>>, vector<1x28x35xbf16>
    %116 = vector.shape_cast %115 : vector<1x28x35xbf16> to vector<28x35xbf16>
    %c3_135 = arith.constant 3 : index
    %c4_136 = arith.constant 4 : index
    %c0_137 = arith.constant 0 : index
    %c0_138 = arith.constant 0 : index
    %117 = vector.load %arg2[%c3_135, %c4_136, %c0_137, %c0_138] : memref<5x5x35x128xbf16, #tpu.memory_space<vmem>>, vector<1x1x35x128xbf16>
    %118 = vector.shape_cast %117 : vector<1x1x35x128xbf16> to vector<35x128xbf16>
    %cst_139 = arith.constant dense<0.000000e+00> : vector<28x128xf32>
    %119 = tpu.matmul %116, %118, %cst_139 {dimension_numbers = #tpu.dot_dimension_numbers<[1], [0], [0], [1], [0, 0, 1, 1], [], []>} : vector<28x35xbf16>, vector<35x128xbf16>, vector<28x128xf32> -> vector<28x128xf32>
    %120 = arith.addf %114, %119 : vector<28x128xf32>
    %c0_140 = arith.constant 0 : index
    %c32 = arith.constant 32 : index
    %c0_141 = arith.constant 0 : index
    %121 = vector.load %arg1[%c0_140, %c32, %c0_141] : memref<1x64x35xbf16, #tpu.memory_space<vmem>>, vector<1x28x35xbf16>
    %122 = vector.shape_cast %121 : vector<1x28x35xbf16> to vector<28x35xbf16>
    %c4_142 = arith.constant 4 : index
    %c0_143 = arith.constant 0 : index
    %c0_144 = arith.constant 0 : index
    %c0_145 = arith.constant 0 : index
    %123 = vector.load %arg2[%c4_142, %c0_143, %c0_144, %c0_145] : memref<5x5x35x128xbf16, #tpu.memory_space<vmem>>, vector<1x1x35x128xbf16>
    %124 = vector.shape_cast %123 : vector<1x1x35x128xbf16> to vector<35x128xbf16>
    %cst_146 = arith.constant dense<0.000000e+00> : vector<28x128xf32>
    %125 = tpu.matmul %122, %124, %cst_146 {dimension_numbers = #tpu.dot_dimension_numbers<[1], [0], [0], [1], [0, 0, 1, 1], [], []>} : vector<28x35xbf16>, vector<35x128xbf16>, vector<28x128xf32> -> vector<28x128xf32>
    %126 = arith.addf %120, %125 : vector<28x128xf32>
    %c0_147 = arith.constant 0 : index
    %c33 = arith.constant 33 : index
    %c0_148 = arith.constant 0 : index
    %127 = vector.load %arg1[%c0_147, %c33, %c0_148] : memref<1x64x35xbf16, #tpu.memory_space<vmem>>, vector<1x28x35xbf16>
    %128 = vector.shape_cast %127 : vector<1x28x35xbf16> to vector<28x35xbf16>
    %c4_149 = arith.constant 4 : index
    %c1_150 = arith.constant 1 : index
    %c0_151 = arith.constant 0 : index
    %c0_152 = arith.constant 0 : index
    %129 = vector.load %arg2[%c4_149, %c1_150, %c0_151, %c0_152] : memref<5x5x35x128xbf16, #tpu.memory_space<vmem>>, vector<1x1x35x128xbf16>
    %130 = vector.shape_cast %129 : vector<1x1x35x128xbf16> to vector<35x128xbf16>
    %cst_153 = arith.constant dense<0.000000e+00> : vector<28x128xf32>
    %131 = tpu.matmul %128, %130, %cst_153 {dimension_numbers = #tpu.dot_dimension_numbers<[1], [0], [0], [1], [0, 0, 1, 1], [], []>} : vector<28x35xbf16>, vector<35x128xbf16>, vector<28x128xf32> -> vector<28x128xf32>
    %132 = arith.addf %126, %131 : vector<28x128xf32>
    %c0_154 = arith.constant 0 : index
    %c34 = arith.constant 34 : index
    %c0_155 = arith.constant 0 : index
    %133 = vector.load %arg1[%c0_154, %c34, %c0_155] : memref<1x64x35xbf16, #tpu.memory_space<vmem>>, vector<1x28x35xbf16>
    %134 = vector.shape_cast %133 : vector<1x28x35xbf16> to vector<28x35xbf16>
    %c4_156 = arith.constant 4 : index
    %c2_157 = arith.constant 2 : index
    %c0_158 = arith.constant 0 : index
    %c0_159 = arith.constant 0 : index
    %135 = vector.load %arg2[%c4_156, %c2_157, %c0_158, %c0_159] : memref<5x5x35x128xbf16, #tpu.memory_space<vmem>>, vector<1x1x35x128xbf16>
    %136 = vector.shape_cast %135 : vector<1x1x35x128xbf16> to vector<35x128xbf16>
    %cst_160 = arith.constant dense<0.000000e+00> : vector<28x128xf32>
    %137 = tpu.matmul %134, %136, %cst_160 {dimension_numbers = #tpu.dot_dimension_numbers<[1], [0], [0], [1], [0, 0, 1, 1], [], []>} : vector<28x35xbf16>, vector<35x128xbf16>, vector<28x128xf32> -> vector<28x128xf32>
    %138 = arith.addf %132, %137 : vector<28x128xf32>
    %c0_161 = arith.constant 0 : index
    %c35 = arith.constant 35 : index
    %c0_162 = arith.constant 0 : index
    %139 = vector.load %arg1[%c0_161, %c35, %c0_162] : memref<1x64x35xbf16, #tpu.memory_space<vmem>>, vector<1x28x35xbf16>
    %140 = vector.shape_cast %139 : vector<1x28x35xbf16> to vector<28x35xbf16>
    %c4_163 = arith.constant 4 : index
    %c3_164 = arith.constant 3 : index
    %c0_165 = arith.constant 0 : index
    %c0_166 = arith.constant 0 : index
    %141 = vector.load %arg2[%c4_163, %c3_164, %c0_165, %c0_166] : memref<5x5x35x128xbf16, #tpu.memory_space<vmem>>, vector<1x1x35x128xbf16>
    %142 = vector.shape_cast %141 : vector<1x1x35x128xbf16> to vector<35x128xbf16>
    %cst_167 = arith.constant dense<0.000000e+00> : vector<28x128xf32>
    %143 = tpu.matmul %140, %142, %cst_167 {dimension_numbers = #tpu.dot_dimension_numbers<[1], [0], [0], [1], [0, 0, 1, 1], [], []>} : vector<28x35xbf16>, vector<35x128xbf16>, vector<28x128xf32> -> vector<28x128xf32>
    %144 = arith.addf %138, %143 : vector<28x128xf32>
    %c0_168 = arith.constant 0 : index
    %c36 = arith.constant 36 : index
    %c0_169 = arith.constant 0 : index
    %145 = vector.load %arg1[%c0_168, %c36, %c0_169] : memref<1x64x35xbf16, #tpu.memory_space<vmem>>, vector<1x28x35xbf16>
    %146 = vector.shape_cast %145 : vector<1x28x35xbf16> to vector<28x35xbf16>
    %c4_170 = arith.constant 4 : index
    %c4_171 = arith.constant 4 : index
    %c0_172 = arith.constant 0 : index
    %c0_173 = arith.constant 0 : index
    %147 = vector.load %arg2[%c4_170, %c4_171, %c0_172, %c0_173] : memref<5x5x35x128xbf16, #tpu.memory_space<vmem>>, vector<1x1x35x128xbf16>
    %148 = vector.shape_cast %147 : vector<1x1x35x128xbf16> to vector<35x128xbf16>
    %cst_174 = arith.constant dense<0.000000e+00> : vector<28x128xf32>
    %149 = tpu.matmul %146, %148, %cst_174 {dimension_numbers = #tpu.dot_dimension_numbers<[1], [0], [0], [1], [0, 0, 1, 1], [], []>} : vector<28x35xbf16>, vector<35x128xbf16>, vector<28x128xf32> -> vector<28x128xf32>
    %150 = arith.addf %144, %149 : vector<28x128xf32>
    %c0_175 = arith.constant 0 : index
    %c0_176 = arith.constant 0 : index
    %151 = vector.load %arg3[%c0_175, %c0_176] : memref<1x128xf32, #tpu.memory_space<vmem>>, vector<1x128xf32>
    %152 = vector.broadcast %151 : vector<1x128xf32> to vector<28x128xf32>
    %153 = arith.addf %150, %152 : vector<28x128xf32>
    %c0_177 = arith.constant 0 : index
    %c0_178 = arith.constant 0 : index
    %c0_179 = arith.constant 0 : index
    %154 = vector.load %arg4[%c0_177, %c0_178, %c0_179] : memref<1x28x128xf32, #tpu.memory_space<vmem>>, vector<1x28x128xf32>
    %155 = vector.shape_cast %154 : vector<1x28x128xf32> to vector<28x128xf32>
    %156 = vector.shape_cast %153 : vector<28x128xf32> to vector<1x28x128xf32>
    tpu.vector_store %arg4[%c0_177, %c0_178, %c0_179], %156 {strides = array<i32>} : memref<1x28x128xf32, #tpu.memory_space<vmem>>, vector<1x28x128xf32>,
    return
  }
  func.func @transform_0(%arg0: i32) -> (i32, i32, i32) {
    %c0_i32 = arith.constant 0 : i32
    %c0_i32_0 = arith.constant 0 : i32
    %c0_i32_1 = arith.constant 0 : i32
    return %arg0, %c0_i32, %c0_i32_0 : i32, i32, i32
  }
  func.func @transform_1(%arg0: i32) -> (i32, i32, i32, i32) {
    %c0_i32 = arith.constant 0 : i32
    %c0_i32_0 = arith.constant 0 : i32
    %c0_i32_1 = arith.constant 0 : i32
    %c0_i32_2 = arith.constant 0 : i32
    %c0_i32_3 = arith.constant 0 : i32
    return %c0_i32, %c0_i32_0, %c0_i32_1, %c0_i32_2 : i32, i32, i32, i32
  }
  func.func @transform_2(%arg0: i32) -> (i32, i32) {
    %c0_i32 = arith.constant 0 : i32
    %c0_i32_0 = arith.constant 0 : i32
    %c0_i32_1 = arith.constant 0 : i32
    return %c0_i32, %c0_i32_0 : i32, i32
  }
  func.func @transform_3(%arg0: i32) -> (i32, i32, i32) {
    %c0_i32 = arith.constant 0 : i32
    %c0_i32_0 = arith.constant 0 : i32
    %c0_i32_1 = arith.constant 0 : i32
    return %arg0, %c0_i32, %c0_i32_0 : i32, i32, i32
  }
}

module attributes {stable_mosaic.version = 11 : i64} {
  func.func @_lstm_gate_kernel(%arg0: i32, %arg1: memref<32x128xf32, #tpu.memory_space<vmem>>, %arg2: memref<32x128xf32, #tpu.memory_space<vmem>>, %arg3: memref<32x32xf32, #tpu.memory_space<vmem>>, %arg4: memref<32x32xf32, #tpu.memory_space<vmem>>, %arg5: memref<32x32xf32, #tpu.memory_space<vmem>>) attributes {dimension_semantics = [#tpu.dimension_semantics<parallel>], iteration_bounds = array<i64: 1>, scalar_prefetch = 0 : i64, scratch_operands = 0 : i64, tpu.core_type = #tpu.core_type<tc>, window_params = [{transform_indices = @transform_0, window_bounds = array<i64: 32, 128>}, {transform_indices = @transform_1, window_bounds = array<i64: 32, 128>}, {transform_indices = @transform_2, window_bounds = array<i64: 32, 32>}, {transform_indices = @transform_3, window_bounds = array<i64: 32, 32>}, {transform_indices = @transform_4, window_bounds = array<i64: 32, 32>}]} {
    %c0 = arith.constant 0 : index
    %c0_0 = arith.constant 0 : index
    %0 = vector.load %arg1[%c0, %c0_0] : memref<32x128xf32, #tpu.memory_space<vmem>>, vector<32x128xf32>
    %c0_1 = arith.constant 0 : index
    %c0_2 = arith.constant 0 : index
    %1 = vector.load %arg2[%c0_1, %c0_2] : memref<32x128xf32, #tpu.memory_space<vmem>>, vector<32x128xf32>
    %2 = arith.addf %0, %1 : vector<32x128xf32>
    %3 = vector.extract_strided_slice %2 {offsets = [0, 0], sizes = [32, 32], strides = [1, 1]} : vector<32x128xf32> to vector<32x32xf32>
    %4 = arith.negf %3 : vector<32x32xf32>
    %5 = math.exp %4 : vector<32x32xf32>
    %cst = arith.constant 1.000000e+00 : f32
    %6 = vector.broadcast %cst : f32 to vector<32x32xf32>
    %7 = arith.addf %6, %5 : vector<32x32xf32>
    %8 = arith.divf %6, %7 : vector<32x32xf32>
    %9 = vector.extract_strided_slice %2 {offsets = [0, 32], sizes = [32, 32], strides = [1, 1]} : vector<32x128xf32> to vector<32x32xf32>
    %10 = arith.negf %9 : vector<32x32xf32>
    %11 = math.exp %10 : vector<32x32xf32>
    %cst_3 = arith.constant 1.000000e+00 : f32
    %12 = vector.broadcast %cst_3 : f32 to vector<32x32xf32>
    %13 = arith.addf %12, %11 : vector<32x32xf32>
    %14 = arith.divf %12, %13 : vector<32x32xf32>
    %15 = vector.extract_strided_slice %2 {offsets = [0, 64], sizes = [32, 32], strides = [1, 1]} : vector<32x128xf32> to vector<32x32xf32>
    %16 = arith.negf %15 : vector<32x32xf32>
    %17 = math.exp %16 : vector<32x32xf32>
    %cst_4 = arith.constant 1.000000e+00 : f32
    %18 = vector.broadcast %cst_4 : f32 to vector<32x32xf32>
    %19 = arith.addf %18, %17 : vector<32x32xf32>
    %20 = arith.divf %18, %19 : vector<32x32xf32>
    %21 = vector.extract_strided_slice %2 {offsets = [0, 96], sizes = [32, 32], strides = [1, 1]} : vector<32x128xf32> to vector<32x32xf32>
    %22 = math.tanh %21 : vector<32x32xf32>
    %c0_5 = arith.constant 0 : index
    %c0_6 = arith.constant 0 : index
    %23 = vector.load %arg3[%c0_5, %c0_6] : memref<32x32xf32, #tpu.memory_space<vmem>>, vector<32x32xf32>
    %24 = arith.mulf %14, %23 : vector<32x32xf32>
    %25 = arith.mulf %8, %22 : vector<32x32xf32>
    %26 = arith.addf %24, %25 : vector<32x32xf32>
    %c0_7 = arith.constant 0 : index
    %c0_8 = arith.constant 0 : index
    %27 = vector.load %arg4[%c0_7, %c0_8] : memref<32x32xf32, #tpu.memory_space<vmem>>, vector<32x32xf32>
    tpu.vector_store %arg4[%c0_7, %c0_8], %26 {strides = array<i32>} : memref<32x32xf32, #tpu.memory_space<vmem>>, vector<32x32xf32>,
    %28 = math.tanh %26 : vector<32x32xf32>
    %29 = arith.mulf %20, %28 : vector<32x32xf32>
    %c0_9 = arith.constant 0 : index
    %c0_10 = arith.constant 0 : index
    %30 = vector.load %arg5[%c0_9, %c0_10] : memref<32x32xf32, #tpu.memory_space<vmem>>, vector<32x32xf32>
    tpu.vector_store %arg5[%c0_9, %c0_10], %29 {strides = array<i32>} : memref<32x32xf32, #tpu.memory_space<vmem>>, vector<32x32xf32>,
    return
  }
  func.func @transform_0(%arg0: i32) -> (i32, i32) {
    %c0_i32 = arith.constant 0 : i32
    %c0_i32_0 = arith.constant 0 : i32
    return %arg0, %c0_i32 : i32, i32
  }
  func.func @transform_1(%arg0: i32) -> (i32, i32) {
    %c0_i32 = arith.constant 0 : i32
    %c0_i32_0 = arith.constant 0 : i32
    return %arg0, %c0_i32 : i32, i32
  }
  func.func @transform_2(%arg0: i32) -> (i32, i32) {
    %c0_i32 = arith.constant 0 : i32
    %c0_i32_0 = arith.constant 0 : i32
    return %arg0, %c0_i32 : i32, i32
  }
  func.func @transform_3(%arg0: i32) -> (i32, i32) {
    %c0_i32 = arith.constant 0 : i32
    %c0_i32_0 = arith.constant 0 : i32
    return %arg0, %c0_i32 : i32, i32
  }
  func.func @transform_4(%arg0: i32) -> (i32, i32) {
    %c0_i32 = arith.constant 0 : i32
    %c0_i32_0 = arith.constant 0 : i32
    return %arg0, %c0_i32 : i32, i32
  }
}

module attributes {stable_mosaic.version = 11 : i64} {
  func.func @_latent_kernel(%arg0: i32, %arg1: memref<32x6xf32, #tpu.memory_space<vmem>>, %arg2: memref<32x6xf32, #tpu.memory_space<vmem>>, %arg3: memref<32x3xf32, #tpu.memory_space<vmem>>, %arg4: memref<32x3xf32, #tpu.memory_space<vmem>>, %arg5: memref<32x3xf32, #tpu.memory_space<vmem>>) attributes {dimension_semantics = [#tpu.dimension_semantics<parallel>], iteration_bounds = array<i64: 1>, scalar_prefetch = 0 : i64, scratch_operands = 0 : i64, tpu.core_type = #tpu.core_type<tc>, window_params = [{transform_indices = @transform_0, window_bounds = array<i64: 32, 6>}, {transform_indices = @transform_1, window_bounds = array<i64: 32, 6>}, {transform_indices = @transform_2, window_bounds = array<i64: 32, 3>}, {transform_indices = @transform_3, window_bounds = array<i64: 32, 3>}, {transform_indices = @transform_4, window_bounds = array<i64: 32, 3>}]} {
    %c0 = arith.constant 0 : index
    %c0_0 = arith.constant 0 : index
    %0 = vector.load %arg1[%c0, %c0_0] : memref<32x6xf32, #tpu.memory_space<vmem>>, vector<32x3xf32>
    %c0_1 = arith.constant 0 : index
    %c3 = arith.constant 3 : index
    %1 = vector.load %arg1[%c0_1, %c3] : memref<32x6xf32, #tpu.memory_space<vmem>>, vector<32x3xf32>
    %c0_2 = arith.constant 0 : index
    %c0_3 = arith.constant 0 : index
    %2 = vector.load %arg2[%c0_2, %c0_3] : memref<32x6xf32, #tpu.memory_space<vmem>>, vector<32x3xf32>
    %c0_4 = arith.constant 0 : index
    %c3_5 = arith.constant 3 : index
    %3 = vector.load %arg2[%c0_4, %c3_5] : memref<32x6xf32, #tpu.memory_space<vmem>>, vector<32x3xf32>
    %cst = arith.constant 5.000000e-01 : f32
    %4 = vector.broadcast %cst : f32 to vector<32x3xf32>
    %5 = arith.mulf %4, %1 : vector<32x3xf32>
    %6 = math.exp %5 : vector<32x3xf32>
    %c0_6 = arith.constant 0 : index
    %c0_7 = arith.constant 0 : index
    %7 = vector.load %arg3[%c0_6, %c0_7] : memref<32x3xf32, #tpu.memory_space<vmem>>, vector<32x3xf32>
    %8 = arith.mulf %6, %7 : vector<32x3xf32>
    %9 = arith.addf %0, %8 : vector<32x3xf32>
    %c0_8 = arith.constant 0 : index
    %c0_9 = arith.constant 0 : index
    %10 = vector.load %arg4[%c0_8, %c0_9] : memref<32x3xf32, #tpu.memory_space<vmem>>, vector<32x3xf32>
    tpu.vector_store %arg4[%c0_8, %c0_9], %9 {strides = array<i32>} : memref<32x3xf32, #tpu.memory_space<vmem>>, vector<32x3xf32>,
    %11 = math.exp %1 : vector<32x3xf32>
    %12 = math.exp %3 : vector<32x3xf32>
    %13 = arith.subf %3, %1 : vector<32x3xf32>
    %14 = arith.subf %0, %2 : vector<32x3xf32>
    %15 = arith.mulf %14, %14 : vector<32x3xf32>
    %16 = arith.addf %11, %15 : vector<32x3xf32>
    %17 = arith.divf %16, %12 : vector<32x3xf32>
    %18 = arith.addf %13, %17 : vector<32x3xf32>
    %cst_10 = arith.constant 1.000000e+00 : f32
    %19 = vector.broadcast %cst_10 : f32 to vector<32x3xf32>
    %20 = arith.subf %18, %19 : vector<32x3xf32>
    %cst_11 = arith.constant 5.000000e-01 : f32
    %21 = vector.broadcast %cst_11 : f32 to vector<32x3xf32>
    %22 = arith.mulf %21, %20 : vector<32x3xf32>
    %c0_12 = arith.constant 0 : index
    %c0_13 = arith.constant 0 : index
    %23 = vector.load %arg5[%c0_12, %c0_13] : memref<32x3xf32, #tpu.memory_space<vmem>>, vector<32x3xf32>
    tpu.vector_store %arg5[%c0_12, %c0_13], %22 {strides = array<i32>} : memref<32x3xf32, #tpu.memory_space<vmem>>, vector<32x3xf32>,
    return
  }
  func.func @transform_0(%arg0: i32) -> (i32, i32) {
    %c0_i32 = arith.constant 0 : i32
    %c0_i32_0 = arith.constant 0 : i32
    return %arg0, %c0_i32 : i32, i32
  }
  func.func @transform_1(%arg0: i32) -> (i32, i32) {
    %c0_i32 = arith.constant 0 : i32
    %c0_i32_0 = arith.constant 0 : i32
    return %arg0, %c0_i32 : i32, i32
  }
  func.func @transform_2(%arg0: i32) -> (i32, i32) {
    %c0_i32 = arith.constant 0 : i32
    %c0_i32_0 = arith.constant 0 : i32
    return %arg0, %c0_i32 : i32, i32
  }
  func.func @transform_3(%arg0: i32) -> (i32, i32) {
    %c0_i32 = arith.constant 0 : i32
    %c0_i32_0 = arith.constant 0 : i32
    return %arg0, %c0_i32 : i32, i32
  }
  func.func @transform_4(%arg0: i32) -> (i32, i32) {
    %c0_i32 = arith.constant 0 : i32
    %c0_i32_0 = arith.constant 0 : i32
    return %arg0, %c0_i32 : i32, i32
  }
}

module attributes {stable_mosaic.version = 11 : i64} {
  func.func @_conv_direct_kernel(%arg0: i32, %arg1: memref<1x64x32xbf16, #tpu.memory_space<vmem>>, %arg2: memref<5x5x32x128xbf16, #tpu.memory_space<vmem>>, %arg3: memref<1x128xf32, #tpu.memory_space<vmem>>, %arg4: memref<1x28x128xf32, #tpu.memory_space<vmem>>) attributes {dimension_semantics = [#tpu.dimension_semantics<parallel>], iteration_bounds = array<i64: 2>, scalar_prefetch = 0 : i64, scratch_operands = 0 : i64, tpu.core_type = #tpu.core_type<tc>, window_params = [{transform_indices = @transform_0, window_bounds = array<i64: 1, 64, 32>}, {pipeline_mode = #tpu.pipeline_mode<synchronous>, transform_indices = @transform_1, window_bounds = array<i64: 5, 5, 32, 128>}, {pipeline_mode = #tpu.pipeline_mode<synchronous>, transform_indices = @transform_2, window_bounds = array<i64: 1, 128>}, {transform_indices = @transform_3, window_bounds = array<i64: 1, 28, 128>}]} {
    %cst = arith.constant 0.000000e+00 : f32
    %0 = vector.broadcast %cst : f32 to vector<28x128xf32>
    %c0 = arith.constant 0 : index
    %c0_0 = arith.constant 0 : index
    %c0_1 = arith.constant 0 : index
    %1 = vector.load %arg1[%c0, %c0_0, %c0_1] : memref<1x64x32xbf16, #tpu.memory_space<vmem>>, vector<1x28x32xbf16>
    %2 = vector.shape_cast %1 : vector<1x28x32xbf16> to vector<28x32xbf16>
    %c0_2 = arith.constant 0 : index
    %c0_3 = arith.constant 0 : index
    %c0_4 = arith.constant 0 : index
    %c0_5 = arith.constant 0 : index
    %3 = vector.load %arg2[%c0_2, %c0_3, %c0_4, %c0_5] : memref<5x5x32x128xbf16, #tpu.memory_space<vmem>>, vector<1x1x32x128xbf16>
    %4 = vector.shape_cast %3 : vector<1x1x32x128xbf16> to vector<32x128xbf16>
    %cst_6 = arith.constant dense<0.000000e+00> : vector<28x128xf32>
    %5 = tpu.matmul %2, %4, %cst_6 {dimension_numbers = #tpu.dot_dimension_numbers<[1], [0], [0], [1], [0, 0, 1, 1], [], []>} : vector<28x32xbf16>, vector<32x128xbf16>, vector<28x128xf32> -> vector<28x128xf32>
    %6 = arith.addf %0, %5 : vector<28x128xf32>
    %c0_7 = arith.constant 0 : index
    %c1 = arith.constant 1 : index
    %c0_8 = arith.constant 0 : index
    %7 = vector.load %arg1[%c0_7, %c1, %c0_8] : memref<1x64x32xbf16, #tpu.memory_space<vmem>>, vector<1x28x32xbf16>
    %8 = vector.shape_cast %7 : vector<1x28x32xbf16> to vector<28x32xbf16>
    %c0_9 = arith.constant 0 : index
    %c1_10 = arith.constant 1 : index
    %c0_11 = arith.constant 0 : index
    %c0_12 = arith.constant 0 : index
    %9 = vector.load %arg2[%c0_9, %c1_10, %c0_11, %c0_12] : memref<5x5x32x128xbf16, #tpu.memory_space<vmem>>, vector<1x1x32x128xbf16>
    %10 = vector.shape_cast %9 : vector<1x1x32x128xbf16> to vector<32x128xbf16>
    %cst_13 = arith.constant dense<0.000000e+00> : vector<28x128xf32>
    %11 = tpu.matmul %8, %10, %cst_13 {dimension_numbers = #tpu.dot_dimension_numbers<[1], [0], [0], [1], [0, 0, 1, 1], [], []>} : vector<28x32xbf16>, vector<32x128xbf16>, vector<28x128xf32> -> vector<28x128xf32>
    %12 = arith.addf %6, %11 : vector<28x128xf32>
    %c0_14 = arith.constant 0 : index
    %c2 = arith.constant 2 : index
    %c0_15 = arith.constant 0 : index
    %13 = vector.load %arg1[%c0_14, %c2, %c0_15] : memref<1x64x32xbf16, #tpu.memory_space<vmem>>, vector<1x28x32xbf16>
    %14 = vector.shape_cast %13 : vector<1x28x32xbf16> to vector<28x32xbf16>
    %c0_16 = arith.constant 0 : index
    %c2_17 = arith.constant 2 : index
    %c0_18 = arith.constant 0 : index
    %c0_19 = arith.constant 0 : index
    %15 = vector.load %arg2[%c0_16, %c2_17, %c0_18, %c0_19] : memref<5x5x32x128xbf16, #tpu.memory_space<vmem>>, vector<1x1x32x128xbf16>
    %16 = vector.shape_cast %15 : vector<1x1x32x128xbf16> to vector<32x128xbf16>
    %cst_20 = arith.constant dense<0.000000e+00> : vector<28x128xf32>
    %17 = tpu.matmul %14, %16, %cst_20 {dimension_numbers = #tpu.dot_dimension_numbers<[1], [0], [0], [1], [0, 0, 1, 1], [], []>} : vector<28x32xbf16>, vector<32x128xbf16>, vector<28x128xf32> -> vector<28x128xf32>
    %18 = arith.addf %12, %17 : vector<28x128xf32>
    %c0_21 = arith.constant 0 : index
    %c3 = arith.constant 3 : index
    %c0_22 = arith.constant 0 : index
    %19 = vector.load %arg1[%c0_21, %c3, %c0_22] : memref<1x64x32xbf16, #tpu.memory_space<vmem>>, vector<1x28x32xbf16>
    %20 = vector.shape_cast %19 : vector<1x28x32xbf16> to vector<28x32xbf16>
    %c0_23 = arith.constant 0 : index
    %c3_24 = arith.constant 3 : index
    %c0_25 = arith.constant 0 : index
    %c0_26 = arith.constant 0 : index
    %21 = vector.load %arg2[%c0_23, %c3_24, %c0_25, %c0_26] : memref<5x5x32x128xbf16, #tpu.memory_space<vmem>>, vector<1x1x32x128xbf16>
    %22 = vector.shape_cast %21 : vector<1x1x32x128xbf16> to vector<32x128xbf16>
    %cst_27 = arith.constant dense<0.000000e+00> : vector<28x128xf32>
    %23 = tpu.matmul %20, %22, %cst_27 {dimension_numbers = #tpu.dot_dimension_numbers<[1], [0], [0], [1], [0, 0, 1, 1], [], []>} : vector<28x32xbf16>, vector<32x128xbf16>, vector<28x128xf32> -> vector<28x128xf32>
    %24 = arith.addf %18, %23 : vector<28x128xf32>
    %c0_28 = arith.constant 0 : index
    %c4 = arith.constant 4 : index
    %c0_29 = arith.constant 0 : index
    %25 = vector.load %arg1[%c0_28, %c4, %c0_29] : memref<1x64x32xbf16, #tpu.memory_space<vmem>>, vector<1x28x32xbf16>
    %26 = vector.shape_cast %25 : vector<1x28x32xbf16> to vector<28x32xbf16>
    %c0_30 = arith.constant 0 : index
    %c4_31 = arith.constant 4 : index
    %c0_32 = arith.constant 0 : index
    %c0_33 = arith.constant 0 : index
    %27 = vector.load %arg2[%c0_30, %c4_31, %c0_32, %c0_33] : memref<5x5x32x128xbf16, #tpu.memory_space<vmem>>, vector<1x1x32x128xbf16>
    %28 = vector.shape_cast %27 : vector<1x1x32x128xbf16> to vector<32x128xbf16>
    %cst_34 = arith.constant dense<0.000000e+00> : vector<28x128xf32>
    %29 = tpu.matmul %26, %28, %cst_34 {dimension_numbers = #tpu.dot_dimension_numbers<[1], [0], [0], [1], [0, 0, 1, 1], [], []>} : vector<28x32xbf16>, vector<32x128xbf16>, vector<28x128xf32> -> vector<28x128xf32>
    %30 = arith.addf %24, %29 : vector<28x128xf32>
    %c0_35 = arith.constant 0 : index
    %c8 = arith.constant 8 : index
    %c0_36 = arith.constant 0 : index
    %31 = vector.load %arg1[%c0_35, %c8, %c0_36] : memref<1x64x32xbf16, #tpu.memory_space<vmem>>, vector<1x28x32xbf16>
    %32 = vector.shape_cast %31 : vector<1x28x32xbf16> to vector<28x32xbf16>
    %c1_37 = arith.constant 1 : index
    %c0_38 = arith.constant 0 : index
    %c0_39 = arith.constant 0 : index
    %c0_40 = arith.constant 0 : index
    %33 = vector.load %arg2[%c1_37, %c0_38, %c0_39, %c0_40] : memref<5x5x32x128xbf16, #tpu.memory_space<vmem>>, vector<1x1x32x128xbf16>
    %34 = vector.shape_cast %33 : vector<1x1x32x128xbf16> to vector<32x128xbf16>
    %cst_41 = arith.constant dense<0.000000e+00> : vector<28x128xf32>
    %35 = tpu.matmul %32, %34, %cst_41 {dimension_numbers = #tpu.dot_dimension_numbers<[1], [0], [0], [1], [0, 0, 1, 1], [], []>} : vector<28x32xbf16>, vector<32x128xbf16>, vector<28x128xf32> -> vector<28x128xf32>
    %36 = arith.addf %30, %35 : vector<28x128xf32>
    %c0_42 = arith.constant 0 : index
    %c9 = arith.constant 9 : index
    %c0_43 = arith.constant 0 : index
    %37 = vector.load %arg1[%c0_42, %c9, %c0_43] : memref<1x64x32xbf16, #tpu.memory_space<vmem>>, vector<1x28x32xbf16>
    %38 = vector.shape_cast %37 : vector<1x28x32xbf16> to vector<28x32xbf16>
    %c1_44 = arith.constant 1 : index
    %c1_45 = arith.constant 1 : index
    %c0_46 = arith.constant 0 : index
    %c0_47 = arith.constant 0 : index
    %39 = vector.load %arg2[%c1_44, %c1_45, %c0_46, %c0_47] : memref<5x5x32x128xbf16, #tpu.memory_space<vmem>>, vector<1x1x32x128xbf16>
    %40 = vector.shape_cast %39 : vector<1x1x32x128xbf16> to vector<32x128xbf16>
    %cst_48 = arith.constant dense<0.000000e+00> : vector<28x128xf32>
    %41 = tpu.matmul %38, %40, %cst_48 {dimension_numbers = #tpu.dot_dimension_numbers<[1], [0], [0], [1], [0, 0, 1, 1], [], []>} : vector<28x32xbf16>, vector<32x128xbf16>, vector<28x128xf32> -> vector<28x128xf32>
    %42 = arith.addf %36, %41 : vector<28x128xf32>
    %c0_49 = arith.constant 0 : index
    %c10 = arith.constant 10 : index
    %c0_50 = arith.constant 0 : index
    %43 = vector.load %arg1[%c0_49, %c10, %c0_50] : memref<1x64x32xbf16, #tpu.memory_space<vmem>>, vector<1x28x32xbf16>
    %44 = vector.shape_cast %43 : vector<1x28x32xbf16> to vector<28x32xbf16>
    %c1_51 = arith.constant 1 : index
    %c2_52 = arith.constant 2 : index
    %c0_53 = arith.constant 0 : index
    %c0_54 = arith.constant 0 : index
    %45 = vector.load %arg2[%c1_51, %c2_52, %c0_53, %c0_54] : memref<5x5x32x128xbf16, #tpu.memory_space<vmem>>, vector<1x1x32x128xbf16>
    %46 = vector.shape_cast %45 : vector<1x1x32x128xbf16> to vector<32x128xbf16>
    %cst_55 = arith.constant dense<0.000000e+00> : vector<28x128xf32>
    %47 = tpu.matmul %44, %46, %cst_55 {dimension_numbers = #tpu.dot_dimension_numbers<[1], [0], [0], [1], [0, 0, 1, 1], [], []>} : vector<28x32xbf16>, vector<32x128xbf16>, vector<28x128xf32> -> vector<28x128xf32>
    %48 = arith.addf %42, %47 : vector<28x128xf32>
    %c0_56 = arith.constant 0 : index
    %c11 = arith.constant 11 : index
    %c0_57 = arith.constant 0 : index
    %49 = vector.load %arg1[%c0_56, %c11, %c0_57] : memref<1x64x32xbf16, #tpu.memory_space<vmem>>, vector<1x28x32xbf16>
    %50 = vector.shape_cast %49 : vector<1x28x32xbf16> to vector<28x32xbf16>
    %c1_58 = arith.constant 1 : index
    %c3_59 = arith.constant 3 : index
    %c0_60 = arith.constant 0 : index
    %c0_61 = arith.constant 0 : index
    %51 = vector.load %arg2[%c1_58, %c3_59, %c0_60, %c0_61] : memref<5x5x32x128xbf16, #tpu.memory_space<vmem>>, vector<1x1x32x128xbf16>
    %52 = vector.shape_cast %51 : vector<1x1x32x128xbf16> to vector<32x128xbf16>
    %cst_62 = arith.constant dense<0.000000e+00> : vector<28x128xf32>
    %53 = tpu.matmul %50, %52, %cst_62 {dimension_numbers = #tpu.dot_dimension_numbers<[1], [0], [0], [1], [0, 0, 1, 1], [], []>} : vector<28x32xbf16>, vector<32x128xbf16>, vector<28x128xf32> -> vector<28x128xf32>
    %54 = arith.addf %48, %53 : vector<28x128xf32>
    %c0_63 = arith.constant 0 : index
    %c12 = arith.constant 12 : index
    %c0_64 = arith.constant 0 : index
    %55 = vector.load %arg1[%c0_63, %c12, %c0_64] : memref<1x64x32xbf16, #tpu.memory_space<vmem>>, vector<1x28x32xbf16>
    %56 = vector.shape_cast %55 : vector<1x28x32xbf16> to vector<28x32xbf16>
    %c1_65 = arith.constant 1 : index
    %c4_66 = arith.constant 4 : index
    %c0_67 = arith.constant 0 : index
    %c0_68 = arith.constant 0 : index
    %57 = vector.load %arg2[%c1_65, %c4_66, %c0_67, %c0_68] : memref<5x5x32x128xbf16, #tpu.memory_space<vmem>>, vector<1x1x32x128xbf16>
    %58 = vector.shape_cast %57 : vector<1x1x32x128xbf16> to vector<32x128xbf16>
    %cst_69 = arith.constant dense<0.000000e+00> : vector<28x128xf32>
    %59 = tpu.matmul %56, %58, %cst_69 {dimension_numbers = #tpu.dot_dimension_numbers<[1], [0], [0], [1], [0, 0, 1, 1], [], []>} : vector<28x32xbf16>, vector<32x128xbf16>, vector<28x128xf32> -> vector<28x128xf32>
    %60 = arith.addf %54, %59 : vector<28x128xf32>
    %c0_70 = arith.constant 0 : index
    %c16 = arith.constant 16 : index
    %c0_71 = arith.constant 0 : index
    %61 = vector.load %arg1[%c0_70, %c16, %c0_71] : memref<1x64x32xbf16, #tpu.memory_space<vmem>>, vector<1x28x32xbf16>
    %62 = vector.shape_cast %61 : vector<1x28x32xbf16> to vector<28x32xbf16>
    %c2_72 = arith.constant 2 : index
    %c0_73 = arith.constant 0 : index
    %c0_74 = arith.constant 0 : index
    %c0_75 = arith.constant 0 : index
    %63 = vector.load %arg2[%c2_72, %c0_73, %c0_74, %c0_75] : memref<5x5x32x128xbf16, #tpu.memory_space<vmem>>, vector<1x1x32x128xbf16>
    %64 = vector.shape_cast %63 : vector<1x1x32x128xbf16> to vector<32x128xbf16>
    %cst_76 = arith.constant dense<0.000000e+00> : vector<28x128xf32>
    %65 = tpu.matmul %62, %64, %cst_76 {dimension_numbers = #tpu.dot_dimension_numbers<[1], [0], [0], [1], [0, 0, 1, 1], [], []>} : vector<28x32xbf16>, vector<32x128xbf16>, vector<28x128xf32> -> vector<28x128xf32>
    %66 = arith.addf %60, %65 : vector<28x128xf32>
    %c0_77 = arith.constant 0 : index
    %c17 = arith.constant 17 : index
    %c0_78 = arith.constant 0 : index
    %67 = vector.load %arg1[%c0_77, %c17, %c0_78] : memref<1x64x32xbf16, #tpu.memory_space<vmem>>, vector<1x28x32xbf16>
    %68 = vector.shape_cast %67 : vector<1x28x32xbf16> to vector<28x32xbf16>
    %c2_79 = arith.constant 2 : index
    %c1_80 = arith.constant 1 : index
    %c0_81 = arith.constant 0 : index
    %c0_82 = arith.constant 0 : index
    %69 = vector.load %arg2[%c2_79, %c1_80, %c0_81, %c0_82] : memref<5x5x32x128xbf16, #tpu.memory_space<vmem>>, vector<1x1x32x128xbf16>
    %70 = vector.shape_cast %69 : vector<1x1x32x128xbf16> to vector<32x128xbf16>
    %cst_83 = arith.constant dense<0.000000e+00> : vector<28x128xf32>
    %71 = tpu.matmul %68, %70, %cst_83 {dimension_numbers = #tpu.dot_dimension_numbers<[1], [0], [0], [1], [0, 0, 1, 1], [], []>} : vector<28x32xbf16>, vector<32x128xbf16>, vector<28x128xf32> -> vector<28x128xf32>
    %72 = arith.addf %66, %71 : vector<28x128xf32>
    %c0_84 = arith.constant 0 : index
    %c18 = arith.constant 18 : index
    %c0_85 = arith.constant 0 : index
    %73 = vector.load %arg1[%c0_84, %c18, %c0_85] : memref<1x64x32xbf16, #tpu.memory_space<vmem>>, vector<1x28x32xbf16>
    %74 = vector.shape_cast %73 : vector<1x28x32xbf16> to vector<28x32xbf16>
    %c2_86 = arith.constant 2 : index
    %c2_87 = arith.constant 2 : index
    %c0_88 = arith.constant 0 : index
    %c0_89 = arith.constant 0 : index
    %75 = vector.load %arg2[%c2_86, %c2_87, %c0_88, %c0_89] : memref<5x5x32x128xbf16, #tpu.memory_space<vmem>>, vector<1x1x32x128xbf16>
    %76 = vector.shape_cast %75 : vector<1x1x32x128xbf16> to vector<32x128xbf16>
    %cst_90 = arith.constant dense<0.000000e+00> : vector<28x128xf32>
    %77 = tpu.matmul %74, %76, %cst_90 {dimension_numbers = #tpu.dot_dimension_numbers<[1], [0], [0], [1], [0, 0, 1, 1], [], []>} : vector<28x32xbf16>, vector<32x128xbf16>, vector<28x128xf32> -> vector<28x128xf32>
    %78 = arith.addf %72, %77 : vector<28x128xf32>
    %c0_91 = arith.constant 0 : index
    %c19 = arith.constant 19 : index
    %c0_92 = arith.constant 0 : index
    %79 = vector.load %arg1[%c0_91, %c19, %c0_92] : memref<1x64x32xbf16, #tpu.memory_space<vmem>>, vector<1x28x32xbf16>
    %80 = vector.shape_cast %79 : vector<1x28x32xbf16> to vector<28x32xbf16>
    %c2_93 = arith.constant 2 : index
    %c3_94 = arith.constant 3 : index
    %c0_95 = arith.constant 0 : index
    %c0_96 = arith.constant 0 : index
    %81 = vector.load %arg2[%c2_93, %c3_94, %c0_95, %c0_96] : memref<5x5x32x128xbf16, #tpu.memory_space<vmem>>, vector<1x1x32x128xbf16>
    %82 = vector.shape_cast %81 : vector<1x1x32x128xbf16> to vector<32x128xbf16>
    %cst_97 = arith.constant dense<0.000000e+00> : vector<28x128xf32>
    %83 = tpu.matmul %80, %82, %cst_97 {dimension_numbers = #tpu.dot_dimension_numbers<[1], [0], [0], [1], [0, 0, 1, 1], [], []>} : vector<28x32xbf16>, vector<32x128xbf16>, vector<28x128xf32> -> vector<28x128xf32>
    %84 = arith.addf %78, %83 : vector<28x128xf32>
    %c0_98 = arith.constant 0 : index
    %c20 = arith.constant 20 : index
    %c0_99 = arith.constant 0 : index
    %85 = vector.load %arg1[%c0_98, %c20, %c0_99] : memref<1x64x32xbf16, #tpu.memory_space<vmem>>, vector<1x28x32xbf16>
    %86 = vector.shape_cast %85 : vector<1x28x32xbf16> to vector<28x32xbf16>
    %c2_100 = arith.constant 2 : index
    %c4_101 = arith.constant 4 : index
    %c0_102 = arith.constant 0 : index
    %c0_103 = arith.constant 0 : index
    %87 = vector.load %arg2[%c2_100, %c4_101, %c0_102, %c0_103] : memref<5x5x32x128xbf16, #tpu.memory_space<vmem>>, vector<1x1x32x128xbf16>
    %88 = vector.shape_cast %87 : vector<1x1x32x128xbf16> to vector<32x128xbf16>
    %cst_104 = arith.constant dense<0.000000e+00> : vector<28x128xf32>
    %89 = tpu.matmul %86, %88, %cst_104 {dimension_numbers = #tpu.dot_dimension_numbers<[1], [0], [0], [1], [0, 0, 1, 1], [], []>} : vector<28x32xbf16>, vector<32x128xbf16>, vector<28x128xf32> -> vector<28x128xf32>
    %90 = arith.addf %84, %89 : vector<28x128xf32>
    %c0_105 = arith.constant 0 : index
    %c24 = arith.constant 24 : index
    %c0_106 = arith.constant 0 : index
    %91 = vector.load %arg1[%c0_105, %c24, %c0_106] : memref<1x64x32xbf16, #tpu.memory_space<vmem>>, vector<1x28x32xbf16>
    %92 = vector.shape_cast %91 : vector<1x28x32xbf16> to vector<28x32xbf16>
    %c3_107 = arith.constant 3 : index
    %c0_108 = arith.constant 0 : index
    %c0_109 = arith.constant 0 : index
    %c0_110 = arith.constant 0 : index
    %93 = vector.load %arg2[%c3_107, %c0_108, %c0_109, %c0_110] : memref<5x5x32x128xbf16, #tpu.memory_space<vmem>>, vector<1x1x32x128xbf16>
    %94 = vector.shape_cast %93 : vector<1x1x32x128xbf16> to vector<32x128xbf16>
    %cst_111 = arith.constant dense<0.000000e+00> : vector<28x128xf32>
    %95 = tpu.matmul %92, %94, %cst_111 {dimension_numbers = #tpu.dot_dimension_numbers<[1], [0], [0], [1], [0, 0, 1, 1], [], []>} : vector<28x32xbf16>, vector<32x128xbf16>, vector<28x128xf32> -> vector<28x128xf32>
    %96 = arith.addf %90, %95 : vector<28x128xf32>
    %c0_112 = arith.constant 0 : index
    %c25 = arith.constant 25 : index
    %c0_113 = arith.constant 0 : index
    %97 = vector.load %arg1[%c0_112, %c25, %c0_113] : memref<1x64x32xbf16, #tpu.memory_space<vmem>>, vector<1x28x32xbf16>
    %98 = vector.shape_cast %97 : vector<1x28x32xbf16> to vector<28x32xbf16>
    %c3_114 = arith.constant 3 : index
    %c1_115 = arith.constant 1 : index
    %c0_116 = arith.constant 0 : index
    %c0_117 = arith.constant 0 : index
    %99 = vector.load %arg2[%c3_114, %c1_115, %c0_116, %c0_117] : memref<5x5x32x128xbf16, #tpu.memory_space<vmem>>, vector<1x1x32x128xbf16>
    %100 = vector.shape_cast %99 : vector<1x1x32x128xbf16> to vector<32x128xbf16>
    %cst_118 = arith.constant dense<0.000000e+00> : vector<28x128xf32>
    %101 = tpu.matmul %98, %100, %cst_118 {dimension_numbers = #tpu.dot_dimension_numbers<[1], [0], [0], [1], [0, 0, 1, 1], [], []>} : vector<28x32xbf16>, vector<32x128xbf16>, vector<28x128xf32> -> vector<28x128xf32>
    %102 = arith.addf %96, %101 : vector<28x128xf32>
    %c0_119 = arith.constant 0 : index
    %c26 = arith.constant 26 : index
    %c0_120 = arith.constant 0 : index
    %103 = vector.load %arg1[%c0_119, %c26, %c0_120] : memref<1x64x32xbf16, #tpu.memory_space<vmem>>, vector<1x28x32xbf16>
    %104 = vector.shape_cast %103 : vector<1x28x32xbf16> to vector<28x32xbf16>
    %c3_121 = arith.constant 3 : index
    %c2_122 = arith.constant 2 : index
    %c0_123 = arith.constant 0 : index
    %c0_124 = arith.constant 0 : index
    %105 = vector.load %arg2[%c3_121, %c2_122, %c0_123, %c0_124] : memref<5x5x32x128xbf16, #tpu.memory_space<vmem>>, vector<1x1x32x128xbf16>
    %106 = vector.shape_cast %105 : vector<1x1x32x128xbf16> to vector<32x128xbf16>
    %cst_125 = arith.constant dense<0.000000e+00> : vector<28x128xf32>
    %107 = tpu.matmul %104, %106, %cst_125 {dimension_numbers = #tpu.dot_dimension_numbers<[1], [0], [0], [1], [0, 0, 1, 1], [], []>} : vector<28x32xbf16>, vector<32x128xbf16>, vector<28x128xf32> -> vector<28x128xf32>
    %108 = arith.addf %102, %107 : vector<28x128xf32>
    %c0_126 = arith.constant 0 : index
    %c27 = arith.constant 27 : index
    %c0_127 = arith.constant 0 : index
    %109 = vector.load %arg1[%c0_126, %c27, %c0_127] : memref<1x64x32xbf16, #tpu.memory_space<vmem>>, vector<1x28x32xbf16>
    %110 = vector.shape_cast %109 : vector<1x28x32xbf16> to vector<28x32xbf16>
    %c3_128 = arith.constant 3 : index
    %c3_129 = arith.constant 3 : index
    %c0_130 = arith.constant 0 : index
    %c0_131 = arith.constant 0 : index
    %111 = vector.load %arg2[%c3_128, %c3_129, %c0_130, %c0_131] : memref<5x5x32x128xbf16, #tpu.memory_space<vmem>>, vector<1x1x32x128xbf16>
    %112 = vector.shape_cast %111 : vector<1x1x32x128xbf16> to vector<32x128xbf16>
    %cst_132 = arith.constant dense<0.000000e+00> : vector<28x128xf32>
    %113 = tpu.matmul %110, %112, %cst_132 {dimension_numbers = #tpu.dot_dimension_numbers<[1], [0], [0], [1], [0, 0, 1, 1], [], []>} : vector<28x32xbf16>, vector<32x128xbf16>, vector<28x128xf32> -> vector<28x128xf32>
    %114 = arith.addf %108, %113 : vector<28x128xf32>
    %c0_133 = arith.constant 0 : index
    %c28 = arith.constant 28 : index
    %c0_134 = arith.constant 0 : index
    %115 = vector.load %arg1[%c0_133, %c28, %c0_134] : memref<1x64x32xbf16, #tpu.memory_space<vmem>>, vector<1x28x32xbf16>
    %116 = vector.shape_cast %115 : vector<1x28x32xbf16> to vector<28x32xbf16>
    %c3_135 = arith.constant 3 : index
    %c4_136 = arith.constant 4 : index
    %c0_137 = arith.constant 0 : index
    %c0_138 = arith.constant 0 : index
    %117 = vector.load %arg2[%c3_135, %c4_136, %c0_137, %c0_138] : memref<5x5x32x128xbf16, #tpu.memory_space<vmem>>, vector<1x1x32x128xbf16>
    %118 = vector.shape_cast %117 : vector<1x1x32x128xbf16> to vector<32x128xbf16>
    %cst_139 = arith.constant dense<0.000000e+00> : vector<28x128xf32>
    %119 = tpu.matmul %116, %118, %cst_139 {dimension_numbers = #tpu.dot_dimension_numbers<[1], [0], [0], [1], [0, 0, 1, 1], [], []>} : vector<28x32xbf16>, vector<32x128xbf16>, vector<28x128xf32> -> vector<28x128xf32>
    %120 = arith.addf %114, %119 : vector<28x128xf32>
    %c0_140 = arith.constant 0 : index
    %c32 = arith.constant 32 : index
    %c0_141 = arith.constant 0 : index
    %121 = vector.load %arg1[%c0_140, %c32, %c0_141] : memref<1x64x32xbf16, #tpu.memory_space<vmem>>, vector<1x28x32xbf16>
    %122 = vector.shape_cast %121 : vector<1x28x32xbf16> to vector<28x32xbf16>
    %c4_142 = arith.constant 4 : index
    %c0_143 = arith.constant 0 : index
    %c0_144 = arith.constant 0 : index
    %c0_145 = arith.constant 0 : index
    %123 = vector.load %arg2[%c4_142, %c0_143, %c0_144, %c0_145] : memref<5x5x32x128xbf16, #tpu.memory_space<vmem>>, vector<1x1x32x128xbf16>
    %124 = vector.shape_cast %123 : vector<1x1x32x128xbf16> to vector<32x128xbf16>
    %cst_146 = arith.constant dense<0.000000e+00> : vector<28x128xf32>
    %125 = tpu.matmul %122, %124, %cst_146 {dimension_numbers = #tpu.dot_dimension_numbers<[1], [0], [0], [1], [0, 0, 1, 1], [], []>} : vector<28x32xbf16>, vector<32x128xbf16>, vector<28x128xf32> -> vector<28x128xf32>
    %126 = arith.addf %120, %125 : vector<28x128xf32>
    %c0_147 = arith.constant 0 : index
    %c33 = arith.constant 33 : index
    %c0_148 = arith.constant 0 : index
    %127 = vector.load %arg1[%c0_147, %c33, %c0_148] : memref<1x64x32xbf16, #tpu.memory_space<vmem>>, vector<1x28x32xbf16>
    %128 = vector.shape_cast %127 : vector<1x28x32xbf16> to vector<28x32xbf16>
    %c4_149 = arith.constant 4 : index
    %c1_150 = arith.constant 1 : index
    %c0_151 = arith.constant 0 : index
    %c0_152 = arith.constant 0 : index
    %129 = vector.load %arg2[%c4_149, %c1_150, %c0_151, %c0_152] : memref<5x5x32x128xbf16, #tpu.memory_space<vmem>>, vector<1x1x32x128xbf16>
    %130 = vector.shape_cast %129 : vector<1x1x32x128xbf16> to vector<32x128xbf16>
    %cst_153 = arith.constant dense<0.000000e+00> : vector<28x128xf32>
    %131 = tpu.matmul %128, %130, %cst_153 {dimension_numbers = #tpu.dot_dimension_numbers<[1], [0], [0], [1], [0, 0, 1, 1], [], []>} : vector<28x32xbf16>, vector<32x128xbf16>, vector<28x128xf32> -> vector<28x128xf32>
    %132 = arith.addf %126, %131 : vector<28x128xf32>
    %c0_154 = arith.constant 0 : index
    %c34 = arith.constant 34 : index
    %c0_155 = arith.constant 0 : index
    %133 = vector.load %arg1[%c0_154, %c34, %c0_155] : memref<1x64x32xbf16, #tpu.memory_space<vmem>>, vector<1x28x32xbf16>
    %134 = vector.shape_cast %133 : vector<1x28x32xbf16> to vector<28x32xbf16>
    %c4_156 = arith.constant 4 : index
    %c2_157 = arith.constant 2 : index
    %c0_158 = arith.constant 0 : index
    %c0_159 = arith.constant 0 : index
    %135 = vector.load %arg2[%c4_156, %c2_157, %c0_158, %c0_159] : memref<5x5x32x128xbf16, #tpu.memory_space<vmem>>, vector<1x1x32x128xbf16>
    %136 = vector.shape_cast %135 : vector<1x1x32x128xbf16> to vector<32x128xbf16>
    %cst_160 = arith.constant dense<0.000000e+00> : vector<28x128xf32>
    %137 = tpu.matmul %134, %136, %cst_160 {dimension_numbers = #tpu.dot_dimension_numbers<[1], [0], [0], [1], [0, 0, 1, 1], [], []>} : vector<28x32xbf16>, vector<32x128xbf16>, vector<28x128xf32> -> vector<28x128xf32>
    %138 = arith.addf %132, %137 : vector<28x128xf32>
    %c0_161 = arith.constant 0 : index
    %c35 = arith.constant 35 : index
    %c0_162 = arith.constant 0 : index
    %139 = vector.load %arg1[%c0_161, %c35, %c0_162] : memref<1x64x32xbf16, #tpu.memory_space<vmem>>, vector<1x28x32xbf16>
    %140 = vector.shape_cast %139 : vector<1x28x32xbf16> to vector<28x32xbf16>
    %c4_163 = arith.constant 4 : index
    %c3_164 = arith.constant 3 : index
    %c0_165 = arith.constant 0 : index
    %c0_166 = arith.constant 0 : index
    %141 = vector.load %arg2[%c4_163, %c3_164, %c0_165, %c0_166] : memref<5x5x32x128xbf16, #tpu.memory_space<vmem>>, vector<1x1x32x128xbf16>
    %142 = vector.shape_cast %141 : vector<1x1x32x128xbf16> to vector<32x128xbf16>
    %cst_167 = arith.constant dense<0.000000e+00> : vector<28x128xf32>
    %143 = tpu.matmul %140, %142, %cst_167 {dimension_numbers = #tpu.dot_dimension_numbers<[1], [0], [0], [1], [0, 0, 1, 1], [], []>} : vector<28x32xbf16>, vector<32x128xbf16>, vector<28x128xf32> -> vector<28x128xf32>
    %144 = arith.addf %138, %143 : vector<28x128xf32>
    %c0_168 = arith.constant 0 : index
    %c36 = arith.constant 36 : index
    %c0_169 = arith.constant 0 : index
    %145 = vector.load %arg1[%c0_168, %c36, %c0_169] : memref<1x64x32xbf16, #tpu.memory_space<vmem>>, vector<1x28x32xbf16>
    %146 = vector.shape_cast %145 : vector<1x28x32xbf16> to vector<28x32xbf16>
    %c4_170 = arith.constant 4 : index
    %c4_171 = arith.constant 4 : index
    %c0_172 = arith.constant 0 : index
    %c0_173 = arith.constant 0 : index
    %147 = vector.load %arg2[%c4_170, %c4_171, %c0_172, %c0_173] : memref<5x5x32x128xbf16, #tpu.memory_space<vmem>>, vector<1x1x32x128xbf16>
    %148 = vector.shape_cast %147 : vector<1x1x32x128xbf16> to vector<32x128xbf16>
    %cst_174 = arith.constant dense<0.000000e+00> : vector<28x128xf32>
    %149 = tpu.matmul %146, %148, %cst_174 {dimension_numbers = #tpu.dot_dimension_numbers<[1], [0], [0], [1], [0, 0, 1, 1], [], []>} : vector<28x32xbf16>, vector<32x128xbf16>, vector<28x128xf32> -> vector<28x128xf32>
    %150 = arith.addf %144, %149 : vector<28x128xf32>
    %c0_175 = arith.constant 0 : index
    %c0_176 = arith.constant 0 : index
    %151 = vector.load %arg3[%c0_175, %c0_176] : memref<1x128xf32, #tpu.memory_space<vmem>>, vector<1x128xf32>
    %152 = vector.broadcast %151 : vector<1x128xf32> to vector<28x128xf32>
    %153 = arith.addf %150, %152 : vector<28x128xf32>
    %c0_177 = arith.constant 0 : index
    %c0_178 = arith.constant 0 : index
    %c0_179 = arith.constant 0 : index
    %154 = vector.load %arg4[%c0_177, %c0_178, %c0_179] : memref<1x28x128xf32, #tpu.memory_space<vmem>>, vector<1x28x128xf32>
    %155 = vector.shape_cast %154 : vector<1x28x128xf32> to vector<28x128xf32>
    %156 = vector.shape_cast %153 : vector<28x128xf32> to vector<1x28x128xf32>
    tpu.vector_store %arg4[%c0_177, %c0_178, %c0_179], %156 {strides = array<i32>} : memref<1x28x128xf32, #tpu.memory_space<vmem>>, vector<1x28x128xf32>,
    return
  }
  func.func @transform_0(%arg0: i32) -> (i32, i32, i32) {
    %c0_i32 = arith.constant 0 : i32
    %c0_i32_0 = arith.constant 0 : i32
    %c0_i32_1 = arith.constant 0 : i32
    return %arg0, %c0_i32, %c0_i32_0 : i32, i32, i32
  }
  func.func @transform_1(%arg0: i32) -> (i32, i32, i32, i32) {
    %c0_i32 = arith.constant 0 : i32
    %c0_i32_0 = arith.constant 0 : i32
    %c0_i32_1 = arith.constant 0 : i32
    %c0_i32_2 = arith.constant 0 : i32
    %c0_i32_3 = arith.constant 0 : i32
    return %c0_i32, %c0_i32_0, %c0_i32_1, %c0_i32_2 : i32, i32, i32, i32
  }
  func.func @transform_2(%arg0: i32) -> (i32, i32) {
    %c0_i32 = arith.constant 0 : i32
    %c0_i32_0 = arith.constant 0 : i32
    %c0_i32_1 = arith.constant 0 : i32
    return %c0_i32, %c0_i32_0 : i32, i32
  }
  func.func @transform_3(%arg0: i32) -> (i32, i32, i32) {
    %c0_i32 = arith.constant 0 : i32
    %c0_i32_0 = arith.constant 0 : i32
    %c0_i32_1 = arith.constant 0 : i32
    return %arg0, %c0_i32, %c0_i32_0 : i32, i32, i32
  }
}

module attributes {stable_mosaic.version = 11 : i64} {
  func.func @_lstm_gate_kernel(%arg0: i32, %arg1: memref<32x128xf32, #tpu.memory_space<vmem>>, %arg2: memref<32x128xf32, #tpu.memory_space<vmem>>, %arg3: memref<32x32xf32, #tpu.memory_space<vmem>>, %arg4: memref<32x32xf32, #tpu.memory_space<vmem>>, %arg5: memref<32x32xf32, #tpu.memory_space<vmem>>) attributes {dimension_semantics = [#tpu.dimension_semantics<parallel>], iteration_bounds = array<i64: 1>, scalar_prefetch = 0 : i64, scratch_operands = 0 : i64, tpu.core_type = #tpu.core_type<tc>, window_params = [{transform_indices = @transform_0, window_bounds = array<i64: 32, 128>}, {transform_indices = @transform_1, window_bounds = array<i64: 32, 128>}, {transform_indices = @transform_2, window_bounds = array<i64: 32, 32>}, {transform_indices = @transform_3, window_bounds = array<i64: 32, 32>}, {transform_indices = @transform_4, window_bounds = array<i64: 32, 32>}]} {
    %c0 = arith.constant 0 : index
    %c0_0 = arith.constant 0 : index
    %0 = vector.load %arg1[%c0, %c0_0] : memref<32x128xf32, #tpu.memory_space<vmem>>, vector<32x128xf32>
    %c0_1 = arith.constant 0 : index
    %c0_2 = arith.constant 0 : index
    %1 = vector.load %arg2[%c0_1, %c0_2] : memref<32x128xf32, #tpu.memory_space<vmem>>, vector<32x128xf32>
    %2 = arith.addf %0, %1 : vector<32x128xf32>
    %3 = vector.extract_strided_slice %2 {offsets = [0, 0], sizes = [32, 32], strides = [1, 1]} : vector<32x128xf32> to vector<32x32xf32>
    %4 = arith.negf %3 : vector<32x32xf32>
    %5 = math.exp %4 : vector<32x32xf32>
    %cst = arith.constant 1.000000e+00 : f32
    %6 = vector.broadcast %cst : f32 to vector<32x32xf32>
    %7 = arith.addf %6, %5 : vector<32x32xf32>
    %8 = arith.divf %6, %7 : vector<32x32xf32>
    %9 = vector.extract_strided_slice %2 {offsets = [0, 32], sizes = [32, 32], strides = [1, 1]} : vector<32x128xf32> to vector<32x32xf32>
    %10 = arith.negf %9 : vector<32x32xf32>
    %11 = math.exp %10 : vector<32x32xf32>
    %cst_3 = arith.constant 1.000000e+00 : f32
    %12 = vector.broadcast %cst_3 : f32 to vector<32x32xf32>
    %13 = arith.addf %12, %11 : vector<32x32xf32>
    %14 = arith.divf %12, %13 : vector<32x32xf32>
    %15 = vector.extract_strided_slice %2 {offsets = [0, 64], sizes = [32, 32], strides = [1, 1]} : vector<32x128xf32> to vector<32x32xf32>
    %16 = arith.negf %15 : vector<32x32xf32>
    %17 = math.exp %16 : vector<32x32xf32>
    %cst_4 = arith.constant 1.000000e+00 : f32
    %18 = vector.broadcast %cst_4 : f32 to vector<32x32xf32>
    %19 = arith.addf %18, %17 : vector<32x32xf32>
    %20 = arith.divf %18, %19 : vector<32x32xf32>
    %21 = vector.extract_strided_slice %2 {offsets = [0, 96], sizes = [32, 32], strides = [1, 1]} : vector<32x128xf32> to vector<32x32xf32>
    %22 = math.tanh %21 : vector<32x32xf32>
    %c0_5 = arith.constant 0 : index
    %c0_6 = arith.constant 0 : index
    %23 = vector.load %arg3[%c0_5, %c0_6] : memref<32x32xf32, #tpu.memory_space<vmem>>, vector<32x32xf32>
    %24 = arith.mulf %14, %23 : vector<32x32xf32>
    %25 = arith.mulf %8, %22 : vector<32x32xf32>
    %26 = arith.addf %24, %25 : vector<32x32xf32>
    %c0_7 = arith.constant 0 : index
    %c0_8 = arith.constant 0 : index
    %27 = vector.load %arg4[%c0_7, %c0_8] : memref<32x32xf32, #tpu.memory_space<vmem>>, vector<32x32xf32>
    tpu.vector_store %arg4[%c0_7, %c0_8], %26 {strides = array<i32>} : memref<32x32xf32, #tpu.memory_space<vmem>>, vector<32x32xf32>,
    %28 = math.tanh %26 : vector<32x32xf32>
    %29 = arith.mulf %20, %28 : vector<32x32xf32>
    %c0_9 = arith.constant 0 : index
    %c0_10 = arith.constant 0 : index
    %30 = vector.load %arg5[%c0_9, %c0_10] : memref<32x32xf32, #tpu.memory_space<vmem>>, vector<32x32xf32>
    tpu.vector_store %arg5[%c0_9, %c0_10], %29 {strides = array<i32>} : memref<32x32xf32, #tpu.memory_space<vmem>>, vector<32x32xf32>,
    return
  }
  func.func @transform_0(%arg0: i32) -> (i32, i32) {
    %c0_i32 = arith.constant 0 : i32
    %c0_i32_0 = arith.constant 0 : i32
    return %arg0, %c0_i32 : i32, i32
  }
  func.func @transform_1(%arg0: i32) -> (i32, i32) {
    %c0_i32 = arith.constant 0 : i32
    %c0_i32_0 = arith.constant 0 : i32
    return %arg0, %c0_i32 : i32, i32
  }
  func.func @transform_2(%arg0: i32) -> (i32, i32) {
    %c0_i32 = arith.constant 0 : i32
    %c0_i32_0 = arith.constant 0 : i32
    return %arg0, %c0_i32 : i32, i32
  }
  func.func @transform_3(%arg0: i32) -> (i32, i32) {
    %c0_i32 = arith.constant 0 : i32
    %c0_i32_0 = arith.constant 0 : i32
    return %arg0, %c0_i32 : i32, i32
  }
  func.func @transform_4(%arg0: i32) -> (i32, i32) {
    %c0_i32 = arith.constant 0 : i32
    %c0_i32_0 = arith.constant 0 : i32
    return %arg0, %c0_i32 : i32, i32
  }
}

module attributes {stable_mosaic.version = 11 : i64} {
  func.func @_matmul_kernel(%arg0: i32, %arg1: i32, %arg2: i32, %arg3: memref<32x128xbf16, #tpu.memory_space<vmem>>, %arg4: memref<128x512xbf16, #tpu.memory_space<vmem>>, %arg5: memref<1x512xf32, #tpu.memory_space<vmem>>, %arg6: memref<32x512xf32, #tpu.memory_space<vmem>>, %arg7: memref<32x512xf32, #tpu.memory_space<vmem>>) attributes {dimension_semantics = [#tpu.dimension_semantics<parallel>, #tpu.dimension_semantics<parallel>, #tpu.dimension_semantics<arbitrary>], iteration_bounds = array<i64: 1, 1, 1>, scalar_prefetch = 0 : i64, scratch_operands = 1 : i64, tpu.core_type = #tpu.core_type<tc>, window_params = [{transform_indices = @transform_0, window_bounds = array<i64: 32, 128>}, {transform_indices = @transform_1, window_bounds = array<i64: 128, 512>}, {transform_indices = @transform_2, window_bounds = array<i64: 1, 512>}, {transform_indices = @transform_3, window_bounds = array<i64: 32, 512>}]} {
    %c0_i32 = arith.constant 0 : i32
    %0 = arith.cmpi eq, %arg2, %c0_i32 : i32
    %1 = arith.extui %0 : i1 to i32
    %c0_i32_0 = arith.constant 0 : i32
    %2 = arith.cmpi ne, %1, %c0_i32_0 : i32
    scf.if %2 {
      %cst_10 = arith.constant 0.000000e+00 : f32
      %12 = vector.broadcast %cst_10 : f32 to vector<32x512xf32>
      %c0_11 = arith.constant 0 : index
      %c0_12 = arith.constant 0 : index
      %13 = vector.load %arg7[%c0_11, %c0_12] : memref<32x512xf32, #tpu.memory_space<vmem>>, vector<32x512xf32>
      tpu.vector_store %arg7[%c0_11, %c0_12], %12 {strides = array<i32>} : memref<32x512xf32, #tpu.memory_space<vmem>>, vector<32x512xf32>,
    } else {
    }
    %c0 = arith.constant 0 : index
    %c0_1 = arith.constant 0 : index
    %3 = vector.load %arg7[%c0, %c0_1] : memref<32x512xf32, #tpu.memory_space<vmem>>, vector<32x512xf32>
    %c0_2 = arith.constant 0 : index
    %c0_3 = arith.constant 0 : index
    %4 = vector.load %arg3[%c0_2, %c0_3] : memref<32x128xbf16, #tpu.memory_space<vmem>>, vector<32x128xbf16>
    %c0_4 = arith.constant 0 : index
    %c0_5 = arith.constant 0 : index
    %5 = vector.load %arg4[%c0_4, %c0_5] : memref<128x512xbf16, #tpu.memory_space<vmem>>, vector<128x512xbf16>
    %cst = arith.constant dense<0.000000e+00> : vector<32x512xf32>
    %6 = tpu.matmul %4, %5, %cst {dimension_numbers = #tpu.dot_dimension_numbers<[1], [0], [0], [1], [0, 0, 1, 1], [], []>} : vector<32x128xbf16>, vector<128x512xbf16>, vector<32x512xf32> -> vector<32x512xf32>
    %7 = arith.addf %3, %6 : vector<32x512xf32>
    %c0_6 = arith.constant 0 : index
    %c0_7 = arith.constant 0 : index
    %8 = vector.load %arg7[%c0_6, %c0_7] : memref<32x512xf32, #tpu.memory_space<vmem>>, vector<32x512xf32>
    tpu.vector_store %arg7[%c0_6, %c0_7], %7 {strides = array<i32>} : memref<32x512xf32, #tpu.memory_space<vmem>>, vector<32x512xf32>,
    %c0_i32_8 = arith.constant 0 : i32
    %9 = arith.cmpi eq, %arg2, %c0_i32_8 : i32
    %10 = arith.extui %9 : i1 to i32
    %c0_i32_9 = arith.constant 0 : i32
    %11 = arith.cmpi ne, %10, %c0_i32_9 : i32
    scf.if %11 {
      %c0_10 = arith.constant 0 : index
      %c0_11 = arith.constant 0 : index
      %12 = vector.load %arg7[%c0_10, %c0_11] : memref<32x512xf32, #tpu.memory_space<vmem>>, vector<32x512xf32>
      %c0_12 = arith.constant 0 : index
      %c0_13 = arith.constant 0 : index
      %13 = vector.load %arg5[%c0_12, %c0_13] : memref<1x512xf32, #tpu.memory_space<vmem>>, vector<1x512xf32>
      %14 = vector.broadcast %13 : vector<1x512xf32> to vector<32x512xf32>
      %15 = arith.addf %12, %14 : vector<32x512xf32>
      %c0_14 = arith.constant 0 : index
      %c0_15 = arith.constant 0 : index
      %16 = vector.load %arg6[%c0_14, %c0_15] : memref<32x512xf32, #tpu.memory_space<vmem>>, vector<32x512xf32>
      tpu.vector_store %arg6[%c0_14, %c0_15], %15 {strides = array<i32>} : memref<32x512xf32, #tpu.memory_space<vmem>>, vector<32x512xf32>,
    } else {
    }
    return
  }
  func.func @transform_0(%arg0: i32, %arg1: i32, %arg2: i32) -> (i32, i32) {
    %c0_i32 = arith.constant 0 : i32
    return %arg0, %arg2 : i32, i32
  }
  func.func @transform_1(%arg0: i32, %arg1: i32, %arg2: i32) -> (i32, i32) {
    %c0_i32 = arith.constant 0 : i32
    return %arg2, %arg1 : i32, i32
  }
  func.func @transform_2(%arg0: i32, %arg1: i32, %arg2: i32) -> (i32, i32) {
    %c0_i32 = arith.constant 0 : i32
    %c0_i32_0 = arith.constant 0 : i32
    return %c0_i32, %arg1 : i32, i32
  }
  func.func @transform_3(%arg0: i32, %arg1: i32, %arg2: i32) -> (i32, i32) {
    %c0_i32 = arith.constant 0 : i32
    return %arg0, %arg1 : i32, i32
  }
}

module attributes {stable_mosaic.version = 11 : i64} {
  func.func @_matmul_kernel(%arg0: i32, %arg1: i32, %arg2: i32, %arg3: memref<512x128xbf16, #tpu.memory_space<vmem>>, %arg4: memref<128x128xbf16, #tpu.memory_space<vmem>>, %arg5: memref<1x128xf32, #tpu.memory_space<vmem>>, %arg6: memref<512x128xf32, #tpu.memory_space<vmem>>, %arg7: memref<512x128xf32, #tpu.memory_space<vmem>>) attributes {dimension_semantics = [#tpu.dimension_semantics<parallel>, #tpu.dimension_semantics<parallel>, #tpu.dimension_semantics<arbitrary>], iteration_bounds = array<i64: 1, 1, 1>, scalar_prefetch = 0 : i64, scratch_operands = 1 : i64, tpu.core_type = #tpu.core_type<tc>, window_params = [{transform_indices = @transform_0, window_bounds = array<i64: 512, 128>}, {transform_indices = @transform_1, window_bounds = array<i64: 128, 128>}, {transform_indices = @transform_2, window_bounds = array<i64: 1, 128>}, {transform_indices = @transform_3, window_bounds = array<i64: 512, 128>}]} {
    %c0_i32 = arith.constant 0 : i32
    %0 = arith.cmpi eq, %arg2, %c0_i32 : i32
    %1 = arith.extui %0 : i1 to i32
    %c0_i32_0 = arith.constant 0 : i32
    %2 = arith.cmpi ne, %1, %c0_i32_0 : i32
    scf.if %2 {
      %cst_10 = arith.constant 0.000000e+00 : f32
      %12 = vector.broadcast %cst_10 : f32 to vector<512x128xf32>
      %c0_11 = arith.constant 0 : index
      %c0_12 = arith.constant 0 : index
      %13 = vector.load %arg7[%c0_11, %c0_12] : memref<512x128xf32, #tpu.memory_space<vmem>>, vector<512x128xf32>
      tpu.vector_store %arg7[%c0_11, %c0_12], %12 {strides = array<i32>} : memref<512x128xf32, #tpu.memory_space<vmem>>, vector<512x128xf32>,
    } else {
    }
    %c0 = arith.constant 0 : index
    %c0_1 = arith.constant 0 : index
    %3 = vector.load %arg7[%c0, %c0_1] : memref<512x128xf32, #tpu.memory_space<vmem>>, vector<512x128xf32>
    %c0_2 = arith.constant 0 : index
    %c0_3 = arith.constant 0 : index
    %4 = vector.load %arg3[%c0_2, %c0_3] : memref<512x128xbf16, #tpu.memory_space<vmem>>, vector<512x128xbf16>
    %c0_4 = arith.constant 0 : index
    %c0_5 = arith.constant 0 : index
    %5 = vector.load %arg4[%c0_4, %c0_5] : memref<128x128xbf16, #tpu.memory_space<vmem>>, vector<128x128xbf16>
    %cst = arith.constant dense<0.000000e+00> : vector<512x128xf32>
    %6 = tpu.matmul %4, %5, %cst {dimension_numbers = #tpu.dot_dimension_numbers<[1], [0], [0], [1], [0, 0, 1, 1], [], []>} : vector<512x128xbf16>, vector<128x128xbf16>, vector<512x128xf32> -> vector<512x128xf32>
    %7 = arith.addf %3, %6 : vector<512x128xf32>
    %c0_6 = arith.constant 0 : index
    %c0_7 = arith.constant 0 : index
    %8 = vector.load %arg7[%c0_6, %c0_7] : memref<512x128xf32, #tpu.memory_space<vmem>>, vector<512x128xf32>
    tpu.vector_store %arg7[%c0_6, %c0_7], %7 {strides = array<i32>} : memref<512x128xf32, #tpu.memory_space<vmem>>, vector<512x128xf32>,
    %c0_i32_8 = arith.constant 0 : i32
    %9 = arith.cmpi eq, %arg2, %c0_i32_8 : i32
    %10 = arith.extui %9 : i1 to i32
    %c0_i32_9 = arith.constant 0 : i32
    %11 = arith.cmpi ne, %10, %c0_i32_9 : i32
    scf.if %11 {
      %c0_10 = arith.constant 0 : index
      %c0_11 = arith.constant 0 : index
      %12 = vector.load %arg7[%c0_10, %c0_11] : memref<512x128xf32, #tpu.memory_space<vmem>>, vector<512x128xf32>
      %c0_12 = arith.constant 0 : index
      %c0_13 = arith.constant 0 : index
      %13 = vector.load %arg5[%c0_12, %c0_13] : memref<1x128xf32, #tpu.memory_space<vmem>>, vector<1x128xf32>
      %14 = vector.broadcast %13 : vector<1x128xf32> to vector<512x128xf32>
      %15 = arith.addf %12, %14 : vector<512x128xf32>
      %c0_14 = arith.constant 0 : index
      %c0_15 = arith.constant 0 : index
      %16 = vector.load %arg6[%c0_14, %c0_15] : memref<512x128xf32, #tpu.memory_space<vmem>>, vector<512x128xf32>
      tpu.vector_store %arg6[%c0_14, %c0_15], %15 {strides = array<i32>} : memref<512x128xf32, #tpu.memory_space<vmem>>, vector<512x128xf32>,
    } else {
    }
    return
  }
  func.func @transform_0(%arg0: i32, %arg1: i32, %arg2: i32) -> (i32, i32) {
    %c0_i32 = arith.constant 0 : i32
    return %arg0, %arg2 : i32, i32
  }
  func.func @transform_1(%arg0: i32, %arg1: i32, %arg2: i32) -> (i32, i32) {
    %c0_i32 = arith.constant 0 : i32
    return %arg2, %arg1 : i32, i32
  }
  func.func @transform_2(%arg0: i32, %arg1: i32, %arg2: i32) -> (i32, i32) {
    %c0_i32 = arith.constant 0 : i32
    %c0_i32_0 = arith.constant 0 : i32
    return %c0_i32, %arg1 : i32, i32
  }
  func.func @transform_3(%arg0: i32, %arg1: i32, %arg2: i32) -> (i32, i32) {
    %c0_i32 = arith.constant 0 : i32
    return %arg0, %arg1 : i32, i32
  }
}

</mosaic_0001>

<bundles_post_ra>
// kernel: fwd.28
= control target key start
LH: loop header
LB: loop body
LE: loop exit
PB: predicated region body
PF: predicated region fallthrough
CT: control target
= control target key end

     0   :  { %s306_s1 = inlined_call_operand.vmem [shape: bf16[128,128], index: 1, kind: input, shape index: {}]   ;;  %s307_s0 = inlined_call_operand.vmem [shape: bf16[32,128], index: 0, kind: input, shape index: {}]   ;;  %s308_s2 = inlined_call_operand.vmem [shape: f32[1,128], index: 2, kind: input, shape index: {}]   ;;  %s309_s3 = inlined_call_operand.vmem [shape: f32[32,128], index: 3, kind: output, shape index: {}]  }
   0x1   :  { %v231_v0 = vld [vmem:[%s306_s1] sm:$0xff]   ;;  %v232_v1 = vld [vmem:[%s306_s1 + $0x8] sm:$0xff]   ;;  %v233_v2 = vld [vmem:[%s306_s1 + $0x10] sm:$0xff]  }
   0x2   :  { %211 = vmatprep.subr.bf16.mxu0 %v231_v0  ;;  %v234_v3 = vld [vmem:[%s306_s1 + $0x18] sm:$0xff]   ;;  %v239_v4 = vld [vmem:[%s307_s0] sm:$0xff]   ;;  %v236_v6 = vld [vmem:[%s306_s1 + $0x28] sm:$0xff]  }
   0x3   :  { %212 = vmatpush3.bf16.msra.mxu0 %v231_v0  ;;  %227 = vmatprep.mubr.bf16.mxu0 %v239_v4  ;;  %v235_v5 = vld [vmem:[%s306_s1 + $0x20] sm:$0xff]   ;;  %v237_v7 = vld [vmem:[%s306_s1 + $0x30] sm:$0xff]   ;;  %v238_v8 = vld [vmem:[%s306_s1 + $0x38] sm:$0xff]  }
   0x4   :  { %213 = vmatprep.subr.bf16.mxu0 %v232_v1  ;;  %v240_v9 = vld [vmem:[%s307_s0 + $0x8] sm:$0xff]   ;;  %v200_v10 = vld [vmem:[%s308_s2] ss:$0 sm:$0xff] }
   0x7   :  { %214 = vmatpush3.bf16.msra.mxu0 %v232_v1 }
   0x8   :  { %215 = vmatprep.subr.bf16.mxu0 %v233_v2 }
   0xb   :  { %216 = vmatpush3.bf16.msra.mxu0 %v233_v2 }
   0xc   :  { %217 = vmatprep.subr.bf16.mxu0 %v234_v3 }
   0xf   :  { %218 = vmatpush3.bf16.msra.mxu0 %v234_v3 }
  0x10   :  { %219 = vmatprep.subr.bf16.mxu0 %v235_v5 }
  0x13   :  { %220 = vmatpush3.bf16.msra.mxu0 %v235_v5 }
  0x14   :  { %221 = vmatprep.subr.bf16.mxu0 %v236_v6 }
  0x17   :  { %222 = vmatpush3.bf16.msra.mxu0 %v236_v6 }
  0x18   :  { %223 = vmatprep.subr.bf16.mxu0 %v237_v7 }
  0x1b   :  { %224 = vmatpush3.bf16.msra.mxu0 %v237_v7 }
  0x1c   :  { %225 = vmatprep.subr.bf16.mxu0 %v238_v8 }
  0x1f   :  { %226 = vmatpush3.bf16.msra.mxu0 %v238_v8 }
  0x22   :  { %228 = vmatmul.mubr.bf16.vlgmr.msra.gmra.mrb[0].mxu0 %v240_v9 }
  0xf5   :  { %v229_v11 = vpop.f32.mrb[0].mxu0 }
  0xf6   :  { %v180_v12 = vadd.f32 %v229_v11, %v200_v10  ;;  %v141_v13 = vpop.f32.mrb[1].mxu0 }
  0xf7   :  { %v178_v14 = vadd.f32 %v200_v10, %v141_v13  ;;  %v230_v15 = vpop.f32.mrb[2].mxu0 }
  0xf8   :  { %184 = vst [vmem:[%s309_s3 + $0x10] sm:$0xff] %v180_v12  ;;  %v181_v16 = vadd.f32 %v230_v15, %v200_v10  ;;  %v144_v17 = vpop.f32.mrb[3].mxu0 }
  0xf9   :  { %182 = vst [vmem:[%s309_s3] sm:$0xff] %v178_v14  ;;  %v179_v18 = vadd.f32 %v200_v10, %v144_v17 }
  0xfa   :  { %185 = vst [vmem:[%s309_s3 + $0x18] sm:$0xff] %v181_v16 }
  0xfb   :  { %183 = vst [vmem:[%s309_s3 + $0x8] sm:$0xff] %v179_v18 }

// kernel: fwd.29
= control target key start
LH: loop header
LB: loop body
LE: loop exit
PB: predicated region body
PF: predicated region fallthrough
CT: control target
= control target key end

     0   :  { %s602_s1 = inlined_call_operand.vmem [shape: bf16[128,128], index: 1, kind: input, shape index: {}]   ;;  %s603_s0 = inlined_call_operand.vmem [shape: bf16[128,128], index: 0, kind: input, shape index: {}]   ;;  %s604_s2 = inlined_call_operand.vmem [shape: f32[1,128], index: 2, kind: input, shape index: {}]   ;;  %s605_s3 = inlined_call_operand.vmem [shape: f32[128,128], index: 3, kind: output, shape index: {}]  }
   0x1   :  { %v467_v0 = vld [vmem:[%s602_s1] sm:$0xff]   ;;  %v468_v1 = vld [vmem:[%s602_s1 + $0x8] sm:$0xff]   ;;  %v469_v2 = vld [vmem:[%s602_s1 + $0x10] sm:$0xff]  }
   0x2   :  { %419 = vmatprep.subr.bf16.mxu0 %v467_v0  ;;  %451 = vmatprep.subr.bf16.mxu1 %v467_v0  ;;  %v470_v3 = vld [vmem:[%s602_s1 + $0x18] sm:$0xff]   ;;  %v475_v4 = vld [vmem:[%s603_s0] sm:$0xff]   ;;  %v472_v7 = vld [vmem:[%s602_s1 + $0x28] sm:$0xff]  }
   0x3   :  { %420 = vmatpush3.bf16.msra.mxu0 %v467_v0  ;;  %459 = vmatpush3.bf16.msra.mxu1 %v467_v0  ;;  %v476_v5 = vld [vmem:[%s603_s0 + $0x20] sm:$0xff]   ;;  %v473_v8 = vld [vmem:[%s602_s1 + $0x30] sm:$0xff]   ;;  %v474_v9 = vld [vmem:[%s602_s1 + $0x38] sm:$0xff]  }
   0x4   :  { %421 = vmatprep.subr.bf16.mxu0 %v468_v1  ;;  %452 = vmatprep.subr.bf16.mxu1 %v468_v1  ;;  %v471_v6 = vld [vmem:[%s602_s1 + $0x20] sm:$0xff]   ;;  %v477_v10 = vld [vmem:[%s603_s0 + $0x8] sm:$0xff]   ;;  %v479_v12 = vld [vmem:[%s603_s0 + $0x10] sm:$0xff]  }
   0x5   :  { %435 = vmatprep.mubr.bf16.mxu0 %v475_v4  ;;  %443 = vmatprep.mubr.bf16.mxu1 %v476_v5  ;;  %v478_v11 = vld [vmem:[%s603_s0 + $0x28] sm:$0xff]   ;;  %v480_v13 = vld [vmem:[%s603_s0 + $0x30] sm:$0xff]   ;;  %v481_v14 = vld [vmem:[%s603_s0 + $0x18] sm:$0xff]  }
   0x6   :  { %v482_v15 = vld [vmem:[%s603_s0 + $0x38] sm:$0xff]   ;;  %v402_v16 = vld [vmem:[%s604_s2] ss:$0 sm:$0xff] }
   0x7   :  { %422 = vmatpush3.bf16.msra.mxu0 %v468_v1  ;;  %460 = vmatpush3.bf16.msra.mxu1 %v468_v1 }
   0x8   :  { %423 = vmatprep.subr.bf16.mxu0 %v469_v2  ;;  %453 = vmatprep.subr.bf16.mxu1 %v469_v2 }
   0xb   :  { %424 = vmatpush3.bf16.msra.mxu0 %v469_v2  ;;  %461 = vmatpush3.bf16.msra.mxu1 %v469_v2 }
   0xc   :  { %425 = vmatprep.subr.bf16.mxu0 %v470_v3  ;;  %454 = vmatprep.subr.bf16.mxu1 %v470_v3 }
   0xf   :  { %426 = vmatpush3.bf16.msra.mxu0 %v470_v3  ;;  %462 = vmatpush3.bf16.msra.mxu1 %v470_v3 }
  0x10   :  { %427 = vmatprep.subr.bf16.mxu0 %v471_v6  ;;  %455 = vmatprep.subr.bf16.mxu1 %v471_v6 }
  0x13   :  { %428 = vmatpush3.bf16.msra.mxu0 %v471_v6  ;;  %463 = vmatpush3.bf16.msra.mxu1 %v471_v6 }
  0x14   :  { %429 = vmatprep.subr.bf16.mxu0 %v472_v7  ;;  %456 = vmatprep.subr.bf16.mxu1 %v472_v7 }
  0x17   :  { %430 = vmatpush3.bf16.msra.mxu0 %v472_v7  ;;  %464 = vmatpush3.bf16.msra.mxu1 %v472_v7 }
  0x18   :  { %431 = vmatprep.subr.bf16.mxu0 %v473_v8  ;;  %457 = vmatprep.subr.bf16.mxu1 %v473_v8 }
  0x1b   :  { %432 = vmatpush3.bf16.msra.mxu0 %v473_v8  ;;  %465 = vmatpush3.bf16.msra.mxu1 %v473_v8 }
  0x1c   :  { %433 = vmatprep.subr.bf16.mxu0 %v474_v9  ;;  %458 = vmatprep.subr.bf16.mxu1 %v474_v9 }
  0x1f   :  { %434 = vmatpush3.bf16.msra.mxu0 %v474_v9  ;;  %466 = vmatpush3.bf16.msra.mxu1 %v474_v9 }
  0x22   :  { %436 = vmatmul.mubr.bf16.vlgmr.msra.gmra.mrb[0].mxu0 %v477_v10  ;;  %444 = vmatmul.mubr.bf16.vlgmr.msra.gmra.mrb[0].mxu1 %v478_v11 }
  0x23   :  { %439 = vmatprep.mubr.bf16.mxu0 %v479_v12  ;;  %447 = vmatprep.mubr.bf16.mxu1 %v480_v13 }
  0x2a   :  { %440 = vmatmul.mubr.bf16.gmra.mrb[4].mxu0 %v481_v14  ;;  %448 = vmatmul.mubr.bf16.gmra.mrb[4].mxu1 %v482_v15 }
  0xf5   :  { %v437_v17 = vpop.f32.mrb[0].mxu0  ;;  %v445_v18 = vpop.f32.mrb[0].mxu1 }
  0xf6   :  { %v336_v19 = vadd.f32 %v437_v17, %v402_v16  ;;  %v344_v20 = vadd.f32 %v445_v18, %v402_v16  ;;  %v213_v21 = vpop.f32.mrb[1].mxu0  ;;  %v245_v22 = vpop.f32.mrb[1].mxu1 }
  0xf7   :  { %v334_v23 = vadd.f32 %v402_v16, %v213_v21  ;;  %v342_v24 = vadd.f32 %v402_v16, %v245_v22  ;;  %v438_v25 = vpop.f32.mrb[2].mxu0  ;;  %v446_v26 = vpop.f32.mrb[2].mxu1 }
  0xf8   :  { %v352_v27 = vmax.f32 %v336_v19, 0.0  ;;  %v360_v28 = vmax.f32 %v344_v20, 0.0  ;;  %v337_v29 = vadd.f32 %v438_v25, %v402_v16  ;;  %v345_v30 = vadd.f32 %v446_v26, %v402_v16  ;;  %v216_v31 = vpop.f32.mrb[3].mxu0  ;;  %v248_v32 = vpop.f32.mrb[3].mxu1 }
  0xf9   :  { %v350_v33 = vmax.f32 %v334_v23, 0.0  ;;  %v358_v34 = vmax.f32 %v342_v24, 0.0  ;;  %v335_v35 = vadd.f32 %v402_v16, %v216_v31  ;;  %v343_v36 = vadd.f32 %v402_v16, %v248_v32 }
  0xfa   :  { %368 = vst [vmem:[%s605_s3 + $0x10] sm:$0xff] %v352_v27  ;;  %376 = vst [vmem:[%s605_s3 + $0x50] sm:$0xff] %v360_v28  ;;  %v353_v37 = vmax.f32 %v337_v29, 0.0  ;;  %v361_v38 = vmax.f32 %v345_v30, 0.0 }
  0xfb   :  { %366 = vst [vmem:[%s605_s3] sm:$0xff] %v350_v33  ;;  %374 = vst [vmem:[%s605_s3 + $0x40] sm:$0xff] %v358_v34  ;;  %v351_v39 = vmax.f32 %v335_v35, 0.0  ;;  %v359_v40 = vmax.f32 %v343_v36, 0.0 }
  0xfc   :  { %369 = vst [vmem:[%s605_s3 + $0x18] sm:$0xff] %v353_v37  ;;  %377 = vst [vmem:[%s605_s3 + $0x58] sm:$0xff] %v361_v38 }
  0xfd   :  { %367 = vst [vmem:[%s605_s3 + $0x8] sm:$0xff] %v351_v39  ;;  %375 = vst [vmem:[%s605_s3 + $0x48] sm:$0xff] %v359_v40  ;;  %v441_v41 = vpop.f32.mrb[4].mxu0  ;;  %v449_v42 = vpop.f32.mrb[4].mxu1 }
  0xfe   :  { %v340_v43 = vadd.f32 %v441_v41, %v402_v16  ;;  %v348_v44 = vadd.f32 %v449_v42, %v402_v16  ;;  %v229_v45 = vpop.f32.mrb[5].mxu0  ;;  %v261_v46 = vpop.f32.mrb[5].mxu1 }
  0xff   :  { %v338_v47 = vadd.f32 %v402_v16, %v229_v45  ;;  %v346_v48 = vadd.f32 %v402_v16, %v261_v46  ;;  %v442_v49 = vpop.f32.mrb[6].mxu0  ;;  %v450_v50 = vpop.f32.mrb[6].mxu1 }
 0x100   :  { %v356_v51 = vmax.f32 %v340_v43, 0.0  ;;  %v364_v52 = vmax.f32 %v348_v44, 0.0  ;;  %v341_v53 = vadd.f32 %v442_v49, %v402_v16  ;;  %v349_v54 = vadd.f32 %v450_v50, %v402_v16  ;;  %v232_v55 = vpop.f32.mrb[7].mxu0  ;;  %v264_v56 = vpop.f32.mrb[7].mxu1 }
 0x101   :  { %v354_v57 = vmax.f32 %v338_v47, 0.0  ;;  %v362_v58 = vmax.f32 %v346_v48, 0.0  ;;  %v339_v59 = vadd.f32 %v402_v16, %v232_v55  ;;  %v347_v60 = vadd.f32 %v402_v16, %v264_v56 }
 0x102   :  { %372 = vst [vmem:[%s605_s3 + $0x30] sm:$0xff] %v356_v51  ;;  %380 = vst [vmem:[%s605_s3 + $0x70] sm:$0xff] %v364_v52  ;;  %v357_v61 = vmax.f32 %v341_v53, 0.0  ;;  %v365_v62 = vmax.f32 %v349_v54, 0.0 }
 0x103   :  { %370 = vst [vmem:[%s605_s3 + $0x20] sm:$0xff] %v354_v57  ;;  %378 = vst [vmem:[%s605_s3 + $0x60] sm:$0xff] %v362_v58  ;;  %v355_v63 = vmax.f32 %v339_v59, 0.0  ;;  %v363_v0 = vmax.f32 %v347_v60, 0.0 }
 0x104   :  { %373 = vst [vmem:[%s605_s3 + $0x38] sm:$0xff] %v357_v61  ;;  %381 = vst [vmem:[%s605_s3 + $0x78] sm:$0xff] %v365_v62 }
 0x105   :  { %371 = vst [vmem:[%s605_s3 + $0x28] sm:$0xff] %v355_v63  ;;  %379 = vst [vmem:[%s605_s3 + $0x68] sm:$0xff] %v363_v0 }

// kernel: fwd.32
= control target key start
LH: loop header
LB: loop body
LE: loop exit
PB: predicated region body
PF: predicated region fallthrough
CT: control target
= control target key end

     0   :  { %s310_s1 = inlined_call_operand.vmem [shape: bf16[128,128], index: 1, kind: input, shape index: {}]   ;;  %s311_s0 = inlined_call_operand.vmem [shape: bf16[32,128], index: 0, kind: input, shape index: {}]   ;;  %s312_s2 = inlined_call_operand.vmem [shape: f32[1,128], index: 2, kind: input, shape index: {}]   ;;  %s313_s3 = inlined_call_operand.vmem [shape: f32[32,128], index: 3, kind: output, shape index: {}]  }
   0x1   :  { %v235_v0 = vld [vmem:[%s310_s1] sm:$0xff]   ;;  %v236_v1 = vld [vmem:[%s310_s1 + $0x8] sm:$0xff]   ;;  %v237_v2 = vld [vmem:[%s310_s1 + $0x10] sm:$0xff]  }
   0x2   :  { %215 = vmatprep.subr.bf16.mxu0 %v235_v0  ;;  %v238_v3 = vld [vmem:[%s310_s1 + $0x18] sm:$0xff]   ;;  %v243_v4 = vld [vmem:[%s311_s0] sm:$0xff]   ;;  %v240_v6 = vld [vmem:[%s310_s1 + $0x28] sm:$0xff]  }
   0x3   :  { %216 = vmatpush3.bf16.msra.mxu0 %v235_v0  ;;  %231 = vmatprep.mubr.bf16.mxu0 %v243_v4  ;;  %v239_v5 = vld [vmem:[%s310_s1 + $0x20] sm:$0xff]   ;;  %v241_v7 = vld [vmem:[%s310_s1 + $0x30] sm:$0xff]   ;;  %v242_v8 = vld [vmem:[%s310_s1 + $0x38] sm:$0xff]  }
   0x4   :  { %217 = vmatprep.subr.bf16.mxu0 %v236_v1  ;;  %v244_v9 = vld [vmem:[%s311_s0 + $0x8] sm:$0xff]   ;;  %v204_v10 = vld [vmem:[%s312_s2] ss:$0 sm:$0xff] }
   0x7   :  { %218 = vmatpush3.bf16.msra.mxu0 %v236_v1 }
   0x8   :  { %219 = vmatprep.subr.bf16.mxu0 %v237_v2 }
   0xb   :  { %220 = vmatpush3.bf16.msra.mxu0 %v237_v2 }
   0xc   :  { %221 = vmatprep.subr.bf16.mxu0 %v238_v3 }
   0xf   :  { %222 = vmatpush3.bf16.msra.mxu0 %v238_v3 }
  0x10   :  { %223 = vmatprep.subr.bf16.mxu0 %v239_v5 }
  0x13   :  { %224 = vmatpush3.bf16.msra.mxu0 %v239_v5 }
  0x14   :  { %225 = vmatprep.subr.bf16.mxu0 %v240_v6 }
  0x17   :  { %226 = vmatpush3.bf16.msra.mxu0 %v240_v6 }
  0x18   :  { %227 = vmatprep.subr.bf16.mxu0 %v241_v7 }
  0x1b   :  { %228 = vmatpush3.bf16.msra.mxu0 %v241_v7 }
  0x1c   :  { %229 = vmatprep.subr.bf16.mxu0 %v242_v8 }
  0x1f   :  { %230 = vmatpush3.bf16.msra.mxu0 %v242_v8 }
  0x22   :  { %232 = vmatmul.mubr.bf16.vlgmr.msra.gmra.mrb[0].mxu0 %v244_v9 }
  0xf5   :  { %v233_v11 = vpop.f32.mrb[0].mxu0 }
  0xf6   :  { %v180_v12 = vadd.f32 %v233_v11, %v204_v10  ;;  %v141_v13 = vpop.f32.mrb[1].mxu0 }
  0xf7   :  { %v178_v14 = vadd.f32 %v204_v10, %v141_v13  ;;  %v234_v15 = vpop.f32.mrb[2].mxu0 }
  0xf8   :  { %v184_v16 = vmax.f32 %v180_v12, 0.0  ;;  %v181_v17 = vadd.f32 %v234_v15, %v204_v10  ;;  %v144_v18 = vpop.f32.mrb[3].mxu0 }
  0xf9   :  { %v182_v19 = vmax.f32 %v178_v14, 0.0  ;;  %v179_v20 = vadd.f32 %v204_v10, %v144_v18 }
  0xfa   :  { %188 = vst [vmem:[%s313_s3 + $0x10] sm:$0xff] %v184_v16  ;;  %v185_v21 = vmax.f32 %v181_v17, 0.0 }
  0xfb   :  { %186 = vst [vmem:[%s313_s3] sm:$0xff] %v182_v19  ;;  %v183_v22 = vmax.f32 %v179_v20, 0.0 }
  0xfc   :  { %189 = vst [vmem:[%s313_s3 + $0x18] sm:$0xff] %v185_v21 }
  0xfd   :  { %187 = vst [vmem:[%s313_s3 + $0x8] sm:$0xff] %v183_v22 }

// kernel: fwd.30
= control target key start
LH: loop header
LB: loop body
LE: loop exit
PB: predicated region body
PF: predicated region fallthrough
CT: control target
= control target key end

     0   :  { %s2145_s12 = smov 0   ;;  %s2579_s0 = inlined_call_operand.vmem [shape: bf16[2,100,32], index: 0, kind: input, shape index: {}]   ;;  %s2580_s1 = inlined_call_operand.vmem [shape: bf16[3,3,32,16], index: 1, kind: input, shape index: {}]   ;;  %s2581_s2 = inlined_call_operand.vmem [shape: f32[1,16], index: 2, kind: input, shape index: {}]   ;;  %s2582_s3 = inlined_call_operand.vmem [shape: f32[2,78,16], index: 3, kind: output, shape index: {}]  }
   0x1 LB: > { %s1643_s13 = sadd.s32 4294967295, %s2121_s12   ;;  %p1647_p0 = scmp.ge.s32.totalorder %s2121_s12, 1  ;;  %s2121_s12 = sphi %s2145_s12, %s13_s12  }
   0x2   : > { %p137_p1 = scmp.lt.s32.totalorder %s2121_s12, 3 }
   0x4   : > { %p138_p2 = pnand %p1647_p0, %p137_p1 }
   0x5   : > { %v2070_v0 = vld [vmem:[%s2580_s1 + $0x10] sm:$0xff] (!%p138_p2)   ;;  %v2123_v1 = vmov (!%p138_p2), 0.0   ;;  %v2071_v2 = vld [vmem:[%s2580_s1 + $0x18] sm:$0xff] (!%p138_p2)   ;;  %p161_p3 = scmp.lt.s32.totalorder (!%p138_p2), %s1643_s13, 1  ;;  %vm2124_vm0 = vmmov (!%p138_p2), 0   ;;  %vm269_vm2 = vcmask (!%p138_p2), 261120  }
   0x6   : > { %141 = sbr.rel (%p138_p2) target bundleno = 424 (0x1a8), region = 32  ;;  %1838 = vmatprep.subr.bf16.mxu0 (!%p138_p2), %v2123_v1  ;;  %2054 = vmatprep.subr.bf16.mxu1 (!%p138_p2), %v2123_v1  ;;  %vm217_vm1 = vsmask.f32 (!%p138_p2), 7424  ;;  %v2076_v20 = vld [vmem:[%s2580_s1 + $0x20] sm:$0xff] (!%p138_p2)   ;;  %v2079_v32 = vld [vmem:[%s2580_s1 + $0x28] sm:$0xff] (!%p138_p2)   ;;  %v2081_v42 = vld [vmem:[%s2580_s1 + $0x30] sm:$0xff] (!%p138_p2)  }
   0x7   : > { %1839 = vmatpush3.bf16.msra.mxu0 (!%p138_p2), %v2070_v0  ;;  %2056 = vmatpush3.bf16.msra.mxu1 (!%p138_p2), %v2070_v0  ;;  %v2077_v28 = vld [vmem:[%s2580_s1] sm:$0xff] (!%p138_p2)   ;;  %v2080_v34 = vld [vmem:[%s2580_s1 + $0x8] sm:$0xff] (!%p138_p2)   ;;  %vm466_vm3 = vcmask (!%p138_p2), 1046528   ;;  %v2084_v45 = vld [vmem:[%s2580_s1 + $0x38] sm:$0xff] (!%p138_p2)   ;;  %vm789_vm4 = vsmask.f32 (!%p138_p2), 6400 }
   0x8   : > { %1840 = vmatprep.subr.bf16.mxu0 (!%p138_p2), %v2123_v1  ;;  %2055 = vmatprep.subr.bf16.mxu1 (!%p138_p2), %v2123_v1  ;;  %v2083_v47 = vld [vmem:[%s2580_s1 + $0x40] sm:$0xff] (!%p138_p2)   ;;  %v2085_v49 = vld [vmem:[%s2580_s1 + $0x48] sm:$0xff] (!%p138_p2)   ;;  %vm958_vm5 = vcmask (!%p138_p2), 1045504   ;;  %vm1254_vm6 = vsmask.f32 (!%p138_p2), 5376  ;;  %vm1427_vm7 = vcmask (!%p138_p2), 1044480  }
   0x9   : > { %1842 = vmatprep.mubr.msk.bf16.mxu0 (!%p138_p2), %vm2124_vm0, %v2123_v1  ;;  %1854 = vmatprep.mubr.msk.bf16.mxu1 (!%p138_p2), %vm2124_vm0, %v2123_v1  ;;  %vm1576_vm8 = vcmask (!%p138_p2), 130048   ;;  %vm1586_vm9 = vcmask (!%p138_p2), 128000  }
   0xb   : > { %1841 = vmatpush3.bf16.msra.mxu0 (!%p138_p2), %v2071_v2  ;;  %2057 = vmatpush3.bf16.msra.mxu1 (!%p138_p2), %v2071_v2 }
   0xc   : > { %1886 = vmatprep.subr.bf16.mxu0 (!%p138_p2), %v2123_v1  ;;  %1862 = vmatprep.subr.bf16.mxu1 (!%p138_p2), %v2123_v1 }
   0xd   : > { %s2584_s13 = smov (!%p161_p3, %s1643_s13), 1 }
   0xe   : > { %s2058_s18 = smul.u32 52, %s2584_s13 }
  0x10   : > { %s2175_s21 = scalar_lea.vmem %s2579_s0, %s2058_s18 }
  0x11   : > { %v172_v3 = vld [vmem:[%s2175_s21] sm:$0xf]  ;;  %v173_v4 = vld [vmem:[%s2175_s21 + $0x4] sm:$0xf]  ;;  %v2180_v6 = vld [vmem:[%s2175_s21 + $0x8] sm:$0xff]  }
  0x12   : > { %v1654_v5 = vcombine.low %v172_v3, %v173_v4  ;;  %v2183_v7 = vld [vmem:[%s2175_s21 + $0x20] sm:$0xf]  ;;  %v186_v8 = vld [vmem:[%s2175_s21 + $0x24] sm:$0xf]  ;;  %v226_v11 = vshll.u32 %v2180_v6, 16  ;;  %v2188_v12 = vld [vmem:[%s2175_s21 + $0x18] sm:$0xff]  }
  0x13   : > { %v2191_v13 = vcombine.low %v2183_v7, %v186_v8  ;;  %v2194_v14 = vld [vmem:[%s2175_s21 + $0x10] sm:$0xff]   ;;  %v242_v17 = vshll.u32 %v2188_v12, 16  ;;  %v246_v18 = vshrl.u32 %v2188_v12, 16  ;;  %v230_v21 = vshrl.u32 %v2180_v6, 16  ;;  %v457_v39 = vld [vmem:[%s2175_s21] sm:$0xe] }
  0x14   : > { %v219_v9 = vshrl.u32 %v1654_v5, 16  ;;  %v221_v10 = vshll.u32 %v1654_v5, 16  ;;  %v228_v16 = vrot.slane %v226_v11, 1  ;;  %v234_v24 = vshll.u32 %v2194_v14, 16  ;;  %v745_v54 = vld [vmem:[%s2175_s21 + $0x4] sm:$0xe] }
  0x15   : > { %v250_v19 = vshll.u32 %v2191_v13, 16  ;;  %v244_v23 = vrot.slane %v242_v17, 1  ;;  %v254_v33 = vshrl.u32 %v2191_v13, 16  ;;  %v238_v36 = vshrl.u32 %v2194_v14, 16  ;;  %v2286_v55 = vld [vmem:[%s2175_s21 + $0x8] sm:$0xf] }
  0x16   : > { %v223_v15 = vrot.slane %v221_v10, 1  ;;  %v232_v30 = vor.u32 %v230_v21, %v228_v16  ;;  %v236_v31 = vrot.slane %v234_v24, 1  ;;  %v1678_v41 = vcombine.low %v457_v39, %v173_v4  ;;  %v181_v56 = vld [vmem:[%s2175_s21 + $0x24] sm:$0x7]  ;;  %v2294_v59 = vld [vmem:[%s2175_s21 + $0xc] sm:$0xff]   ;;  %v2308_v10 = vld [vmem:[%s2175_s21 + $0x14] sm:$0xff]  }
  0x17   : > { %v252_v25 = vrot.slane %v250_v19, 1  ;;  %v248_v27 = vor.u32 %v246_v18, %v244_v23  ;;  %v468_v44 = vrot.slane %v2180_v6, 1  ;;  %v470_v48 = vrot.slane %v2194_v14, 1  ;;  %v2087_v61 = vld [vmem:[%s2175_s21 + $0x4] sm:$0xfe]   ;;  %v2088_v62 = vld [vmem:[%s2175_s21 + $0xc] sm:$0xff]  }
  0x18   : > { %v224_v22 = vor.u32 %v223_v15, %v219_v9  ;;  %v237_v35 = vsel %vm217_vm1, %v232_v30, %v236_v31  ;;  %v240_v38 = vor.u32 %v238_v36, %v236_v31  ;;  %v467_v43 = vrot.slane %v1678_v41, 1  ;;  %v2098_v19 = vld [vmem:[%s2580_s1 + $0x58] sm:$0xff]   ;;  %v2093_v21 = vld [vmem:[%s2580_s1 + $0x60] sm:$0xff]   ;;  %v2099_v30 = vld [vmem:[%s2580_s1 + $0x68] sm:$0xff]  }
  0x19   : > { %v253_v29 = vsel %vm217_vm1, %v248_v27, %v252_v25  ;;  %v256_v37 = vor.u32 %v254_v33, %v252_v25  ;;  %v471_v50 = vsel %vm466_vm3, %v468_v44, %v470_v48  ;;  %v472_v51 = vrot.slane %v2188_v12, 1  ;;  %v2332_v24 = vld [vmem:[%s2175_s21 + $0x1c] sm:$0xff]  }
  0x1a   : > { %v229_v26 = vsel %vm217_vm1, %v224_v22, %v228_v16  ;;  %1855 = vmatmul.mubr.msk.bf16.vlgmr.msra.gmra.mrb[0].mxu1 %vm269_vm2, %v253_v29  ;;  %v245_v40 = vsel %vm217_vm1, %v240_v38, %v244_v23  ;;  %v469_v46 = vsel %vm466_vm3, %v467_v43, %v468_v44  ;;  %v474_v53 = vrot.slane %v2191_v13, 1  ;;  %v2090_v13 = vld [vmem:[%s2175_s21 + $0x14] sm:$0xff]  }
  0x1b   : > { %1843 = vmatmul.mubr.msk.bf16.vlgmr.msra.gmra.mrb[0].mxu0 %vm269_vm2, %v229_v26  ;;  %1863 = vmatpush3.bf16.msra.mxu1 %v2077_v28  ;;  %v473_v52 = vsel %vm466_vm3, %v470_v48, %v472_v51  ;;  %v1706_v58 = vcombine.low %v745_v54, %v2286_v55  ;;  %v1666_v60 = vcombine.low %v2183_v7, %v181_v56  ;;  %v799_v2 = vshrl.u32 %v2294_v59, 16  ;;  %v2094_v26 = vld [vmem:[%s2175_s21 + $0x1c] sm:$0xff]   ;;  %v949_v48 = vld [vmem:[%s2175_s21 + $0x4] sm:$0xc]  ;;  %v2385_v54 = vld [vmem:[%s2175_s21 + $0xc] sm:$0xf] }
  0x1c   : > { %1887 = vmatpush3.bf16.msra.mxu0 %v2076_v20  ;;  %1846 = vmatprep.mubr.msk.bf16.mxu0 %vm2124_vm0, %v2123_v1  ;;  %v475_v57 = vsel %vm466_vm3, %v472_v51, %v474_v53  ;;  %v802_v3 = vshll.u32 %v2294_v59, 16  ;;  %v626_v4 = vrot.slane %v2087_v61, 1  ;;  %v808_v16 = vshrl.u32 %v2308_v10, 16 }
  0x1d   : > { %1888 = vmatprep.subr.bf16.mxu0 %v2123_v1  ;;  %1858 = vmatprep.mubr.msk.bf16.mxu1 %vm2124_vm0, %v2123_v1  ;;  %v791_v63 = vshrl.u32 %v1706_v58, 16  ;;  %v794_v0 = vshll.u32 %v1706_v58, 16  ;;  %v801_v8 = vrot.slane %v799_v2, 1  ;;  %v811_v17 = vshll.u32 %v2308_v10, 16  ;;  %v2109_v2 = vld [vmem:[%s2580_s1 + $0x78] sm:$0xff]  }
  0x1e   : > { %1864 = vmatprep.subr.bf16.mxu1 %v2123_v1  ;;  %v804_v9 = vrot.slane %v802_v3, 2  ;;  %v629_v18 = vrot.slane %v2090_v13, 1  ;;  %v810_v22 = vrot.slane %v808_v16, 1  ;;  %v817_v28 = vshrl.u32 %v2332_v24, 16  ;;  %v2446_v16 = vld [vmem:[%s2175_s21 + $0x28] sm:$0xff]  }
  0x1f   : > { %1865 = vmatpush3.bf16.msra.mxu1 %v2080_v34  ;;  %v796_v7 = vrot.slane %v794_v0, 2  ;;  %v813_v23 = vrot.slane %v811_v17, 2  ;;  %v820_v29 = vshll.u32 %v2332_v24, 16  ;;  %v631_v31 = vrot.slane %v2094_v26, 1 }
  0x20   : > { %1889 = vmatpush3.bf16.msra.mxu0 %v2079_v32  ;;  %1910 = vmatprep.subr.bf16.mxu1 %v2123_v1  ;;  %v805_v15 = vor.u32 %v804_v9, %v801_v8  ;;  %v819_v33 = vrot.slane %v817_v28, 1  ;;  %v1723_v51 = vcombine.low %v949_v48, %v2286_v55  ;;  %v962_v0 = vrot.slane %v2308_v10, 2  ;;  %v2110_v8 = vld [vmem:[%s2580_s1 + $0x88] sm:$0xff]  }
  0x21   : > { %1934 = vmatprep.subr.bf16.mxu0 %v2123_v1  ;;  %v814_v27 = vor.u32 %v813_v23, %v810_v22  ;;  %v822_v34 = vrot.slane %v820_v29, 2  ;;  %v632_v36 = vsel %vm466_vm3, %v629_v18, %v631_v31  ;;  %v964_v9 = vrot.slane %v2332_v24, 2 }
  0x22   : > { %1859 = vmatmul.mubr.msk.bf16.gmra.mrb[4].mxu1 %vm269_vm2, %v256_v37  ;;  %v2096_v37 = vld [vmem:[%s2175_s21 + $0x24] sm:$0xff]   ;;  %v959_v56 = vrot.slane %v1723_v51, 2 }
  0x23   : > { %1847 = vmatmul.mubr.msk.bf16.gmra.mrb[4].mxu0 %vm269_vm2, %v237_v35  ;;  %1866 = vmatprep.mubr.msk.bf16.mxu1 %vm2124_vm0, %v2123_v1  ;;  %v815_v32 = vsel %vm789_vm4, %v805_v15, %v814_v27  ;;  %v2351_v35 = vld [vmem:[%s2175_s21 + $0x24] sm:$0xff]   ;;  %v823_v38 = vor.u32 %v822_v34, %v819_v33  ;;  %v633_v41 = vrot.slane %v2096_v37, 1 }
  0x24   : > { %1850 = vmatprep.mubr.msk.bf16.mxu0 %vm2124_vm0, %v2123_v1  ;;  %v826_v39 = vshrl.u32 %v2351_v35, 16 }
  0x26   : > { %v828_v43 = vrot.slane %v826_v39, 1 }
  0x2a   : > { %1867 = vmatmul.mubr.msk.bf16.vlgmr.msra.gmra.mrb[8].mxu1 %vm269_vm2, %v1654_v5  ;;  %v627_v5 = vrot.slane %v2088_v62, 1  ;;  %v2103_v62 = vld [vmem:[%s2580_s1 + $0x70] sm:$0xff]  }
  0x2b   : > { %1851 = vmatmul.mubr.msk.bf16.gmra.mrb[8].mxu0 %vm269_vm2, %v245_v40  ;;  %1911 = vmatpush3.bf16.msra.mxu1 %v2081_v42  ;;  %v829_v40 = vshll.u32 %v2351_v35, 16  ;;  %v824_v42 = vsel %vm789_vm4, %v814_v27, %v823_v38 }
  0x2c   : > { %1890 = vmatprep.mubr.msk.bf16.mxu0 %vm2124_vm0, %v2123_v1  ;;  %1870 = vmatprep.mubr.msk.bf16.mxu1 %vm2124_vm0, %v2123_v1  ;;  %v628_v11 = vsel %vm466_vm3, %v626_v4, %v627_v5  ;;  %v630_v25 = vsel %vm466_vm3, %v627_v5, %v629_v18  ;;  %v2106_v4 = vld [vmem:[%s2580_s1 + $0x80] sm:$0xff]   ;;  %v2416_v5 = vld [vmem:[%s2175_s21 + $0x18] sm:$0xff]   ;;  %v1131_v18 = vrot.slane %v2446_v16, 2 }
  0x2d   : > { %1912 = vmatprep.subr.bf16.mxu1 %v2123_v1  ;;  %v831_v44 = vrot.slane %v829_v40, 2  ;;  %v1431_v51 = vrot.slane %v2416_v5, 3 }
  0x2f   : > { %1913 = vmatpush3.bf16.msra.mxu1 %v2084_v45  ;;  %v634_v45 = vsel %vm466_vm3, %v631_v31, %v633_v41 }
  0x30   : > { %1958 = vmatprep.subr.bf16.mxu1 %v2123_v1 }
  0x32   : > { %1871 = vmatmul.mubr.msk.bf16.gmra.mrb[12].mxu1 %vm269_vm2, %v2180_v6  ;;  %v793_v6 = vrot.slane %v791_v63, 1 }
  0x33   : > { %1891 = vmatmul.mubr.msk.bf16.vlgmr.msra.gmra.mrb[12].mxu0 %vm269_vm2, %v469_v46  ;;  %1874 = vmatprep.mubr.msk.bf16.mxu1 %vm2124_vm0, %v2123_v1  ;;  %v832_v46 = vor.u32 %v831_v44, %v828_v43 }
  0x34   : > { %1935 = vmatpush3.bf16.msra.mxu0 %v2083_v47  ;;  %1894 = vmatprep.mubr.msk.bf16.mxu0 %vm2124_vm0, %v2123_v1  ;;  %v2370_v47 = vld [vmem:[%s2175_s21 + $0x2c] ss:$0 sps:$4 sm:$0x11]  }
  0x35   : > { %1936 = vmatprep.subr.bf16.mxu0 %v2123_v1 }
  0x38   : > { %1937 = vmatpush3.bf16.msra.mxu0 %v2085_v49  ;;  %v833_v49 = vsel %vm789_vm4, %v823_v38, %v832_v46 }
  0x39   : > { %1982 = vmatprep.subr.bf16.mxu0 %v2123_v1 }
  0x3a   : > { %1875 = vmatmul.mubr.msk.bf16.gmra.mrb[16].mxu1 %vm269_vm2, %v2194_v14  ;;  %v797_v14 = vor.u32 %v796_v7, %v793_v6  ;;  %v1127_v7 = vrot.slane %v2416_v5, 2 }
  0x3b   : > { %1895 = vmatmul.mubr.msk.bf16.gmra.mrb[16].mxu0 %vm269_vm2, %v471_v50  ;;  %1878 = vmatprep.mubr.msk.bf16.mxu1 %vm2124_vm0, %v2123_v1  ;;  %v835_v50 = vshll.u32 %v2370_v47, 16 }
  0x3c   : > { %1898 = vmatprep.mubr.msk.bf16.mxu0 %vm2124_vm0, %v2123_v1  ;;  %v806_v20 = vsel %vm789_vm4, %v797_v14, %v805_v15  ;;  %v966_v14 = vrot.slane %v2351_v35, 2  ;;  %v1273_v35 = vshrl.u32 %v2416_v5, 16 }
  0x3e   : > { %v967_v17 = vsel %vm958_vm5, %v964_v9, %v966_v14  ;;  %v1275_v40 = vrot.slane %v1273_v35, 2 }
  0x42   : > { %1879 = vmatmul.mubr.msk.bf16.gmra.mrb[20].mxu1 %vm269_vm2, %v2188_v12  ;;  %v2089_v12 = vld [vmem:[%s2580_s1 + $0x50] sm:$0xff]  }
  0x43   : > { %1899 = vmatmul.mubr.msk.bf16.gmra.mrb[20].mxu0 %vm269_vm2, %v473_v52  ;;  %1882 = vmatprep.mubr.msk.bf16.mxu1 %vm2124_vm0, %v2123_v1  ;;  %v837_v52 = vrot.slane %v835_v50, 2 }
  0x44   : > { %1902 = vmatprep.mubr.msk.bf16.mxu0 %vm2124_vm0, %v2123_v1 }
  0x45   : > { %v838_v55 = vsel %vm789_vm4, %v832_v46, %v837_v52 }
  0x4a   : > { %1883 = vmatmul.mubr.msk.bf16.gmra.mrb[24].mxu1 %vm269_vm2, %v1666_v60  ;;  %v2393_v60 = vld [vmem:[%s2175_s21 + $0x10] sm:$0xff]  }
  0x4b   : > { %1903 = vmatmul.mubr.msk.bf16.gmra.mrb[24].mxu0 %vm269_vm2, %v475_v57  ;;  %1914 = vmatprep.mubr.msk.bf16.mxu1 %vm2124_vm0, %v2123_v1  ;;  %v960_v57 = vrot.slane %v2294_v59, 2  ;;  %v1125_v63 = vrot.slane %v2393_v60, 2  ;;  %v1264_v22 = vshrl.u32 %v2393_v60, 16  ;;  %v1267_v23 = vshll.u32 %v2393_v60, 16 }
  0x4c   : > { %1906 = vmatprep.mubr.msk.bf16.mxu0 %vm2124_vm0, %v2123_v1  ;;  %v1429_v43 = vrot.slane %v2393_v60, 3  ;;  %v2114_v60 = vld [vmem:[%s2175_s21 + $0x30] ss:$0 sps:$4 sm:$0x33]  }
  0x4d   : > { %v961_v61 = vsel %vm958_vm5, %v959_v56, %v960_v57  ;;  %v963_v6 = vsel %vm958_vm5, %v960_v57, %v962_v0  ;;  %v1128_v10 = vsel %vm958_vm5, %v1125_v63, %v1127_v7  ;;  %v1266_v29 = vrot.slane %v1264_v22, 2 }
  0x4e   : > { %v1432_v56 = vsel %vm1427_vm7, %v1429_v43, %v1431_v51 }
  0x52   : > { %1915 = vmatmul.mubr.msk.bf16.vlgmr.msra.gmra.mrb[28].mxu1 %vm269_vm2, %v628_v11  ;;  %v2433_v11 = vld [vmem:[%s2175_s21 + $0x20] sm:$0xff]  }
  0x53   : > { %1907 = vmatmul.mubr.msk.bf16.gmra.mrb[28].mxu0 %vm269_vm2, %v474_v53  ;;  %1959 = vmatpush3.bf16.msra.mxu1 %v2089_v12  ;;  %v1080_v53 = vld [vmem:[%s2175_s21 + $0x8] sm:$0xc]  ;;  %v965_v12 = vsel %vm958_vm5, %v962_v0, %v964_v9  ;;  %v1129_v13 = vrot.slane %v2433_v11, 2  ;;  %v1285_v46 = vshll.u32 %v2433_v11, 16  ;;  %v1437_v9 = vrot.slane %v2114_v60, 3 }
  0x54   : > { %1938 = vmatprep.mubr.msk.bf16.mxu0 %vm2124_vm0, %v2123_v1  ;;  %1918 = vmatprep.mubr.msk.bf16.mxu1 %vm2124_vm0, %v2123_v1  ;;  %v1735_v58 = vcombine.low %v1080_v53, %v2385_v54  ;;  %v1291_v53 = vshrl.u32 %v2446_v16, 16 }
  0x55   : > { %1960 = vmatprep.subr.bf16.mxu1 %v2123_v1  ;;  %v1130_v15 = vsel %vm958_vm5, %v1127_v7, %v1129_v13  ;;  %v1132_v24 = vsel %vm958_vm5, %v1129_v13, %v1131_v18  ;;  %v1287_v50 = vrot.slane %v1285_v46, 3 }
  0x56   : > { %v1124_v59 = vrot.slane %v1735_v58, 2 }
  0x57   : > { %1961 = vmatpush3.bf16.msra.mxu1 %v2098_v19  ;;  %v968_v19 = vrot.slane %v2370_v47, 2 }
  0x58   : > { %2006 = vmatprep.subr.bf16.mxu1 %v2123_v1  ;;  %v1126_v3 = vsel %vm958_vm5, %v1124_v59, %v1125_v63  ;;  %v1300_v59 = vshrl.u32 %v2114_v60, 16  ;;  %v1303_v63 = vshll.u32 %v2114_v60, 16 }
  0x59   : > { %v969_v26 = vsel %vm958_vm5, %v966_v14, %v968_v19 }
  0x5a   : > { %1919 = vmatmul.mubr.msk.bf16.gmra.mrb[32].mxu1 %vm269_vm2, %v630_v25  ;;  %v2112_v25 = vld [vmem:[%s2175_s21 + $0x30] ss:$0 sps:$4 sm:$0x11]  }
  0x5b   : > { %1939 = vmatmul.mubr.msk.bf16.vlgmr.msra.gmra.mrb[32].mxu0 %vm269_vm2, %v806_v20  ;;  %1922 = vmatprep.mubr.msk.bf16.mxu1 %vm2124_vm0, %v2123_v1  ;;  %v1256_v20 = vshrl.u32 %v1735_v58, 16  ;;  %v1133_v31 = vrot.slane %v2112_v25, 2 }
  0x5c   : > { %1983 = vmatpush3.bf16.msra.mxu0 %v2093_v21  ;;  %1942 = vmatprep.mubr.msk.bf16.mxu0 %vm2124_vm0, %v2123_v1  ;;  %v1259_v21 = vshll.u32 %v1735_v58, 16 }
  0x5d   : > { %1984 = vmatprep.subr.bf16.mxu0 %v2123_v1  ;;  %v1258_v27 = vrot.slane %v1256_v20, 2  ;;  %v1134_v37 = vsel %vm958_vm5, %v1131_v18, %v1133_v31 }
  0x5e   : > { %v1261_v28 = vrot.slane %v1259_v21, 3 }
  0x60   : > { %1985 = vmatpush3.bf16.msra.mxu0 %v2099_v30  ;;  %v1269_v30 = vrot.slane %v1267_v23, 3  ;;  %v1262_v33 = vor.u32 %v1261_v28, %v1258_v27 }
  0x61   : > { %2030 = vmatprep.subr.bf16.mxu0 %v2123_v1 }
  0x62   : > { %1923 = vmatmul.mubr.msk.bf16.gmra.mrb[36].mxu1 %vm269_vm2, %v632_v36  ;;  %v1270_v34 = vor.u32 %v1269_v30, %v1266_v29  ;;  %v1276_v36 = vshll.u32 %v2416_v5, 16  ;;  %v1435_v5 = vrot.slane %v2446_v16, 3 }
  0x63   : > { %1943 = vmatmul.mubr.msk.bf16.gmra.mrb[36].mxu0 %vm269_vm2, %v815_v32  ;;  %1926 = vmatprep.mubr.msk.bf16.mxu1 %vm2124_vm0, %v2123_v1  ;;  %v1418_v32 = vld [vmem:[%s2175_s21 + $0x8] sm:$0x8]  ;;  %s2059_s21 = smul.u32 80, %s2584_s13 }
  0x64   : > { %1946 = vmatprep.mubr.msk.bf16.mxu0 %vm2124_vm0, %v2123_v1  ;;  %v1764_v38 = vcombine.low %v1418_v32, %v2385_v54  ;;  %v1271_v39 = vsel %vm1254_vm6, %v1262_v33, %v1270_v34  ;;  %v1294_v54 = vshll.u32 %v2446_v16, 16 }
  0x65   : > { %s2541_s13 = scalar_lea.vmem %s2582_s3, %s2059_s21 }
  0x66   : > { %v1296_v58 = vrot.slane %v1294_v54, 3 }
  0x6a   : > { %1927 = vmatmul.mubr.msk.bf16.gmra.mrb[40].mxu1 %vm269_vm2, %v634_v45  ;;  %v1282_v45 = vshrl.u32 %v2433_v11, 16 }
  0x6b   : > { %1947 = vmatmul.mubr.msk.bf16.gmra.mrb[40].mxu0 %vm269_vm2, %v824_v42  ;;  %1930 = vmatprep.mubr.msk.bf16.mxu1 %vm2124_vm0, %v2123_v1  ;;  %v1428_v42 = vrot.slane %v1764_v38, 3 }
  0x6c   : > { %1950 = vmatprep.mubr.msk.bf16.mxu0 %vm2124_vm0, %v2123_v1 }
  0x6d   : > { %v1430_v47 = vsel %vm1427_vm7, %v1428_v42, %v1429_v43 }
  0x72   : > { %1931 = vmatmul.mubr.msk.bf16.gmra.mrb[44].mxu1 %vm269_vm2, %v633_v41  ;;  %v1278_v41 = vrot.slane %v1276_v36, 3 }
  0x73   : > { %1951 = vmatmul.mubr.msk.bf16.gmra.mrb[44].mxu0 %vm269_vm2, %v833_v49  ;;  %1962 = vmatprep.mubr.msk.bf16.mxu1 %vm2124_vm0, %v2123_v1  ;;  %v1284_v49 = vrot.slane %v1282_v45, 2 }
  0x74   : > { %1954 = vmatprep.mubr.msk.bf16.mxu0 %vm2124_vm0, %v2123_v1  ;;  %v1279_v44 = vor.u32 %v1278_v41, %v1275_v40 }
  0x75   : > { %v1288_v52 = vor.u32 %v1287_v50, %v1284_v49 }
  0x76   : > { %v1280_v48 = vsel %vm1254_vm6, %v1270_v34, %v1279_v44 }
  0x77   : > { %v1289_v57 = vsel %vm1254_vm6, %v1279_v44, %v1288_v52 }
  0x7a   : > { %1963 = vmatmul.mubr.msk.bf16.vlgmr.msra.gmra.mrb[48].mxu1 %vm269_vm2, %v961_v61  ;;  %v1433_v61 = vrot.slane %v2433_v11, 3 }
  0x7b   : > { %1955 = vmatmul.mubr.msk.bf16.gmra.mrb[48].mxu0 %vm269_vm2, %v838_v55  ;;  %2007 = vmatpush3.bf16.msra.mxu1 %v2103_v62  ;;  %v1293_v55 = vrot.slane %v1291_v53, 2 }
  0x7c   : > { %1986 = vmatprep.mubr.msk.bf16.mxu0 %vm2124_vm0, %v2123_v1  ;;  %1966 = vmatprep.mubr.msk.bf16.mxu1 %vm2124_vm0, %v2123_v1  ;;  %v1434_v0 = vsel %vm1427_vm7, %v1431_v51, %v1433_v61  ;;  %v1436_v7 = vsel %vm1427_vm7, %v1433_v61, %v1435_v5 }
  0x7d   : > { %2008 = vmatprep.subr.bf16.mxu1 %v2123_v1  ;;  %v1297_v62 = vor.u32 %v1296_v58, %v1293_v55 }
  0x7f   : > { %2009 = vmatpush3.bf16.msra.mxu1 %v2109_v2  ;;  %v1298_v2 = vsel %vm1254_vm6, %v1288_v52, %v1297_v62 }
  0x82   : > { %1967 = vmatmul.mubr.msk.bf16.gmra.mrb[52].mxu1 %vm269_vm2, %v963_v6 }
  0x83   : > { %1987 = vmatmul.mubr.msk.bf16.vlgmr.msra.gmra.mrb[52].mxu0 %vm269_vm2, %v1126_v3  ;;  %1970 = vmatprep.mubr.msk.bf16.mxu1 %vm2124_vm0, %v2123_v1  ;;  %v1302_v3 = vrot.slane %v1300_v59, 2 }
  0x84   : > { %2031 = vmatpush3.bf16.msra.mxu0 %v2106_v4  ;;  %1990 = vmatprep.mubr.msk.bf16.mxu0 %vm2124_vm0, %v2123_v1  ;;  %v1305_v4 = vrot.slane %v1303_v63, 3 }
  0x85   : > { %2032 = vmatprep.subr.bf16.mxu0 %v2123_v1 }
  0x86   : > { %v1306_v6 = vor.u32 %v1305_v4, %v1302_v3 }
  0x88   : > { %2033 = vmatpush3.bf16.msra.mxu0 %v2110_v8  ;;  %v1307_v8 = vsel %vm1254_vm6, %v1297_v62, %v1306_v6 }
  0x8a   : > { %1971 = vmatmul.mubr.msk.bf16.gmra.mrb[56].mxu1 %vm269_vm2, %v965_v12 }
  0x8b   : > { %1991 = vmatmul.mubr.msk.bf16.gmra.mrb[56].mxu0 %vm269_vm2, %v1128_v10  ;;  %1974 = vmatprep.mubr.msk.bf16.mxu1 %vm2124_vm0, %v2123_v1  ;;  %v1438_v10 = vsel %vm1427_vm7, %v1435_v5, %v1437_v9 }
  0x8c   : > { %1994 = vmatprep.mubr.msk.bf16.mxu0 %vm2124_vm0, %v2123_v1 }
  0x92   : > { %1975 = vmatmul.mubr.msk.bf16.gmra.mrb[60].mxu1 %vm269_vm2, %v967_v17 }
  0x93   : > { %1995 = vmatmul.mubr.msk.bf16.gmra.mrb[60].mxu0 %vm269_vm2, %v1130_v15  ;;  %1978 = vmatprep.mubr.msk.bf16.mxu1 %vm2124_vm0, %v2123_v1 }
  0x94   : > { %1998 = vmatprep.mubr.msk.bf16.mxu0 %vm2124_vm0, %v2123_v1 }
  0x9a   : > { %1979 = vmatmul.mubr.msk.bf16.gmra.mrb[64].mxu1 %vm269_vm2, %v969_v26 }
  0x9b   : > { %1999 = vmatmul.mubr.msk.bf16.gmra.mrb[64].mxu0 %vm269_vm2, %v1132_v24  ;;  %2010 = vmatprep.mubr.msk.bf16.mxu1 %vm2124_vm0, %v2123_v1 }
  0x9c   : > { %2002 = vmatprep.mubr.msk.bf16.mxu0 %vm2124_vm0, %v2123_v1 }
  0xa2   : > { %2011 = vmatmul.mubr.msk.bf16.vlgmr.msra.gmra.mrb[68].mxu1 %vm269_vm2, %v1271_v39 }
  0xa3   : > { %2003 = vmatmul.mubr.msk.bf16.gmra.mrb[68].mxu0 %vm269_vm2, %v1134_v37  ;;  %2014 = vmatprep.mubr.msk.bf16.mxu1 %vm2124_vm0, %v2123_v1 }
  0xa4   : > { %2034 = vmatprep.mubr.msk.bf16.mxu0 %vm2124_vm0, %v2123_v1 }
  0xaa   : > { %2015 = vmatmul.mubr.msk.bf16.gmra.mrb[72].mxu1 %vm269_vm2, %v1280_v48 }
  0xab   : > { %2035 = vmatmul.mubr.msk.bf16.vlgmr.msra.gmra.mrb[72].mxu0 %vm269_vm2, %v1430_v47  ;;  %2018 = vmatprep.mubr.msk.bf16.mxu1 %vm2124_vm0, %v2123_v1 }
  0xac   : > { %2038 = vmatprep.mubr.msk.bf16.mxu0 %vm2124_vm0, %v2123_v1 }
  0xb2   : > { %2019 = vmatmul.mubr.msk.bf16.gmra.mrb[76].mxu1 %vm269_vm2, %v1289_v57 }
  0xb3   : > { %2039 = vmatmul.mubr.msk.bf16.gmra.mrb[76].mxu0 %vm269_vm2, %v1432_v56  ;;  %2022 = vmatprep.mubr.msk.bf16.mxu1 %vm2124_vm0, %v2123_v1 }
  0xb4   : > { %2042 = vmatprep.mubr.msk.bf16.mxu0 %vm2124_vm0, %v2123_v1 }
  0xba   : > { %2023 = vmatmul.mubr.msk.bf16.gmra.mrb[80].mxu1 %vm269_vm2, %v1298_v2 }
  0xbb   : > { %2043 = vmatmul.mubr.msk.bf16.gmra.mrb[80].mxu0 %vm269_vm2, %v1434_v0  ;;  %2026 = vmatprep.mubr.msk.bf16.mxu1 %vm2124_vm0, %v2123_v1 }
  0xbc   : > { %2046 = vmatprep.mubr.msk.bf16.mxu0 %vm2124_vm0, %v2123_v1 }
  0xc2   : > { %2027 = vmatmul.mubr.msk.bf16.gmra.mrb[84].mxu1 %vm269_vm2, %v1307_v8 }
  0xc3   : > { %2047 = vmatmul.mubr.msk.bf16.gmra.mrb[84].mxu0 %vm269_vm2, %v1436_v7 }
  0xc4   : > { %2050 = vmatprep.mubr.msk.bf16.mxu0 %vm2124_vm0, %v2123_v1 }
  0xcb   : > { %2051 = vmatmul.mubr.msk.bf16.gmra.mrb[88].mxu0 %vm269_vm2, %v1438_v10 }
  0xed   : > { %v343_v14 = vpop.f32.mrb[0].mxu1 }
  0xee   : > { %v319_v11 = vpop.f32.mrb[0].mxu0  ;;  %v1856_v16 = vpop.f32.mrb[1].mxu1 }
  0xef   : > { %v1844_v12 = vpop.f32.mrb[1].mxu0  ;;  %v346_v17 = vpop.f32.mrb[2].mxu1 }
  0xf0   : > { %v322_v13 = vpop.f32.mrb[2].mxu0  ;;  %v1857_v18 = vpop.f32.mrb[3].mxu1 }
  0xf1   : > { %v1845_v15 = vpop.f32.mrb[3].mxu0 }
  0xf5   : > { %v351_v22 = vpop.f32.mrb[4].mxu1 }
  0xf6   : > { %v327_v19 = vpop.f32.mrb[4].mxu0  ;;  %v1860_v23 = vpop.f32.mrb[5].mxu1 }
  0xf7   : > { %v1848_v20 = vpop.f32.mrb[5].mxu0  ;;  %v354_v24 = vpop.f32.mrb[6].mxu1 }
  0xf8   : > { %v330_v21 = vpop.f32.mrb[6].mxu0  ;;  %v1861_v25 = vpop.f32.mrb[7].mxu1 }
  0xf9   : > { %v1849_v1 = vpop.f32.mrb[7].mxu0 }
  0xfd   : > { %v418_v28 = vpop.f32.mrb[8].mxu1 }
  0xfe   : > { %v335_v26 = vpop.f32.mrb[8].mxu0  ;;  %v419_v30 = vadd.f32 %v418_v28, %v319_v11  ;;  %v1868_v31 = vpop.f32.mrb[9].mxu1 }
  0xff   : > { %v1852_v27 = vpop.f32.mrb[9].mxu0  ;;  %v421_v33 = vpop.f32.mrb[10].mxu1 }
 0x100   : > { %v338_v29 = vpop.f32.mrb[10].mxu0  ;;  %v422_v34 = vadd.f32 %v421_v33, %v322_v13  ;;  %v1869_v35 = vpop.f32.mrb[11].mxu1 }
 0x101   : > { %v1853_v32 = vpop.f32.mrb[11].mxu0 }
 0x105   : > { %v426_v39 = vpop.f32.mrb[12].mxu1 }
 0x106   : > { %v537_v36 = vpop.f32.mrb[12].mxu0  ;;  %v427_v41 = vadd.f32 %v426_v39, %v327_v19  ;;  %v1872_v42 = vpop.f32.mrb[13].mxu1 }
 0x107   : > { %v576_v37 = vadd.f32 %v537_v36, %v419_v30  ;;  %v1892_v38 = vpop.f32.mrb[13].mxu0  ;;  %v429_v45 = vpop.f32.mrb[14].mxu1 }
 0x108   : > { %v540_v40 = vpop.f32.mrb[14].mxu0  ;;  %v430_v46 = vadd.f32 %v429_v45, %v330_v21  ;;  %v1873_v47 = vpop.f32.mrb[15].mxu1 }
 0x109   : > { %v577_v43 = vadd.f32 %v540_v40, %v422_v34  ;;  %v1893_v44 = vpop.f32.mrb[15].mxu0 }
 0x10d   : > { %v434_v51 = vpop.f32.mrb[16].mxu1 }
 0x10e   : > { %v545_v48 = vpop.f32.mrb[16].mxu0  ;;  %v435_v53 = vadd.f32 %v434_v51, %v335_v26  ;;  %v1876_v54 = vpop.f32.mrb[17].mxu1 }
 0x10f   : > { %v578_v49 = vadd.f32 %v545_v48, %v427_v41  ;;  %v1896_v50 = vpop.f32.mrb[17].mxu0  ;;  %v437_v55 = vpop.f32.mrb[18].mxu1 }
 0x110   : > { %v548_v52 = vpop.f32.mrb[18].mxu0  ;;  %v438_v58 = vadd.f32 %v437_v55, %v338_v29  ;;  %v1877_v60 = vpop.f32.mrb[19].mxu1 }
 0x111   : > { %v579_v56 = vadd.f32 %v548_v52, %v430_v46  ;;  %v1897_v57 = vpop.f32.mrb[19].mxu0 }
 0x115   : > { %v442_v63 = vpop.f32.mrb[20].mxu1 }
 0x116   : > { %v553_v61 = vpop.f32.mrb[20].mxu0  ;;  %v443_v2 = vadd.f32 %v442_v63, %v343_v14  ;;  %v1880_v3 = vpop.f32.mrb[21].mxu1 }
 0x117   : > { %v580_v62 = vadd.f32 %v553_v61, %v435_v53  ;;  %v1900_v59 = vpop.f32.mrb[21].mxu0  ;;  %v445_v6 = vpop.f32.mrb[22].mxu1 }
 0x118   : > { %v556_v0 = vpop.f32.mrb[22].mxu0  ;;  %v446_v7 = vadd.f32 %v445_v6, %v346_v17  ;;  %v1881_v8 = vpop.f32.mrb[23].mxu1 }
 0x119   : > { %v581_v4 = vadd.f32 %v556_v0, %v438_v58  ;;  %v1901_v5 = vpop.f32.mrb[23].mxu0 }
 0x11d   : > { %v450_v12 = vpop.f32.mrb[24].mxu1 }
 0x11e   : > { %v561_v9 = vpop.f32.mrb[24].mxu0  ;;  %v451_v15 = vadd.f32 %v450_v12, %v351_v22  ;;  %v1884_v16 = vpop.f32.mrb[25].mxu1 }
 0x11f   : > { %v582_v10 = vadd.f32 %v561_v9, %v443_v2  ;;  %v1904_v11 = vpop.f32.mrb[25].mxu0  ;;  %v453_v20 = vpop.f32.mrb[26].mxu1 }
 0x120   : > { %v564_v13 = vpop.f32.mrb[26].mxu0  ;;  %v454_v21 = vadd.f32 %v453_v20, %v354_v24  ;;  %v1885_v1 = vpop.f32.mrb[27].mxu1 }
 0x121   : > { %v583_v18 = vadd.f32 %v564_v13, %v446_v7  ;;  %v1905_v19 = vpop.f32.mrb[27].mxu0 }
 0x125   : > { %v696_v26 = vpop.f32.mrb[28].mxu1 }
 0x126   : > { %v569_v23 = vpop.f32.mrb[28].mxu0  ;;  %v735_v28 = vadd.f32 %v696_v26, %v576_v37  ;;  %v1916_v17 = vpop.f32.mrb[29].mxu1 }
 0x127   : > { %v584_v14 = vadd.f32 %v569_v23, %v451_v15  ;;  %v1908_v25 = vpop.f32.mrb[29].mxu0  ;;  %v699_v31 = vpop.f32.mrb[30].mxu1 }
 0x128   : > { %v572_v27 = vpop.f32.mrb[30].mxu0  ;;  %v736_v32 = vadd.f32 %v699_v31, %v577_v43  ;;  %v1917_v33 = vpop.f32.mrb[31].mxu1 }
 0x129   : > { %v585_v29 = vadd.f32 %v572_v27, %v454_v21  ;;  %v1909_v30 = vpop.f32.mrb[31].mxu0 }
 0x12d   : > { %v704_v36 = vpop.f32.mrb[32].mxu1 }
 0x12e   : > { %v900_v34 = vpop.f32.mrb[32].mxu0  ;;  %v737_v39 = vadd.f32 %v704_v36, %v578_v49  ;;  %v1920_v24 = vpop.f32.mrb[33].mxu1 }
 0x12f   : > { %v939_v22 = vadd.f32 %v900_v34, %v735_v28  ;;  %v1940_v35 = vpop.f32.mrb[33].mxu0  ;;  %v707_v42 = vpop.f32.mrb[34].mxu1 }
 0x130   : > { %v903_v38 = vpop.f32.mrb[34].mxu0  ;;  %v738_v44 = vadd.f32 %v707_v42, %v579_v56  ;;  %v1921_v45 = vpop.f32.mrb[35].mxu1 }
 0x131   : > { %v940_v40 = vadd.f32 %v903_v38, %v736_v32  ;;  %v1941_v41 = vpop.f32.mrb[35].mxu0 }
 0x135   : > { %v712_v48 = vpop.f32.mrb[36].mxu1 }
 0x136   : > { %v908_v46 = vpop.f32.mrb[36].mxu0  ;;  %v739_v51 = vadd.f32 %v712_v48, %v580_v62  ;;  %v1924_v43 = vpop.f32.mrb[37].mxu1 }
 0x137   : > { %v941_v37 = vadd.f32 %v908_v46, %v737_v39  ;;  %v1944_v47 = vpop.f32.mrb[37].mxu0  ;;  %v715_v54 = vpop.f32.mrb[38].mxu1 }
 0x138   : > { %v911_v50 = vpop.f32.mrb[38].mxu0  ;;  %v740_v57 = vadd.f32 %v715_v54, %v581_v4  ;;  %v1925_v55 = vpop.f32.mrb[39].mxu1 }
 0x139   : > { %v942_v52 = vadd.f32 %v911_v50, %v738_v44  ;;  %v1945_v53 = vpop.f32.mrb[39].mxu0 }
 0x13d   : > { %v720_v61 = vpop.f32.mrb[40].mxu1 }
 0x13e   : > { %v916_v58 = vpop.f32.mrb[40].mxu0  ;;  %v741_v63 = vadd.f32 %v720_v61, %v582_v10  ;;  %v1928_v56 = vpop.f32.mrb[41].mxu1 }
 0x13f   : > { %v943_v49 = vadd.f32 %v916_v58, %v739_v51  ;;  %v1948_v60 = vpop.f32.mrb[41].mxu0  ;;  %v723_v3 = vpop.f32.mrb[42].mxu1 }
 0x140   : > { %v919_v59 = vpop.f32.mrb[42].mxu0  ;;  %v742_v5 = vadd.f32 %v723_v3, %v583_v18  ;;  %v1929_v6 = vpop.f32.mrb[43].mxu1 }
 0x141   : > { %v944_v0 = vadd.f32 %v919_v59, %v740_v57  ;;  %v1949_v2 = vpop.f32.mrb[43].mxu0 }
 0x145   : > { %v728_v9 = vpop.f32.mrb[44].mxu1 }
 0x146   : > { %v924_v7 = vpop.f32.mrb[44].mxu0  ;;  %v743_v12 = vadd.f32 %v728_v9, %v584_v14  ;;  %v1932_v4 = vpop.f32.mrb[45].mxu1 }
 0x147   : > { %v945_v62 = vadd.f32 %v924_v7, %v741_v63  ;;  %v1952_v8 = vpop.f32.mrb[45].mxu0  ;;  %v731_v16 = vpop.f32.mrb[46].mxu1 }
 0x148   : > { %v927_v11 = vpop.f32.mrb[46].mxu0  ;;  %v744_v19 = vadd.f32 %v731_v16, %v585_v29  ;;  %v1933_v20 = vpop.f32.mrb[47].mxu1 }
 0x149   : > { %v946_v13 = vadd.f32 %v927_v11, %v742_v5  ;;  %v1953_v15 = vpop.f32.mrb[47].mxu0 }
 0x14d   : > { %v1031_v23 = vpop.f32.mrb[48].mxu1 }
 0x14e   : > { %v932_v21 = vpop.f32.mrb[48].mxu0  ;;  %v1070_v26 = vadd.f32 %v1031_v23, %v939_v22  ;;  %v1964_v18 = vpop.f32.mrb[49].mxu1 }
 0x14f   : > { %v947_v10 = vadd.f32 %v932_v21, %v743_v12  ;;  %v1956_v1 = vpop.f32.mrb[49].mxu0  ;;  %v1034_v17 = vpop.f32.mrb[50].mxu1 }
 0x150   : > { %v935_v25 = vpop.f32.mrb[50].mxu0  ;;  %v1071_v30 = vadd.f32 %v1034_v17, %v940_v40  ;;  %v1965_v31 = vpop.f32.mrb[51].mxu1 }
 0x151   : > { %v948_v27 = vadd.f32 %v935_v25, %v744_v19  ;;  %v1957_v28 = vpop.f32.mrb[51].mxu0 }
 0x155   : > { %v1039_v34 = vpop.f32.mrb[52].mxu1 }
 0x156   : > { %v1196_v32 = vpop.f32.mrb[52].mxu0  ;;  %v1072_v36 = vadd.f32 %v1039_v34, %v941_v37  ;;  %v1968_v29 = vpop.f32.mrb[53].mxu1 }
 0x157   : > { %v1235_v14 = vadd.f32 %v1196_v32, %v1070_v26  ;;  %v1988_v33 = vpop.f32.mrb[53].mxu0  ;;  %v1042_v24 = vpop.f32.mrb[54].mxu1 }
 0x158   : > { %v1199_v35 = vpop.f32.mrb[54].mxu0  ;;  %v1073_v41 = vadd.f32 %v1042_v24, %v942_v52  ;;  %v1969_v42 = vpop.f32.mrb[55].mxu1 }
 0x159   : > { %v1236_v38 = vadd.f32 %v1199_v35, %v1071_v30  ;;  %v1989_v39 = vpop.f32.mrb[55].mxu0 }
 0x15d   : > { %v1047_v46 = vpop.f32.mrb[56].mxu1 }
 0x15e   : > { %v1204_v44 = vpop.f32.mrb[56].mxu0  ;;  %v1074_v48 = vadd.f32 %v1047_v46, %v943_v49  ;;  %v1972_v40 = vpop.f32.mrb[57].mxu1 }
 0x15f   : > { %v1237_v22 = vadd.f32 %v1204_v44, %v1072_v36  ;;  %v1992_v45 = vpop.f32.mrb[57].mxu0  ;;  %v1050_v43 = vpop.f32.mrb[58].mxu1 }
 0x160   : > { %v1207_v47 = vpop.f32.mrb[58].mxu0  ;;  %v1075_v53 = vadd.f32 %v1050_v43, %v944_v0  ;;  %v1973_v54 = vpop.f32.mrb[59].mxu1 }
 0x161   : > { %v1238_v50 = vadd.f32 %v1207_v47, %v1073_v41  ;;  %v1993_v51 = vpop.f32.mrb[59].mxu0 }
 0x165   : > { %v1055_v58 = vpop.f32.mrb[60].mxu1 }
 0x166   : > { %v1212_v57 = vpop.f32.mrb[60].mxu0  ;;  %v1076_v61 = vadd.f32 %v1055_v58, %v945_v62  ;;  %v1976_v52 = vpop.f32.mrb[61].mxu1 }
 0x167   : > { %v1239_v37 = vadd.f32 %v1212_v57, %v1074_v48  ;;  %v1996_v55 = vpop.f32.mrb[61].mxu0  ;;  %v1058_v56 = vpop.f32.mrb[62].mxu1 }
 0x168   : > { %v1215_v60 = vpop.f32.mrb[62].mxu0  ;;  %v1077_v2 = vadd.f32 %v1058_v56, %v946_v13  ;;  %v1977_v3 = vpop.f32.mrb[63].mxu1 }
 0x169   : > { %v2521_v59 = vadd.f32 %v1215_v60, %v1075_v53  ;;  %v1997_v63 = vpop.f32.mrb[63].mxu0 }
 0x16d   : > { %v1063_v7 = vpop.f32.mrb[64].mxu1 }
 0x16e   : > { %v1220_v49 = vpop.f32.mrb[64].mxu0  ;;  %v1078_v8 = vadd.f32 %v1063_v7, %v947_v10  ;;  %v1980_v9 = vpop.f32.mrb[65].mxu1 }
 0x16f   : > { %v2523_v5 = vadd.f32 %v1220_v49, %v1076_v61  ;;  %v2000_v6 = vpop.f32.mrb[65].mxu0  ;;  %v1066_v62 = vpop.f32.mrb[66].mxu1 }
 0x170   : > { %v1223_v0 = vpop.f32.mrb[66].mxu0  ;;  %v1079_v4 = vadd.f32 %v1066_v62, %v948_v27  ;;  %v1981_v15 = vpop.f32.mrb[67].mxu1  ;;  %v2535_v27 = vld [vmem:[%s2581_s2] ss:$0 sm:$0xff] }
 0x171   : > { %v2525_v11 = vadd.f32 %v1223_v0, %v1077_v2  ;;  %v2001_v12 = vpop.f32.mrb[67].mxu0 }
 0x175   : > { %v1369_v20 = vpop.f32.mrb[68].mxu1 }
 0x176   : > { %v1228_v16 = vpop.f32.mrb[68].mxu0  ;;  %v1408_v1 = vadd.f32 %v1369_v20, %v1235_v14  ;;  %v2012_v23 = vpop.f32.mrb[69].mxu1 }
 0x177   : > { %v2527_v19 = vadd.f32 %v1228_v16, %v1078_v8  ;;  %v2004_v13 = vpop.f32.mrb[69].mxu0  ;;  %v1372_v10 = vpop.f32.mrb[70].mxu1 }
 0x178   : > { %v1231_v21 = vpop.f32.mrb[70].mxu0  ;;  %v1409_v18 = vadd.f32 %v1372_v10, %v1236_v38  ;;  %v2013_v28 = vpop.f32.mrb[71].mxu1 }
 0x179   : > { %v2529_v25 = vadd.f32 %v1231_v21, %v1079_v4  ;;  %v2005_v26 = vpop.f32.mrb[71].mxu0 }
 0x17d   : > { %v1377_v32 = vpop.f32.mrb[72].mxu1 }
 0x17e   : > { %v1500_v17 = vpop.f32.mrb[72].mxu0  ;;  %v1410_v34 = vadd.f32 %v1377_v32, %v1237_v22  ;;  %v2016_v35 = vpop.f32.mrb[73].mxu1 }
 0x17f   : > { %v1539_v30 = vadd.f32 %v1500_v17, %v1408_v1  ;;  %v2036_v31 = vpop.f32.mrb[73].mxu0  ;;  %v1380_v38 = vpop.f32.mrb[74].mxu1 }
 0x180   : > { %v1503_v33 = vpop.f32.mrb[74].mxu0  ;;  %v1411_v24 = vadd.f32 %v1380_v38, %v1238_v50  ;;  %v2017_v42 = vpop.f32.mrb[75].mxu1 }
 0x181   : > { %v1556_v14 = vadd.f32 %v2535_v27, %v1539_v30  ;;  %v1540_v36 = vadd.f32 %v1503_v33, %v1409_v18  ;;  %v2037_v29 = vpop.f32.mrb[75].mxu0 }
 0x183   : > { %v1566_v39 = vmax.f32 %v1556_v14, 0.0  ;;  %v1557_v41 = vadd.f32 %v2535_v27, %v1540_v36 }
 0x185   : > { %1577 = vst.msk [vmem:[%s2541_s13] sm:$0xff] %vm1576_vm8, %v1566_v39  ;;  %v1567_v44 = vmax.f32 %v1557_v41, 0.0  ;;  %v1385_v47 = vpop.f32.mrb[76].mxu1 }
 0x186   : > { %v1508_v22 = vpop.f32.mrb[76].mxu0  ;;  %v1412_v40 = vadd.f32 %v1385_v47, %v1239_v37  ;;  %v2020_v43 = vpop.f32.mrb[77].mxu1 }
 0x187   : > { %1578 = vst.msk [vmem:[%s2541_s13 + $0x8] sm:$0xff] %vm1576_vm8, %v1567_v44  ;;  %v1541_v45 = vadd.f32 %v1508_v22, %v1410_v34  ;;  %v2040_v46 = vpop.f32.mrb[77].mxu0  ;;  %v1388_v54 = vpop.f32.mrb[78].mxu1 }
 0x188   : > { %v1511_v48 = vpop.f32.mrb[78].mxu0  ;;  %v1413_v55 = vadd.f32 %v1388_v54, %v2521_v59  ;;  %v2021_v60 = vpop.f32.mrb[79].mxu1 }
 0x189   : > { %v1558_v51 = vadd.f32 %v2535_v27, %v1541_v45  ;;  %v1542_v50 = vadd.f32 %v1511_v48, %v1411_v24  ;;  %v2041_v53 = vpop.f32.mrb[79].mxu0 }
 0x18b   : > { %v1568_v57 = vmax.f32 %v1558_v51, 0.0  ;;  %v1559_v58 = vadd.f32 %v2535_v27, %v1542_v50 }
 0x18d   : > { %1579 = vst.msk [vmem:[%s2541_s13 + $0x10] sm:$0xff] %vm1576_vm8, %v1568_v57  ;;  %v1569_v61 = vmax.f32 %v1559_v58, 0.0  ;;  %v1393_v56 = vpop.f32.mrb[80].mxu1 }
 0x18e   : > { %v1516_v52 = vpop.f32.mrb[80].mxu0  ;;  %v1414_v3 = vadd.f32 %v1393_v56, %v2523_v5  ;;  %v2024_v59 = vpop.f32.mrb[81].mxu1 }
 0x18f   : > { %1580 = vst.msk [vmem:[%s2541_s13 + $0x18] sm:$0xff] %vm1576_vm8, %v1569_v61  ;;  %v1543_v37 = vadd.f32 %v1516_v52, %v1412_v40  ;;  %v2044_v63 = vpop.f32.mrb[81].mxu0  ;;  %v1396_v0 = vpop.f32.mrb[82].mxu1 }
 0x190   : > { %v1519_v2 = vpop.f32.mrb[82].mxu0  ;;  %v1415_v9 = vadd.f32 %v1396_v0, %v2525_v11  ;;  %v2025_v62 = vpop.f32.mrb[83].mxu1 }
 0x191   : > { %v1560_v49 = vadd.f32 %v2535_v27, %v1543_v37  ;;  %v1544_v6 = vadd.f32 %v1519_v2, %v1413_v55  ;;  %v2045_v7 = vpop.f32.mrb[83].mxu0 }
 0x193   : > { %v1570_v8 = vmax.f32 %v1560_v49, 0.0  ;;  %v1561_v12 = vadd.f32 %v2535_v27, %v1544_v6 }
 0x195   : > { %1581 = vst.msk [vmem:[%s2541_s13 + $0x20] sm:$0xff] %vm1576_vm8, %v1570_v8  ;;  %v1571_v4 = vmax.f32 %v1561_v12, 0.0  ;;  %v1401_v13 = vpop.f32.mrb[84].mxu1 }
 0x196   : > { %v1524_v15 = vpop.f32.mrb[84].mxu0  ;;  %v1416_v21 = vadd.f32 %v1401_v13, %v2527_v19  ;;  %v2028_v11 = vpop.f32.mrb[85].mxu1 }
 0x197   : > { %1582 = vst.msk [vmem:[%s2541_s13 + $0x28] sm:$0xff] %vm1576_vm8, %v1571_v4  ;;  %v1545_v5 = vadd.f32 %v1524_v15, %v1414_v3  ;;  %v2048_v16 = vpop.f32.mrb[85].mxu0  ;;  %v1404_v10 = vpop.f32.mrb[86].mxu1 }
 0x198   : > { %v1527_v20 = vpop.f32.mrb[86].mxu0  ;;  %v1417_v28 = vadd.f32 %v1404_v10, %v2529_v25  ;;  %v2029_v30 = vpop.f32.mrb[87].mxu1 }
 0x199   : > { %v1562_v1 = vadd.f32 %v2535_v27, %v1545_v5  ;;  %v1546_v23 = vadd.f32 %v1527_v20, %v1415_v9  ;;  %v2049_v26 = vpop.f32.mrb[87].mxu0 }
 0x19b   : > { %v1572_v18 = vmax.f32 %v1562_v1, 0.0  ;;  %v1563_v17 = vadd.f32 %v2535_v27, %v1546_v23 }
 0x19d   : > { %1583 = vst.msk [vmem:[%s2541_s13 + $0x30] sm:$0xff] %vm1576_vm8, %v1572_v18  ;;  %v1573_v31 = vmax.f32 %v1563_v17, 0.0 }
 0x19e   : > { %v1532_v32 = vpop.f32.mrb[88].mxu0 }
 0x19f   : > { %1584 = vst.msk [vmem:[%s2541_s13 + $0x38] sm:$0xff] %vm1576_vm8, %v1573_v31  ;;  %v1547_v19 = vadd.f32 %v1532_v32, %v1416_v21  ;;  %v2052_v33 = vpop.f32.mrb[89].mxu0 }
 0x1a0   : > { %v1535_v34 = vpop.f32.mrb[90].mxu0 }
 0x1a1   : > { %v1564_v14 = vadd.f32 %v2535_v27, %v1547_v19  ;;  %v1548_v35 = vadd.f32 %v1535_v34, %v1417_v28  ;;  %v2053_v36 = vpop.f32.mrb[91].mxu0 }
 0x1a3   : > { %v1574_v29 = vmax.f32 %v1564_v14, 0.0  ;;  %v1565_v25 = vadd.f32 %v2535_v27, %v1548_v35 }
 0x1a5   : > { %1585 = vst.msk [vmem:[%s2541_s13 + $0x40] sm:$0xff] %vm1576_vm8, %v1574_v29  ;;  %v1575_v38 = vmax.f32 %v1565_v25, 0.0 }
 0x1a7   : > { %1587 = vst.msk [vmem:[%s2541_s13 + $0x48] sm:$0x3f] %vm1586_vm9, %v1575_v38 }
 0x1a8 PF: > { %s13_s12 = sadd.s32 1, %s2121_s12  }
 0x1a9   : > { %p10_p4 = scmp.ge.s32.totalorder %s13_s12, 4  }
 0x1ab   :  { %12 = sbr.rel (!%p10_p4) target bundleno = 1 (0x1), region = 70 }

// kernel: fwd.39
= control target key start
LH: loop header
LB: loop body
LE: loop exit
PB: predicated region body
PF: predicated region fallthrough
CT: control target
= control target key end

     0   :  { %s3227_s12 = smov 0   ;;  %s3706_s0 = inlined_call_operand.vmem [shape: bf16[2,64,32], index: 0, kind: input, shape index: {}]   ;;  %s3707_s1 = inlined_call_operand.vmem [shape: bf16[5,5,32,6], index: 1, kind: input, shape index: {}]   ;;  %s3708_s2 = inlined_call_operand.vmem [shape: f32[1,6], index: 2, kind: input, shape index: {}]   ;;  %s3709_s3 = inlined_call_operand.vmem [shape: f32[2,28,6], index: 3, kind: output, shape index: {}]  }
   0x1 LB: > { %s2475_s13 = sadd.s32 4294967295, %s3205_s12   ;;  %p2479_p0 = scmp.ge.s32.totalorder %s3205_s12, 1  ;;  %s3205_s12 = sphi %s3227_s12, %s13_s12  }
   0x2   : > { %p137_p1 = scmp.lt.s32.totalorder %s3205_s12, 3 }
   0x4   : > { %p138_p2 = pnand %p2479_p0, %p137_p1 }
   0x5   : > { %v3119_v0 = vld [vmem:[%s3707_s1 + $0xc0] sm:$0xff] (!%p138_p2)   ;;  %p161_p3 = scmp.lt.s32.totalorder (!%p138_p2), %s2475_s13, 1  ;;  %v3120_v1 = vld [vmem:[%s3707_s1 + $0xc8] sm:$0xff] (!%p138_p2)   ;;  %v3121_v2 = vld [vmem:[%s3707_s1 + $0x10] sm:$0xff] (!%p138_p2)   ;;  %vm224_vm0 = vcmask (!%p138_p2), 261120   ;;  %vm358_vm1 = vcmask (!%p138_p2), 1046528  }
   0x6   : > { %141 = sbr.rel (%p138_p2) target bundleno = 388 (0x184), region = 32  ;;  %2911 = vmatprep.subr.bf16.mxu0 (!%p138_p2), %v3119_v0  ;;  %v3125_v3 = vld [vmem:[%s3707_s1 + $0xd0] sm:$0xff] (!%p138_p2)   ;;  %2815 = vmatprep.subr.bf16.mxu1 (!%p138_p2), %v3121_v2  ;;  %v3126_v4 = vld [vmem:[%s3707_s1 + $0x18] sm:$0xff] (!%p138_p2)   ;;  %vm196_vm2 = vsmask.f32 (!%p138_p2), 7424  ;;  %v3131_v21 = vld [vmem:[%s3707_s1] sm:$0xff] (!%p138_p2)  }
   0x7   : > { %2912 = vmatpush3.bf16.msra.mxu0 (!%p138_p2), %v3119_v0  ;;  %2816 = vmatpush3.bf16.msra.mxu1 (!%p138_p2), %v3121_v2  ;;  %v3130_v27 = vld [vmem:[%s3707_s1 + $0xd8] sm:$0xff] (!%p138_p2)   ;;  %vm442_vm3 = vsmask.f32 (!%p138_p2), 6400  ;;  %v3132_v40 = vld [vmem:[%s3707_s1 + $0xe0] sm:$0xff] (!%p138_p2)   ;;  %v3133_v44 = vld [vmem:[%s3707_s1 + $0x8] sm:$0xff] (!%p138_p2)   ;;  %vm540_vm4 = vcmask (!%p138_p2), 1045504  }
   0x8   : > { %2913 = vmatprep.subr.bf16.mxu0 (!%p138_p2), %v3120_v1  ;;  %2817 = vmatprep.subr.bf16.mxu1 (!%p138_p2), %v3126_v4  ;;  %v3136_v52 = vld [vmem:[%s3707_s1 + $0x20] sm:$0xff] (!%p138_p2)   ;;  %v3135_v55 = vld [vmem:[%s3707_s1 + $0xe8] sm:$0xff] (!%p138_p2)   ;;  %v3138_v62 = vld [vmem:[%s3707_s1 + $0xf0] sm:$0xff] (!%p138_p2)   ;;  %vm2414_vm5 = vcmask (!%p138_p2), 48128   ;;  %vm2418_vm6 = vcmask (!%p138_p2), 44032  }
   0x9   : > { %v3139_v63 = vld [vmem:[%s3707_s1 + $0x28] sm:$0xff] (!%p138_p2)  }
   0xb   : > { %2914 = vmatpush3.bf16.msra.mxu0 (!%p138_p2), %v3120_v1  ;;  %2818 = vmatpush3.bf16.msra.mxu1 (!%p138_p2), %v3126_v4 }
   0xc   : > { %2919 = vmatprep.subr.bf16.mxu0 (!%p138_p2), %v3125_v3  ;;  %2823 = vmatprep.subr.bf16.mxu1 (!%p138_p2), %v3131_v21 }
   0xd   : > { %s3711_s13 = smov (!%p161_p3, %s2475_s13), 1 }
   0xe   : > { %s2713_s22 = sshll.u32 %s3711_s13, 5 }
   0xf   : > { %s3258_s27 = scalar_lea.vmem %s3706_s0, %s2713_s22  ;;  %s170_s28 = scalar_lea.vmem %s3709_s3, %s2713_s22 }
  0x10   : > { %v3261_v5 = vld [vmem:[%s3258_s27 + $0xc] sm:$0xf]  ;;  %v3264_v6 = vld [vmem:[%s3258_s27 + $0x10] sm:$0xf]  ;;  %v1152_v7 = vld [vmem:[%s3258_s27 + $0x14] sm:$0x7] }
  0x11   : > { %v3268_v8 = vcombine.low %v3264_v6, %v1152_v7  ;;  %v1246_v9 = vld [vmem:[%s3258_s27 + $0x8] sm:$0xe]  ;;  %v1329_v10 = vld [vmem:[%s3258_s27 + $0x14] sm:$0xf]  ;;  %v172_v11 = vld [vmem:[%s3258_s27] sm:$0xf] }
  0x12   : > { %v2595_v12 = vcombine.low %v1246_v9, %v3261_v5  ;;  %v3275_v13 = vcombine.low %v3264_v6, %v1329_v10  ;;  %v3278_v14 = vld [vmem:[%s3258_s27 + $0x4] sm:$0xf]  ;;  %v3281_v15 = vld [vmem:[%s3258_s27 + $0x8] sm:$0xf]  ;;  %v180_v16 = vld [vmem:[%s3258_s27 + $0xc] sm:$0x7] }
  0x13   : > { %v1256_v17 = vrot.slane %v3268_v8, 1  ;;  %v2488_v18 = vcombine.low %v172_v11, %v3278_v14  ;;  %v3287_v19 = vcombine.low %v3281_v15, %v180_v16  ;;  %v1426_v45 = vld [vmem:[%s3258_s27 + $0x8] sm:$0xc]  ;;  %v433_v47 = vld [vmem:[%s3258_s27 + $0xc] sm:$0xf]  ;;  %v3142_v11 = vld [vmem:[%s3707_s1 + $0x30] sm:$0xff]  }
  0x14   : > { %v1255_v20 = vrot.slane %v2595_v12, 1  ;;  %v1339_v28 = vshrl.u32 %v2595_v12, 16  ;;  %v1342_v29 = vshll.u32 %v2595_v12, 16  ;;  %v1347_v30 = vshrl.u32 %v3275_v13, 16  ;;  %v349_v49 = vld [vmem:[%s3258_s27] sm:$0xe] }
  0x15   : > { %v198_v22 = vshrl.u32 %v2488_v18, 16  ;;  %v200_v23 = vshll.u32 %v2488_v18, 16  ;;  %v205_v24 = vshll.u32 %v3287_v19, 16  ;;  %v209_v25 = vshrl.u32 %v3287_v19, 16  ;;  %v175_v56 = vld [vmem:[%s3258_s27 + $0xc] sm:$0x3] }
  0x16   : > { %v1257_v26 = vsel %vm358_vm1, %v1255_v20, %v1256_v17  ;;  %v1350_v33 = vshll.u32 %v3275_v13, 16  ;;  %v1341_v34 = vrot.slane %v1339_v28, 1  ;;  %v1344_v35 = vrot.slane %v1342_v29, 2  ;;  %v1509_v4 = vld [vmem:[%s3258_s27 + $0xc] sm:$0xf]  ;;  %v3141_v20 = vld [vmem:[%s3707_s1 + $0xf8] sm:$0xff]  }
  0x17   : > { %2915 = vmatprep.mubr.msk.bf16.mxu0 %vm224_vm0, %v1257_v26  ;;  %v202_v31 = vrot.slane %v200_v23, 1  ;;  %v207_v32 = vrot.slane %v205_v24, 1  ;;  %v1349_v36 = vrot.slane %v1347_v30, 1  ;;  %v2613_v46 = vcombine.low %v1426_v45, %v3261_v5  ;;  %v3346_v7 = vld [vmem:[%s3258_s27 + $0x10] sm:$0xf]  ;;  %v3145_v23 = vld [vmem:[%s3707_s1 + $0x100] sm:$0xff]  }
  0x18   : > { %2916 = vmatmul.mubr.msk.bf16.vlgmr.msra.gmra.mrb[0].mxu0 %vm224_vm0, %v1256_v17  ;;  %v1352_v39 = vrot.slane %v1350_v33, 2  ;;  %v1345_v41 = vor.u32 %v1344_v35, %v1341_v34  ;;  %v1436_v51 = vrot.slane %v3275_v13, 2  ;;  %v2503_v53 = vcombine.low %v349_v49, %v3278_v14  ;;  %v1599_v10 = vld [vmem:[%s3258_s27 + $0x18] sm:$0x7]  ;;  %v1511_v13 = vld [vmem:[%s3258_s27 + $0x14] sm:$0xf] }
  0x19   : > { %2920 = vmatpush3.bf16.msra.mxu0 %v3125_v3  ;;  %v203_v37 = vor.u32 %v202_v31, %v198_v22  ;;  %v211_v38 = vor.u32 %v209_v25, %v207_v32  ;;  %v1435_v50 = vrot.slane %v2613_v46, 2  ;;  %v3324_v54 = vcombine.low %v3281_v15, %v433_v47  ;;  %v799_v28 = vld [vmem:[%s3258_s27 + $0x4] sm:$0xe]  ;;  %v3146_v29 = vld [vmem:[%s3707_s1 + $0x38] sm:$0xff]   ;;  %v531_v30 = vld [vmem:[%s3258_s27] sm:$0xc] }
  0x1a   : > { %2921 = vmatprep.subr.bf16.mxu0 %v3130_v27  ;;  %v1353_v43 = vor.u32 %v1352_v39, %v1349_v36  ;;  %v359_v58 = vrot.slane %v2503_v53, 1  ;;  %v360_v59 = vrot.slane %v3287_v19, 1  ;;  %v2494_v60 = vcombine.low %v3281_v15, %v175_v56  ;;  %v705_v33 = vld [vmem:[%s3258_s27 + $0x10] sm:$0x7]  ;;  %v1512_v34 = vld [vmem:[%s3258_s27 + $0x18] sm:$0x3] }
  0x1b   : > { %v208_v42 = vsel %vm196_vm2, %v203_v37, %v207_v32  ;;  %v1437_v57 = vsel %vm540_vm4, %v1435_v50, %v1436_v51  ;;  %v452_v61 = vshrl.u32 %v3324_v54, 16  ;;  %v444_v0 = vshrl.u32 %v2503_v53, 16  ;;  %v3378_v32 = vld [vmem:[%s3258_s27 + $0x8] sm:$0xf]  ;;  %v3151_v56 = vld [vmem:[%s3707_s1 + $0x110] sm:$0xff]  }
  0x1c   : > { %2819 = vmatprep.mubr.msk.bf16.mxu1 %vm224_vm0, %v208_v42  ;;  %v1354_v48 = vsel %vm442_vm3, %v1345_v41, %v1353_v43  ;;  %v447_v1 = vshll.u32 %v2503_v53, 16  ;;  %v455_v2 = vshll.u32 %v3324_v54, 16  ;;  %v361_v3 = vsel %vm358_vm1, %v359_v58, %v360_v59  ;;  %v1776_v42 = vld [vmem:[%s3258_s27 + $0x18] sm:$0xf]  ;;  %v3148_v45 = vld [vmem:[%s3707_s1 + $0x108] sm:$0xff]  }
  0x1d   : > { %2820 = vmatmul.mubr.msk.bf16.vlgmr.msra.gmra.mrb[0].mxu1 %vm224_vm0, %v211_v38  ;;  %2922 = vmatpush3.bf16.msra.mxu0 %v3130_v27  ;;  %v454_v9 = vrot.slane %v452_v61, 1  ;;  %v2622_v12 = vcombine.low %v1509_v4, %v3346_v7  ;;  %v446_v15 = vrot.slane %v444_v0, 1  ;;  %v1693_v27 = vld [vmem:[%s3258_s27 + $0xc] sm:$0xe]  ;;  %v2549_v35 = vcombine.low %v799_v28, %v3378_v32  ;;  %v3430_v0 = vld [vmem:[%s3258_s27 + $0x14] sm:$0xf] }
  0x1e   : > { %2824 = vmatpush3.bf16.msra.mxu1 %v3131_v21  ;;  %2923 = vmatprep.mubr.msk.bf16.mxu0 %vm224_vm0, %v1354_v48  ;;  %v449_v16 = vrot.slane %v447_v1, 2  ;;  %v457_v17 = vrot.slane %v455_v2, 2  ;;  %v3385_v38 = vld [vmem:[%s3258_s27 + $0xc] sm:$0xf]  ;;  %v3388_v39 = vcombine.low %v1693_v27, %v3346_v7  ;;  %v2521_v41 = vcombine.low %v531_v30, %v3278_v14  ;;  %v2140_v2 = vld [vmem:[%s3258_s27 + $0x10] sm:$0xe] }
  0x1f   : > { %2927 = vmatprep.subr.bf16.mxu0 %v3132_v40  ;;  %2825 = vmatprep.subr.bf16.mxu1 %v3133_v44  ;;  %v1610_v19 = vshll.u32 %v2622_v12, 16  ;;  %v1608_v24 = vshrl.u32 %v2622_v12, 16  ;;  %v808_v47 = vrot.slane %v2549_v35, 1  ;;  %v542_v50 = vrot.slane %v3324_v54, 2  ;;  %v882_v4 = vld [vmem:[%s3258_s27 + $0x10] sm:$0xf] }
  0x20   : > { %2827 = vmatprep.mubr.msk.bf16.mxu1 %vm224_vm0, %v2488_v18  ;;  %v3356_v18 = vcombine.low %v1511_v13, %v1599_v10  ;;  %v450_v21 = vor.u32 %v449_v16, %v446_v15  ;;  %v3362_v22 = vor.u32 %v457_v17, %v454_v9  ;;  %v1786_v46 = vshrl.u32 %v3388_v39, 16  ;;  %v2046_v15 = vld [vmem:[%s3258_s27 + $0x1c] sm:$0x7] }
  0x21   : > { %v1612_v25 = vrot.slane %v1610_v19, 1  ;;  %v1702_v53 = vrot.slane %v3388_v39, 1  ;;  %v1789_v58 = vshll.u32 %v3388_v39, 16  ;;  %v895_v1 = vshll.u32 %v2549_v35, 16 }
  0x22   : > { %2826 = vmatpush3.bf16.msra.mxu1 %v3133_v44  ;;  %v1615_v26 = vshll.u32 %v3356_v18, 16  ;;  %v459_v31 = vsel %vm442_vm3, %v450_v21, %v3362_v22  ;;  %v2623_v44 = vcombine.low %v1511_v13, %v1512_v34  ;;  %v1619_v14 = vshrl.u32 %v3356_v18, 16  ;;  %v3155_v21 = vld [vmem:[%s3707_s1 + $0x50] sm:$0xff]  }
  0x23   : > { %2831 = vmatprep.subr.bf16.mxu1 %v3136_v52  ;;  %v1613_v36 = vor.u32 %v1612_v25, %v1608_v24  ;;  %v3426_v61 = vrot.slane %v1786_v46, 1  ;;  %v3441_v10 = vcombine.low %v3385_v38, %v882_v4  ;;  %v3470_v34 = vrot.slane %v1789_v58, 2 }
  0x24   : > { %2924 = vmatmul.mubr.msk.bf16.vlgmr.msra.gmra.mrb[0].mxu0 %vm224_vm0, %v1353_v43  ;;  %v1617_v37 = vrot.slane %v1615_v26, 1  ;;  %v3397_v43 = vcombine.low %v3385_v38, %v705_v33  ;;  %v3154_v26 = vld [vmem:[%s3707_s1 + $0x118] sm:$0xff]   ;;  %v615_v33 = vld [vmem:[%s3258_s27 + $0x4] sm:$0xf] }
  0x25   : > { %2928 = vmatpush3.bf16.msra.mxu0 %v3132_v40  ;;  %2931 = vmatprep.mubr.msk.bf16.mxu0 %vm224_vm0, %v1437_v57  ;;  %v3149_v40 = vld [vmem:[%s3707_s1 + $0x40] sm:$0xff]   ;;  %v1703_v57 = vrot.slane %v3356_v18, 1  ;;  %v900_v17 = vshrl.u32 %v3441_v10, 16  ;;  %v903_v19 = vshll.u32 %v3441_v10, 16 }
  0x26   : > { %2929 = vmatprep.subr.bf16.mxu0 %v3135_v55  ;;  %v809_v48 = vrot.slane %v3397_v43, 1  ;;  %v1618_v49 = vsel %vm196_vm2, %v1613_v36, %v1617_v37  ;;  %v1621_v16 = vor.u32 %v1619_v14, %v1617_v37  ;;  %v979_v36 = vld [vmem:[%s3258_s27 + $0x4] sm:$0xc] }
  0x27   : > { %v902_v28 = vrot.slane %v900_v17, 1  ;;  %v3162_v17 = vld [vmem:[%s3707_s1 + $0x60] sm:$0xff]  }
  0x29   : > { %2828 = vmatmul.mubr.msk.bf16.vlgmr.msra.gmra.mrb[0].mxu1 %vm224_vm0, %v2494_v60  ;;  %2930 = vmatpush3.bf16.msra.mxu0 %v3135_v55  ;;  %v3413_v55 = vsel %vm358_vm1, %v808_v47, %v809_v48  ;;  %v3152_v60 = vld [vmem:[%s3707_s1 + $0x48] sm:$0xff]   ;;  %v3156_v47 = vld [vmem:[%s3707_s1 + $0x120] sm:$0xff]  }
  0x2a   : > { %2832 = vmatpush3.bf16.msra.mxu1 %v3136_v52  ;;  %2935 = vmatprep.subr.bf16.mxu0 %v3138_v62  ;;  %v541_v52 = vrot.slane %v2521_v41, 2  ;;  %v989_v41 = vrot.slane %v3441_v10, 2  ;;  %v3195_v10 = vld [vmem:[%s3707_s1 + $0x180] sm:$0xff]  }
  0x2b   : > { %2833 = vmatprep.subr.bf16.mxu1 %v3139_v63  ;;  %2835 = vmatprep.mubr.msk.bf16.mxu1 %vm224_vm0, %v361_v3  ;;  %v3434_v3 = vld [vmem:[%s3258_s27 + $0x18] sm:$0xf] }
  0x2c   : > { %v543_v9 = vsel %vm540_vm4, %v541_v52, %v542_v50 }
  0x2e   : > { %2834 = vmatpush3.bf16.msra.mxu1 %v3139_v63 }
  0x2f   : > { %2839 = vmatprep.subr.bf16.mxu1 %v3142_v11 }
  0x30   : > { %2932 = vmatmul.mubr.msk.bf16.vlgmr.msra.gmra.mrb[0].mxu0 %vm224_vm0, %v1436_v51  ;;  %v3407_v51 = vcombine.low %v1511_v13, %v1776_v42 }
  0x31   : > { %2936 = vmatpush3.bf16.msra.mxu0 %v3138_v62  ;;  %2939 = vmatprep.mubr.msk.bf16.mxu0 %vm224_vm0, %v2622_v12  ;;  %v892_v62 = vshrl.u32 %v2549_v35, 16  ;;  %v897_v12 = vrot.slane %v895_v1, 2  ;;  %v3157_v1 = vld [vmem:[%s3707_s1 + $0x58] sm:$0xff]  }
  0x32   : > { %2937 = vmatprep.subr.bf16.mxu0 %v3141_v20  ;;  %v1794_v63 = vshrl.u32 %v3407_v51, 16 }
  0x34   : > { %v1796_v42 = vrot.slane %v1794_v63, 1  ;;  %v3509_v63 = vld [vmem:[%s3258_s27 + $0x14] sm:$0x3] }
  0x35   : > { %2836 = vmatmul.mubr.msk.bf16.vlgmr.msra.gmra.mrb[0].mxu1 %vm224_vm0, %v360_v59  ;;  %2938 = vmatpush3.bf16.msra.mxu0 %v3141_v20  ;;  %v1956_v59 = vld [vmem:[%s3258_s27 + $0x10] sm:$0xf]  ;;  %v3452_v20 = vcombine.low %v3434_v3, %v2046_v15 }
  0x36   : > { %2840 = vmatpush3.bf16.msra.mxu1 %v3142_v11  ;;  %2943 = vmatprep.subr.bf16.mxu0 %v3145_v23  ;;  %v894_v11 = vrot.slane %v892_v62, 1  ;;  %v3446_v13 = vcombine.low %v1956_v59, %v3430_v0  ;;  %v1062_v59 = vld [vmem:[%s3258_s27 + $0x8] sm:$0xf] }
  0x37   : > { %2841 = vmatprep.subr.bf16.mxu1 %v3146_v29  ;;  %2843 = vmatprep.mubr.msk.bf16.mxu1 %vm224_vm0, %v459_v31  ;;  %v2062_v30 = vshll.u32 %v3452_v20, 16  ;;  %v1704_v31 = vsel %vm358_vm1, %v1702_v53, %v1703_v57  ;;  %v2150_v46 = vrot.slane %v3452_v20, 1 }
  0x38   : > { %v2055_v24 = vshrl.u32 %v3446_v13, 16  ;;  %v2057_v25 = vshll.u32 %v3446_v13, 16  ;;  %v898_v27 = vor.u32 %v897_v12, %v894_v11 }
  0x39   : > { %v3475_v39 = vrot.slane %v2062_v30, 1 }
  0x3a   : > { %2842 = vmatpush3.bf16.msra.mxu1 %v3146_v29  ;;  %v905_v29 = vrot.slane %v903_v19, 2  ;;  %v2059_v35 = vrot.slane %v2057_v25, 1 }
  0x3b   : > { %2847 = vmatprep.subr.bf16.mxu1 %v3149_v40 }
  0x3c   : > { %2940 = vmatmul.mubr.msk.bf16.vlgmr.msra.gmra.mrb[0].mxu0 %vm224_vm0, %v2623_v44  ;;  %v3473_v37 = vor.u32 %v905_v29, %v902_v28  ;;  %v2060_v44 = vor.u32 %v2059_v35, %v2055_v24  ;;  %v1168_v24 = vshll.u32 %v3268_v8, 16  ;;  %v2320_v28 = vld [vmem:[%s3258_s27 + $0x10] sm:$0xc]  ;;  %v3161_v35 = vld [vmem:[%s3707_s1 + $0x128] sm:$0xff]  }
  0x3d   : > { %2944 = vmatpush3.bf16.msra.mxu0 %v3145_v23  ;;  %2947 = vmatprep.mubr.msk.bf16.mxu0 %vm224_vm0, %v1618_v49  ;;  %v2687_v23 = vcombine.low %v2140_v2, %v3430_v0  ;;  %v2577_v2 = vcombine.low %v3264_v6, %v3509_v63 }
  0x3e   : > { %2945 = vmatprep.subr.bf16.mxu0 %v3148_v45  ;;  %v3486_v14 = vsel %vm442_vm3, %v898_v27, %v3473_v37  ;;  %v3491_v53 = vsel %vm196_vm2, %v2060_v44, %v3475_v39  ;;  %v1873_v44 = vld [vmem:[%s3258_s27 + $0xc] sm:$0xc] }
  0x3f   : > { %v2233_v4 = vshrl.u32 %v2687_v23, 16  ;;  %v2236_v11 = vshll.u32 %v2687_v23, 16 }
  0x41   : > { %2844 = vmatmul.mubr.msk.bf16.vlgmr.msra.gmra.mrb[0].mxu1 %vm224_vm0, %v3362_v22  ;;  %2946 = vmatpush3.bf16.msra.mxu0 %v3148_v45  ;;  %v1797_v22 = vshll.u32 %v3407_v51, 16  ;;  %v2149_v45 = vrot.slane %v2687_v23, 1  ;;  %v2238_v54 = vrot.slane %v2236_v11, 2  ;;  %v725_v11 = vshrl.u32 %v3397_v43, 16 }
  0x42   : > { %2848 = vmatpush3.bf16.msra.mxu1 %v3149_v40  ;;  %2951 = vmatprep.subr.bf16.mxu0 %v3151_v56  ;;  %v2567_v40 = vcombine.low %v979_v36, %v3378_v32 }
  0x43   : > { %2849 = vmatprep.subr.bf16.mxu1 %v3152_v60  ;;  %2851 = vmatprep.mubr.msk.bf16.mxu1 %vm224_vm0, %v543_v9  ;;  %v1799_v49 = vrot.slane %v1797_v22, 2  ;;  %v3496_v58 = vsel %vm358_vm1, %v2149_v45, %v2150_v46 }
  0x44   : > { %v988_v52 = vrot.slane %v2567_v40, 2 }
  0x45   : > { %v1800_v19 = vor.u32 %v1799_v49, %v1796_v42 }
  0x46   : > { %2850 = vmatpush3.bf16.msra.mxu1 %v3152_v60  ;;  %v2530_v60 = vcombine.low %v615_v33, %v3378_v32  ;;  %v3503_v62 = vsel %vm540_vm4, %v988_v52, %v989_v41  ;;  %v2223_v32 = vld [vmem:[%s3258_s27 + $0x1c] sm:$0xf]  ;;  %v2705_v33 = vcombine.low %v2320_v28, %v3430_v0 }
  0x47   : > { %2855 = vmatprep.subr.bf16.mxu1 %v3155_v21  ;;  %v3523_v15 = vcombine.low %v3434_v3, %v2223_v32  ;;  %v1883_v32 = vrot.slane %v3407_v51, 2 }
  0x48   : > { %2948 = vmatmul.mubr.msk.bf16.vlgmr.msra.gmra.mrb[0].mxu0 %vm224_vm0, %v1621_v16  ;;  %v716_v9 = vshll.u32 %v2530_v60, 16  ;;  %v714_v12 = vshrl.u32 %v2530_v60, 16  ;;  %v2235_v16 = vrot.slane %v2233_v4, 1  ;;  %v2329_v49 = vrot.slane %v2705_v33, 2 }
  0x49   : > { %2952 = vmatpush3.bf16.msra.mxu0 %v3151_v56  ;;  %2955 = vmatprep.mubr.msk.bf16.mxu0 %vm224_vm0, %v1704_v31  ;;  %v3506_v56 = vcombine.low %v1062_v59, %v3261_v5  ;;  %v1792_v5 = vor.u32 %v3470_v34, %v3426_v61  ;;  %v721_v61 = vshll.u32 %v3397_v43, 16  ;;  %v2244_v23 = vshll.u32 %v3523_v15, 16  ;;  %v618_v34 = vld [vmem:[%s3258_s27 + $0x10] sm:$0x3]  ;;  %v3180_v43 = vld [vmem:[%s3707_s1 + $0x158] sm:$0xff]  }
  0x4a   : > { %2953 = vmatprep.subr.bf16.mxu0 %v3154_v26  ;;  %v718_v25 = vrot.slane %v716_v9, 1  ;;  %v3536_v31 = vrot.slane %v1168_v24, 1  ;;  %v2330_v42 = vrot.slane %v3523_v15, 2 }
  0x4b   : > { %v1163_v22 = vshll.u32 %v3506_v56, 16  ;;  %v2246_v30 = vrot.slane %v2244_v23, 2  ;;  %v1801_v36 = vsel %vm442_vm3, %v1792_v5, %v1800_v19  ;;  %v723_v52 = vrot.slane %v721_v61, 1  ;;  %v3167_v5 = vld [vmem:[%s3707_s1 + $0x138] sm:$0xff]   ;;  %v3186_v23 = vld [vmem:[%s3707_s1 + $0x168] sm:$0xff]  }
  0x4c   : > { %v719_v0 = vor.u32 %v718_v25, %v714_v12  ;;  %v3564_v18 = vsel %vm540_vm4, %v2329_v49, %v2330_v42  ;;  %v2710_v25 = vld [vmem:[%s3708_s2] ss:$0 sm:$0xff] }
  0x4d   : > { %2852 = vmatmul.mubr.msk.bf16.vlgmr.msra.gmra.mrb[0].mxu1 %vm224_vm0, %v542_v50  ;;  %2954 = vmatpush3.bf16.msra.mxu0 %v3154_v26  ;;  %v1161_v50 = vshrl.u32 %v3506_v56, 16  ;;  %v2239_v26 = vor.u32 %v2238_v54, %v2235_v16  ;;  %v1165_v27 = vrot.slane %v1163_v22, 1  ;;  %v727_v51 = vor.u32 %v725_v11, %v723_v52  ;;  %v3170_v16 = vld [vmem:[%s3707_s1 + $0x140] sm:$0xff]   ;;  %v3172_v54 = vld [vmem:[%s3707_s1 + $0x148] sm:$0xff]   ;;  %v1959_v22 = vld [vmem:[%s3258_s27 + $0x1c] sm:$0x3] }
  0x4e   : > { %2856 = vmatpush3.bf16.msra.mxu1 %v3155_v21  ;;  %2959 = vmatprep.subr.bf16.mxu0 %v3156_v47  ;;  %v2241_v21 = vshrl.u32 %v3523_v15, 16  ;;  %v724_v4 = vsel %vm196_vm2, %v719_v0, %v723_v52  ;;  %v2669_v61 = vcombine.low %v3434_v3, %v1959_v22  ;;  %v3184_v3 = vld [vmem:[%s3707_s1 + $0x98] sm:$0xff]  }
  0x4f   : > { %2857 = vmatprep.subr.bf16.mxu1 %v3157_v1  ;;  %2859 = vmatprep.mubr.msk.bf16.mxu1 %vm224_vm0, %v2530_v60  ;;  %v1166_v40 = vor.u32 %v1165_v27, %v1161_v50  ;;  %v2531_v60 = vcombine.low %v3385_v38, %v618_v34  ;;  %v3165_v38 = vld [vmem:[%s3707_s1 + $0x68] sm:$0xff]  }
  0x50   : > { %v2243_v29 = vrot.slane %v2241_v21, 1  ;;  %v3177_v50 = vld [vmem:[%s3707_s1 + $0x88] sm:$0xff]  }
  0x51   : > { %v3553_v59 = vsel %vm196_vm2, %v1166_v40, %v3536_v31 }
  0x52   : > { %2858 = vmatpush3.bf16.msra.mxu1 %v3157_v1  ;;  %v3546_v45 = vor.u32 %v2246_v30, %v2243_v29 }
  0x53   : > { %2863 = vmatprep.subr.bf16.mxu1 %v3162_v17 }
  0x54   : > { %2956 = vmatmul.mubr.msk.bf16.vlgmr.msra.gmra.mrb[0].mxu0 %vm224_vm0, %v1703_v57  ;;  %v3559_v1 = vsel %vm442_vm3, %v2239_v26, %v3546_v45  ;;  %v3164_v57 = vld [vmem:[%s3707_s1 + $0x130] sm:$0xff]  }
  0x55   : > { %2960 = vmatpush3.bf16.msra.mxu0 %v3156_v47  ;;  %2963 = vmatprep.mubr.msk.bf16.mxu0 %vm224_vm0, %v1801_v36  ;;  %v2659_v47 = vcombine.low %v1873_v44, %v3346_v7  ;;  %v3168_v7 = vld [vmem:[%s3707_s1 + $0x70] sm:$0xff]  }
  0x56   : > { %2961 = vmatprep.subr.bf16.mxu0 %v3161_v35 }
  0x57   : > { %v1882_v9 = vrot.slane %v2659_v47, 2 }
  0x59   : > { %2860 = vmatmul.mubr.msk.bf16.vlgmr.msra.gmra.mrb[0].mxu1 %vm224_vm0, %v2531_v60  ;;  %2962 = vmatpush3.bf16.msra.mxu0 %v3161_v35  ;;  %v1884_v12 = vsel %vm540_vm4, %v1882_v9, %v1883_v32 }
  0x5a   : > { %2864 = vmatpush3.bf16.msra.mxu1 %v3162_v17  ;;  %2967 = vmatprep.subr.bf16.mxu0 %v3164_v57  ;;  %v3171_v17 = vld [vmem:[%s3707_s1 + $0x78] sm:$0xff]  }
  0x5b   : > { %2865 = vmatprep.subr.bf16.mxu1 %v3165_v38  ;;  %2867 = vmatprep.mubr.msk.bf16.mxu1 %vm224_vm0, %v724_v4 }
  0x5e   : > { %2866 = vmatpush3.bf16.msra.mxu1 %v3165_v38 }
  0x5f   : > { %2871 = vmatprep.subr.bf16.mxu1 %v3168_v7 }
  0x60   : > { %2964 = vmatmul.mubr.msk.bf16.vlgmr.msra.gmra.mrb[0].mxu0 %vm224_vm0, %v1800_v19  ;;  %v3173_v19 = vld [vmem:[%s3707_s1 + $0x80] sm:$0xff]  }
  0x61   : > { %2968 = vmatpush3.bf16.msra.mxu0 %v3164_v57  ;;  %2971 = vmatprep.mubr.msk.bf16.mxu0 %vm224_vm0, %v1884_v12 }
  0x62   : > { %2969 = vmatprep.subr.bf16.mxu0 %v3167_v5 }
  0x65   : > { %2868 = vmatmul.mubr.msk.bf16.vlgmr.msra.gmra.mrb[0].mxu1 %vm224_vm0, %v727_v51  ;;  %2970 = vmatpush3.bf16.msra.mxu0 %v3167_v5 }
  0x66   : > { %2872 = vmatpush3.bf16.msra.mxu1 %v3168_v7  ;;  %2975 = vmatprep.subr.bf16.mxu0 %v3170_v16 }
  0x67   : > { %2873 = vmatprep.subr.bf16.mxu1 %v3171_v17  ;;  %2875 = vmatprep.mubr.msk.bf16.mxu1 %vm224_vm0, %v3413_v55  ;;  %v3176_v55 = vld [vmem:[%s3707_s1 + $0x150] sm:$0xff]  }
  0x6a   : > { %2874 = vmatpush3.bf16.msra.mxu1 %v3171_v17 }
  0x6b   : > { %2879 = vmatprep.subr.bf16.mxu1 %v3173_v19 }
  0x6c   : > { %2972 = vmatmul.mubr.msk.bf16.vlgmr.msra.gmra.mrb[0].mxu0 %vm224_vm0, %v1883_v32 }
  0x6d   : > { %2976 = vmatpush3.bf16.msra.mxu0 %v3170_v16  ;;  %2979 = vmatprep.mubr.msk.bf16.mxu0 %vm224_vm0, %v3446_v13  ;;  %v3181_v13 = vld [vmem:[%s3707_s1 + $0x90] sm:$0xff]  }
  0x6e   : > { %2977 = vmatprep.subr.bf16.mxu0 %v3172_v54 }
  0x71   : > { %2876 = vmatmul.mubr.msk.bf16.vlgmr.msra.gmra.mrb[0].mxu1 %vm224_vm0, %v809_v48  ;;  %2978 = vmatpush3.bf16.msra.mxu0 %v3172_v54  ;;  %v3183_v48 = vld [vmem:[%s3707_s1 + $0x160] sm:$0xff]  }
  0x72   : > { %2880 = vmatpush3.bf16.msra.mxu1 %v3173_v19  ;;  %2983 = vmatprep.subr.bf16.mxu0 %v3176_v55 }
  0x73   : > { %2881 = vmatprep.subr.bf16.mxu1 %v3177_v50  ;;  %2883 = vmatprep.mubr.msk.bf16.mxu1 %vm224_vm0, %v3486_v14  ;;  %v2066_v14 = vshrl.u32 %v3452_v20, 16  ;;  %v1172_v20 = vshrl.u32 %v3268_v8, 16 }
  0x75   : > { %v2068_v21 = vor.u32 %v2066_v14, %v3475_v39  ;;  %v3189_v39 = vld [vmem:[%s3707_s1 + $0xa8] sm:$0xff]   ;;  %v1174_v6 = vor.u32 %v1172_v20, %v3536_v31 }
  0x76   : > { %2882 = vmatpush3.bf16.msra.mxu1 %v3177_v50 }
  0x77   : > { %2887 = vmatprep.subr.bf16.mxu1 %v3181_v13 }
  0x78   : > { %2980 = vmatmul.mubr.msk.bf16.vlgmr.msra.gmra.mrb[0].mxu0 %vm224_vm0, %v2669_v61 }
  0x79   : > { %2984 = vmatpush3.bf16.msra.mxu0 %v3176_v55  ;;  %2987 = vmatprep.mubr.msk.bf16.mxu0 %vm224_vm0, %v3491_v53  ;;  %v3187_v53 = vld [vmem:[%s3707_s1 + $0xa0] sm:$0xff]  }
  0x7a   : > { %2985 = vmatprep.subr.bf16.mxu0 %v3180_v43 }
  0x7d   : > { %2884 = vmatmul.mubr.msk.bf16.vlgmr.msra.gmra.mrb[0].mxu1 %vm224_vm0, %v3473_v37  ;;  %2986 = vmatpush3.bf16.msra.mxu0 %v3180_v43  ;;  %v3188_v37 = vld [vmem:[%s3707_s1 + $0x170] sm:$0xff]  }
  0x7e   : > { %2888 = vmatpush3.bf16.msra.mxu1 %v3181_v13  ;;  %2991 = vmatprep.subr.bf16.mxu0 %v3183_v48 }
  0x7f   : > { %2889 = vmatprep.subr.bf16.mxu1 %v3184_v3  ;;  %2891 = vmatprep.mubr.msk.bf16.mxu1 %vm224_vm0, %v3503_v62  ;;  %v3192_v62 = vld [vmem:[%s3707_s1 + $0x178] sm:$0xff]  }
  0x82   : > { %2890 = vmatpush3.bf16.msra.mxu1 %v3184_v3 }
  0x83   : > { %2895 = vmatprep.subr.bf16.mxu1 %v3187_v53 }
  0x84   : > { %2988 = vmatmul.mubr.msk.bf16.vlgmr.msra.gmra.mrb[0].mxu0 %vm224_vm0, %v2068_v21 }
  0x85   : > { %2992 = vmatpush3.bf16.msra.mxu0 %v3183_v48  ;;  %2995 = vmatprep.mubr.msk.bf16.mxu0 %vm224_vm0, %v3496_v58  ;;  %v3193_v58 = vld [vmem:[%s3707_s1 + $0xb0] sm:$0xff]  }
  0x86   : > { %2993 = vmatprep.subr.bf16.mxu0 %v3186_v23 }
  0x89   : > { %2892 = vmatmul.mubr.msk.bf16.vlgmr.msra.gmra.mrb[0].mxu1 %vm224_vm0, %v989_v41  ;;  %2994 = vmatpush3.bf16.msra.mxu0 %v3186_v23  ;;  %v3196_v41 = vld [vmem:[%s3707_s1 + $0xb8] sm:$0xff]  }
  0x8a   : > { %2896 = vmatpush3.bf16.msra.mxu1 %v3187_v53  ;;  %2999 = vmatprep.subr.bf16.mxu0 %v3188_v37 }
  0x8b   : > { %2897 = vmatprep.subr.bf16.mxu1 %v3189_v39  ;;  %2899 = vmatprep.mubr.msk.bf16.mxu1 %vm224_vm0, %v3506_v56 }
  0x8e   : > { %2898 = vmatpush3.bf16.msra.mxu1 %v3189_v39 }
  0x8f   : > { %2903 = vmatprep.subr.bf16.mxu1 %v3193_v58 }
  0x90   : > { %2996 = vmatmul.mubr.msk.bf16.vlgmr.msra.gmra.mrb[0].mxu0 %vm224_vm0, %v2150_v46  ;;  %v3197_v46 = vld [vmem:[%s3707_s1 + $0x188] sm:$0xff]  }
  0x91   : > { %3000 = vmatpush3.bf16.msra.mxu0 %v3188_v37  ;;  %3003 = vmatprep.mubr.msk.bf16.mxu0 %vm224_vm0, %v3559_v1 }
  0x92   : > { %3001 = vmatprep.subr.bf16.mxu0 %v3192_v62 }
  0x95   : > { %2900 = vmatmul.mubr.msk.bf16.vlgmr.msra.gmra.mrb[0].mxu1 %vm224_vm0, %v2577_v2  ;;  %3002 = vmatpush3.bf16.msra.mxu0 %v3192_v62 }
  0x96   : > { %2904 = vmatpush3.bf16.msra.mxu1 %v3193_v58  ;;  %3007 = vmatprep.subr.bf16.mxu0 %v3195_v10 }
  0x97   : > { %2905 = vmatprep.subr.bf16.mxu1 %v3196_v41  ;;  %2907 = vmatprep.mubr.msk.bf16.mxu1 %vm224_vm0, %v3553_v59 }
  0x9a   : > { %2906 = vmatpush3.bf16.msra.mxu1 %v3196_v41 }
  0x9c   : > { %3004 = vmatmul.mubr.msk.bf16.vlgmr.msra.gmra.mrb[0].mxu0 %vm224_vm0, %v3546_v45 }
  0x9d   : > { %3008 = vmatpush3.bf16.msra.mxu0 %v3195_v10  ;;  %3011 = vmatprep.mubr.msk.bf16.mxu0 %vm224_vm0, %v3564_v18 }
  0x9e   : > { %3009 = vmatprep.subr.bf16.mxu0 %v3197_v46 }
  0xa1   : > { %2908 = vmatmul.mubr.msk.bf16.vlgmr.msra.gmra.mrb[0].mxu1 %vm224_vm0, %v1174_v6  ;;  %3010 = vmatpush3.bf16.msra.mxu0 %v3197_v46 }
  0xa8   : > { %3012 = vmatmul.mubr.msk.bf16.vlgmr.msra.gmra.mrb[0].mxu0 %vm224_vm0, %v2330_v42 }
 0x174   : > { %v2909_v8 = vpop.f32.mrb[0].mxu1 }
 0x175   : > { %v1227_v56 = vpop.f32.mrb[1].mxu1 }
 0x176   : > { %v2910_v63 = vpop.f32.mrb[2].mxu1 }
 0x177   : > { %v1230_v2 = vpop.f32.mrb[3].mxu1 }
 0x17b   : > { %v3013_v24 = vpop.f32.mrb[0].mxu0 }
 0x17c   : > { %v3015_v26 = vadd.f32 %v3013_v24, %v2909_v8  ;;  %v2384_v27 = vpop.f32.mrb[1].mxu0 }
 0x17d   : > { %v3016_v15 = vadd.f32 %v2384_v27, %v1227_v56  ;;  %v3014_v28 = vpop.f32.mrb[2].mxu0 }
 0x17e   : > { %v2412_v29 = vadd.f32 %v3015_v26, %v2710_v25  ;;  %v3017_v30 = vadd.f32 %v3014_v28, %v2910_v63  ;;  %v2387_v31 = vpop.f32.mrb[3].mxu0 }
 0x17f   : > { %v2410_v33 = vadd.f32 %v3016_v15, %v2710_v25  ;;  %v3018_v34 = vadd.f32 %v2387_v31, %v1230_v2 }
 0x180   : > { %2417 = vst.msk [vmem:[%s170_s28 + $0x10] sm:$0xff] %vm2414_vm5, %v2412_v29  ;;  %v2413_v35 = vadd.f32 %v3017_v30, %v2710_v25 }
 0x181   : > { %2415 = vst.msk [vmem:[%s170_s28] sm:$0xff] %vm2414_vm5, %v2410_v33  ;;  %v2411_v36 = vadd.f32 %v3018_v34, %v2710_v25 }
 0x182   : > { %2419 = vst.msk [vmem:[%s170_s28 + $0x18] sm:$0xf] %vm2418_vm6, %v2413_v35 }
 0x183   : > { %2416 = vst.msk [vmem:[%s170_s28 + $0x8] sm:$0xff] %vm2414_vm5, %v2411_v36 }
 0x184 PF: > { %s13_s12 = sadd.s32 1, %s3205_s12  }
 0x185   : > { %p10_p4 = scmp.ge.s32.totalorder %s13_s12, 4  }
 0x187   :  { %12 = sbr.rel (!%p10_p4) target bundleno = 1 (0x1), region = 86 }

// kernel: fwd.27
= control target key start
LH: loop header
LB: loop body
LE: loop exit
PB: predicated region body
PF: predicated region fallthrough
CT: control target
= control target key end

     0   :  { %s3973_s12 = smov 0   ;;  %s4512_s0 = inlined_call_operand.vmem [shape: bf16[2,64,64], index: 0, kind: input, shape index: {}]   ;;  %s4513_s1 = inlined_call_operand.vmem [shape: bf16[5,5,64,128], index: 1, kind: input, shape index: {}]   ;;  %s4514_s2 = inlined_call_operand.vmem [shape: f32[1,128], index: 2, kind: input, shape index: {}]   ;;  %s4515_s3 = inlined_call_operand.vmem [shape: f32[2,28,128], index: 3, kind: output, shape index: {}]  }
   0x1 LB: > { %s2873_s13 = sadd.s32 4294967295, %s3951_s12   ;;  %p2877_p0 = scmp.ge.s32.totalorder %s3951_s12, 1  ;;  %s3951_s12 = sphi %s3973_s12, %s13_s12  }
   0x2   : > { %p137_p1 = scmp.lt.s32.totalorder %s3951_s12, 3 }
   0x4   : > { %p138_p2 = pnand %p2877_p0, %p137_p1 }
   0x5   : > { %v3813_v0 = vld [vmem:[%s4513_s1 + $0x20] sm:$0xff] (!%p138_p2)   ;;  %p161_p3 = scmp.lt.s32.totalorder (!%p138_p2), %s2873_s13, 1  ;;  %v3815_v2 = vld [vmem:[%s4513_s1 + $0x28] sm:$0xff] (!%p138_p2)   ;;  %v3817_v4 = vld [vmem:[%s4513_s1 + $0x30] sm:$0xff] (!%p138_p2)   ;;  %vm204_vm0 = vsmask.f32 (!%p138_p2), 7424 }
   0x6   : > { %141 = sbr.rel (%p138_p2) target bundleno = 437 (0x1b5), region = 32  ;;  %v3814_v1 = vld [vmem:[%s4513_s1 + $0x180] sm:$0xff] (!%p138_p2)   ;;  %3409 = vmatprep.subr.bf16.mxu1 (!%p138_p2), %v3813_v0  ;;  %v3816_v3 = vld [vmem:[%s4513_s1 + $0x188] sm:$0xff] (!%p138_p2)   ;;  %v3818_v5 = vld [vmem:[%s4513_s1 + $0x190] sm:$0xff] (!%p138_p2)   ;;  %vm244_vm1 = vcmask (!%p138_p2), 523264   ;;  %vm394_vm2 = vcmask (!%p138_p2), 1046528  }
   0x7   : > { %3553 = vmatprep.subr.bf16.mxu0 (!%p138_p2), %v3814_v1  ;;  %3410 = vmatpush3.bf16.msra.mxu1 (!%p138_p2), %v3813_v0  ;;  %v3819_v6 = vld [vmem:[%s4513_s1 + $0x38] sm:$0xff] (!%p138_p2)   ;;  %v3824_v14 = vld [vmem:[%s4513_s1] sm:$0xff] (!%p138_p2)   ;;  %v3829_v34 = vld [vmem:[%s4513_s1 + $0x8] sm:$0xff] (!%p138_p2)   ;;  %vm494_vm3 = vsmask.f32 (!%p138_p2), 6400  ;;  %vm608_vm4 = vcmask (!%p138_p2), 1045504  }
   0x8   : > { %3554 = vmatpush3.bf16.msra.mxu0 (!%p138_p2), %v3814_v1  ;;  %3411 = vmatprep.subr.bf16.mxu1 (!%p138_p2), %v3815_v2  ;;  %v3820_v10 = vld [vmem:[%s4513_s1 + $0x198] sm:$0xff] (!%p138_p2)   ;;  %v3828_v27 = vld [vmem:[%s4513_s1 + $0x1a0] sm:$0xff] (!%p138_p2)   ;;  %v3830_v38 = vld [vmem:[%s4513_s1 + $0x1a8] sm:$0xff] (!%p138_p2)  }
   0x9   : > { %3555 = vmatprep.subr.bf16.mxu0 (!%p138_p2), %v3816_v3  ;;  %v3831_v43 = vld [vmem:[%s4513_s1 + $0x10] sm:$0xff] (!%p138_p2)   ;;  %v3833_v47 = vld [vmem:[%s4513_s1 + $0x18] sm:$0xff] (!%p138_p2)   ;;  %v3835_v52 = vld [vmem:[%s4513_s1 + $0x40] sm:$0xff] (!%p138_p2)  }
   0xa   : > { %v3832_v44 = vld [vmem:[%s4513_s1 + $0x1b0] sm:$0xff] (!%p138_p2)   ;;  %v3834_v50 = vld [vmem:[%s4513_s1 + $0x1b8] sm:$0xff] (!%p138_p2)   ;;  %v3836_v55 = vld [vmem:[%s4513_s1 + $0x1c0] sm:$0xff] (!%p138_p2)  }
   0xb   : > { %3412 = vmatpush3.bf16.msra.mxu1 (!%p138_p2), %v3815_v2  ;;  %v3838_v0 = vld [vmem:[%s4513_s1 + $0x48] sm:$0xff] (!%p138_p2)  }
   0xc   : > { %3556 = vmatpush3.bf16.msra.mxu0 (!%p138_p2), %v3816_v3  ;;  %3413 = vmatprep.subr.bf16.mxu1 (!%p138_p2), %v3817_v4  ;;  %v3839_v2 = vld [vmem:[%s4513_s1 + $0x1c8] sm:$0xff] (!%p138_p2)  }
   0xd   : > { %s4517_s13 = smov (!%p161_p3, %s2873_s13), 1  ;;  %3557 = vmatprep.subr.bf16.mxu0 %v3818_v5 }
   0xe   : > { %s3257_s24 = sshll.u32 %s4517_s13, 5 }
   0xf   : > { %s4007_s29 = scalar_lea.vmem %s4512_s0, %s3257_s24  ;;  %3414 = vmatpush3.bf16.msra.mxu1 %v3817_v4  ;;  %s170_s10 = scalar_lea.vmem %s4515_s3, %s3257_s24 }
  0x10   : > { %v172_v7 = vld [vmem:[%s4007_s29] sm:$0xf]  ;;  %v4014_v8 = vld [vmem:[%s4007_s29 + $0x4] sm:$0xf]  ;;  %v4017_v9 = vld [vmem:[%s4007_s29 + $0x8] sm:$0xf]  ;;  %3558 = vmatpush3.bf16.msra.mxu0 %v3818_v5  ;;  %3415 = vmatprep.subr.bf16.mxu1 %v3819_v6 }
  0x11   : > { %v184_v11 = vld [vmem:[%s4007_s29 + $0xc] sm:$0x7]  ;;  %v2890_v12 = vcombine.low %v172_v7, %v4014_v8  ;;  %v1224_v18 = vld [vmem:[%s4007_s29 + $0x10] sm:$0xf]  ;;  %v1328_v21 = vld [vmem:[%s4007_s29 + $0x14] sm:$0x7]  ;;  %3559 = vmatprep.subr.bf16.mxu0 %v3820_v10 }
  0x12   : > { %v4025_v13 = vcombine.low %v4017_v9, %v184_v11  ;;  %v4031_v17 = vld [vmem:[%s4007_s29 + $0xc] sm:$0xf]  ;;  %v1438_v22 = vld [vmem:[%s4007_s29 + $0x8] sm:$0xe]  ;;  %v4038_v24 = vcombine.low %v1224_v18, %v1328_v21  ;;  %v1537_v26 = vld [vmem:[%s4007_s29 + $0x14] sm:$0xf] }
  0x13   : > { %v206_v15 = vshrl.u32 %v2890_v12, 16  ;;  %v208_v16 = vshll.u32 %v2890_v12, 16  ;;  %v3065_v25 = vcombine.low %v1438_v22, %v4031_v17  ;;  %3416 = vmatpush3.bf16.msra.mxu1 %v3819_v6  ;;  %v4046_v33 = vcombine.low %v1224_v18, %v1537_v26  ;;  %v175_v54 = vld [vmem:[%s4007_s29 + $0xc] sm:$0x3]  ;;  %v381_v56 = vld [vmem:[%s4007_s29] sm:$0xe] }
  0x14   : > { %v213_v19 = vshll.u32 %v4025_v13, 16  ;;  %v217_v20 = vshrl.u32 %v4025_v13, 16  ;;  %v1452_v31 = vrot.slane %v4038_v24, 1  ;;  %3560 = vmatpush3.bf16.msra.mxu0 %v3820_v10  ;;  %3421 = vmatprep.subr.bf16.mxu1 %v3824_v14  ;;  %v481_v57 = vld [vmem:[%s4007_s29 + $0xc] sm:$0xf]  ;;  %v2913_v58 = vcombine.low %v381_v56, %v4014_v8  ;;  %v3840_v7 = vld [vmem:[%s4513_s1 + $0x50] sm:$0xff]  }
  0x15   : > { %v210_v23 = vrot.slane %v208_v16, 1  ;;  %v1451_v30 = vrot.slane %v3065_v25, 1  ;;  %v1551_v35 = vshrl.u32 %v3065_v25, 16  ;;  %3565 = vmatprep.subr.bf16.mxu0 %v3828_v27  ;;  %v1554_v39 = vshll.u32 %v3065_v25, 16  ;;  %v1650_v59 = vld [vmem:[%s4007_s29 + $0x8] sm:$0xc] }
  0x16   : > { %v215_v28 = vrot.slane %v213_v19, 1  ;;  %v1559_v42 = vshrl.u32 %v4046_v33, 16  ;;  %v1562_v45 = vshll.u32 %v4046_v33, 16  ;;  %v2898_v60 = vcombine.low %v4017_v9, %v175_v54  ;;  %v3847_v21 = vld [vmem:[%s4513_s1 + $0x1e0] sm:$0xff]   ;;  %v1749_v25 = vld [vmem:[%s4007_s29 + $0xc] sm:$0xf] }
  0x17   : > { %v211_v29 = vor.u32 %v210_v23, %v206_v15  ;;  %v1453_v37 = vsel %vm394_vm2, %v1451_v30, %v1452_v31  ;;  %v1553_v40 = vrot.slane %v1551_v35, 1  ;;  %v1556_v41 = vrot.slane %v1554_v39, 2  ;;  %v3843_v15 = vld [vmem:[%s4513_s1 + $0x1d8] sm:$0xff]   ;;  %v4129_v26 = vld [vmem:[%s4007_s29 + $0x10] sm:$0xf] }
  0x18   : > { %v219_v32 = vor.u32 %v217_v20, %v215_v28  ;;  %3561 = vmatprep.mubr.msk.bf16.mxu0 %vm244_vm1, %v1453_v37  ;;  %v1561_v46 = vrot.slane %v1559_v42, 1  ;;  %v1564_v49 = vrot.slane %v1562_v45, 2  ;;  %v396_v61 = vrot.slane %v4025_v13, 1  ;;  %v3845_v20 = vld [vmem:[%s4513_s1 + $0x60] sm:$0xff]   ;;  %v3850_v30 = vld [vmem:[%s4513_s1 + $0x70] sm:$0xff]   ;;  %v3852_v37 = vld [vmem:[%s4513_s1 + $0x78] sm:$0xff]  }
  0x19   : > { %v216_v36 = vsel %vm204_vm0, %v211_v29, %v215_v28  ;;  %3562 = vmatmul.mubr.msk.bf16.vlgmr.msra.gmra.mrb[0].mxu0 %vm244_vm1, %v1452_v31  ;;  %v1557_v48 = vor.u32 %v1556_v41, %v1553_v40  ;;  %v3095_v62 = vcombine.low %v1650_v59, %v4031_v17  ;;  %v1664_v63 = vrot.slane %v4046_v33, 2  ;;  %v3849_v28 = vld [vmem:[%s4513_s1 + $0x1e8] sm:$0xff]   ;;  %v1855_v33 = vld [vmem:[%s4007_s29 + $0x18] sm:$0x7]  ;;  %v3854_v40 = vld [vmem:[%s4513_s1 + $0x80] sm:$0xff]  }
  0x1a   : > { %3417 = vmatprep.mubr.msk.bf16.mxu1 %vm244_vm1, %v216_v36  ;;  %3566 = vmatpush3.bf16.msra.mxu0 %v3828_v27  ;;  %v1565_v51 = vor.u32 %v1564_v49, %v1561_v46  ;;  %v395_v1 = vrot.slane %v2913_v58, 1  ;;  %v4099_v4 = vcombine.low %v4017_v9, %v481_v57  ;;  %v3841_v9 = vld [vmem:[%s4513_s1 + $0x1d0] sm:$0xff]   ;;  %v499_v13 = vshll.u32 %v2913_v58, 16  ;;  %v3848_v27 = vld [vmem:[%s4513_s1 + $0x68] sm:$0xff]   ;;  %v3853_v39 = vld [vmem:[%s4513_s1 + $0x1f8] sm:$0xff]  }
  0x1b   : > { %3418 = vmatmul.mubr.msk.bf16.vlgmr.msra.gmra.mrb[0].mxu1 %vm244_vm1, %v219_v32  ;;  %3567 = vmatprep.subr.bf16.mxu0 %v3830_v38  ;;  %v1663_v3 = vrot.slane %v3095_v62, 2  ;;  %v3110_v29 = vcombine.low %v1749_v25, %v4129_v26  ;;  %v3851_v32 = vld [vmem:[%s4513_s1 + $0x1f0] sm:$0xff]   ;;  %v1752_v45 = vld [vmem:[%s4007_s29 + $0x18] sm:$0x3]  ;;  %v3857_v46 = vld [vmem:[%s4513_s1 + $0x200] sm:$0xff]  }
  0x1c   : > { %3422 = vmatpush3.bf16.msra.mxu1 %v3824_v14  ;;  %3429 = vmatprep.mubr.msk.bf16.mxu1 %vm244_vm1, %v2890_v12  ;;  %v1566_v53 = vsel %vm494_vm3, %v1557_v48, %v1565_v51  ;;  %v397_v5 = vsel %vm394_vm2, %v395_v1, %v396_v61  ;;  %v504_v10 = vshrl.u32 %v4099_v4, 16  ;;  %v507_v11 = vshll.u32 %v4099_v4, 16  ;;  %v3842_v14 = vld [vmem:[%s4513_s1 + $0x58] sm:$0xff]   ;;  %v3861_v56 = vld [vmem:[%s4513_s1 + $0x90] sm:$0xff]   ;;  %v3866_v62 = vld [vmem:[%s4513_s1 + $0xa0] sm:$0xff]  }
  0x1d   : > { %3423 = vmatprep.subr.bf16.mxu1 %v3829_v34  ;;  %3573 = vmatprep.mubr.msk.bf16.mxu0 %vm244_vm1, %v1566_v53  ;;  %v1665_v6 = vsel %vm608_vm4, %v1663_v3, %v1664_v63  ;;  %v496_v12 = vshrl.u32 %v2913_v58, 16  ;;  %v501_v19 = vrot.slane %v499_v13, 2  ;;  %v1870_v36 = vshll.u32 %v3110_v29, 16  ;;  %v3862_v57 = vld [vmem:[%s4513_s1 + $0x210] sm:$0xff]   ;;  %v3863_v59 = vld [vmem:[%s4513_s1 + $0x98] sm:$0xff]  }
  0x1e   : > { %3568 = vmatpush3.bf16.msra.mxu0 %v3830_v38  ;;  %v506_v16 = vrot.slane %v504_v10, 1  ;;  %v509_v17 = vrot.slane %v507_v11, 2  ;;  %v595_v38 = vld [vmem:[%s4007_s29] sm:$0xc]  ;;  %v1868_v42 = vshrl.u32 %v3110_v29, 16 }
  0x1f   : > { %3569 = vmatprep.subr.bf16.mxu0 %v3832_v44  ;;  %v498_v18 = vrot.slane %v496_v12, 1  ;;  %v2943_v41 = vcombine.low %v595_v38, %v4014_v8  ;;  %v801_v11 = vld [vmem:[%s4007_s29 + $0x10] sm:$0x7] }
  0x20   : > { %3424 = vmatpush3.bf16.msra.mxu1 %v3829_v34  ;;  %v510_v23 = vor.u32 %v509_v17, %v506_v16  ;;  %v4151_v34 = vld [vmem:[%s4007_s29 + $0x14] sm:$0xf]  ;;  %v4236_v17 = vld [vmem:[%s4007_s29 + $0xc] sm:$0xf] }
  0x21   : > { %3425 = vmatprep.subr.bf16.mxu1 %v3831_v43  ;;  %v502_v22 = vor.u32 %v501_v19, %v498_v18  ;;  %v4154_v35 = vcombine.low %v4151_v34, %v1855_v33  ;;  %v3111_v48 = vcombine.low %v4151_v34, %v1752_v45  ;;  %v609_v49 = vrot.slane %v2943_v41, 2  ;;  %v3872_v16 = vld [vmem:[%s4513_s1 + $0x230] sm:$0xff]  }
  0x22   : > { %3570 = vmatpush3.bf16.msra.mxu0 %v3832_v44  ;;  %v4241_v18 = vcombine.low %v4236_v17, %v801_v11 }
  0x23   : > { %3571 = vmatprep.subr.bf16.mxu0 %v3834_v50  ;;  %v511_v31 = vsel %vm494_vm3, %v502_v22, %v510_v23  ;;  %v1875_v44 = vshll.u32 %v4154_v35, 16  ;;  %v1979_v1 = vrot.slane %v4154_v35, 1 }
  0x24   : > { %3426 = vmatpush3.bf16.msra.mxu1 %v3831_v43  ;;  %v1872_v43 = vrot.slane %v1870_v36, 1  ;;  %v3878_v36 = vld [vmem:[%s4513_s1 + $0x240] sm:$0xff]  }
  0x25   : > { %3427 = vmatprep.subr.bf16.mxu1 %v3833_v47 }
  0x26   : > { %3572 = vmatpush3.bf16.msra.mxu0 %v3834_v50  ;;  %v1873_v8 = vor.u32 %v1872_v43, %v1868_v42  ;;  %v1877_v50 = vrot.slane %v1875_v44, 1  ;;  %v3880_v42 = vld [vmem:[%s4513_s1 + $0xc8] sm:$0xff]  }
  0x27   : > { %3577 = vmatprep.subr.bf16.mxu0 %v3836_v55  ;;  %v3881_v43 = vld [vmem:[%s4513_s1 + $0x248] sm:$0xff]  }
  0x28   : > { %3428 = vmatpush3.bf16.msra.mxu1 %v3833_v47  ;;  %v610_v47 = vrot.slane %v4099_v4, 2  ;;  %v1878_v54 = vsel %vm204_vm0, %v1873_v8, %v1877_v50  ;;  %v3869_v4 = vld [vmem:[%s4513_s1 + $0xa8] sm:$0xff]   ;;  %v3885_v8 = vld [vmem:[%s4513_s1 + $0x258] sm:$0xff]  }
  0x29   : > { %3433 = vmatprep.subr.bf16.mxu1 %v3835_v52  ;;  %3574 = vmatmul.mubr.msk.bf16.vlgmr.msra.gmra.mrb[0].mxu0 %vm244_vm1, %v1565_v51  ;;  %v3859_v51 = vld [vmem:[%s4513_s1 + $0x88] sm:$0xff]  }
  0x2a   : > { %3578 = vmatpush3.bf16.msra.mxu0 %v3836_v55  ;;  %3585 = vmatprep.mubr.msk.bf16.mxu0 %vm244_vm1, %v1665_v6  ;;  %v611_v53 = vsel %vm608_vm4, %v609_v49, %v610_v47  ;;  %v1965_v55 = vld [vmem:[%s4007_s29 + $0xc] sm:$0xe]  ;;  %v2064_v6 = vld [vmem:[%s4007_s29 + $0x18] sm:$0xf] }
  0x2b   : > { %3430 = vmatmul.mubr.msk.bf16.vlgmr.msra.gmra.mrb[0].mxu1 %vm244_vm1, %v2898_v60  ;;  %3579 = vmatprep.subr.bf16.mxu0 %v3839_v2  ;;  %v3141_v58 = vcombine.low %v1965_v55, %v4129_v26  ;;  %v3864_v60 = vld [vmem:[%s4513_s1 + $0x218] sm:$0xff]   ;;  %v4227_v12 = vcombine.low %v4151_v34, %v2064_v6  ;;  %v698_v34 = vld [vmem:[%s4007_s29 + $0x10] sm:$0x3] }
  0x2c   : > { %3434 = vmatpush3.bf16.msra.mxu1 %v3835_v52  ;;  %3441 = vmatprep.mubr.msk.bf16.mxu1 %vm244_vm1, %v397_v5  ;;  %v3860_v52 = vld [vmem:[%s4513_s1 + $0x208] sm:$0xff]   ;;  %v2959_v38 = vcombine.low %v4236_v17, %v698_v34  ;;  %v3884_v49 = vld [vmem:[%s4513_s1 + $0xd8] sm:$0xff]  }
  0x2d   : > { %3435 = vmatprep.subr.bf16.mxu1 %v3838_v0  ;;  %v4213_v5 = vld [vmem:[%s4007_s29 + $0x8] sm:$0xf]  ;;  %v2078_v13 = vshrl.u32 %v3141_v58, 16  ;;  %v2089_v22 = vshll.u32 %v4227_v12, 16  ;;  %v3903_v34 = vld [vmem:[%s4513_s1 + $0x118] sm:$0xff]  }
  0x2e   : > { %3580 = vmatpush3.bf16.msra.mxu0 %v3839_v2  ;;  %v695_v2 = vld [vmem:[%s4007_s29 + $0x4] sm:$0xf] }
  0x2f   : > { %3581 = vmatprep.subr.bf16.mxu0 %v3841_v9  ;;  %v2091_v33 = vrot.slane %v2089_v22, 2  ;;  %v3900_v22 = vld [vmem:[%s4513_s1 + $0x288] sm:$0xff]  }
  0x30   : > { %3436 = vmatpush3.bf16.msra.mxu1 %v3838_v0  ;;  %v3868_v0 = vld [vmem:[%s4513_s1 + $0x220] sm:$0xff]  }
  0x31   : > { %3437 = vmatprep.subr.bf16.mxu1 %v3840_v7 }
  0x32   : > { %3582 = vmatpush3.bf16.msra.mxu0 %v3841_v9  ;;  %v2958_v9 = vcombine.low %v695_v2, %v4213_v5  ;;  %v3893_v2 = vld [vmem:[%s4513_s1 + $0x270] sm:$0xff]  }
  0x33   : > { %3583 = vmatprep.subr.bf16.mxu0 %v3843_v15 }
  0x34   : > { %3438 = vmatpush3.bf16.msra.mxu1 %v3840_v7  ;;  %v3870_v7 = vld [vmem:[%s4513_s1 + $0x228] sm:$0xff]   ;;  %v816_v19 = vshll.u32 %v2958_v9, 16 }
  0x35   : > { %3439 = vmatprep.subr.bf16.mxu1 %v3842_v14 }
  0x36   : > { %3584 = vmatpush3.bf16.msra.mxu0 %v3843_v15  ;;  %v3871_v15 = vld [vmem:[%s4513_s1 + $0xb0] sm:$0xff]  }
  0x37   : > { %3589 = vmatprep.subr.bf16.mxu0 %v3847_v21 }
  0x38   : > { %3440 = vmatpush3.bf16.msra.mxu1 %v3842_v14  ;;  %v2081_v14 = vshll.u32 %v3141_v58, 16 }
  0x39   : > { %3445 = vmatprep.subr.bf16.mxu1 %v3845_v20  ;;  %3586 = vmatmul.mubr.msk.bf16.vlgmr.msra.gmra.mrb[0].mxu0 %vm244_vm1, %v1664_v63  ;;  %v1978_v63 = vrot.slane %v3141_v58, 1 }
  0x3a   : > { %3590 = vmatpush3.bf16.msra.mxu0 %v3847_v21  ;;  %3597 = vmatprep.mubr.msk.bf16.mxu0 %vm244_vm1, %v3110_v29  ;;  %v2086_v21 = vshrl.u32 %v4227_v12, 16  ;;  %v2083_v25 = vrot.slane %v2081_v14, 2  ;;  %v818_v29 = vrot.slane %v816_v19, 1  ;;  %v2276_v19 = vld [vmem:[%s4007_s29 + $0x10] sm:$0xf] }
  0x3b   : > { %3442 = vmatmul.mubr.msk.bf16.vlgmr.msra.gmra.mrb[0].mxu1 %vm244_vm1, %v396_v61  ;;  %3591 = vmatprep.subr.bf16.mxu0 %v3849_v28  ;;  %v1879_v61 = vshrl.u32 %v4154_v35, 16  ;;  %v1980_v10 = vsel %vm394_vm2, %v1978_v63, %v1979_v1  ;;  %v911_v35 = vld [vmem:[%s4007_s29 + $0x4] sm:$0xe] }
  0x3c   : > { %3446 = vmatpush3.bf16.msra.mxu1 %v3845_v20  ;;  %3453 = vmatprep.mubr.msk.bf16.mxu1 %vm244_vm1, %v511_v31  ;;  %v2080_v20 = vrot.slane %v2078_v13, 1  ;;  %v3877_v31 = vld [vmem:[%s4513_s1 + $0xc0] sm:$0xff]  }
  0x3d   : > { %3447 = vmatprep.subr.bf16.mxu1 %v3848_v27  ;;  %v1881_v3 = vor.u32 %v1879_v61, %v1877_v50  ;;  %v2989_v50 = vcombine.low %v911_v35, %v4213_v5  ;;  %v3891_v61 = vld [vmem:[%s4513_s1 + $0x268] sm:$0xff]  }
  0x3e   : > { %3592 = vmatpush3.bf16.msra.mxu0 %v3849_v28  ;;  %v814_v28 = vshrl.u32 %v2958_v9, 16  ;;  %v3911_v35 = vld [vmem:[%s4513_s1 + $0x128] sm:$0xff]  }
  0x3f   : > { %3593 = vmatprep.subr.bf16.mxu0 %v3851_v32  ;;  %v924_v55 = vrot.slane %v2989_v50, 1 }
  0x40   : > { %3448 = vmatpush3.bf16.msra.mxu1 %v3848_v27  ;;  %v3874_v27 = vld [vmem:[%s4513_s1 + $0x238] sm:$0xff]  }
  0x41   : > { %3449 = vmatprep.subr.bf16.mxu1 %v3850_v30 }
  0x42   : > { %3594 = vmatpush3.bf16.msra.mxu0 %v3851_v32  ;;  %v2088_v32 = vrot.slane %v2086_v21, 1  ;;  %v3899_v21 = vld [vmem:[%s4513_s1 + $0x108] sm:$0xff]  }
  0x43   : > { %3595 = vmatprep.subr.bf16.mxu0 %v3853_v39 }
  0x44   : > { %3450 = vmatpush3.bf16.msra.mxu1 %v3850_v30  ;;  %v821_v30 = vshll.u32 %v4241_v18, 16  ;;  %v2092_v41 = vor.u32 %v2091_v33, %v2088_v32  ;;  %v1123_v33 = vld [vmem:[%s4007_s29 + $0x4] sm:$0xc] }
  0x45   : > { %3451 = vmatprep.subr.bf16.mxu1 %v3852_v37 }
  0x46   : > { %3596 = vmatpush3.bf16.msra.mxu0 %v3853_v39  ;;  %v819_v39 = vor.u32 %v818_v29, %v814_v28  ;;  %v3901_v28 = vld [vmem:[%s4513_s1 + $0x110] sm:$0xff]  }
  0x47   : > { %3601 = vmatprep.subr.bf16.mxu0 %v3857_v46  ;;  %v3902_v29 = vld [vmem:[%s4513_s1 + $0x290] sm:$0xff]  }
  0x48   : > { %3452 = vmatpush3.bf16.msra.mxu1 %v3852_v37  ;;  %v2084_v37 = vor.u32 %v2083_v25, %v2080_v20  ;;  %v4337_v20 = vld [vmem:[%s4007_s29 + $0x14] sm:$0xf] }
  0x49   : > { %3457 = vmatprep.subr.bf16.mxu1 %v3854_v40  ;;  %3598 = vmatmul.mubr.msk.bf16.vlgmr.msra.gmra.mrb[0].mxu0 %vm244_vm1, %v3111_v48  ;;  %v2177_v48 = vld [vmem:[%s4007_s29 + $0xc] sm:$0xc] }
  0x4a   : > { %3602 = vmatpush3.bf16.msra.mxu0 %v3857_v46  ;;  %3609 = vmatprep.mubr.msk.bf16.mxu0 %vm244_vm1, %v1878_v54  ;;  %v2093_v45 = vsel %vm494_vm3, %v2084_v37, %v2092_v41  ;;  %v3882_v46 = vld [vmem:[%s4513_s1 + $0xd0] sm:$0xff]   ;;  %v3889_v54 = vld [vmem:[%s4513_s1 + $0x260] sm:$0xff]   ;;  %v3019_v37 = vcombine.low %v1123_v33, %v4213_v5 }
  0x4b   : > { %3454 = vmatmul.mubr.msk.bf16.vlgmr.msra.gmra.mrb[0].mxu1 %vm244_vm1, %v510_v23  ;;  %3603 = vmatprep.subr.bf16.mxu0 %v3860_v52  ;;  %v3873_v23 = vld [vmem:[%s4513_s1 + $0xb8] sm:$0xff]  }
  0x4c   : > { %3458 = vmatpush3.bf16.msra.mxu1 %v3854_v40  ;;  %3465 = vmatprep.mubr.msk.bf16.mxu1 %vm244_vm1, %v611_v53  ;;  %v823_v40 = vrot.slane %v821_v30, 1  ;;  %v3887_v53 = vld [vmem:[%s4513_s1 + $0xe0] sm:$0xff]   ;;  %v4359_v30 = vld [vmem:[%s4007_s29 + $0x18] sm:$0xf] }
  0x4d   : > { %3459 = vmatprep.subr.bf16.mxu1 %v3859_v51 }
  0x4e   : > { %3604 = vmatpush3.bf16.msra.mxu0 %v3860_v52  ;;  %v824_v44 = vsel %vm204_vm0, %v819_v39, %v823_v40  ;;  %v3171_v52 = vcombine.low %v2177_v48, %v4129_v26  ;;  %v3890_v26 = vld [vmem:[%s4513_s1 + $0xe8] sm:$0xff]  }
  0x4f   : > { %3605 = vmatprep.subr.bf16.mxu0 %v3862_v57  ;;  %v3912_v48 = vld [vmem:[%s4513_s1 + $0x2a8] sm:$0xff]  }
  0x50   : > { %3460 = vmatpush3.bf16.msra.mxu1 %v3859_v51  ;;  %v825_v51 = vshrl.u32 %v4241_v18, 16  ;;  %v2190_v58 = vrot.slane %v3171_v52, 2  ;;  %v2492_v52 = vld [vmem:[%s4007_s29 + $0x10] sm:$0xe] }
  0x51   : > { %3461 = vmatprep.subr.bf16.mxu1 %v3861_v56 }
  0x52   : > { %3606 = vmatpush3.bf16.msra.mxu0 %v3862_v57  ;;  %v827_v57 = vor.u32 %v825_v51, %v823_v40  ;;  %v3914_v51 = vld [vmem:[%s4513_s1 + $0x2b0] sm:$0xff]  }
  0x53   : > { %3607 = vmatprep.subr.bf16.mxu0 %v3864_v60 }
  0x54   : > { %3462 = vmatpush3.bf16.msra.mxu1 %v3861_v56  ;;  %v925_v56 = vrot.slane %v4241_v18, 1 }
  0x55   : > { %3463 = vmatprep.subr.bf16.mxu1 %v3863_v59 }
  0x56   : > { %3608 = vmatpush3.bf16.msra.mxu0 %v3864_v60  ;;  %v1010_v60 = vld [vmem:[%s4007_s29 + $0x10] sm:$0xf] }
  0x57   : > { %3613 = vmatprep.subr.bf16.mxu0 %v3868_v0 }
  0x58   : > { %3464 = vmatpush3.bf16.msra.mxu1 %v3863_v59  ;;  %v2191_v59 = vrot.slane %v4227_v12, 2 }
  0x59   : > { %3469 = vmatprep.subr.bf16.mxu1 %v3866_v62  ;;  %3610 = vmatmul.mubr.msk.bf16.vlgmr.msra.gmra.mrb[0].mxu0 %vm244_vm1, %v1881_v3  ;;  %v1024_v3 = vshrl.u32 %v2989_v50, 16 }
  0x5a   : > { %3614 = vmatpush3.bf16.msra.mxu0 %v3868_v0  ;;  %3621 = vmatprep.mubr.msk.bf16.mxu0 %vm244_vm1, %v1980_v10  ;;  %v2192_v63 = vsel %vm608_vm4, %v2190_v58, %v2191_v59  ;;  %v4311_v0 = vcombine.low %v4236_v17, %v1010_v60  ;;  %v3895_v10 = vld [vmem:[%s4513_s1 + $0x278] sm:$0xff]  }
  0x5b   : > { %3466 = vmatmul.mubr.msk.bf16.vlgmr.msra.gmra.mrb[0].mxu1 %vm244_vm1, %v610_v47  ;;  %3615 = vmatprep.subr.bf16.mxu0 %v3870_v7  ;;  %v3883_v47 = vld [vmem:[%s4513_s1 + $0x250] sm:$0xff]   ;;  %v1026_v11 = vrot.slane %v1024_v3, 1 }
  0x5c   : > { %3470 = vmatpush3.bf16.msra.mxu1 %v3866_v62  ;;  %3477 = vmatprep.mubr.msk.bf16.mxu1 %vm244_vm1, %v2958_v9  ;;  %v926_v62 = vsel %vm394_vm2, %v924_v55, %v925_v56  ;;  %v1032_v6 = vshrl.u32 %v4311_v0, 16  ;;  %v3894_v9 = vld [vmem:[%s4513_s1 + $0xf8] sm:$0xff]   ;;  %v3217_v55 = vcombine.low %v2492_v52, %v4337_v20 }
  0x5d   : > { %3471 = vmatprep.subr.bf16.mxu1 %v3869_v4 }
  0x5e   : > { %3616 = vmatpush3.bf16.msra.mxu0 %v3870_v7  ;;  %v1035_v7 = vshll.u32 %v4311_v0, 16  ;;  %v1034_v13 = vrot.slane %v1032_v6, 1  ;;  %v2505_v60 = vrot.slane %v3217_v55, 1  ;;  %v3923_v6 = vld [vmem:[%s4513_s1 + $0x150] sm:$0xff]  }
  0x5f   : > { %3617 = vmatprep.subr.bf16.mxu0 %v3872_v16 }
  0x60   : > { %3472 = vmatpush3.bf16.msra.mxu1 %v3869_v4  ;;  %v1027_v4 = vshll.u32 %v2989_v50, 16  ;;  %v1037_v14 = vrot.slane %v1035_v7, 2  ;;  %v3913_v50 = vld [vmem:[%s4513_s1 + $0x130] sm:$0xff]  }
  0x61   : > { %3473 = vmatprep.subr.bf16.mxu1 %v3871_v15  ;;  %v3924_v7 = vld [vmem:[%s4513_s1 + $0x2d0] sm:$0xff]  }
  0x62   : > { %3618 = vmatpush3.bf16.msra.mxu0 %v3872_v16  ;;  %v1029_v12 = vrot.slane %v1027_v4, 2  ;;  %v3898_v16 = vld [vmem:[%s4513_s1 + $0x280] sm:$0xff]   ;;  %v1038_v18 = vor.u32 %v1037_v14, %v1034_v13  ;;  %v3925_v14 = vld [vmem:[%s4513_s1 + $0x158] sm:$0xff]  }
  0x63   : > { %3619 = vmatprep.subr.bf16.mxu0 %v3874_v27 }
  0x64   : > { %3474 = vmatpush3.bf16.msra.mxu1 %v3871_v15  ;;  %v3896_v15 = vld [vmem:[%s4513_s1 + $0x100] sm:$0xff]   ;;  %v1030_v17 = vor.u32 %v1029_v12, %v1026_v11 }
  0x65   : > { %3475 = vmatprep.subr.bf16.mxu1 %v3873_v23 }
  0x66   : > { %3620 = vmatpush3.bf16.msra.mxu0 %v3874_v27  ;;  %v1039_v25 = vsel %vm494_vm3, %v1030_v17, %v1038_v18  ;;  %v2382_v27 = vld [vmem:[%s4007_s29 + $0x1c] sm:$0x7] }
  0x67   : > { %3625 = vmatprep.subr.bf16.mxu0 %v3878_v36 }
  0x68   : > { %3476 = vmatpush3.bf16.msra.mxu1 %v3873_v23  ;;  %v3186_v23 = vcombine.low %v2276_v19, %v4337_v20 }
  0x69   : > { %3481 = vmatprep.subr.bf16.mxu1 %v3877_v31  ;;  %3622 = vmatmul.mubr.msk.bf16.vlgmr.msra.gmra.mrb[0].mxu0 %vm244_vm1, %v1979_v1  ;;  %v3892_v1 = vld [vmem:[%s4513_s1 + $0xf0] sm:$0xff]  }
  0x6a   : > { %3626 = vmatpush3.bf16.msra.mxu0 %v3878_v36  ;;  %3633 = vmatprep.mubr.msk.bf16.mxu0 %vm244_vm1, %v2093_v45  ;;  %v2397_v32 = vshll.u32 %v3186_v23, 16  ;;  %v3904_v36 = vld [vmem:[%s4513_s1 + $0x298] sm:$0xff]   ;;  %v1136_v45 = vrot.slane %v3019_v37, 2  ;;  %v3932_v37 = vld [vmem:[%s4513_s1 + $0x2e8] sm:$0xff]  }
  0x6b   : > { %3478 = vmatmul.mubr.msk.bf16.vlgmr.msra.gmra.mrb[0].mxu1 %vm244_vm1, %v2959_v38  ;;  %3627 = vmatprep.subr.bf16.mxu0 %v3881_v43  ;;  %v2395_v38 = vshrl.u32 %v3186_v23, 16 }
  0x6c   : > { %3482 = vmatpush3.bf16.msra.mxu1 %v3877_v31  ;;  %3489 = vmatprep.mubr.msk.bf16.mxu1 %vm244_vm1, %v824_v44  ;;  %v4362_v31 = vcombine.low %v4359_v30, %v2382_v27  ;;  %v2399_v39 = vrot.slane %v2397_v32, 1  ;;  %v1137_v44 = vrot.slane %v4311_v0, 2  ;;  %v3922_v0 = vld [vmem:[%s4513_s1 + $0x2c8] sm:$0xff]   ;;  %v3928_v27 = vld [vmem:[%s4513_s1 + $0x160] sm:$0xff]  }
  0x6d   : > { %3483 = vmatprep.subr.bf16.mxu1 %v3880_v42 }
  0x6e   : > { %3628 = vmatpush3.bf16.msra.mxu0 %v3881_v43  ;;  %v2402_v40 = vshll.u32 %v4362_v31, 16  ;;  %v3909_v43 = vld [vmem:[%s4513_s1 + $0x2a0] sm:$0xff]  }
  0x6f   : > { %3629 = vmatprep.subr.bf16.mxu0 %v3883_v47 }
  0x70   : > { %3484 = vmatpush3.bf16.msra.mxu1 %v3880_v42  ;;  %v3906_v42 = vld [vmem:[%s4513_s1 + $0x120] sm:$0xff]  }
  0x71   : > { %3485 = vmatprep.subr.bf16.mxu1 %v3882_v46 }
  0x72   : > { %3630 = vmatpush3.bf16.msra.mxu0 %v3883_v47  ;;  %v2404_v47 = vrot.slane %v2402_v40, 1  ;;  %v3933_v40 = vld [vmem:[%s4513_s1 + $0x170] sm:$0xff]  }
  0x73   : > { %3631 = vmatprep.subr.bf16.mxu0 %v3885_v8 }
  0x74   : > { %3486 = vmatpush3.bf16.msra.mxu1 %v3882_v46  ;;  %v2400_v46 = vor.u32 %v2399_v39, %v2395_v38 }
  0x75   : > { %3487 = vmatprep.subr.bf16.mxu1 %v3884_v49 }
  0x76   : > { %3632 = vmatpush3.bf16.msra.mxu0 %v3885_v8  ;;  %v2405_v8 = vsel %vm204_vm0, %v2400_v46, %v2404_v47  ;;  %v3938_v46 = vld [vmem:[%s4513_s1 + $0x300] sm:$0xff]  }
  0x77   : > { %3637 = vmatprep.subr.bf16.mxu0 %v3889_v54 }
  0x78   : > { %3488 = vmatpush3.bf16.msra.mxu1 %v3884_v49  ;;  %v1138_v49 = vsel %vm608_vm4, %v1136_v45, %v1137_v44  ;;  %v1352_v45 = vshrl.u32 %v4038_v24, 16 }
  0x79   : > { %3493 = vmatprep.subr.bf16.mxu1 %v3887_v53  ;;  %3634 = vmatmul.mubr.msk.bf16.vlgmr.msra.gmra.mrb[0].mxu0 %vm244_vm1, %v2092_v41  ;;  %v2279_v41 = vld [vmem:[%s4007_s29 + $0x1c] sm:$0x3] }
  0x7a   : > { %3638 = vmatpush3.bf16.msra.mxu0 %v3889_v54  ;;  %3645 = vmatprep.mubr.msk.bf16.mxu0 %vm244_vm1, %v2192_v63  ;;  %v3187_v5 = vcombine.low %v4359_v30, %v2279_v41  ;;  %v3916_v54 = vld [vmem:[%s4513_s1 + $0x2b8] sm:$0xff]   ;;  %v3921_v63 = vld [vmem:[%s4513_s1 + $0x148] sm:$0xff]   ;;  %v3934_v41 = vld [vmem:[%s4513_s1 + $0x2f0] sm:$0xff]  }
  0x7b   : > { %3490 = vmatmul.mubr.msk.bf16.vlgmr.msra.gmra.mrb[0].mxu1 %vm244_vm1, %v827_v57  ;;  %3639 = vmatprep.subr.bf16.mxu0 %v3891_v61  ;;  %v3918_v57 = vld [vmem:[%s4513_s1 + $0x140] sm:$0xff]  }
  0x7c   : > { %3494 = vmatpush3.bf16.msra.mxu1 %v3887_v53  ;;  %3501 = vmatprep.mubr.msk.bf16.mxu1 %vm244_vm1, %v926_v62  ;;  %v3915_v53 = vld [vmem:[%s4513_s1 + $0x138] sm:$0xff]  }
  0x7d   : > { %3495 = vmatprep.subr.bf16.mxu1 %v3890_v26  ;;  %v2591_v62 = vld [vmem:[%s4007_s29 + $0x1c] sm:$0xf] }
  0x7e   : > { %3640 = vmatpush3.bf16.msra.mxu0 %v3891_v61  ;;  %v2506_v61 = vrot.slane %v4362_v31, 1  ;;  %v4429_v4 = vcombine.low %v4359_v30, %v2591_v62  ;;  %v3944_v30 = vld [vmem:[%s4007_s29 + $0x10] sm:$0xf] }
  0x7f   : > { %3641 = vmatprep.subr.bf16.mxu0 %v3893_v2 }
  0x80   : > { %3496 = vmatpush3.bf16.msra.mxu1 %v3890_v26  ;;  %v3920_v26 = vld [vmem:[%s4513_s1 + $0x2c0] sm:$0xff]   ;;  %v2507_v3 = vsel %vm394_vm2, %v2505_v60, %v2506_v61  ;;  %v2613_v12 = vshrl.u32 %v4429_v4, 16  ;;  %v2616_v13 = vshll.u32 %v4429_v4, 16 }
  0x81   : > { %3497 = vmatprep.subr.bf16.mxu1 %v3892_v1 }
  0x82   : > { %3642 = vmatpush3.bf16.msra.mxu0 %v3893_v2 }
  0x83   : > { %3643 = vmatprep.subr.bf16.mxu0 %v3895_v10 }
  0x84   : > { %3498 = vmatpush3.bf16.msra.mxu1 %v3892_v1  ;;  %v3943_v1 = vld [vmem:[%s4007_s29 + $0xc] sm:$0xf] }
  0x85   : > { %3499 = vmatprep.subr.bf16.mxu1 %v3894_v9 }
  0x86   : > { %3644 = vmatpush3.bf16.msra.mxu0 %v3895_v10  ;;  %v2608_v10 = vshll.u32 %v3217_v55, 16 }
  0x87   : > { %3649 = vmatprep.subr.bf16.mxu0 %v3898_v16 }
  0x88   : > { %3500 = vmatpush3.bf16.msra.mxu1 %v3894_v9  ;;  %v2605_v9 = vshrl.u32 %v3217_v55, 16  ;;  %v3254_v55 = vld [vmem:[%s4514_s2] ss:$0 sm:$0xff] }
  0x89   : > { %3505 = vmatprep.subr.bf16.mxu1 %v3896_v15  ;;  %3646 = vmatmul.mubr.msk.bf16.vlgmr.msra.gmra.mrb[0].mxu0 %vm244_vm1, %v2191_v59  ;;  %v1222_v59 = vld [vmem:[%s4007_s29 + $0x8] sm:$0xf] }
  0x8a   : > { %3650 = vmatpush3.bf16.msra.mxu0 %v3898_v16  ;;  %3657 = vmatprep.mubr.msk.bf16.mxu0 %vm244_vm1, %v3186_v23  ;;  %v3034_v2 = vcombine.low %v1222_v59, %v3943_v1  ;;  %v1348_v16 = vshll.u32 %v4038_v24, 16  ;;  %v2607_v17 = vrot.slane %v2605_v9, 1  ;;  %v2618_v23 = vrot.slane %v2616_v13, 2 }
  0x8b   : > { %3502 = vmatmul.mubr.msk.bf16.vlgmr.msra.gmra.mrb[0].mxu1 %vm244_vm1, %v925_v56  ;;  %3651 = vmatprep.subr.bf16.mxu0 %v3900_v22  ;;  %v2406_v56 = vshrl.u32 %v4362_v31, 16 }
  0x8c   : > { %3506 = vmatpush3.bf16.msra.mxu1 %v3896_v15  ;;  %3513 = vmatprep.mubr.msk.bf16.mxu1 %vm244_vm1, %v1039_v25  ;;  %v1343_v11 = vshll.u32 %v3034_v2, 16  ;;  %v3926_v15 = vld [vmem:[%s4513_s1 + $0x2d8] sm:$0xff]   ;;  %v1341_v19 = vshrl.u32 %v3034_v2, 16  ;;  %v1225_v25 = vld [vmem:[%s4007_s29 + $0x14] sm:$0x3] }
  0x8d   : > { %3507 = vmatprep.subr.bf16.mxu1 %v3899_v21  ;;  %v2408_v58 = vor.u32 %v2406_v56, %v2404_v47  ;;  %v3035_v31 = vcombine.low %v3944_v30, %v1225_v25 }
  0x8e   : > { %3652 = vmatpush3.bf16.msra.mxu0 %v3900_v22  ;;  %v2615_v22 = vrot.slane %v2613_v12, 1 }
  0x8f   : > { %3653 = vmatprep.subr.bf16.mxu0 %v3902_v29 }
  0x90   : > { %3508 = vmatpush3.bf16.msra.mxu1 %v3899_v21  ;;  %v1345_v21 = vrot.slane %v1343_v11, 1 }
  0x91   : > { %3509 = vmatprep.subr.bf16.mxu1 %v3901_v28 }
  0x92   : > { %3654 = vmatpush3.bf16.msra.mxu0 %v3902_v29  ;;  %v1350_v29 = vrot.slane %v1348_v16, 1  ;;  %v1346_v32 = vor.u32 %v1345_v21, %v1341_v19 }
  0x93   : > { %3655 = vmatprep.subr.bf16.mxu0 %v3904_v36 }
  0x94   : > { %3510 = vmatpush3.bf16.msra.mxu1 %v3901_v28  ;;  %v3929_v28 = vld [vmem:[%s4513_s1 + $0x2e0] sm:$0xff]   ;;  %v1351_v38 = vsel %vm204_vm0, %v1346_v32, %v1350_v29 }
  0x95   : > { %3511 = vmatprep.subr.bf16.mxu1 %v3903_v34 }
  0x96   : > { %3656 = vmatpush3.bf16.msra.mxu0 %v3904_v36  ;;  %v3931_v36 = vld [vmem:[%s4513_s1 + $0x168] sm:$0xff]  }
  0x97   : > { %3661 = vmatprep.subr.bf16.mxu0 %v3909_v43 }
  0x98   : > { %3512 = vmatpush3.bf16.msra.mxu1 %v3903_v34  ;;  %v2619_v34 = vor.u32 %v2618_v23, %v2615_v22 }
  0x99   : > { %3517 = vmatprep.subr.bf16.mxu1 %v3906_v42  ;;  %3658 = vmatmul.mubr.msk.bf16.vlgmr.msra.gmra.mrb[0].mxu0 %vm244_vm1, %v3187_v5 }
  0x9a   : > { %3662 = vmatpush3.bf16.msra.mxu0 %v3909_v43  ;;  %3669 = vmatprep.mubr.msk.bf16.mxu0 %vm244_vm1, %v2405_v8  ;;  %v3935_v43 = vld [vmem:[%s4513_s1 + $0x178] sm:$0xff]  }
  0x9b   : > { %3514 = vmatmul.mubr.msk.bf16.vlgmr.msra.gmra.mrb[0].mxu1 %vm244_vm1, %v1038_v18  ;;  %3663 = vmatprep.subr.bf16.mxu0 %v3912_v48  ;;  %v2610_v18 = vrot.slane %v2608_v10, 2  ;;  %v3941_v8 = vld [vmem:[%s4513_s1 + $0x318] sm:$0xff]  }
  0x9c   : > { %3518 = vmatpush3.bf16.msra.mxu1 %v3906_v42  ;;  %3525 = vmatprep.mubr.msk.bf16.mxu1 %vm244_vm1, %v1138_v49  ;;  %v2704_v42 = vld [vmem:[%s4007_s29 + $0x10] sm:$0xc] }
  0x9d   : > { %3519 = vmatprep.subr.bf16.mxu1 %v3911_v35  ;;  %v2611_v33 = vor.u32 %v2610_v18, %v2607_v17  ;;  %v3247_v5 = vcombine.low %v2704_v42, %v4337_v20  ;;  %v3939_v20 = vld [vmem:[%s4513_s1 + $0x308] sm:$0xff]   ;;  %v3940_v49 = vld [vmem:[%s4513_s1 + $0x310] sm:$0xff]  }
  0x9e   : > { %3664 = vmatpush3.bf16.msra.mxu0 %v3912_v48  ;;  %v1354_v48 = vor.u32 %v1352_v45, %v1350_v29 }
  0x9f   : > { %3665 = vmatprep.subr.bf16.mxu0 %v3914_v51  ;;  %v2620_v39 = vsel %vm494_vm3, %v2611_v33, %v2619_v34  ;;  %v2717_v47 = vrot.slane %v3247_v5, 2 }
  0xa0   : > { %3520 = vmatpush3.bf16.msra.mxu1 %v3911_v35  ;;  %v2718_v35 = vrot.slane %v4429_v4, 2 }
  0xa1   : > { %3521 = vmatprep.subr.bf16.mxu1 %v3913_v50 }
  0xa2   : > { %3666 = vmatpush3.bf16.msra.mxu0 %v3914_v51  ;;  %v2719_v24 = vsel %vm608_vm4, %v2717_v47, %v2718_v35 }
  0xa3   : > { %3667 = vmatprep.subr.bf16.mxu0 %v3916_v54 }
  0xa4   : > { %3522 = vmatpush3.bf16.msra.mxu1 %v3913_v50 }
  0xa5   : > { %3523 = vmatprep.subr.bf16.mxu1 %v3915_v53 }
  0xa6   : > { %3668 = vmatpush3.bf16.msra.mxu0 %v3916_v54 }
  0xa7   : > { %3673 = vmatprep.subr.bf16.mxu0 %v3920_v26 }
  0xa8   : > { %3524 = vmatpush3.bf16.msra.mxu1 %v3915_v53 }
  0xa9   : > { %3529 = vmatprep.subr.bf16.mxu1 %v3918_v57  ;;  %3670 = vmatmul.mubr.msk.bf16.vlgmr.msra.gmra.mrb[0].mxu0 %vm244_vm1, %v2408_v58 }
  0xaa   : > { %3674 = vmatpush3.bf16.msra.mxu0 %v3920_v26  ;;  %3681 = vmatprep.mubr.msk.bf16.mxu0 %vm244_vm1, %v2507_v3 }
  0xab   : > { %3526 = vmatmul.mubr.msk.bf16.vlgmr.msra.gmra.mrb[0].mxu1 %vm244_vm1, %v1137_v44  ;;  %3675 = vmatprep.subr.bf16.mxu0 %v3922_v0  ;;  %v3936_v44 = vld [vmem:[%s4513_s1 + $0x2f8] sm:$0xff]  }
  0xac   : > { %3530 = vmatpush3.bf16.msra.mxu1 %v3918_v57  ;;  %3537 = vmatprep.mubr.msk.bf16.mxu1 %vm244_vm1, %v3034_v2 }
  0xad   : > { %3531 = vmatprep.subr.bf16.mxu1 %v3921_v63 }
  0xae   : > { %3676 = vmatpush3.bf16.msra.mxu0 %v3922_v0 }
  0xaf   : > { %3677 = vmatprep.subr.bf16.mxu0 %v3924_v7 }
  0xb0   : > { %3532 = vmatpush3.bf16.msra.mxu1 %v3921_v63 }
  0xb1   : > { %3533 = vmatprep.subr.bf16.mxu1 %v3923_v6 }
  0xb2   : > { %3678 = vmatpush3.bf16.msra.mxu0 %v3924_v7 }
  0xb3   : > { %3679 = vmatprep.subr.bf16.mxu0 %v3926_v15 }
  0xb4   : > { %3534 = vmatpush3.bf16.msra.mxu1 %v3923_v6 }
  0xb5   : > { %3535 = vmatprep.subr.bf16.mxu1 %v3925_v14 }
  0xb6   : > { %3680 = vmatpush3.bf16.msra.mxu0 %v3926_v15 }
  0xb7   : > { %3685 = vmatprep.subr.bf16.mxu0 %v3929_v28 }
  0xb8   : > { %3536 = vmatpush3.bf16.msra.mxu1 %v3925_v14 }
  0xb9   : > { %3541 = vmatprep.subr.bf16.mxu1 %v3928_v27  ;;  %3682 = vmatmul.mubr.msk.bf16.vlgmr.msra.gmra.mrb[0].mxu0 %vm244_vm1, %v2506_v61 }
  0xba   : > { %3686 = vmatpush3.bf16.msra.mxu0 %v3929_v28  ;;  %3693 = vmatprep.mubr.msk.bf16.mxu0 %vm244_vm1, %v2620_v39 }
  0xbb   : > { %3538 = vmatmul.mubr.msk.bf16.vlgmr.msra.gmra.mrb[0].mxu1 %vm244_vm1, %v3035_v31  ;;  %3687 = vmatprep.subr.bf16.mxu0 %v3932_v37 }
  0xbc   : > { %3542 = vmatpush3.bf16.msra.mxu1 %v3928_v27  ;;  %3549 = vmatprep.mubr.msk.bf16.mxu1 %vm244_vm1, %v1351_v38 }
  0xbd   : > { %3543 = vmatprep.subr.bf16.mxu1 %v3931_v36 }
  0xbe   : > { %3688 = vmatpush3.bf16.msra.mxu0 %v3932_v37 }
  0xbf   : > { %3689 = vmatprep.subr.bf16.mxu0 %v3934_v41 }
  0xc0   : > { %3544 = vmatpush3.bf16.msra.mxu1 %v3931_v36 }
  0xc1   : > { %3545 = vmatprep.subr.bf16.mxu1 %v3933_v40 }
  0xc2   : > { %3690 = vmatpush3.bf16.msra.mxu0 %v3934_v41 }
  0xc3   : > { %3691 = vmatprep.subr.bf16.mxu0 %v3936_v44 }
  0xc4   : > { %3546 = vmatpush3.bf16.msra.mxu1 %v3933_v40 }
  0xc5   : > { %3547 = vmatprep.subr.bf16.mxu1 %v3935_v43 }
  0xc6   : > { %3692 = vmatpush3.bf16.msra.mxu0 %v3936_v44 }
  0xc7   : > { %3697 = vmatprep.subr.bf16.mxu0 %v3938_v46 }
  0xc8   : > { %3548 = vmatpush3.bf16.msra.mxu1 %v3935_v43 }
  0xc9   : > { %3694 = vmatmul.mubr.msk.bf16.vlgmr.msra.gmra.mrb[0].mxu0 %vm244_vm1, %v2619_v34 }
  0xca   : > { %3698 = vmatpush3.bf16.msra.mxu0 %v3938_v46  ;;  %3705 = vmatprep.mubr.msk.bf16.mxu0 %vm244_vm1, %v2719_v24 }
  0xcb   : > { %3550 = vmatmul.mubr.msk.bf16.vlgmr.msra.gmra.mrb[0].mxu1 %vm244_vm1, %v1354_v48  ;;  %3699 = vmatprep.subr.bf16.mxu0 %v3939_v20 }
  0xce   : > { %3700 = vmatpush3.bf16.msra.mxu0 %v3939_v20 }
  0xcf   : > { %3701 = vmatprep.subr.bf16.mxu0 %v3940_v49 }
  0xd2   : > { %3702 = vmatpush3.bf16.msra.mxu0 %v3940_v49 }
  0xd3   : > { %3703 = vmatprep.subr.bf16.mxu0 %v3941_v8 }
  0xd6   : > { %3704 = vmatpush3.bf16.msra.mxu0 %v3941_v8 }
  0xd9   : > { %3706 = vmatmul.mubr.msk.bf16.vlgmr.msra.gmra.mrb[0].mxu0 %vm244_vm1, %v2718_v35 }
 0x19e   : > { %v3551_v50 = vpop.f32.mrb[0].mxu1 }
 0x19f   : > { %v1419_v51 = vpop.f32.mrb[1].mxu1 }
 0x1a0   : > { %v3552_v52 = vpop.f32.mrb[2].mxu1 }
 0x1a1   : > { %v1422_v53 = vpop.f32.mrb[3].mxu1 }
 0x1ac   : > { %v3707_v54 = vpop.f32.mrb[0].mxu0 }
 0x1ad   : > { %v3709_v56 = vadd.f32 %v3707_v54, %v3551_v50  ;;  %v2784_v57 = vpop.f32.mrb[1].mxu0 }
 0x1ae   : > { %v3710_v26 = vadd.f32 %v2784_v57, %v1419_v51  ;;  %v3708_v58 = vpop.f32.mrb[2].mxu0 }
 0x1af   : > { %v2812_v59 = vadd.f32 %v3709_v56, %v3254_v55  ;;  %v3711_v60 = vadd.f32 %v3708_v58, %v3552_v52  ;;  %v2787_v61 = vpop.f32.mrb[3].mxu0 }
 0x1b0   : > { %v2810_v62 = vadd.f32 %v3710_v26, %v3254_v55  ;;  %v3712_v63 = vadd.f32 %v2787_v61, %v1422_v53 }
 0x1b1   : > { %2816 = vst [vmem:[%s170_s10 + $0x10] sm:$0xff] %v2812_v59  ;;  %v2813_v0 = vadd.f32 %v3711_v60, %v3254_v55 }
 0x1b2   : > { %2814 = vst [vmem:[%s170_s10] sm:$0xff] %v2810_v62  ;;  %v2811_v1 = vadd.f32 %v3712_v63, %v3254_v55 }
 0x1b3   : > { %2817 = vst [vmem:[%s170_s10 + $0x18] sm:$0xf] %v2813_v0 }
 0x1b4   : > { %2815 = vst [vmem:[%s170_s10 + $0x8] sm:$0xff] %v2811_v1 }
 0x1b5 PF: > { %s13_s12 = sadd.s32 1, %s3951_s12  }
 0x1b6   : > { %p10_p4 = scmp.ge.s32.totalorder %s13_s12, 4  }
 0x1b8   :  { %12 = sbr.rel (!%p10_p4) target bundleno = 1 (0x1), region = 86 }

// kernel: fwd.34
= control target key start
LH: loop header
LB: loop body
LE: loop exit
PB: predicated region body
PF: predicated region fallthrough
CT: control target
= control target key end

     0   :  { %s1167_s12 = smov 0   ;;  %s1271_s0 = inlined_call_operand.vmem [shape: bf16[2,36,16], index: 0, kind: input, shape index: {}]   ;;  %s1272_s1 = inlined_call_operand.vmem [shape: bf16[3,3,16,32], index: 1, kind: input, shape index: {}]   ;;  %s1273_s2 = inlined_call_operand.vmem [shape: f32[1,32], index: 2, kind: input, shape index: {}]   ;;  %s1274_s3 = inlined_call_operand.vmem [shape: f32[2,22,32], index: 3, kind: output, shape index: {}]  }
   0x1 LB: > { %s960_s13 = sadd.s32 4294967295, %s1145_s12   ;;  %p964_p0 = scmp.ge.s32.totalorder %s1145_s12, 1  ;;  %s1145_s12 = sphi %s1167_s12, %s13_s12  }
   0x2   : > { %p137_p1 = scmp.lt.s32.totalorder %s1145_s12, 3 }
   0x4   : > { %p138_p2 = pnand %p964_p0, %p137_p1 }
   0x5   : > { %v1117_v0 = vld [vmem:[%s1272_s1 + $0x8] sm:$0xff] (!%p138_p2)   ;;  %p161_p3 = scmp.lt.s32.totalorder (!%p138_p2), %s960_s13, 1  ;;  %v1118_v1 = vld [vmem:[%s1272_s1] sm:$0xff] (!%p138_p2)   ;;  %v1186_v2 = vld [vmem:[%s1272_s1 + $0x10] sm:$0xff] (!%p138_p2)   ;;  %vm211_vm0 = vcmask (!%p138_p2), 130048   ;;  %vm335_vm2 = vcmask (!%p138_p2), 1046528  }
   0x6   : > { %141 = sbr.rel (%p138_p2) target bundleno = 282 (0x11a), region = 32  ;;  %1053 = vmatprep.subr.bf16.mxu0 (!%p138_p2), %v1117_v0  ;;  %1059 = vmatprep.subr.bf16.mxu1 (!%p138_p2), %v1118_v1  ;;  %v1123_v3 = vld [vmem:[%s1272_s1 + $0x18] sm:$0xff] (!%p138_p2)   ;;  %vm189_vm1 = vsmask.f32 (!%p138_p2), 7424  ;;  %vm419_vm3 = vcmask (!%p138_p2), 1044480   ;;  %v1128_v12 = vld [vmem:[%s1272_s1 + $0x28] sm:$0xff] (!%p138_p2)  }
   0x7   : > { %1054 = vmatpush3.bf16.msra.mxu0 (!%p138_p2), %v1117_v0  ;;  %1060 = vmatpush3.bf16.msra.mxu1 (!%p138_p2), %v1118_v1  ;;  %v1125_v41 = vld [vmem:[%s1272_s1 + $0x20] sm:$0xff] (!%p138_p2)   ;;  %v1133_v50 = vld [vmem:[%s1272_s1 + $0x38] sm:$0xff] (!%p138_p2)   ;;  %vm493_vm4 = vsmask.f32 (!%p138_p2), 4352  ;;  %vm733_vm5 = vsmask.f32 (!%p138_p2), 5376 }
   0x8   : > { %1065 = vmatprep.subr.bf16.mxu0 (!%p138_p2), %v1186_v2  ;;  %1071 = vmatprep.subr.bf16.mxu1 (!%p138_p2), %v1123_v3  ;;  %v1130_v1 = vld [vmem:[%s1272_s1 + $0x30] sm:$0xff] (!%p138_p2)   ;;  %vm659_vm6 = vcmask (!%p138_p2), 1045504   ;;  %vm903_vm7 = vcmask (!%p138_p2), 259072   ;;  %vm900_vm8 = vcmask (!%p138_p2), 261120  }
   0xd   : > { %s1276_s13 = smov (!%p161_p3, %s960_s13), 1 }
   0xe   : > { %s1107_s20 = smul.u32 20, %s1276_s13 }
   0xf   : > { %s1108_s9 = smul.u32 24, %s1276_s13 }
  0x10   : > { %s1196_s25 = scalar_lea.vmem %s1271_s0, %s1107_s20 }
  0x11   : > { %v172_v4 = vld [vmem:[%s1196_s25] sm:$0xf]  ;;  %v173_v5 = vld [vmem:[%s1196_s25 + $0x4] sm:$0xf]  ;;  %v1201_v7 = vld [vmem:[%s1196_s25 + $0x8] ss:$0 sps:$4 sm:$0xff]   ;;  %s170_s16 = scalar_lea.vmem %s1274_s3, %s1108_s9 }
  0x12   : > { %v969_v6 = vcombine.low %v172_v4, %v173_v5  ;;  %v328_v8 = vld [vmem:[%s1196_s25] sm:$0xe]  ;;  %v1122_v9 = vld [vmem:[%s1196_s25 + $0x8] ss:$0 sps:$4 sm:$0x77]   ;;  %v198_v15 = vshll.u32 %v1201_v7, 16 }
  0x13   : > { %v980_v10 = vcombine.low %v328_v8, %v173_v5  ;;  %v402_v11 = vld [vmem:[%s1196_s25] sm:$0x8]  ;;  %v202_v16 = vshrl.u32 %v1201_v7, 16  ;;  %v403_v17 = vld [vmem:[%s1196_s25 + $0x4] sm:$0xf]  ;;  %v337_v19 = vrot.slane %v1201_v7, 1 }
  0x14   : > { %v191_v13 = vshrl.u32 %v969_v6, 16  ;;  %v193_v14 = vshll.u32 %v969_v6, 16  ;;  %1061 = vmatprep.mubr.msk.bf16.mxu1 %vm211_vm0, %v969_v6  ;;  %v404_v20 = vld [vmem:[%s1196_s25 + $0x8] sm:$0xf]  ;;  %v405_v21 = vld [vmem:[%s1196_s25 + $0xc] sm:$0x3]  ;;  %v986_v22 = vcombine.low %v402_v11, %v403_v17 }
  0x15   : > { %1062 = vmatmul.mubr.msk.bf16.vlgmr.msra.gmra.mrb[0].mxu1 %vm211_vm0, %v1122_v9  ;;  %v336_v18 = vrot.slane %v980_v10, 1  ;;  %v200_v24 = vrot.slane %v198_v15, 1  ;;  %v987_v25 = vcombine.low %v404_v20, %v405_v21  ;;  %v486_v26 = vld [vmem:[%s1196_s25 + $0xc] sm:$0x7]  ;;  %v642_v34 = vld [vmem:[%s1196_s25 + $0x4] sm:$0xc]  ;;  %v999_v48 = vcombine.low %v403_v17, %v404_v20 }
  0x16   : > { %v195_v23 = vrot.slane %v193_v14, 1  ;;  %1072 = vmatpush3.bf16.msra.mxu1 %v1123_v3  ;;  %v420_v27 = vrot.slane %v986_v22, 3  ;;  %v993_v28 = vcombine.low %v404_v20, %v486_v26  ;;  %v495_v29 = vshrl.u32 %v986_v22, 16  ;;  %v643_v39 = vld [vmem:[%s1196_s25 + $0x8] sm:$0xf]  ;;  %v1137_v7 = vld [vmem:[%s1272_s1 + $0x40] sm:$0xff]  }
  0x17   : > { %1083 = vmatprep.subr.bf16.mxu1 %v1128_v12  ;;  %v204_v31 = vor.u32 %v202_v16, %v200_v24  ;;  %v421_v32 = vrot.slane %v987_v25, 3  ;;  %v498_v33 = vshll.u32 %v986_v22, 16  ;;  %v338_v35 = vsel %vm335_vm2, %v336_v18, %v337_v19  ;;  %v644_v44 = vld [vmem:[%s1196_s25 + $0xc] sm:$0xf]  ;;  %v726_v49 = vld [vmem:[%s1196_s25 + $0x10] sm:$0x3] }
  0x18   : > { %v196_v30 = vor.u32 %v195_v23, %v191_v13  ;;  %v497_v36 = vrot.slane %v495_v29, 3  ;;  %v503_v37 = vshrl.u32 %v993_v28, 16  ;;  %v506_v38 = vshll.u32 %v993_v28, 16  ;;  %v645_v59 = vld [vmem:[%s1196_s25 + $0x10] sm:$0x1] }
  0x19   : > { %v422_v42 = vsel %vm419_vm3, %v420_v27, %v421_v32  ;;  %v500_v43 = vrot.slane %v498_v33, 4  ;;  %v1006_v45 = vcombine.low %v642_v34, %v643_v39  ;;  %v1013_v51 = vcombine.low %v644_v44, %v726_v49  ;;  %v814_v9 = vld [vmem:[%s1196_s25 + $0x4] sm:$0x8] }
  0x1a   : > { %v201_v40 = vsel %vm189_vm1, %v196_v30, %v200_v24  ;;  %1073 = vmatprep.mubr.msk.bf16.mxu1 %vm211_vm0, %v422_v42  ;;  %v505_v46 = vrot.slane %v503_v37, 3  ;;  %v508_v47 = vrot.slane %v506_v38, 4  ;;  %v1007_v3 = vcombine.low %v644_v44, %v645_v59 }
  0x1b   : > { %1055 = vmatprep.mubr.msk.bf16.mxu0 %vm211_vm0, %v201_v40  ;;  %v735_v52 = vshrl.u32 %v1006_v45, 16  ;;  %v501_v53 = vor.u32 %v500_v43, %v497_v36  ;;  %v738_v54 = vshll.u32 %v1006_v45, 16  ;;  %v743_v57 = vshrl.u32 %v1013_v51, 16 }
  0x1c   : > { %1056 = vmatmul.mubr.msk.bf16.vlgmr.msra.gmra.mrb[0].mxu0 %vm211_vm0, %v204_v31  ;;  %v509_v55 = vor.u32 %v508_v47, %v505_v46  ;;  %v746_v58 = vshll.u32 %v1013_v51, 16  ;;  %v660_v6 = vrot.slane %v1006_v45, 2  ;;  %v661_v8 = vrot.slane %v1007_v3, 2 }
  0x1d   : > { %1066 = vmatpush3.bf16.msra.mxu0 %v1186_v2  ;;  %1067 = vmatprep.mubr.msk.bf16.mxu0 %vm211_vm0, %v338_v35  ;;  %v737_v56 = vrot.slane %v735_v52, 2  ;;  %v740_v60 = vrot.slane %v738_v54, 3  ;;  %v745_v61 = vrot.slane %v743_v57, 2  ;;  %v1000_v2 = vcombine.low %v486_v26, %v486_v26 }
  0x1e   : > { %1077 = vmatprep.subr.bf16.mxu0 %v1125_v41  ;;  %1074 = vmatmul.mubr.msk.bf16.vlgmr.msra.gmra.mrb[4].mxu1 %vm211_vm0, %v421_v32  ;;  %v748_v62 = vrot.slane %v746_v58, 3  ;;  %v510_v0 = vsel %vm493_vm4, %v501_v53, %v509_v55  ;;  %v662_v10 = vsel %vm659_vm6, %v660_v6, %v661_v8  ;;  %v1019_v11 = vcombine.low %v814_v9, %v643_v39 }
  0x1f   : > { %1084 = vmatpush3.bf16.msra.mxu1 %v1128_v12  ;;  %1085 = vmatprep.mubr.msk.bf16.mxu1 %vm211_vm0, %v999_v48  ;;  %v741_v63 = vor.u32 %v740_v60, %v737_v56  ;;  %v822_v13 = vrot.slane %v1013_v51, 3 }
  0x20   : > { %1095 = vmatprep.subr.bf16.mxu1 %v1133_v50  ;;  %v749_v4 = vor.u32 %v748_v62, %v745_v61  ;;  %v821_v12 = vrot.slane %v1019_v11, 3 }
  0x22   : > { %v750_v5 = vsel %vm733_vm5, %v741_v63, %v749_v4  ;;  %v823_v14 = vsel %vm419_vm3, %v821_v12, %v822_v13 }
  0x24   : > { %1068 = vmatmul.mubr.msk.bf16.vlgmr.msra.gmra.mrb[4].mxu0 %vm211_vm0, %v337_v19 }
  0x25   : > { %1078 = vmatpush3.bf16.msra.mxu0 %v1125_v41  ;;  %1079 = vmatprep.mubr.msk.bf16.mxu0 %vm211_vm0, %v510_v0 }
  0x26   : > { %1089 = vmatprep.subr.bf16.mxu0 %v1130_v1  ;;  %1086 = vmatmul.mubr.msk.bf16.vlgmr.msra.gmra.mrb[8].mxu1 %vm211_vm0, %v1000_v2 }
  0x27   : > { %1096 = vmatpush3.bf16.msra.mxu1 %v1133_v50  ;;  %1097 = vmatprep.mubr.msk.bf16.mxu1 %vm211_vm0, %v750_v5  ;;  %v1023_v5 = vld [vmem:[%s1273_s2] ss:$0 sm:$0xff] }
  0x2c   : > { %1080 = vmatmul.mubr.msk.bf16.vlgmr.msra.gmra.mrb[8].mxu0 %vm211_vm0, %v509_v55 }
  0x2d   : > { %1090 = vmatpush3.bf16.msra.mxu0 %v1130_v1  ;;  %1091 = vmatprep.mubr.msk.bf16.mxu0 %vm211_vm0, %v662_v10 }
  0x2e   : > { %1101 = vmatprep.subr.bf16.mxu0 %v1137_v7  ;;  %1098 = vmatmul.mubr.msk.bf16.vlgmr.msra.gmra.mrb[12].mxu1 %vm211_vm0, %v749_v4 }
  0x34   : > { %1092 = vmatmul.mubr.msk.bf16.vlgmr.msra.gmra.mrb[12].mxu0 %vm211_vm0, %v661_v8 }
  0x35   : > { %1102 = vmatpush3.bf16.msra.mxu0 %v1137_v7  ;;  %1103 = vmatprep.mubr.msk.bf16.mxu0 %vm211_vm0, %v823_v14 }
  0x3c   : > { %1104 = vmatmul.mubr.msk.bf16.vlgmr.msra.gmra.mrb[16].mxu0 %vm211_vm0, %v822_v13 }
  0xe8   : > { %v1063_v15 = vpop.f32.mrb[0].mxu1 }
  0xe9   : > { %v314_v16 = vpop.f32.mrb[1].mxu1 }
  0xea   : > { %v1064_v17 = vpop.f32.mrb[2].mxu1 }
  0xeb   : > { %v317_v18 = vpop.f32.mrb[3].mxu1 }
  0xef   : > { %v1057_v19 = vpop.f32.mrb[0].mxu0 }
  0xf0   : > { %v323_v20 = vadd.f32 %v1063_v15, %v1057_v19  ;;  %v252_v21 = vpop.f32.mrb[1].mxu0 }
  0xf1   : > { %v315_v22 = vadd.f32 %v314_v16, %v252_v21  ;;  %v1058_v23 = vpop.f32.mrb[2].mxu0  ;;  %v1075_v24 = vpop.f32.mrb[4].mxu1 }
  0xf2   : > { %v255_v25 = vpop.f32.mrb[3].mxu0  ;;  %v469_v26 = vpop.f32.mrb[5].mxu1 }
  0xf3   : > { %v318_v27 = vadd.f32 %v317_v18, %v255_v25  ;;  %v1076_v28 = vpop.f32.mrb[6].mxu1 }
  0xf4   : > { %v472_v29 = vpop.f32.mrb[7].mxu1 }
  0xf7   : > { %v1069_v30 = vpop.f32.mrb[4].mxu0 }
  0xf8   : > { %v401_v31 = vadd.f32 %v1069_v30, %v323_v20  ;;  %v385_v32 = vpop.f32.mrb[5].mxu0 }
  0xf9   : > { %v399_v33 = vadd.f32 %v385_v32, %v315_v22  ;;  %v1070_v34 = vpop.f32.mrb[6].mxu0  ;;  %v1087_v35 = vpop.f32.mrb[8].mxu1 }
  0xfa   : > { %v485_v36 = vadd.f32 %v1075_v24, %v401_v31  ;;  %v388_v37 = vpop.f32.mrb[7].mxu0  ;;  %v625_v38 = vpop.f32.mrb[9].mxu1 }
  0xfb   : > { %v400_v39 = vadd.f32 %v388_v37, %v318_v27  ;;  %v483_v40 = vadd.f32 %v469_v26, %v399_v33  ;;  %v1088_v41 = vpop.f32.mrb[10].mxu1 }
  0xfc   : > { %v628_v42 = vpop.f32.mrb[11].mxu1 }
  0xfd   : > { %v484_v43 = vadd.f32 %v472_v29, %v400_v39 }
  0xff   : > { %v1081_v44 = vpop.f32.mrb[8].mxu0 }
 0x100   : > { %v573_v45 = vadd.f32 %v1081_v44, %v485_v36  ;;  %v557_v46 = vpop.f32.mrb[9].mxu0 }
 0x101   : > { %v571_v47 = vadd.f32 %v557_v46, %v483_v40  ;;  %v1082_v48 = vpop.f32.mrb[10].mxu0  ;;  %v1099_v49 = vpop.f32.mrb[12].mxu1 }
 0x102   : > { %v641_v50 = vadd.f32 %v1087_v35, %v573_v45  ;;  %v560_v51 = vpop.f32.mrb[11].mxu0  ;;  %v797_v52 = vpop.f32.mrb[13].mxu1 }
 0x103   : > { %v572_v53 = vadd.f32 %v560_v51, %v484_v43  ;;  %v639_v54 = vadd.f32 %v625_v38, %v571_v47  ;;  %v1100_v55 = vpop.f32.mrb[14].mxu1 }
 0x104   : > { %v800_v56 = vpop.f32.mrb[15].mxu1 }
 0x105   : > { %v640_v57 = vadd.f32 %v628_v42, %v572_v53 }
 0x107   : > { %v1093_v58 = vpop.f32.mrb[12].mxu0 }
 0x108   : > { %v725_v59 = vadd.f32 %v1093_v58, %v641_v50  ;;  %v709_v60 = vpop.f32.mrb[13].mxu0 }
 0x109   : > { %v723_v61 = vadd.f32 %v709_v60, %v639_v54  ;;  %v1094_v62 = vpop.f32.mrb[14].mxu0 }
 0x10a   : > { %v813_v63 = vadd.f32 %v1099_v49, %v725_v59  ;;  %v712_v0 = vpop.f32.mrb[15].mxu0 }
 0x10b   : > { %v724_v1 = vadd.f32 %v712_v0, %v640_v57  ;;  %v811_v2 = vadd.f32 %v797_v52, %v723_v61 }
 0x10d   : > { %v812_v3 = vadd.f32 %v800_v56, %v724_v1 }
 0x10f   : > { %v1105_v4 = vpop.f32.mrb[16].mxu0 }
 0x110   : > { %v886_v6 = vadd.f32 %v1105_v4, %v813_v63  ;;  %v870_v8 = vpop.f32.mrb[17].mxu0 }
 0x111   : > { %v884_v9 = vadd.f32 %v870_v8, %v811_v2  ;;  %v1106_v10 = vpop.f32.mrb[18].mxu0 }
 0x112   : > { %v896_v7 = vadd.f32 %v1023_v5, %v886_v6  ;;  %v873_v11 = vpop.f32.mrb[19].mxu0 }
 0x113   : > { %v894_v12 = vadd.f32 %v1023_v5, %v884_v9  ;;  %v885_v13 = vadd.f32 %v873_v11, %v812_v3 }
 0x114   : > { %v899_v14 = vmax.f32 %v896_v7, 0.0 }
 0x115   : > { %v897_v15 = vmax.f32 %v894_v12, 0.0  ;;  %v895_v16 = vadd.f32 %v1023_v5, %v885_v13 }
 0x116   : > { %904 = vst.msk [vmem:[%s170_s16 + $0x10] sm:$0x3f] %vm903_vm7, %v899_v14 }
 0x117   : > { %901 = vst.msk [vmem:[%s170_s16] sm:$0xff] %vm900_vm8, %v897_v15  ;;  %v898_v17 = vmax.f32 %v895_v16, 0.0 }
 0x119   : > { %902 = vst.msk [vmem:[%s170_s16 + $0x8] sm:$0xff] %vm900_vm8, %v898_v17 }
 0x11a PF: > { %s13_s12 = sadd.s32 1, %s1145_s12  }
 0x11b   : > { %p10_p4 = scmp.ge.s32.totalorder %s13_s12, 4  }
 0x11d   :  { %12 = sbr.rel (!%p10_p4) target bundleno = 1 (0x1), region = 70 }

// kernel: fwd.33
= control target key start
LH: loop header
LB: loop body
LE: loop exit
PB: predicated region body
PF: predicated region fallthrough
CT: control target
= control target key end

     0   :  { %s1300_s12 = smov 0   ;;  %s1428_s0 = inlined_call_operand.vmem [shape: bf16[2,36,32], index: 0, kind: input, shape index: {}]   ;;  %s1429_s1 = inlined_call_operand.vmem [shape: bf16[3,3,32,16], index: 1, kind: input, shape index: {}]   ;;  %s1430_s2 = inlined_call_operand.vmem [shape: f32[1,16], index: 2, kind: input, shape index: {}]   ;;  %s1431_s3 = inlined_call_operand.vmem [shape: f32[2,22,16], index: 3, kind: output, shape index: {}]  }
   0x1 LB: > { %s1032_s13 = sadd.s32 4294967295, %s1278_s12   ;;  %p1036_p0 = scmp.ge.s32.totalorder %s1278_s12, 1  ;;  %s1278_s12 = sphi %s1300_s12, %s13_s12  }
   0x2   : > { %p137_p1 = scmp.lt.s32.totalorder %s1278_s12, 3 }
   0x4   : > { %p138_p2 = pnand %p1036_p0, %p137_p1 }
   0x5   : > { %v1241_v0 = vld [vmem:[%s1429_s1 + $0x10] sm:$0xff] (!%p138_p2)   ;;  %p161_p3 = scmp.lt.s32.totalorder (!%p138_p2), %s1032_s13, 1  ;;  %v1242_v1 = vld [vmem:[%s1429_s1] sm:$0xff] (!%p138_p2)   ;;  %v1243_v2 = vld [vmem:[%s1429_s1 + $0x18] sm:$0xff] (!%p138_p2)   ;;  %vm221_vm0 = vcmask (!%p138_p2), 261120   ;;  %vm353_vm2 = vcmask (!%p138_p2), 1046528  }
   0x6   : > { %141 = sbr.rel (%p138_p2) target bundleno = 282 (0x11a), region = 32  ;;  %1159 = vmatprep.subr.bf16.mxu0 (!%p138_p2), %v1241_v0  ;;  %1167 = vmatprep.subr.bf16.mxu1 (!%p138_p2), %v1242_v1  ;;  %v1244_v3 = vld [vmem:[%s1429_s1 + $0x8] sm:$0xff] (!%p138_p2)   ;;  %v1247_v4 = vld [vmem:[%s1429_s1 + $0x20] sm:$0xff] (!%p138_p2)   ;;  %v1249_v5 = vld [vmem:[%s1429_s1 + $0x30] sm:$0xff] (!%p138_p2)   ;;  %vm193_vm1 = vsmask.f32 (!%p138_p2), 7424 }
   0x7   : > { %1160 = vmatpush3.bf16.msra.mxu0 (!%p138_p2), %v1241_v0  ;;  %1168 = vmatpush3.bf16.msra.mxu1 (!%p138_p2), %v1242_v1  ;;  %v1251_v11 = vld [vmem:[%s1429_s1 + $0x38] sm:$0xff] (!%p138_p2)   ;;  %v1256_v29 = vld [vmem:[%s1429_s1 + $0x50] sm:$0xff] (!%p138_p2)   ;;  %vm445_vm3 = vcmask (!%p138_p2), 1044480   ;;  %v1250_v32 = vld [vmem:[%s1429_s1 + $0x28] sm:$0xff] (!%p138_p2)   ;;  %vm527_vm4 = vsmask.f32 (!%p138_p2), 4352 }
   0x8   : > { %1161 = vmatprep.subr.bf16.mxu0 (!%p138_p2), %v1243_v2  ;;  %1169 = vmatprep.subr.bf16.mxu1 (!%p138_p2), %v1244_v3  ;;  %v1258_v42 = vld [vmem:[%s1429_s1 + $0x58] sm:$0xff] (!%p138_p2)   ;;  %v1253_v44 = vld [vmem:[%s1429_s1 + $0x40] sm:$0xff] (!%p138_p2)   ;;  %v1257_v48 = vld [vmem:[%s1429_s1 + $0x48] sm:$0xff] (!%p138_p2)   ;;  %vm709_vm5 = vcmask (!%p138_p2), 1045504   ;;  %vm791_vm6 = vsmask.f32 (!%p138_p2), 5376 }
   0x9   : > { %v1263_v52 = vld [vmem:[%s1429_s1 + $0x70] sm:$0xff] (!%p138_p2)   ;;  %v1265_v1 = vld [vmem:[%s1429_s1 + $0x78] sm:$0xff] (!%p138_p2)   ;;  %vm975_vm7 = vcmask (!%p138_p2), 128000   ;;  %vm972_vm8 = vcmask (!%p138_p2), 130048  }
   0xb   : > { %1162 = vmatpush3.bf16.msra.mxu0 (!%p138_p2), %v1243_v2  ;;  %1170 = vmatpush3.bf16.msra.mxu1 (!%p138_p2), %v1244_v3 }
   0xc   : > { %1175 = vmatprep.subr.bf16.mxu0 (!%p138_p2), %v1247_v4  ;;  %1183 = vmatprep.subr.bf16.mxu1 (!%p138_p2), %v1249_v5 }
   0xd   : > { %s1433_s13 = smov (!%p161_p3, %s1032_s13), 1 }
   0xe   : > { %s1231_s22 = smul.u32 20, %s1433_s13 }
   0xf   : > { %s1232_s29 = smul.u32 24, %s1433_s13 }
  0x10   : > { %s1329_s27 = scalar_lea.vmem %s1428_s0, %s1231_s22 }
  0x11   : > { %v172_v6 = vld [vmem:[%s1329_s27] sm:$0xf]  ;;  %v173_v7 = vld [vmem:[%s1329_s27 + $0x4] sm:$0xf]  ;;  %v1337_v9 = vld [vmem:[%s1329_s27 + $0x8] ss:$0 sps:$4 sm:$0xff]   ;;  %s170_s7 = scalar_lea.vmem %s1431_s3, %s1232_s29 }
  0x12   : > { %v1043_v8 = vcombine.low %v172_v6, %v173_v7  ;;  %v1248_v10 = vld [vmem:[%s1329_s27 + $0x8] ss:$0 sps:$4 sm:$0x77]   ;;  %v202_v14 = vshll.u32 %v1337_v9, 16  ;;  %v206_v15 = vshrl.u32 %v1337_v9, 16  ;;  %v355_v17 = vrot.slane %v1337_v9, 1 }
  0x13   : > { %v344_v16 = vld [vmem:[%s1329_s27] sm:$0xe]  ;;  %v427_v22 = vld [vmem:[%s1329_s27 + $0x4] sm:$0xf]  ;;  %v428_v23 = vld [vmem:[%s1329_s27 + $0x8] sm:$0xf] }
  0x14   : > { %v195_v12 = vshrl.u32 %v1043_v8, 16  ;;  %v197_v13 = vshll.u32 %v1043_v8, 16  ;;  %1171 = vmatprep.mubr.msk.bf16.mxu1 %vm221_vm0, %v1043_v8  ;;  %v204_v19 = vrot.slane %v202_v14, 1  ;;  %v1058_v20 = vcombine.low %v344_v16, %v173_v7  ;;  %v426_v21 = vld [vmem:[%s1329_s27] sm:$0x8] }
  0x15   : > { %1172 = vmatmul.mubr.msk.bf16.vlgmr.msra.gmra.mrb[0].mxu1 %vm221_vm0, %v1248_v10  ;;  %v429_v24 = vld [vmem:[%s1329_s27 + $0xc] sm:$0x3]  ;;  %v1067_v28 = vcombine.low %v426_v21, %v427_v22  ;;  %v1086_v40 = vcombine.low %v427_v22, %v428_v23  ;;  %v690_v53 = vld [vmem:[%s1329_s27 + $0x4] sm:$0xc]  ;;  %v691_v54 = vld [vmem:[%s1329_s27 + $0x8] sm:$0xf] }
  0x16   : > { %v199_v18 = vrot.slane %v197_v13, 1  ;;  %1184 = vmatpush3.bf16.msra.mxu1 %v1249_v5  ;;  %v208_v26 = vor.u32 %v206_v15, %v204_v19  ;;  %v354_v27 = vrot.slane %v1058_v20, 1  ;;  %v1068_v30 = vcombine.low %v428_v23, %v429_v24  ;;  %v518_v36 = vld [vmem:[%s1329_s27 + $0xc] sm:$0x7]  ;;  %v693_v56 = vld [vmem:[%s1329_s27 + $0x10] sm:$0x1] }
  0x17   : > { %1185 = vmatprep.subr.bf16.mxu1 %v1251_v11  ;;  %v446_v34 = vrot.slane %v1067_v28, 3  ;;  %v529_v37 = vshrl.u32 %v1067_v28, 16  ;;  %v1077_v38 = vcombine.low %v428_v23, %v518_v36  ;;  %v532_v39 = vshll.u32 %v1067_v28, 16  ;;  %v692_v55 = vld [vmem:[%s1329_s27 + $0xc] sm:$0xf]  ;;  %v1260_v5 = vld [vmem:[%s1429_s1 + $0x60] sm:$0xff]  }
  0x18   : > { %v200_v25 = vor.u32 %v199_v18, %v195_v12  ;;  %v356_v33 = vsel %vm353_vm2, %v354_v27, %v355_v17  ;;  %v447_v35 = vrot.slane %v1068_v30, 3  ;;  %v1096_v58 = vcombine.low %v690_v53, %v691_v54  ;;  %v782_v60 = vld [vmem:[%s1329_s27 + $0x10] sm:$0x3]  ;;  %v878_v12 = vld [vmem:[%s1329_s27 + $0x4] sm:$0x8]  ;;  %v1264_v15 = vld [vmem:[%s1429_s1 + $0x68] sm:$0xff]  }
  0x19   : > { %v531_v43 = vrot.slane %v529_v37, 3  ;;  %v534_v45 = vrot.slane %v532_v39, 4  ;;  %v537_v46 = vshrl.u32 %v1077_v38, 16  ;;  %v540_v47 = vshll.u32 %v1077_v38, 16  ;;  %v1270_v22 = vld [vmem:[%s1429_s1 + $0x88] sm:$0xff]  }
  0x1a   : > { %v205_v31 = vsel %vm193_vm1, %v200_v25, %v204_v19  ;;  %1186 = vmatpush3.bf16.msra.mxu1 %v1251_v11  ;;  %v448_v41 = vsel %vm445_vm3, %v446_v34, %v447_v35  ;;  %v1097_v59 = vcombine.low %v692_v55, %v693_v56  ;;  %v1087_v61 = vcombine.low %v518_v36, %v518_v36  ;;  %v1269_v19 = vld [vmem:[%s1429_s1 + $0x80] sm:$0xff]  }
  0x1b   : > { %1163 = vmatprep.mubr.msk.bf16.mxu0 %vm221_vm0, %v205_v31  ;;  %1199 = vmatprep.subr.bf16.mxu1 %v1256_v29  ;;  %v535_v49 = vor.u32 %v534_v45, %v531_v43  ;;  %v539_v50 = vrot.slane %v537_v46, 3  ;;  %v542_v51 = vrot.slane %v540_v47, 4  ;;  %v1106_v62 = vcombine.low %v692_v55, %v782_v60 }
  0x1c   : > { %1164 = vmatmul.mubr.msk.bf16.vlgmr.msra.gmra.mrb[0].mxu0 %vm221_vm0, %v208_v26  ;;  %1187 = vmatprep.mubr.msk.bf16.mxu1 %vm221_vm0, %v448_v41  ;;  %v793_v0 = vshrl.u32 %v1096_v58, 16  ;;  %v796_v2 = vshll.u32 %v1096_v58, 16  ;;  %v710_v6 = vrot.slane %v1096_v58, 2  ;;  %v711_v7 = vrot.slane %v1097_v59, 2 }
  0x1d   : > { %1176 = vmatpush3.bf16.msra.mxu0 %v1247_v4  ;;  %1179 = vmatprep.mubr.msk.bf16.mxu0 %vm221_vm0, %v356_v33  ;;  %v543_v57 = vor.u32 %v542_v51, %v539_v50  ;;  %v801_v3 = vshrl.u32 %v1106_v62, 16  ;;  %v804_v4 = vshll.u32 %v1106_v62, 16  ;;  %v888_v21 = vrot.slane %v1106_v62, 3 }
  0x1e   : > { %1177 = vmatprep.subr.bf16.mxu0 %v1250_v32  ;;  %1188 = vmatmul.mubr.msk.bf16.vlgmr.msra.gmra.mrb[4].mxu1 %vm221_vm0, %v447_v35  ;;  %v795_v8 = vrot.slane %v793_v0, 2  ;;  %v798_v9 = vrot.slane %v796_v2, 3  ;;  %v712_v16 = vsel %vm709_vm5, %v710_v6, %v711_v7 }
  0x1f   : > { %1200 = vmatpush3.bf16.msra.mxu1 %v1256_v29  ;;  %1203 = vmatprep.mubr.msk.bf16.mxu1 %vm221_vm0, %v1086_v40  ;;  %v544_v63 = vsel %vm527_vm4, %v535_v49, %v543_v57  ;;  %v803_v10 = vrot.slane %v801_v3, 2  ;;  %v806_v11 = vrot.slane %v804_v4, 3 }
  0x20   : > { %1201 = vmatprep.subr.bf16.mxu1 %v1258_v42  ;;  %v799_v13 = vor.u32 %v798_v9, %v795_v8 }
  0x21   : > { %1178 = vmatpush3.bf16.msra.mxu0 %v1250_v32  ;;  %v807_v14 = vor.u32 %v806_v11, %v803_v10 }
  0x22   : > { %1191 = vmatprep.subr.bf16.mxu0 %v1253_v44 }
  0x23   : > { %1202 = vmatpush3.bf16.msra.mxu1 %v1258_v42  ;;  %v808_v18 = vsel %vm791_vm6, %v799_v13, %v807_v14 }
  0x24   : > { %1180 = vmatmul.mubr.msk.bf16.vlgmr.msra.gmra.mrb[4].mxu0 %vm221_vm0, %v355_v17  ;;  %1215 = vmatprep.subr.bf16.mxu1 %v1263_v52  ;;  %v1115_v17 = vcombine.low %v878_v12, %v691_v54 }
  0x25   : > { %1192 = vmatpush3.bf16.msra.mxu0 %v1253_v44  ;;  %1195 = vmatprep.mubr.msk.bf16.mxu0 %vm221_vm0, %v544_v63 }
  0x26   : > { %1193 = vmatprep.subr.bf16.mxu0 %v1257_v48  ;;  %1204 = vmatmul.mubr.msk.bf16.vlgmr.msra.gmra.mrb[8].mxu1 %vm221_vm0, %v1087_v61  ;;  %v887_v20 = vrot.slane %v1115_v17, 3 }
  0x27   : > { %1216 = vmatpush3.bf16.msra.mxu1 %v1263_v52  ;;  %1219 = vmatprep.mubr.msk.bf16.mxu1 %vm221_vm0, %v808_v18 }
  0x28   : > { %1217 = vmatprep.subr.bf16.mxu1 %v1265_v1  ;;  %v889_v23 = vsel %vm445_vm3, %v887_v20, %v888_v21 }
  0x29   : > { %1194 = vmatpush3.bf16.msra.mxu0 %v1257_v48 }
  0x2a   : > { %1207 = vmatprep.subr.bf16.mxu0 %v1260_v5 }
  0x2b   : > { %1218 = vmatpush3.bf16.msra.mxu1 %v1265_v1 }
  0x2c   : > { %1196 = vmatmul.mubr.msk.bf16.vlgmr.msra.gmra.mrb[8].mxu0 %vm221_vm0, %v543_v57 }
  0x2d   : > { %1208 = vmatpush3.bf16.msra.mxu0 %v1260_v5  ;;  %1211 = vmatprep.mubr.msk.bf16.mxu0 %vm221_vm0, %v712_v16 }
  0x2e   : > { %1209 = vmatprep.subr.bf16.mxu0 %v1264_v15  ;;  %1220 = vmatmul.mubr.msk.bf16.vlgmr.msra.gmra.mrb[12].mxu1 %vm221_vm0, %v807_v14  ;;  %v1120_v14 = vld [vmem:[%s1430_s2] ss:$0 sm:$0xff] }
  0x31   : > { %1210 = vmatpush3.bf16.msra.mxu0 %v1264_v15 }
  0x32   : > { %1223 = vmatprep.subr.bf16.mxu0 %v1269_v19 }
  0x34   : > { %1212 = vmatmul.mubr.msk.bf16.vlgmr.msra.gmra.mrb[12].mxu0 %vm221_vm0, %v711_v7 }
  0x35   : > { %1224 = vmatpush3.bf16.msra.mxu0 %v1269_v19  ;;  %1227 = vmatprep.mubr.msk.bf16.mxu0 %vm221_vm0, %v889_v23 }
  0x36   : > { %1225 = vmatprep.subr.bf16.mxu0 %v1270_v22 }
  0x39   : > { %1226 = vmatpush3.bf16.msra.mxu0 %v1270_v22 }
  0x3c   : > { %1228 = vmatmul.mubr.msk.bf16.vlgmr.msra.gmra.mrb[16].mxu0 %vm221_vm0, %v888_v21 }
  0xe8   : > { %v1173_v24 = vpop.f32.mrb[0].mxu1 }
  0xe9   : > { %v330_v25 = vpop.f32.mrb[1].mxu1 }
  0xea   : > { %v1174_v26 = vpop.f32.mrb[2].mxu1 }
  0xeb   : > { %v333_v27 = vpop.f32.mrb[3].mxu1 }
  0xef   : > { %v1165_v28 = vpop.f32.mrb[0].mxu0 }
  0xf0   : > { %v339_v29 = vadd.f32 %v1173_v24, %v1165_v28  ;;  %v262_v30 = vpop.f32.mrb[1].mxu0 }
  0xf1   : > { %v331_v31 = vadd.f32 %v330_v25, %v262_v30  ;;  %v1166_v32 = vpop.f32.mrb[2].mxu0  ;;  %v1189_v34 = vpop.f32.mrb[4].mxu1 }
  0xf2   : > { %v265_v33 = vpop.f32.mrb[3].mxu0  ;;  %v501_v36 = vpop.f32.mrb[5].mxu1 }
  0xf3   : > { %v334_v35 = vadd.f32 %v333_v27, %v265_v33  ;;  %v1190_v37 = vpop.f32.mrb[6].mxu1 }
  0xf4   : > { %v504_v38 = vpop.f32.mrb[7].mxu1 }
  0xf7   : > { %v1181_v39 = vpop.f32.mrb[4].mxu0 }
  0xf8   : > { %v425_v40 = vadd.f32 %v1181_v39, %v339_v29  ;;  %v409_v41 = vpop.f32.mrb[5].mxu0 }
  0xf9   : > { %v423_v42 = vadd.f32 %v409_v41, %v331_v31  ;;  %v1182_v43 = vpop.f32.mrb[6].mxu0  ;;  %v1205_v46 = vpop.f32.mrb[8].mxu1 }
  0xfa   : > { %v517_v44 = vadd.f32 %v1189_v34, %v425_v40  ;;  %v412_v45 = vpop.f32.mrb[7].mxu0  ;;  %v673_v49 = vpop.f32.mrb[9].mxu1 }
  0xfb   : > { %v424_v47 = vadd.f32 %v412_v45, %v334_v35  ;;  %v515_v48 = vadd.f32 %v501_v36, %v423_v42  ;;  %v1206_v50 = vpop.f32.mrb[10].mxu1 }
  0xfc   : > { %v676_v52 = vpop.f32.mrb[11].mxu1 }
  0xfd   : > { %v516_v51 = vadd.f32 %v504_v38, %v424_v47 }
  0xff   : > { %v1197_v53 = vpop.f32.mrb[8].mxu0 }
 0x100   : > { %v613_v54 = vadd.f32 %v1197_v53, %v517_v44  ;;  %v597_v55 = vpop.f32.mrb[9].mxu0 }
 0x101   : > { %v611_v56 = vadd.f32 %v597_v55, %v515_v48  ;;  %v1198_v57 = vpop.f32.mrb[10].mxu0  ;;  %v1221_v60 = vpop.f32.mrb[12].mxu1 }
 0x102   : > { %v689_v58 = vadd.f32 %v1205_v46, %v613_v54  ;;  %v600_v59 = vpop.f32.mrb[11].mxu0  ;;  %v861_v63 = vpop.f32.mrb[13].mxu1 }
 0x103   : > { %v612_v61 = vadd.f32 %v600_v59, %v516_v51  ;;  %v687_v62 = vadd.f32 %v673_v49, %v611_v56  ;;  %v1222_v0 = vpop.f32.mrb[14].mxu1 }
 0x104   : > { %v864_v2 = vpop.f32.mrb[15].mxu1 }
 0x105   : > { %v688_v1 = vadd.f32 %v676_v52, %v612_v61 }
 0x107   : > { %v1213_v3 = vpop.f32.mrb[12].mxu0 }
 0x108   : > { %v781_v4 = vadd.f32 %v1213_v3, %v689_v58  ;;  %v765_v5 = vpop.f32.mrb[13].mxu0 }
 0x109   : > { %v779_v6 = vadd.f32 %v765_v5, %v687_v62  ;;  %v1214_v7 = vpop.f32.mrb[14].mxu0 }
 0x10a   : > { %v877_v8 = vadd.f32 %v1221_v60, %v781_v4  ;;  %v768_v9 = vpop.f32.mrb[15].mxu0 }
 0x10b   : > { %v780_v10 = vadd.f32 %v768_v9, %v688_v1  ;;  %v875_v11 = vadd.f32 %v861_v63, %v779_v6 }
 0x10d   : > { %v876_v12 = vadd.f32 %v864_v2, %v780_v10 }
 0x10f   : > { %v1229_v13 = vpop.f32.mrb[16].mxu0 }
 0x110   : > { %v958_v15 = vadd.f32 %v1229_v13, %v877_v8  ;;  %v942_v16 = vpop.f32.mrb[17].mxu0 }
 0x111   : > { %v956_v17 = vadd.f32 %v942_v16, %v875_v11  ;;  %v1230_v18 = vpop.f32.mrb[18].mxu0 }
 0x112   : > { %v968_v19 = vadd.f32 %v1120_v14, %v958_v15  ;;  %v945_v20 = vpop.f32.mrb[19].mxu0 }
 0x113   : > { %v966_v21 = vadd.f32 %v1120_v14, %v956_v17  ;;  %v957_v22 = vadd.f32 %v945_v20, %v876_v12 }
 0x114   : > { %v971_v23 = vmax.f32 %v968_v19, 0.0 }
 0x115   : > { %v969_v24 = vmax.f32 %v966_v21, 0.0  ;;  %v967_v25 = vadd.f32 %v1120_v14, %v957_v22 }
 0x116   : > { %976 = vst.msk [vmem:[%s170_s7 + $0x10] sm:$0x3f] %vm975_vm7, %v971_v23 }
 0x117   : > { %973 = vst.msk [vmem:[%s170_s7] sm:$0xff] %vm972_vm8, %v969_v24  ;;  %v970_v26 = vmax.f32 %v967_v25, 0.0 }
 0x119   : > { %974 = vst.msk [vmem:[%s170_s7 + $0x8] sm:$0xff] %vm972_vm8, %v970_v26 }
 0x11a PF: > { %s13_s12 = sadd.s32 1, %s1278_s12  }
 0x11b   : > { %p10_p4 = scmp.ge.s32.totalorder %s13_s12, 4  }
 0x11d   :  { %12 = sbr.rel (!%p10_p4) target bundleno = 1 (0x1), region = 70 }

// kernel: fwd.37
= control target key start
LH: loop header
LB: loop body
LE: loop exit
PB: predicated region body
PF: predicated region fallthrough
CT: control target
= control target key end

     0   :  { %s232_s5 = smov 32   ;;  %s234_s12 = smov 64   ;;  %vm136_vm0 = vcmask 261120   ;;  %s344_s0 = inlined_call_operand.vmem [shape: f32[32,128], index: 0, kind: input, shape index: {}]   ;;  %s345_s1 = inlined_call_operand.vmem [shape: f32[32,128], index: 1, kind: input, shape index: {}]   ;;  %s346_s2 = inlined_call_operand.vmem [shape: f32[32,32], index: 2, kind: input, shape index: {}]   ;;  %s347_s3 = inlined_call_operand.vmem [shape: f32[32,32], index: 3, kind: output, shape index: {0}]   ;;  %s348_s4 = inlined_call_operand.vmem [shape: f32[32,32], index: 4, kind: output, shape index: {1}]  }
   0x1   :  { %v16_v0 = vld [vmem:[%s344_s0] sm:$0xff]  ;;  %v18_v3 = vld [vmem:[%s344_s0 + $0x10] sm:$0xff]  ;;  %v17_v5 = vld [vmem:[%s344_s0 + $0x8] sm:$0xff] }
   0x2   :  { %v20_v1 = vld [vmem:[%s345_s1] sm:$0xff]  ;;  %v22_v4 = vld [vmem:[%s345_s1 + $0x10] sm:$0xff]  ;;  %v21_v6 = vld [vmem:[%s345_s1 + $0x8] sm:$0xff] }
   0x3   :  { %v24_v2 = vadd.f32 %v20_v1, %v16_v0  ;;  %v26_v7 = vadd.f32 %v22_v4, %v18_v3  ;;  %v19_v8 = vld [vmem:[%s344_s0 + $0x18] sm:$0xff]  ;;  %v25_v10 = vadd.f32 %v21_v6, %v17_v5  ;;  %v56_v16 = vld [vmem:[%s346_s2] sm:$0xff]  ;;  %v57_v17 = vld [vmem:[%s346_s2 + $0x8] sm:$0xff] }
   0x4   :  { %v23_v9 = vld [vmem:[%s345_s1 + $0x18] sm:$0xff]  ;;  %v58_v18 = vld [vmem:[%s346_s2 + $0x10] sm:$0xff] }
   0x5   :  { %200 = vtanh.f32 %v24_v2  ;;  %v27_v11 = vadd.f32 %v23_v9, %v19_v8  ;;  %v59_v19 = vld [vmem:[%s346_s2 + $0x18] sm:$0xff]  ;;  %v193_v20 = vmul.f32 -1.442695, %v24_v2  ;;  %v195_v21 = vmul.f32 -1.442695, %v26_v7  ;;  %s233_s2 = smov 96  }
   0x6   :  { %202 = vtanh.f32 %v26_v7  ;;  %v194_v22 = vmul.f32 -1.442695, %v25_v10 }
   0x7   :  { %204 = vtanh.f32 %v25_v10  ;;  %v196_v23 = vmul.f32 -1.442695, %v27_v11 }
   0x8   :  { %206 = vtanh.f32 %v27_v11 }
   0x9   :  { %208 = vpow2.f32 %v193_v20 }
   0xa   :  { %210 = vpow2.f32 %v195_v21 }
   0xb   :  { %212 = vpow2.f32 %v194_v22 }
   0xc   :  { %214 = vpow2.f32 %v196_v23 }
   0xf   :  { %v201_v12 = vpop.eup %200 }
  0x10   :  { %v203_v13 = vpop.eup %202  ;;  %84 = vrot.lane.b32.xlu0 %v201_v12, %s232_s5 }
  0x11   :  { %88 = vrot.lane.b32.xlu1 %v203_v13, %s232_s5  ;;  %v205_v14 = vpop.eup %204 }
  0x12   :  { %v207_v15 = vpop.eup %206 }
  0x13   :  { %v209_v24 = vpop.eup %208 }
  0x14   :  { %86 = vrot.lane.b32.xlu0 %v205_v14, %s232_s5  ;;  %v211_v25 = vpop.eup %210  ;;  %v40_v26 = vadd.f32 1.0, %v209_v24 }
  0x15   :  { %90 = vrot.lane.b32.xlu1 %v207_v15, %s232_s5  ;;  %v42_v27 = vadd.f32 1.0, %v211_v25  ;;  %v213_v28 = vpop.eup %212 }
  0x16   :  { %216 = vrcp.f32 %v40_v26  ;;  %v215_v29 = vpop.eup %214  ;;  %v41_v30 = vadd.f32 1.0, %v213_v28 }
  0x17   :  { %218 = vrcp.f32 %v42_v27  ;;  %v43_v31 = vadd.f32 1.0, %v215_v29 }
  0x18   :  { %64 = vrot.lane.b32.xlu0 %v56_v16, %s232_s5  ;;  %220 = vrcp.f32 %v41_v30 }
  0x19   :  { %66 = vrot.lane.b32.xlu1 %v57_v17, %s232_s5  ;;  %222 = vrcp.f32 %v43_v31 }
  0x1c   :  { %68 = vrot.lane.b32.xlu0 %v58_v18, %s232_s5 }
  0x1d   :  { %70 = vrot.lane.b32.xlu1 %v59_v19, %s232_s5 }
  0x20   :  { %v217_v32 = vpop.eup %216 }
  0x21   :  { %v219_v33 = vpop.eup %218 }
  0x22   :  { %v221_v38 = vpop.eup %220 }
  0x23   :  { %v223_v39 = vpop.eup %222 }
  0x82   :  { %v85_v34 = vpop.permute.xlu0 %84 }
  0x83   :  { %v96_v35 = vmul.f32 %v217_v32, %v85_v34  ;;  %v89_v36 = vpop.permute.xlu1 %88 }
  0x84   :  { %v98_v37 = vmul.f32 %v219_v33, %v89_v36 }
  0x85   :  { %104 = vrot.lane.b32.xlu0 %v96_v35, %s232_s5 }
  0x86   :  { %v87_v40 = vpop.permute.xlu0 %86 }
  0x87   :  { %v97_v41 = vmul.f32 %v221_v38, %v87_v40  ;;  %v91_v42 = vpop.permute.xlu1 %90 }
  0x88   :  { %v99_v43 = vmul.f32 %v223_v39, %v91_v42 }
  0x89   :  { %108 = vrot.lane.b32.xlu0 %v98_v37, %s232_s5  ;;  %106 = vrot.lane.b32.xlu1 %v97_v41, %s232_s5 }
  0x8a   :  { %v65_v44 = vpop.permute.xlu0 %64 }
  0x8b   :  { %v67_v45 = vpop.permute.xlu1 %66  ;;  %v76_v47 = vmul.f32 %v217_v32, %v65_v44 }
  0x8c   :  { %v77_v53 = vmul.f32 %v221_v38, %v67_v45 }
  0x8d   :  { %110 = vrot.lane.b32.xlu1 %v99_v43, %s232_s5 }
  0x8e   :  { %v69_v46 = vpop.permute.xlu0 %68 }
  0x8f   :  { %v71_v48 = vpop.permute.xlu1 %70  ;;  %v78_v51 = vmul.f32 %v219_v33, %v69_v46 }
  0x90   :  { %v79_v57 = vmul.f32 %v223_v39, %v71_v48 }
  0xf7   :  { %v105_v49 = vpop.permute.xlu0 %104 }
  0xf8   :  { %v116_v50 = vadd.f32 %v105_v49, %v76_v47 }
  0xfa   :  { %224 = vtanh.f32 %v116_v50 }
  0xfb   :  { %v109_v52 = vpop.permute.xlu0 %108  ;;  %v107_v55 = vpop.permute.xlu1 %106 }
  0xfc   :  { %v118_v54 = vadd.f32 %v109_v52, %v78_v51  ;;  %v117_v56 = vadd.f32 %v107_v55, %v77_v53 }
  0xfe   :  { %226 = vtanh.f32 %v118_v54 }
  0xff   :  { %228 = vtanh.f32 %v117_v56  ;;  %v111_v58 = vpop.permute.xlu1 %110 }
 0x100   :  { %v119_v59 = vadd.f32 %v111_v58, %v79_v57 }
 0x102   :  { %230 = vtanh.f32 %v119_v59 }
 0x104   :  { %v225_v60 = vpop.eup %224 }
 0x105   :  { %149 = vrot.lane.b32.xlu0 %v225_v60, %s232_s5 }
 0x108   :  { %v227_v61 = vpop.eup %226 }
 0x109   :  { %153 = vrot.lane.b32.xlu0 %v227_v61, %s232_s5  ;;  %v229_v62 = vpop.eup %228 }
 0x10a   :  { %151 = vrot.lane.b32.xlu1 %v229_v62, %s232_s5 }
 0x10c   :  { %v231_v63 = vpop.eup %230 }
 0x10d   :  { %124 = vrot.lane.b32.xlu0 %v116_v50, %s233_s2 }
 0x10e   :  { %155 = vrot.lane.b32.xlu1 %v231_v63, %s232_s5 }
 0x111   :  { %128 = vrot.lane.b32.xlu0 %v118_v54, %s233_s2 }
 0x112   :  { %126 = vrot.lane.b32.xlu1 %v117_v56, %s233_s2 }
 0x116   :  { %130 = vrot.lane.b32.xlu1 %v119_v59, %s233_s2 }
 0x177   :  { %v150_v0 = vpop.permute.xlu0 %149 }
 0x178   :  { %v161_v1 = vmul.f32 %v217_v32, %v150_v0 }
 0x17a   :  { %169 = vrot.lane.b32.xlu0 %v161_v1, %s234_s12 }
 0x17b   :  { %v154_v2 = vpop.permute.xlu0 %153 }
 0x17c   :  { %v163_v3 = vmul.f32 %v219_v33, %v154_v2  ;;  %v152_v4 = vpop.permute.xlu1 %151 }
 0x17d   :  { %v162_v5 = vmul.f32 %v221_v38, %v152_v4 }
 0x17e   :  { %173 = vrot.lane.b32.xlu0 %v163_v3, %s234_s12 }
 0x17f   :  { %v125_v6 = vpop.permute.xlu0 %124  ;;  %171 = vrot.lane.b32.xlu1 %v162_v5, %s234_s12 }
 0x180   :  { %137 = vst.msk [vmem:[%s347_s3] sm:$0xff] %vm136_vm0, %v125_v6  ;;  %v156_v7 = vpop.permute.xlu1 %155 }
 0x181   :  { %v164_v8 = vmul.f32 %v223_v39, %v156_v7 }
 0x183   :  { %v129_v9 = vpop.permute.xlu0 %128  ;;  %175 = vrot.lane.b32.xlu1 %v164_v8, %s234_s12 }
 0x184   :  { %139 = vst.msk [vmem:[%s347_s3 + $0x10] sm:$0xff] %vm136_vm0, %v129_v9  ;;  %v127_v10 = vpop.permute.xlu1 %126 }
 0x185   :  { %138 = vst.msk [vmem:[%s347_s3 + $0x8] sm:$0xff] %vm136_vm0, %v127_v10 }
 0x188   :  { %v131_v11 = vpop.permute.xlu1 %130 }
 0x189   :  { %140 = vst.msk [vmem:[%s347_s3 + $0x18] sm:$0xff] %vm136_vm0, %v131_v11 }
 0x1ec   :  { %v170_v12 = vpop.permute.xlu0 %169 }
 0x1ed   :  { %181 = vst.msk [vmem:[%s348_s4] sm:$0xff] %vm136_vm0, %v170_v12 }
 0x1f0   :  { %v174_v13 = vpop.permute.xlu0 %173 }
 0x1f1   :  { %183 = vst.msk [vmem:[%s348_s4 + $0x10] sm:$0xff] %vm136_vm0, %v174_v13  ;;  %v172_v14 = vpop.permute.xlu1 %171 }
 0x1f2   :  { %182 = vst.msk [vmem:[%s348_s4 + $0x8] sm:$0xff] %vm136_vm0, %v172_v14 }
 0x1f5   :  { %v176_v15 = vpop.permute.xlu1 %175 }
 0x1f6   :  { %184 = vst.msk [vmem:[%s348_s4 + $0x18] sm:$0xff] %vm136_vm0, %v176_v15 }

// kernel: fwd.40
= control target key start
LH: loop header
LB: loop body
LE: loop exit
PB: predicated region body
PF: predicated region fallthrough
CT: control target
= control target key end

     0   :  { %s219_s5 = smov 3   ;;  %vm80_vm0 = vcmask 23552   ;;  %s362_s0 = inlined_call_operand.vmem [shape: f32[32,6], index: 0, kind: input, shape index: {}]   ;;  %s363_s1 = inlined_call_operand.vmem [shape: f32[32,6], index: 1, kind: input, shape index: {}]   ;;  %s364_s2 = inlined_call_operand.vmem [shape: f32[32,3], index: 2, kind: input, shape index: {}]   ;;  %s365_s3 = inlined_call_operand.vmem [shape: f32[32,3], index: 3, kind: output, shape index: {0}]   ;;  %s366_s4 = inlined_call_operand.vmem [shape: f32[32,3], index: 4, kind: output, shape index: {1}]  }
   0x1   :  { %v249_v0 = vld [vmem:[%s362_s0 + $0x10] sm:$0xff]  ;;  %v259_v2 = vld [vmem:[%s362_s0] sm:$0xff]  ;;  %v271_v5 = vld [vmem:[%s362_s0 + $0x18] sm:$0xff] }
   0x2   :  { %v254_v1 = vld [vmem:[%s363_s1 + $0x10] sm:$0xff]  ;;  %v266_v4 = vld [vmem:[%s363_s1] sm:$0xff]  ;;  %v276_v6 = vld [vmem:[%s363_s1 + $0x18] sm:$0xff]  ;;  %v89_v24 = vmul.f32 1.442695, %v249_v0  ;;  %v24_v28 = vmul.f32 0.5, %v259_v2 }
   0x3   :  { %v107_v3 = vsub.f32 %v249_v0, %v254_v1  ;;  %v105_v7 = vsub.f32 %v259_v2, %v266_v4  ;;  %v108_v8 = vsub.f32 %v271_v5, %v276_v6  ;;  %v285_v9 = vld [vmem:[%s362_s0 + $0x8] sm:$0xff]  ;;  %v36_v17 = vld [vmem:[%s364_s2] sm:$0xff]  ;;  %v39_v18 = vld [vmem:[%s364_s2 + $0x18] sm:$0xff]  ;;  %v93_v20 = vmul.f32 1.442695, %v266_v4 }
   0x4   :  { %v290_v10 = vld [vmem:[%s363_s1 + $0x8] sm:$0xff]  ;;  %v38_v19 = vld [vmem:[%s364_s2 + $0x10] sm:$0xff]  ;;  %v99_v22 = vmul.f32 1.442695, %v276_v6  ;;  %v97_v23 = vmul.f32 1.442695, %v254_v1  ;;  %v101_v52 = vsub.f32 %v266_v4, %v259_v2  ;;  %v103_v63 = vsub.f32 %v254_v1, %v249_v0 }
   0x5   :  { %v111_v11 = vmul.f32 %v107_v3, %v107_v3  ;;  %v106_v12 = vsub.f32 %v285_v9, %v290_v10  ;;  %v109_v13 = vmul.f32 %v105_v7, %v105_v7  ;;  %v112_v14 = vmul.f32 %v108_v8, %v108_v8  ;;  %v37_v16 = vld [vmem:[%s364_s2 + $0x8] sm:$0xff]  ;;  %s220_s2 = smov 125  }
   0x6   :  { %v95_v21 = vmul.f32 1.442695, %v290_v10  ;;  %187 = vpow2.f32 %v93_v20  ;;  %v25_v25 = vmul.f32 0.5, %v285_v9  ;;  %v85_v26 = vmul.f32 1.442695, %v259_v2 }
   0x7   :  { %121 = vrot.lane.b32.xlu1 %v111_v11, %s219_s5  ;;  %117 = vrot.lane.b32.xlu0 %v109_v13, %s219_s5  ;;  %v110_v15 = vmul.f32 %v106_v12, %v106_v12  ;;  %v91_v27 = vmul.f32 1.442695, %v271_v5  ;;  %v87_v29 = vmul.f32 1.442695, %v285_v9  ;;  %v28_v32 = vmul.f32 1.442695, %v24_v28 }
   0x8   :  { %189 = vpow2.f32 %v95_v21  ;;  %v30_v30 = vmul.f32 1.442695, %v25_v25  ;;  %v27_v34 = vmul.f32 0.5, %v271_v5  ;;  %v26_v36 = vmul.f32 0.5, %v249_v0 }
   0x9   :  { %191 = vpow2.f32 %v99_v22  ;;  %v102_v58 = vsub.f32 %v290_v10, %v285_v9  ;;  %v104_v3 = vsub.f32 %v276_v6, %v271_v5 }
   0xa   :  { %193 = vpow2.f32 %v97_v23  ;;  %v34_v38 = vmul.f32 1.442695, %v27_v34  ;;  %v32_v39 = vmul.f32 1.442695, %v26_v36 }
   0xb   :  { %123 = vrot.lane.b32.xlu1 %v112_v14, %s219_s5  ;;  %119 = vrot.lane.b32.xlu0 %v110_v15, %s219_s5  ;;  %195 = vpow2.f32 %v89_v24 }
   0xc   :  { %197 = vpow2.f32 %v85_v26 }
   0xd   :  { %199 = vpow2.f32 %v91_v27 }
   0xe   :  { %201 = vpow2.f32 %v87_v29 }
   0xf   :  { %46 = vrot.lane.b32.xlu1 %v37_v16, %s219_s5  ;;  %44 = vrot.lane.b32.xlu0 %v36_v17, %s219_s5  ;;  %203 = vpow2.f32 %v30_v30 }
  0x10   :  { %v188_v31 = vpop.eup %187 }
  0x11   :  { %205 = vrcp.f32 %v188_v31 }
  0x12   :  { %v190_v33 = vpop.eup %189  ;;  %207 = vpow2.f32 %v28_v32 }
  0x13   :  { %50 = vrot.lane.b32.xlu1 %v39_v18, %s219_s5  ;;  %48 = vrot.lane.b32.xlu0 %v38_v19, %s219_s5  ;;  %v192_v35 = vpop.eup %191  ;;  %209 = vrcp.f32 %v190_v33 }
  0x14   :  { %v194_v37 = vpop.eup %193  ;;  %211 = vrcp.f32 %v192_v35 }
  0x15   :  { %213 = vrcp.f32 %v194_v37  ;;  %v196_v40 = vpop.eup %195 }
  0x16   :  { %v198_v41 = vpop.eup %197  ;;  %215 = vpow2.f32 %v34_v38 }
  0x17   :  { %v200_v42 = vpop.eup %199  ;;  %217 = vpow2.f32 %v32_v39 }
  0x18   :  { %v202_v44 = vpop.eup %201 }
  0x19   :  { %v204_v46 = vpop.eup %203 }
  0x1b   :  { %v206_v48 = vpop.eup %205 }
  0x1c   :  { %v208_v49 = vpop.eup %207 }
  0x1d   :  { %v210_v51 = vpop.eup %209 }
  0x1e   :  { %v212_v55 = vpop.eup %211 }
  0x1f   :  { %v214_v60 = vpop.eup %213 }
  0x20   :  { %v216_v11 = vpop.eup %215 }
  0x21   :  { %v218_v16 = vpop.eup %217 }
  0x79   :  { %v122_v43 = vpop.permute.xlu1 %121  ;;  %v118_v45 = vpop.permute.xlu0 %117 }
  0x7a   :  { %v129_v47 = vadd.f32 %v198_v41, %v118_v45  ;;  %v131_v56 = vadd.f32 %v196_v40, %v122_v43 }
  0x7c   :  { %v134_v57 = vmul.f32 %v206_v48, %v129_v47  ;;  %v138_v12 = vmul.f32 %v214_v60, %v131_v56 }
  0x7d   :  { %v124_v50 = vpop.permute.xlu1 %123  ;;  %v120_v54 = vpop.permute.xlu0 %119 }
  0x7e   :  { %v132_v53 = vadd.f32 %v200_v42, %v124_v50  ;;  %v130_v59 = vadd.f32 %v202_v44, %v120_v54  ;;  %v141_v13 = vadd.f32 %v134_v57, %v101_v52  ;;  %v143_v20 = vadd.f32 %v138_v12, %v103_v63 }
  0x80   :  { %v136_v61 = vmul.f32 %v210_v51, %v130_v59  ;;  %v140_v7 = vmul.f32 %v212_v55, %v132_v53  ;;  %v181_v6 = vadd.f32 -1.0, %v141_v13  ;;  %v183_v25 = vadd.f32 -1.0, %v143_v20 }
  0x81   :  { %v47_v62 = vpop.permute.xlu1 %46  ;;  %v45_v8 = vpop.permute.xlu0 %44 }
  0x82   :  { %v57_v4 = vmul.f32 %v204_v46, %v47_v62  ;;  %v142_v14 = vadd.f32 %v136_v61, %v102_v58  ;;  %v56_v15 = vmul.f32 %v208_v49, %v45_v8  ;;  %v144_v17 = vadd.f32 %v140_v7, %v104_v3 }
  0x83   :  { %v149_v24 = vmul.f32 0.5, %v181_v6  ;;  %v151_v27 = vmul.f32 0.5, %v183_v25 }
  0x84   :  { %66 = vrot.lane.b32.xlu1 %v57_v4, %s220_s2  ;;  %64 = vrot.lane.b32.xlu0 %v56_v15, %s220_s2  ;;  %v182_v1 = vadd.f32 -1.0, %v142_v14  ;;  %v184_v23 = vadd.f32 -1.0, %v144_v17 }
  0x85   :  { %v51_v10 = vpop.permute.xlu1 %50  ;;  %v49_v19 = vpop.permute.xlu0 %48 }
  0x86   :  { %v59_v18 = vmul.f32 %v216_v11, %v51_v10  ;;  %v58_v21 = vmul.f32 %v218_v16, %v49_v19  ;;  %v150_v22 = vmul.f32 0.5, %v182_v1  ;;  %v152_v26 = vmul.f32 0.5, %v184_v23 }
  0x88   :  { %70 = vrot.lane.b32.xlu1 %v59_v18, %s220_s2  ;;  %68 = vrot.lane.b32.xlu0 %v58_v21, %s220_s2 }
  0x8c   :  { %159 = vrot.lane.b32.xlu1 %v150_v22, %s220_s2  ;;  %157 = vrot.lane.b32.xlu0 %v149_v24, %s220_s2 }
  0x90   :  { %163 = vrot.lane.b32.xlu1 %v152_v26, %s220_s2  ;;  %161 = vrot.lane.b32.xlu0 %v151_v27, %s220_s2 }
  0xf6   :  { %v67_v28 = vpop.permute.xlu1 %66  ;;  %v65_v30 = vpop.permute.xlu0 %64 }
  0xf7   :  { %v77_v29 = vadd.f32 %v67_v28, %v285_v9  ;;  %v76_v31 = vadd.f32 %v65_v30, %v259_v2 }
  0xf9   :  { %82 = vst.msk [vmem:[%s365_s3 + $0x8] sm:$0xff] %vm80_vm0, %v77_v29  ;;  %81 = vst.msk [vmem:[%s365_s3] sm:$0xff] %vm80_vm0, %v76_v31 }
  0xfa   :  { %v71_v32 = vpop.permute.xlu1 %70  ;;  %v69_v34 = vpop.permute.xlu0 %68 }
  0xfb   :  { %v79_v33 = vadd.f32 %v71_v32, %v271_v5  ;;  %v78_v35 = vadd.f32 %v69_v34, %v249_v0 }
  0xfd   :  { %84 = vst.msk [vmem:[%s365_s3 + $0x18] sm:$0xff] %vm80_vm0, %v79_v33  ;;  %83 = vst.msk [vmem:[%s365_s3 + $0x10] sm:$0xff] %vm80_vm0, %v78_v35 }
  0xfe   :  { %v160_v2 = vpop.permute.xlu1 %159  ;;  %v158_v5 = vpop.permute.xlu0 %157 }
  0xff   :  { %170 = vst.msk [vmem:[%s366_s4 + $0x8] sm:$0xff] %vm80_vm0, %v160_v2  ;;  %169 = vst.msk [vmem:[%s366_s4] sm:$0xff] %vm80_vm0, %v158_v5 }
 0x102   :  { %v164_v0 = vpop.permute.xlu1 %163  ;;  %v162_v9 = vpop.permute.xlu0 %161 }
 0x103   :  { %172 = vst.msk [vmem:[%s366_s4 + $0x18] sm:$0xff] %vm80_vm0, %v164_v0  ;;  %171 = vst.msk [vmem:[%s366_s4 + $0x10] sm:$0xff] %vm80_vm0, %v162_v9 }

// kernel: fwd.36
= control target key start
LH: loop header
LB: loop body
LE: loop exit
PB: predicated region body
PF: predicated region fallthrough
CT: control target
= control target key end

     0   :  { %s3557_s12 = smov 0   ;;  %s4052_s0 = inlined_call_operand.vmem [shape: bf16[2,64,35], index: 0, kind: input, shape index: {}]   ;;  %s4053_s1 = inlined_call_operand.vmem [shape: bf16[5,5,35,128], index: 1, kind: input, shape index: {}]   ;;  %s4054_s2 = inlined_call_operand.vmem [shape: f32[1,128], index: 2, kind: input, shape index: {}]   ;;  %s4055_s3 = inlined_call_operand.vmem [shape: f32[2,28,128], index: 3, kind: output, shape index: {}]  }
   0x1 LB: > { %s2652_s13 = sadd.s32 4294967295, %s3534_s12   ;;  %p2656_p0 = scmp.ge.s32.totalorder %s3534_s12, 1  ;;  %s3534_s12 = sphi %s3557_s12, %s13_s12  }
   0x2   : > { %p137_p1 = scmp.lt.s32.totalorder %s3534_s12, 3 }
   0x4   : > { %p138_p2 = pnand %p2656_p0, %p137_p1 }
   0x5   : > { %v3421_v0 = vld [vmem:[%s4053_s1 + $0xf0] sm:$0xff] (!%p138_p2)   ;;  %vm236_vm0 = vcmask (!%p138_p2), 1040384   ;;  %vm237_vm1 = vcmask (!%p138_p2), 1041408   ;;  %v3423_v2 = vld [vmem:[%s4053_s1 + $0xf8] sm:$0xff] (!%p138_p2)   ;;  %v3536_v4 = vmov (!%p138_p2), 65535   ;;  %p161_p3 = scmp.lt.s32.totalorder (!%p138_p2), %s2652_s13, 1 }
   0x6   : > { %141 = sbr.rel (%p138_p2) target bundleno = 388 (0x184), region = 32  ;;  %v3422_v1 = vld [vmem:[%s4053_s1 + $0x14] sm:$0xff] (!%p138_p2)   ;;  %3186 = vmatprep.subr.bf16.mxu0 (!%p138_p2), %v3421_v0  ;;  %v3424_v3 = vld [vmem:[%s4053_s1 + $0x1c] sm:$0xff] (!%p138_p2)   ;;  %v238_v5 = vsel (!%p138_p2), %vm236_vm0, 4294967295, %v3536_v4  ;;  %v3430_v11 = vld [vmem:[%s4053_s1 + $0x104] sm:$0xff] (!%p138_p2)   ;;  %vm377_vm2 = vcmask (!%p138_p2), 1046528  }
   0x7   : > { %3187 = vmatpush3.bf16.msra.mxu0 (!%p138_p2), %v3421_v0  ;;  %3066 = vmatprep.subr.bf16.mxu1 (!%p138_p2), %v3422_v1  ;;  %v3577_v6 = vsel (!%p138_p2), %vm237_vm1, %v238_v5, 0  ;;  %v3425_v7 = vld [vmem:[%s4053_s1 + $0x100] ss:$0 sps:$4 sm:$0x33] (!%p138_p2)   ;;  %vm229_vm3 = vcmask (!%p138_p2), 285696   ;;  %v3435_v34 = vld [vmem:[%s4053_s1 + $0x10c] sm:$0xff] (!%p138_p2)  }
   0x8   : > { %3067 = vmatpush3.bf16.msra.mxu1 (!%p138_p2), %v3422_v1  ;;  %3188 = vmatprep.subr.bf16.mxu0 (!%p138_p2), %v3423_v2  ;;  %v3426_v8 = vld [vmem:[%s4053_s1 + $0x24] ss:$0 sps:$4 sm:$0x33] (!%p138_p2)   ;;  %v1369_v9 = vand.u32 (!%p138_p2), %v3425_v7, %v3577_v6  ;;  %vm198_vm4 = vsmask.f32 (!%p138_p2), 7424  ;;  %v3436_v44 = vld [vmem:[%s4053_s1 + $0x8] sm:$0xff] (!%p138_p2)  }
   0x9   : > { %3068 = vmatprep.subr.bf16.mxu1 (!%p138_p2), %v3424_v3  ;;  %v241_v10 = vand.u32 (!%p138_p2), %v3426_v8, %v3577_v6  ;;  %v3434_v12 = vld [vmem:[%s4053_s1] sm:$0xff] (!%p138_p2)   ;;  %v3437_v35 = vld [vmem:[%s4053_s1 + $0x114] ss:$0 sps:$4 sm:$0x33] (!%p138_p2)   ;;  %vm468_vm5 = vsmask.f32 (!%p138_p2), 6400 }
   0xa   : > { %v3438_v45 = vld [vmem:[%s4053_s1 + $0x10] ss:$0 sps:$4 sm:$0x33] (!%p138_p2)   ;;  %v1473_v48 = vand.u32 (!%p138_p2), %v3437_v35, %v3577_v6  ;;  %v3439_v57 = vld [vmem:[%s4053_s1 + $0x118] sm:$0xff] (!%p138_p2)   ;;  %vm573_vm6 = vcmask (!%p138_p2), 1045504   ;;  %v3441_v4 = vld [vmem:[%s4053_s1 + $0x28] sm:$0xff] (!%p138_p2)  }
   0xb   : > { %3189 = vmatpush3.bf16.msra.mxu0 (!%p138_p2), %v3423_v2  ;;  %v316_v60 = vand.u32 (!%p138_p2), %v3438_v45, %v3577_v6  ;;  %v3442_v2 = vld [vmem:[%s4053_s1 + $0x120] sm:$0xff] (!%p138_p2)  }
   0xc   : > { %3069 = vmatpush3.bf16.msra.mxu1 (!%p138_p2), %v3424_v3  ;;  %3190 = vmatprep.subr.bf16.mxu0 (!%p138_p2), %v1369_v9  ;;  %v3444_v3 = vld [vmem:[%s4053_s1 + $0x128] ss:$0 sps:$4 sm:$0x33] (!%p138_p2)  }
   0xd   : > { %s4057_s13 = smov (!%p161_p3, %s2652_s13), 1  ;;  %3070 = vmatprep.subr.bf16.mxu1 %v241_v10 }
   0xe   : > { %s2939_s28 = sshll.u32 %s4057_s13, 5 }
   0xf   : > { %s3601_s6 = scalar_lea.vmem %s4052_s0, %s2939_s28  ;;  %3191 = vmatpush3.bf16.msra.mxu0 %v1369_v9  ;;  %s170_s5 = scalar_lea.vmem %s4055_s3, %s2939_s28 }
  0x10   : > { %v3604_v13 = vld [vmem:[%s3601_s6 + $0xc] sm:$0xf]  ;;  %v1138_v14 = vld [vmem:[%s3601_s6 + $0x10] sm:$0xf]  ;;  %v1233_v15 = vld [vmem:[%s3601_s6 + $0x14] sm:$0x7]  ;;  %3071 = vmatpush3.bf16.msra.mxu1 %v241_v10  ;;  %3196 = vmatprep.subr.bf16.mxu0 %v3430_v11 }
  0x11   : > { %v3608_v16 = vcombine.low %v1138_v14, %v1233_v15  ;;  %v1334_v17 = vld [vmem:[%s3601_s6 + $0x8] sm:$0xe]  ;;  %v1424_v18 = vld [vmem:[%s3601_s6 + $0x14] sm:$0xf]  ;;  %v172_v19 = vld [vmem:[%s3601_s6] sm:$0xf]  ;;  %3076 = vmatprep.subr.bf16.mxu1 %v3434_v12 }
  0x12   : > { %v2796_v20 = vcombine.low %v1334_v17, %v3604_v13  ;;  %v3615_v21 = vld [vmem:[%s3601_s6 + $0x4] sm:$0xf]  ;;  %v3618_v22 = vld [vmem:[%s3601_s6 + $0x8] sm:$0xf]  ;;  %v181_v23 = vld [vmem:[%s3601_s6 + $0xc] sm:$0x7]  ;;  %v3626_v28 = vcombine.low %v1138_v14, %v1424_v18 }
  0x13   : > { %v1345_v24 = vrot.slane %v3608_v16, 1  ;;  %v2666_v25 = vcombine.low %v172_v19, %v3615_v21  ;;  %v3624_v26 = vcombine.low %v3618_v22, %v181_v23  ;;  %v458_v54 = vld [vmem:[%s3601_s6 + $0xc] sm:$0xf]  ;;  %v1528_v55 = vld [vmem:[%s3601_s6 + $0x8] sm:$0xc] }
  0x14   : > { %v1344_v27 = vrot.slane %v2796_v20, 1  ;;  %v1435_v38 = vshrl.u32 %v2796_v20, 16  ;;  %v1438_v39 = vshll.u32 %v2796_v20, 16  ;;  %v1443_v40 = vshrl.u32 %v3626_v28, 16  ;;  %v367_v59 = vld [vmem:[%s3601_s6] sm:$0xe] }
  0x15   : > { %v200_v29 = vshrl.u32 %v2666_v25, 16  ;;  %v202_v30 = vshll.u32 %v2666_v25, 16  ;;  %v207_v31 = vshll.u32 %v3624_v26, 16  ;;  %v211_v32 = vshrl.u32 %v3624_v26, 16  ;;  %v175_v63 = vld [vmem:[%s3601_s6 + $0xc] sm:$0x3] }
  0x16   : > { %v1346_v33 = vsel %vm377_vm2, %v1344_v27, %v1345_v24  ;;  %v1446_v41 = vshll.u32 %v3626_v28, 16  ;;  %v1437_v46 = vrot.slane %v1435_v38, 1  ;;  %v1440_v47 = vrot.slane %v1438_v39, 2  ;;  %v3445_v10 = vld [vmem:[%s4053_s1 + $0x38] ss:$0 sps:$4 sm:$0x33]  }
  0x17   : > { %3192 = vmatprep.mubr.msk.bf16.mxu0 %vm229_vm3, %v1346_v33  ;;  %v204_v36 = vrot.slane %v202_v30, 1  ;;  %v209_v37 = vrot.slane %v207_v31, 1  ;;  %v1445_v49 = vrot.slane %v1443_v40, 1  ;;  %v1539_v58 = vrot.slane %v3626_v28, 2  ;;  %v1618_v15 = vld [vmem:[%s3601_s6 + $0xc] sm:$0xf] }
  0x18   : > { %3193 = vmatmul.mubr.msk.bf16.vlgmr.msra.gmra.mrb[0].mxu0 %vm229_vm3, %v1345_v24  ;;  %v1448_v50 = vrot.slane %v1446_v41, 2  ;;  %v1441_v52 = vor.u32 %v1440_v47, %v1437_v46  ;;  %v2818_v61 = vcombine.low %v1528_v55, %v3604_v13  ;;  %v2684_v62 = vcombine.low %v367_v59, %v3615_v21  ;;  %v3697_v20 = vld [vmem:[%s3601_s6 + $0x10] sm:$0xf]  ;;  %v3452_v27 = vld [vmem:[%s4053_s1 + $0x13c] ss:$0 sps:$4 sm:$0x33]  }
  0x19   : > { %v205_v42 = vor.u32 %v204_v36, %v200_v29  ;;  %v213_v43 = vor.u32 %v211_v32, %v209_v37  ;;  %3197 = vmatpush3.bf16.msra.mxu0 %v3430_v11  ;;  %v3666_v1 = vcombine.low %v3618_v22, %v458_v54  ;;  %v379_v8 = vrot.slane %v3624_v26, 1  ;;  %v3443_v11 = vld [vmem:[%s4053_s1 + $0x30] sm:$0xff]   ;;  %v1715_v26 = vld [vmem:[%s3601_s6 + $0x18] sm:$0x7]  ;;  %v3449_v36 = vld [vmem:[%s4053_s1 + $0x3c] sm:$0xff]  }
  0x1a   : > { %3198 = vmatprep.subr.bf16.mxu0 %v3435_v34  ;;  %v1449_v53 = vor.u32 %v1448_v50, %v1445_v49  ;;  %v1538_v0 = vrot.slane %v2818_v61, 2  ;;  %v378_v7 = vrot.slane %v2684_v62, 1  ;;  %v2673_v9 = vcombine.low %v3618_v22, %v175_v63  ;;  %v3447_v22 = vld [vmem:[%s4053_s1 + $0x12c] sm:$0xff]   ;;  %v3710_v32 = vld [vmem:[%s3601_s6 + $0x14] sm:$0xf]  ;;  %v3457_v47 = vld [vmem:[%s4053_s1 + $0x140] sm:$0xff]  }
  0x1b   : > { %v210_v51 = vsel %vm198_vm4, %v205_v42, %v209_v37  ;;  %v470_v13 = vshrl.u32 %v2684_v62, 16  ;;  %v478_v14 = vshrl.u32 %v3666_v1, 16  ;;  %v473_v17 = vshll.u32 %v2684_v62, 16  ;;  %v3450_v33 = vld [vmem:[%s4053_s1 + $0x134] sm:$0xff]   ;;  %v563_v46 = vld [vmem:[%s3601_s6] sm:$0xc] }
  0x1c   : > { %3072 = vmatprep.mubr.msk.bf16.mxu1 %vm229_vm3, %v210_v51  ;;  %v1450_v56 = vsel %vm468_vm5, %v1441_v52, %v1449_v53  ;;  %v1540_v5 = vsel %vm573_vm6, %v1538_v0, %v1539_v58  ;;  %v481_v18 = vshll.u32 %v3666_v1, 16  ;;  %v380_v19 = vsel %vm377_vm2, %v378_v7, %v379_v8  ;;  %v3453_v39 = vld [vmem:[%s4053_s1 + $0x4c] ss:$0 sps:$4 sm:$0x33]   ;;  %v1816_v51 = vld [vmem:[%s3601_s6 + $0xc] sm:$0xe] }
  0x1d   : > { %3073 = vmatmul.mubr.msk.bf16.vlgmr.msra.gmra.mrb[0].mxu1 %vm229_vm3, %v213_v43  ;;  %3199 = vmatpush3.bf16.msra.mxu0 %v3435_v34  ;;  %v403_v23 = vand.u32 %v3445_v10, %v3577_v6  ;;  %v472_v24 = vrot.slane %v470_v13, 1  ;;  %v2829_v29 = vcombine.low %v1618_v15, %v3697_v20  ;;  %v480_v30 = vrot.slane %v478_v14, 1  ;;  %v3451_v43 = vld [vmem:[%s4053_s1 + $0x44] sm:$0xff]   ;;  %v3461_v54 = vld [vmem:[%s4053_s1 + $0x150] ss:$0 sps:$4 sm:$0x33]  }
  0x1e   : > { %3077 = vmatpush3.bf16.msra.mxu1 %v3434_v12  ;;  %3200 = vmatprep.subr.bf16.mxu0 %v1473_v48  ;;  %v1563_v12 = vand.u32 %v3444_v3, %v3577_v6  ;;  %v483_v31 = vrot.slane %v481_v18, 2  ;;  %v3716_v34 = vcombine.low %v3710_v32, %v1715_v26  ;;  %v1660_v40 = vand.u32 %v3452_v27, %v3577_v6  ;;  %v3459_v55 = vld [vmem:[%s4053_s1 + $0x148] sm:$0xff]   ;;  %v3462_v62 = vld [vmem:[%s4053_s1 + $0x60] ss:$0 sps:$4 sm:$0x33]  }
  0x1f   : > { %3078 = vmatprep.subr.bf16.mxu1 %v3436_v44  ;;  %3202 = vmatprep.mubr.msk.bf16.mxu0 %vm229_vm3, %v1450_v56  ;;  %v1727_v35 = vshll.u32 %v2829_v29, 16  ;;  %v1725_v41 = vshrl.u32 %v2829_v29, 16  ;;  %v508_v50 = vand.u32 %v3453_v39, %v3577_v6  ;;  %v2852_v59 = vcombine.low %v1816_v51, %v3697_v20  ;;  %v1906_v63 = vld [vmem:[%s3601_s6 + $0x18] sm:$0xf]  ;;  %v3467_v10 = vld [vmem:[%s4053_s1 + $0x15c] sm:$0xff]  }
  0x20   : > { %3082 = vmatprep.mubr.msk.bf16.mxu1 %vm229_vm3, %v2666_v25  ;;  %v475_v25 = vrot.slane %v473_v17, 2  ;;  %v484_v38 = vor.u32 %v483_v31, %v480_v30  ;;  %v1732_v28 = vshll.u32 %v3716_v34, 16  ;;  %v1761_v61 = vand.u32 %v3461_v54, %v3577_v6  ;;  %v3790_v13 = vld [vmem:[%s3601_s6 + $0x8] sm:$0xf]  ;;  %v751_v26 = vld [vmem:[%s3601_s6 + $0x10] sm:$0x7] }
  0x21   : > { %3201 = vmatpush3.bf16.msra.mxu0 %v1473_v48  ;;  %v1729_v42 = vrot.slane %v1727_v35, 1  ;;  %v1736_v0 = vshrl.u32 %v3716_v34, 16  ;;  %v1827_v3 = vrot.slane %v3716_v34, 1  ;;  %v599_v7 = vand.u32 %v3462_v62, %v3577_v6  ;;  %v3477_v34 = vld [vmem:[%s4053_s1 + $0x80] sm:$0xff]   ;;  %v942_v62 = vld [vmem:[%s3601_s6 + $0x10] sm:$0xf] }
  0x22   : > { %3079 = vmatpush3.bf16.msra.mxu1 %v3436_v44  ;;  %3206 = vmatprep.subr.bf16.mxu0 %v3439_v57  ;;  %v476_v37 = vor.u32 %v475_v25, %v472_v24  ;;  %v1621_v44 = vld [vmem:[%s3601_s6 + $0x18] sm:$0x3]  ;;  %v1734_v49 = vrot.slane %v1732_v28, 1  ;;  %v1917_v14 = vshrl.u32 %v2852_v59, 16  ;;  %v1920_v15 = vshll.u32 %v2852_v59, 16 }
  0x23   : > { %3080 = vmatprep.subr.bf16.mxu1 %v316_v60  ;;  %v1730_v48 = vor.u32 %v1729_v42, %v1725_v41  ;;  %v2830_v52 = vcombine.low %v3710_v32, %v1621_v44  ;;  %v3470_v24 = vld [vmem:[%s4053_s1 + $0x74] ss:$0 sps:$4 sm:$0x33]   ;;  %v3478_v44 = vld [vmem:[%s4053_s1 + $0x178] ss:$0 sps:$4 sm:$0x33]  }
  0x24   : > { %3203 = vmatmul.mubr.msk.bf16.vlgmr.msra.gmra.mrb[0].mxu0 %vm229_vm3, %v1449_v53  ;;  %v485_v45 = vsel %vm468_vm5, %v476_v37, %v484_v38  ;;  %v2706_v53 = vcombine.low %v563_v46, %v3615_v21  ;;  %v1919_v27 = vrot.slane %v1917_v14, 1  ;;  %v696_v39 = vand.u32 %v3470_v24, %v3577_v6  ;;  %v852_v54 = vld [vmem:[%s3601_s6 + $0x4] sm:$0xe] }
  0x25   : > { %3207 = vmatpush3.bf16.msra.mxu0 %v3439_v57  ;;  %3212 = vmatprep.mubr.msk.bf16.mxu0 %vm229_vm3, %v1540_v5  ;;  %v1735_v56 = vsel %vm198_vm4, %v1730_v48, %v1734_v49  ;;  %v3458_v57 = vld [vmem:[%s4053_s1 + $0x50] sm:$0xff]   ;;  %v3775_v5 = vcombine.low %v3710_v32, %v1906_v63  ;;  %v3809_v32 = vld [vmem:[%s3601_s6 + $0xc] sm:$0xf]  ;;  %v1955_v51 = vand.u32 %v3478_v44, %v3577_v6  ;;  %v3484_v63 = vld [vmem:[%s4053_s1 + $0x184] sm:$0xff]  }
  0x26   : > { %3081 = vmatpush3.bf16.msra.mxu1 %v316_v60  ;;  %3208 = vmatprep.subr.bf16.mxu0 %v3442_v2  ;;  %v574_v21 = vrot.slane %v2706_v53, 2  ;;  %v3460_v60 = vld [vmem:[%s4053_s1 + $0x58] sm:$0xff]  }
  0x27   : > { %3086 = vmatprep.subr.bf16.mxu1 %v3441_v4  ;;  %v1925_v17 = vshrl.u32 %v3775_v5, 16  ;;  %v1928_v18 = vshll.u32 %v3775_v5, 16  ;;  %v2103_v44 = vld [vmem:[%s3601_s6 + $0x1c] sm:$0x3] }
  0x29   : > { %3083 = vmatmul.mubr.msk.bf16.vlgmr.msra.gmra.mrb[0].mxu1 %vm229_vm3, %v2673_v9  ;;  %3209 = vmatpush3.bf16.msra.mxu0 %v3442_v2  ;;  %v1826_v2 = vrot.slane %v2852_v59, 1  ;;  %v1738_v9 = vor.u32 %v1736_v0, %v1734_v49  ;;  %v1927_v30 = vrot.slane %v1925_v17, 1  ;;  %v1930_v31 = vrot.slane %v1928_v18, 2  ;;  %v3489_v18 = vld [vmem:[%s4053_s1 + $0x190] sm:$0xff]  }
  0x2a   : > { %3087 = vmatpush3.bf16.msra.mxu1 %v3441_v4  ;;  %3210 = vmatprep.subr.bf16.mxu0 %v1563_v12  ;;  %v3464_v4 = vld [vmem:[%s4053_s1 + $0x154] sm:$0xff]  }
  0x2b   : > { %3088 = vmatprep.subr.bf16.mxu1 %v3443_v11  ;;  %3092 = vmatprep.mubr.msk.bf16.mxu1 %vm229_vm3, %v380_v19  ;;  %v3466_v19 = vld [vmem:[%s4053_s1 + $0x64] sm:$0xff]  }
  0x2d   : > { %3211 = vmatpush3.bf16.msra.mxu0 %v1563_v12  ;;  %v1828_v12 = vsel %vm377_vm2, %v1826_v2, %v1827_v3 }
  0x2e   : > { %3089 = vmatpush3.bf16.msra.mxu1 %v3443_v11  ;;  %3216 = vmatprep.subr.bf16.mxu0 %v3447_v22  ;;  %v654_v11 = vld [vmem:[%s3601_s6 + $0x4] sm:$0xf] }
  0x2f   : > { %3090 = vmatprep.subr.bf16.mxu1 %v403_v23  ;;  %v2717_v25 = vcombine.low %v654_v11, %v3790_v13  ;;  %v3884_v11 = vld [vmem:[%s3601_s6 + $0x14] sm:$0xf] }
  0x30   : > { %3213 = vmatmul.mubr.msk.bf16.vlgmr.msra.gmra.mrb[0].mxu0 %vm229_vm3, %v1539_v58  ;;  %v575_v58 = vrot.slane %v3666_v1, 2 }
  0x31   : > { %3217 = vmatpush3.bf16.msra.mxu0 %v3447_v22  ;;  %3222 = vmatprep.mubr.msk.bf16.mxu0 %vm229_vm3, %v2829_v29  ;;  %v3468_v22 = vld [vmem:[%s4053_s1 + $0x6c] sm:$0xff]   ;;  %v1922_v29 = vrot.slane %v1920_v15, 2  ;;  %v763_v35 = vshll.u32 %v2717_v25, 16  ;;  %v761_v41 = vshrl.u32 %v2717_v25, 16 }
  0x32   : > { %3091 = vmatpush3.bf16.msra.mxu1 %v403_v23  ;;  %3218 = vmatprep.subr.bf16.mxu0 %v3450_v33  ;;  %v576_v1 = vsel %vm573_vm6, %v574_v21, %v575_v58  ;;  %v2740_v21 = vcombine.low %v852_v54, %v3790_v13  ;;  %v2298_v54 = vld [vmem:[%s3601_s6 + $0x10] sm:$0xe] }
  0x33   : > { %3096 = vmatprep.subr.bf16.mxu1 %v3449_v36  ;;  %v1923_v37 = vor.u32 %v1922_v29, %v1919_v27  ;;  %v765_v42 = vrot.slane %v763_v35, 1  ;;  %v3897_v29 = vld [vmem:[%s3601_s6 + $0x18] sm:$0xf]  ;;  %v3490_v35 = vld [vmem:[%s4053_s1 + $0xa0] sm:$0xff]  }
  0x34   : > { %v956_v14 = vshll.u32 %v2740_v21, 16 }
  0x35   : > { %3093 = vmatmul.mubr.msk.bf16.vlgmr.msra.gmra.mrb[0].mxu1 %vm229_vm3, %v379_v8  ;;  %3219 = vmatpush3.bf16.msra.mxu0 %v3450_v33  ;;  %v3469_v8 = vld [vmem:[%s4053_s1 + $0x164] ss:$0 sps:$4 sm:$0x33]   ;;  %v3812_v33 = vcombine.low %v3809_v32, %v751_v26  ;;  %v766_v48 = vor.u32 %v765_v42, %v761_v41  ;;  %v3492_v42 = vld [vmem:[%s4053_s1 + $0xa8] sm:$0xff]  }
  0x36   : > { %3097 = vmatpush3.bf16.msra.mxu1 %v3449_v36  ;;  %3220 = vmatprep.subr.bf16.mxu0 %v1660_v40  ;;  %v1851_v23 = vand.u32 %v3469_v8, %v3577_v6  ;;  %v3471_v36 = vld [vmem:[%s4053_s1 + $0x168] sm:$0xff]   ;;  %v3487_v8 = vld [vmem:[%s4053_s1 + $0x9c] ss:$0 sps:$4 sm:$0x33]  }
  0x37   : > { %3098 = vmatprep.subr.bf16.mxu1 %v3451_v43  ;;  %3102 = vmatprep.mubr.msk.bf16.mxu1 %vm229_vm3, %v485_v45  ;;  %v768_v28 = vshll.u32 %v3812_v33, 16  ;;  %v3476_v45 = vld [vmem:[%s4053_s1 + $0x170] sm:$0xff]   ;;  %v772_v59 = vshrl.u32 %v3812_v33, 16  ;;  %v863_v2 = vrot.slane %v3812_v33, 1 }
  0x39   : > { %3221 = vmatpush3.bf16.msra.mxu0 %v1660_v40  ;;  %v657_v40 = vld [vmem:[%s3601_s6 + $0x10] sm:$0x3]  ;;  %v770_v49 = vrot.slane %v768_v28, 1 }
  0x3a   : > { %3099 = vmatpush3.bf16.msra.mxu1 %v3451_v43  ;;  %3226 = vmatprep.subr.bf16.mxu0 %v3457_v47  ;;  %v3475_v43 = vld [vmem:[%s4053_s1 + $0x78] sm:$0xff]   ;;  %v3494_v28 = vld [vmem:[%s4053_s1 + $0xb0] ss:$0 sps:$4 sm:$0x33]  }
  0x3b   : > { %3100 = vmatprep.subr.bf16.mxu1 %v508_v50 }
  0x3c   : > { %3223 = vmatmul.mubr.msk.bf16.vlgmr.msra.gmra.mrb[0].mxu0 %vm229_vm3, %v2830_v52  ;;  %v3479_v52 = vld [vmem:[%s4053_s1 + $0x88] ss:$0 sps:$4 sm:$0x33]  }
  0x3d   : > { %3227 = vmatpush3.bf16.msra.mxu0 %v3457_v47  ;;  %3232 = vmatprep.mubr.msk.bf16.mxu0 %vm229_vm3, %v1735_v56  ;;  %v2010_v47 = vld [vmem:[%s3601_s6 + $0xc] sm:$0xc]  ;;  %v3481_v56 = vld [vmem:[%s4053_s1 + $0x17c] sm:$0xff]  }
  0x3e   : > { %3101 = vmatpush3.bf16.msra.mxu1 %v508_v50  ;;  %3228 = vmatprep.subr.bf16.mxu0 %v3459_v55  ;;  %v2718_v50 = vcombine.low %v3809_v32, %v657_v40  ;;  %v2874_v53 = vcombine.low %v2010_v47, %v3697_v20  ;;  %v2021_v20 = vrot.slane %v3775_v5, 2 }
  0x3f   : > { %3106 = vmatprep.subr.bf16.mxu1 %v3458_v57 }
  0x41   : > { %3103 = vmatmul.mubr.msk.bf16.vlgmr.msra.gmra.mrb[0].mxu1 %vm229_vm3, %v484_v38  ;;  %3229 = vmatpush3.bf16.msra.mxu0 %v3459_v55  ;;  %v1931_v38 = vor.u32 %v1930_v31, %v1927_v30  ;;  %v771_v55 = vsel %vm198_vm4, %v766_v48, %v770_v49  ;;  %v3491_v30 = vld [vmem:[%s4053_s1 + $0x198] sm:$0xff]   ;;  %v3493_v31 = vld [vmem:[%s4053_s1 + $0x1a0] ss:$0 sps:$4 sm:$0x33]  }
  0x42   : > { %3107 = vmatpush3.bf16.msra.mxu1 %v3458_v57  ;;  %3230 = vmatprep.subr.bf16.mxu0 %v1761_v61  ;;  %v2020_v57 = vrot.slane %v2874_v53, 2  ;;  %v3503_v53 = vld [vmem:[%s4053_s1 + $0x1b4] ss:$0 sps:$4 sm:$0x33]  }
  0x43   : > { %3108 = vmatprep.subr.bf16.mxu1 %v3460_v60  ;;  %3112 = vmatprep.mubr.msk.bf16.mxu1 %vm229_vm3, %v576_v1  ;;  %v1932_v46 = vsel %vm468_vm5, %v1923_v37, %v1931_v38  ;;  %v862_v1 = vrot.slane %v2740_v21, 1 }
  0x44   : > { %v2022_v0 = vsel %vm573_vm6, %v2020_v57, %v2021_v20  ;;  %v2908_v57 = vcombine.low %v2298_v54, %v3884_v11  ;;  %v1254_v54 = vshrl.u32 %v3608_v16, 16 }
  0x45   : > { %3231 = vmatpush3.bf16.msra.mxu0 %v1761_v61  ;;  %v3486_v61 = vld [vmem:[%s4053_s1 + $0x18c] ss:$0 sps:$4 sm:$0x33]  }
  0x46   : > { %3109 = vmatpush3.bf16.msra.mxu1 %v3460_v60  ;;  %3236 = vmatprep.subr.bf16.mxu0 %v3464_v4  ;;  %v3483_v60 = vld [vmem:[%s4053_s1 + $0x8c] sm:$0xff]   ;;  %v2045_v5 = vand.u32 %v3486_v61, %v3577_v6 }
  0x47   : > { %3110 = vmatprep.subr.bf16.mxu1 %v599_v7 }
  0x48   : > { %3233 = vmatmul.mubr.msk.bf16.vlgmr.msra.gmra.mrb[0].mxu0 %vm229_vm3, %v1738_v9  ;;  %v864_v9 = vsel %vm377_vm2, %v862_v1, %v863_v2 }
  0x49   : > { %3237 = vmatpush3.bf16.msra.mxu0 %v3464_v4  ;;  %3242 = vmatprep.mubr.msk.bf16.mxu0 %vm229_vm3, %v1828_v12  ;;  %v774_v4 = vor.u32 %v772_v59, %v770_v49  ;;  %v953_v12 = vshrl.u32 %v2740_v21, 16  ;;  %v991_v49 = vand.u32 %v3494_v28, %v3577_v6  ;;  %v3502_v21 = vld [vmem:[%s4053_s1 + $0xbc] sm:$0xff]   ;;  %v2492_v28 = vld [vmem:[%s3601_s6 + $0x10] sm:$0xc] }
  0x4a   : > { %3111 = vmatpush3.bf16.msra.mxu1 %v599_v7  ;;  %3238 = vmatprep.subr.bf16.mxu0 %v3467_v10  ;;  %v3485_v7 = vld [vmem:[%s4053_s1 + $0x94] sm:$0xff]   ;;  %v2388_v59 = vld [vmem:[%s3601_s6 + $0x1c] sm:$0xf] }
  0x4b   : > { %3116 = vmatprep.subr.bf16.mxu1 %v3466_v19  ;;  %v955_v24 = vrot.slane %v953_v12, 1  ;;  %v3963_v1 = vcombine.low %v3897_v29, %v2388_v59 }
  0x4d   : > { %3113 = vmatmul.mubr.msk.bf16.vlgmr.msra.gmra.mrb[0].mxu1 %vm229_vm3, %v575_v58  ;;  %3239 = vmatpush3.bf16.msra.mxu0 %v3467_v10  ;;  %v797_v58 = vand.u32 %v3479_v52, %v3577_v6  ;;  %v2100_v10 = vld [vmem:[%s3601_s6 + $0x10] sm:$0xf]  ;;  %v2407_v12 = vshrl.u32 %v3963_v1, 16 }
  0x4e   : > { %3117 = vmatpush3.bf16.msra.mxu1 %v3466_v19  ;;  %3240 = vmatprep.subr.bf16.mxu0 %v1851_v23  ;;  %v887_v19 = vand.u32 %v3487_v8, %v3577_v6  ;;  %v3501_v52 = vld [vmem:[%s4053_s1 + $0x1ac] sm:$0xff]  }
  0x4f   : > { %3118 = vmatprep.subr.bf16.mxu1 %v3468_v22  ;;  %3122 = vmatprep.mubr.msk.bf16.mxu1 %vm229_vm3, %v2717_v25  ;;  %v958_v25 = vrot.slane %v956_v14, 2  ;;  %v2410_v14 = vshll.u32 %v3963_v1, 16 }
  0x51   : > { %3241 = vmatpush3.bf16.msra.mxu0 %v1851_v23  ;;  %v2197_v23 = vld [vmem:[%s3601_s6 + $0x1c] sm:$0x7] }
  0x52   : > { %3119 = vmatpush3.bf16.msra.mxu1 %v3468_v22  ;;  %3246 = vmatprep.subr.bf16.mxu0 %v3471_v36  ;;  %v2885_v22 = vcombine.low %v2100_v10, %v3884_v11  ;;  %v2402_v10 = vshll.u32 %v2908_v57, 16 }
  0x53   : > { %3120 = vmatprep.subr.bf16.mxu1 %v696_v39 }
  0x54   : > { %3243 = vmatmul.mubr.msk.bf16.vlgmr.msra.gmra.mrb[0].mxu0 %vm229_vm3, %v1827_v3  ;;  %v3871_v3 = vcombine.low %v3809_v32, %v942_v62  ;;  %v3906_v32 = vcombine.low %v3897_v29, %v2197_v23  ;;  %v2209_v33 = vshll.u32 %v2885_v22, 16  ;;  %v3506_v62 = vld [vmem:[%s4053_s1 + $0x1b8] sm:$0xff]   ;;  %v2404_v23 = vrot.slane %v2402_v10, 2 }
  0x55   : > { %3247 = vmatpush3.bf16.msra.mxu0 %v3471_v36  ;;  %3252 = vmatprep.mubr.msk.bf16.mxu0 %vm229_vm3, %v1932_v46  ;;  %v959_v36 = vor.u32 %v958_v25, %v955_v24  ;;  %v3498_v46 = vld [vmem:[%s4053_s1 + $0x1a4] sm:$0xff]   ;;  %v2409_v24 = vrot.slane %v2407_v12, 1  ;;  %v2412_v25 = vrot.slane %v2410_v14, 2 }
  0x56   : > { %3121 = vmatpush3.bf16.msra.mxu1 %v696_v39  ;;  %3248 = vmatprep.subr.bf16.mxu0 %v3476_v45  ;;  %v961_v15 = vshrl.u32 %v3871_v3, 16  ;;  %v964_v17 = vshll.u32 %v3871_v3, 16  ;;  %v2207_v39 = vshrl.u32 %v2885_v22, 16  ;;  %v2211_v40 = vrot.slane %v2209_v33, 1 }
  0x57   : > { %3126 = vmatprep.subr.bf16.mxu1 %v3475_v43  ;;  %v2214_v41 = vshll.u32 %v3906_v32, 16 }
  0x58   : > { %v963_v26 = vrot.slane %v961_v15, 1  ;;  %v966_v27 = vrot.slane %v964_v17, 2  ;;  %v2212_v47 = vor.u32 %v2211_v40, %v2207_v39  ;;  %v3508_v15 = vld [vmem:[%s4053_s1 + $0xc8] sm:$0xff]   ;;  %v3517_v39 = vld [vmem:[%s4053_s1 + $0x1d4] sm:$0xff]  }
  0x59   : > { %3123 = vmatmul.mubr.msk.bf16.vlgmr.msra.gmra.mrb[0].mxu1 %vm229_vm3, %v2718_v50  ;;  %3249 = vmatpush3.bf16.msra.mxu0 %v3476_v45  ;;  %v1046_v45 = vld [vmem:[%s3601_s6 + $0x4] sm:$0xc]  ;;  %v2216_v48 = vrot.slane %v2214_v41, 1  ;;  %v2886_v50 = vcombine.low %v3897_v29, %v2103_v44  ;;  %v3519_v40 = vld [vmem:[%s4053_s1 + $0x1dc] ss:$0 sps:$4 sm:$0x33]  }
  0x5a   : > { %3127 = vmatpush3.bf16.msra.mxu1 %v3475_v43  ;;  %3250 = vmatprep.subr.bf16.mxu0 %v1955_v51  ;;  %v967_v37 = vor.u32 %v966_v27, %v963_v26  ;;  %v3510_v26 = vld [vmem:[%s4053_s1 + $0xd0] sm:$0xff]   ;;  %v3512_v27 = vld [vmem:[%s4053_s1 + $0xd8] ss:$0 sps:$4 sm:$0x33]  }
  0x5b   : > { %3128 = vmatprep.subr.bf16.mxu1 %v3477_v34  ;;  %3132 = vmatprep.mubr.msk.bf16.mxu1 %vm229_vm3, %v771_v55  ;;  %v1178_v33 = vand.u32 %v3512_v27, %v3577_v6 }
  0x5c   : > { %v968_v43 = vsel %vm468_vm5, %v959_v36, %v967_v37 }
  0x5d   : > { %3251 = vmatpush3.bf16.msra.mxu0 %v1955_v51  ;;  %v2762_v51 = vcombine.low %v1046_v45, %v3790_v13  ;;  %v3500_v13 = vld [vmem:[%s4053_s1 + $0xb4] sm:$0xff]   ;;  %v3527_v45 = vld [vmem:[%s3601_s6 + $0x10] sm:$0xf] }
  0x5e   : > { %3129 = vmatpush3.bf16.msra.mxu1 %v3477_v34  ;;  %3256 = vmatprep.subr.bf16.mxu0 %v3481_v56  ;;  %v2217_v34 = vsel %vm198_vm4, %v2212_v47, %v2216_v48  ;;  %v2437_v47 = vand.u32 %v3519_v40, %v3577_v6 }
  0x5f   : > { %3130 = vmatprep.subr.bf16.mxu1 %v797_v58  ;;  %v1056_v55 = vrot.slane %v2762_v51, 2 }
  0x60   : > { %3253 = vmatmul.mubr.msk.bf16.vlgmr.msra.gmra.mrb[0].mxu0 %vm229_vm3, %v1931_v38  ;;  %v2142_v38 = vand.u32 %v3493_v31, %v3577_v6 }
  0x61   : > { %3257 = vmatpush3.bf16.msra.mxu0 %v3481_v56  ;;  %3262 = vmatprep.mubr.msk.bf16.mxu0 %vm229_vm3, %v2022_v0  ;;  %v1057_v56 = vrot.slane %v3871_v3, 2  ;;  %v2309_v0 = vrot.slane %v3906_v32, 1 }
  0x62   : > { %3131 = vmatpush3.bf16.msra.mxu1 %v797_v58  ;;  %3258 = vmatprep.subr.bf16.mxu0 %v3484_v63  ;;  %v3504_v58 = vld [vmem:[%s4053_s1 + $0xc4] ss:$0 sps:$4 sm:$0x33]  }
  0x63   : > { %3136 = vmatprep.subr.bf16.mxu1 %v3483_v60  ;;  %v1058_v61 = vsel %vm573_vm6, %v1056_v55, %v1057_v56  ;;  %v3524_v55 = vld [vmem:[%s4053_s1 + $0x1f0] ss:$0 sps:$4 sm:$0x33]  }
  0x65   : > { %3133 = vmatmul.mubr.msk.bf16.vlgmr.msra.gmra.mrb[0].mxu1 %vm229_vm3, %v774_v4  ;;  %3259 = vmatpush3.bf16.msra.mxu0 %v3484_v63  ;;  %v2308_v63 = vrot.slane %v2908_v57, 1  ;;  %v3511_v4 = vld [vmem:[%s4053_s1 + $0x1c8] ss:$0 sps:$4 sm:$0x33]  }
  0x66   : > { %3137 = vmatpush3.bf16.msra.mxu1 %v3483_v60  ;;  %3260 = vmatprep.subr.bf16.mxu0 %v2045_v5  ;;  %v2218_v60 = vshrl.u32 %v3906_v32, 16  ;;  %v2333_v17 = vand.u32 %v3511_v4, %v3577_v6  ;;  %v2413_v32 = vor.u32 %v2412_v25, %v2409_v24 }
  0x67   : > { %3138 = vmatprep.subr.bf16.mxu1 %v3485_v7  ;;  %3142 = vmatprep.mubr.msk.bf16.mxu1 %vm229_vm3, %v864_v9  ;;  %v2310_v8 = vsel %vm377_vm2, %v2308_v63, %v2309_v0  ;;  %v1136_v9 = vld [vmem:[%s3601_s6 + $0x8] sm:$0xf] }
  0x68   : > { %v2220_v3 = vor.u32 %v2218_v60, %v2216_v48  ;;  %v2930_v48 = vcombine.low %v2492_v28, %v3884_v11  ;;  %v3522_v11 = vld [vmem:[%s4053_s1 + $0x1e0] sm:$0xff]  }
  0x69   : > { %3261 = vmatpush3.bf16.msra.mxu0 %v2045_v5  ;;  %v2399_v5 = vshrl.u32 %v2908_v57, 16 }
  0x6a   : > { %3139 = vmatpush3.bf16.msra.mxu1 %v3485_v7  ;;  %3266 = vmatprep.subr.bf16.mxu0 %v3489_v18  ;;  %v3509_v7 = vld [vmem:[%s4053_s1 + $0x1c0] sm:$0xff]  }
  0x6b   : > { %3140 = vmatprep.subr.bf16.mxu1 %v887_v19 }
  0x6c   : > { %3263 = vmatmul.mubr.msk.bf16.vlgmr.msra.gmra.mrb[0].mxu0 %vm229_vm3, %v2021_v20  ;;  %v2243_v20 = vand.u32 %v3503_v53, %v3577_v6  ;;  %v2503_v53 = vrot.slane %v3963_v1, 2 }
  0x6d   : > { %3267 = vmatpush3.bf16.msra.mxu0 %v3489_v18  ;;  %3272 = vmatprep.mubr.msk.bf16.mxu0 %vm229_vm3, %v2885_v22  ;;  %v3526_v18 = vld [vmem:[%s3601_s6 + $0xc] sm:$0xf]  ;;  %v2401_v22 = vrot.slane %v2399_v5, 1 }
  0x6e   : > { %3141 = vmatpush3.bf16.msra.mxu1 %v887_v19  ;;  %3268 = vmatprep.subr.bf16.mxu0 %v3491_v30  ;;  %v2773_v19 = vcombine.low %v1136_v9, %v3526_v18 }
  0x6f   : > { %3146 = vmatprep.subr.bf16.mxu1 %v3490_v35  ;;  %v2405_v31 = vor.u32 %v2404_v23, %v2401_v22 }
  0x70   : > { %v1245_v29 = vshll.u32 %v2773_v19, 16 }
  0x71   : > { %3143 = vmatmul.mubr.msk.bf16.vlgmr.msra.gmra.mrb[0].mxu1 %vm229_vm3, %v863_v2  ;;  %3269 = vmatpush3.bf16.msra.mxu0 %v3491_v30  ;;  %v1081_v2 = vand.u32 %v3504_v58, %v3577_v6  ;;  %v3513_v30 = vld [vmem:[%s4053_s1 + $0x1cc] sm:$0xff]   ;;  %v2414_v41 = vsel %vm468_vm5, %v2405_v31, %v2413_v32 }
  0x72   : > { %3147 = vmatpush3.bf16.msra.mxu1 %v3490_v35  ;;  %3270 = vmatprep.subr.bf16.mxu0 %v2142_v38  ;;  %v1243_v35 = vshrl.u32 %v2773_v19, 16  ;;  %v1247_v36 = vrot.slane %v1245_v29, 1 }
  0x73   : > { %3148 = vmatprep.subr.bf16.mxu1 %v3492_v42  ;;  %3152 = vmatprep.mubr.msk.bf16.mxu1 %vm229_vm3, %v968_v43 }
  0x74   : > { %v1248_v43 = vor.u32 %v1247_v36, %v1243_v35 }
  0x75   : > { %3271 = vmatpush3.bf16.msra.mxu0 %v2142_v38  ;;  %v1139_v38 = vld [vmem:[%s3601_s6 + $0x14] sm:$0x3] }
  0x76   : > { %3149 = vmatpush3.bf16.msra.mxu1 %v3492_v42  ;;  %3276 = vmatprep.subr.bf16.mxu0 %v3498_v46  ;;  %v3516_v42 = vld [vmem:[%s4053_s1 + $0xdc] sm:$0xff]  }
  0x77   : > { %3150 = vmatprep.subr.bf16.mxu1 %v991_v49 }
  0x78   : > { %3273 = vmatmul.mubr.msk.bf16.vlgmr.msra.gmra.mrb[0].mxu0 %vm229_vm3, %v2886_v50  ;;  %v3520_v50 = vld [vmem:[%s4053_s1 + $0xec] ss:$0 sps:$4 sm:$0x33]  }
  0x79   : > { %3277 = vmatpush3.bf16.msra.mxu0 %v3498_v46  ;;  %3282 = vmatprep.mubr.msk.bf16.mxu0 %vm229_vm3, %v2217_v34  ;;  %v2774_v46 = vcombine.low %v3527_v45, %v1139_v38  ;;  %v1279_v34 = vand.u32 %v3520_v50, %v3577_v6 }
  0x7a   : > { %3151 = vmatpush3.bf16.msra.mxu1 %v991_v49  ;;  %3278 = vmatprep.subr.bf16.mxu0 %v3501_v52  ;;  %v3518_v49 = vld [vmem:[%s4053_s1 + $0xe4] sm:$0xff]  }
  0x7b   : > { %3156 = vmatprep.subr.bf16.mxu1 %v3500_v13 }
  0x7d   : > { %3153 = vmatmul.mubr.msk.bf16.vlgmr.msra.gmra.mrb[0].mxu1 %vm229_vm3, %v967_v37  ;;  %3279 = vmatpush3.bf16.msra.mxu0 %v3501_v52  ;;  %v1250_v37 = vshll.u32 %v3608_v16, 16  ;;  %v2502_v52 = vrot.slane %v2930_v48, 2  ;;  %v2527_v16 = vand.u32 %v3524_v55, %v3577_v6 }
  0x7e   : > { %3157 = vmatpush3.bf16.msra.mxu1 %v3500_v13  ;;  %3280 = vmatprep.subr.bf16.mxu0 %v2243_v20  ;;  %v3523_v13 = vld [vmem:[%s4053_s1 + $0x1e8] sm:$0xff]  }
  0x7f   : > { %3158 = vmatprep.subr.bf16.mxu1 %v3502_v21  ;;  %3162 = vmatprep.mubr.msk.bf16.mxu1 %vm229_vm3, %v1058_v61  ;;  %v1252_v44 = vrot.slane %v1250_v37, 1  ;;  %v2936_v61 = vld [vmem:[%s4054_s2] ss:$0 sm:$0xff] }
  0x81   : > { %3281 = vmatpush3.bf16.msra.mxu0 %v2243_v20  ;;  %v1253_v51 = vsel %vm198_vm4, %v1248_v43, %v1252_v44  ;;  %v1256_v57 = vor.u32 %v1254_v54, %v1252_v44 }
  0x82   : > { %3159 = vmatpush3.bf16.msra.mxu1 %v3502_v21  ;;  %3286 = vmatprep.subr.bf16.mxu0 %v3506_v62 }
  0x83   : > { %3160 = vmatprep.subr.bf16.mxu1 %v1081_v2 }
  0x84   : > { %3283 = vmatmul.mubr.msk.bf16.vlgmr.msra.gmra.mrb[0].mxu0 %vm229_vm3, %v2220_v3 }
  0x85   : > { %3287 = vmatpush3.bf16.msra.mxu0 %v3506_v62  ;;  %3292 = vmatprep.mubr.msk.bf16.mxu0 %vm229_vm3, %v2310_v8 }
  0x86   : > { %3161 = vmatpush3.bf16.msra.mxu1 %v1081_v2  ;;  %3288 = vmatprep.subr.bf16.mxu0 %v3509_v7 }
  0x87   : > { %3166 = vmatprep.subr.bf16.mxu1 %v3508_v15 }
  0x89   : > { %3163 = vmatmul.mubr.msk.bf16.vlgmr.msra.gmra.mrb[0].mxu1 %vm229_vm3, %v1057_v56  ;;  %3289 = vmatpush3.bf16.msra.mxu0 %v3509_v7  ;;  %v2504_v56 = vsel %vm573_vm6, %v2502_v52, %v2503_v53 }
  0x8a   : > { %3167 = vmatpush3.bf16.msra.mxu1 %v3508_v15  ;;  %3290 = vmatprep.subr.bf16.mxu0 %v2333_v17 }
  0x8b   : > { %3168 = vmatprep.subr.bf16.mxu1 %v3510_v26  ;;  %3172 = vmatprep.mubr.msk.bf16.mxu1 %vm229_vm3, %v2773_v19 }
  0x8d   : > { %3291 = vmatpush3.bf16.msra.mxu0 %v2333_v17 }
  0x8e   : > { %3169 = vmatpush3.bf16.msra.mxu1 %v3510_v26  ;;  %3296 = vmatprep.subr.bf16.mxu0 %v3513_v30 }
  0x8f   : > { %3170 = vmatprep.subr.bf16.mxu1 %v1178_v33 }
  0x90   : > { %3293 = vmatmul.mubr.msk.bf16.vlgmr.msra.gmra.mrb[0].mxu0 %vm229_vm3, %v2309_v0 }
  0x91   : > { %3297 = vmatpush3.bf16.msra.mxu0 %v3513_v30  ;;  %3302 = vmatprep.mubr.msk.bf16.mxu0 %vm229_vm3, %v2414_v41 }
  0x92   : > { %3171 = vmatpush3.bf16.msra.mxu1 %v1178_v33  ;;  %3298 = vmatprep.subr.bf16.mxu0 %v3517_v39 }
  0x93   : > { %3176 = vmatprep.subr.bf16.mxu1 %v3516_v42 }
  0x95   : > { %3173 = vmatmul.mubr.msk.bf16.vlgmr.msra.gmra.mrb[0].mxu1 %vm229_vm3, %v2774_v46  ;;  %3299 = vmatpush3.bf16.msra.mxu0 %v3517_v39 }
  0x96   : > { %3177 = vmatpush3.bf16.msra.mxu1 %v3516_v42  ;;  %3300 = vmatprep.subr.bf16.mxu0 %v2437_v47 }
  0x97   : > { %3178 = vmatprep.subr.bf16.mxu1 %v3518_v49  ;;  %3182 = vmatprep.mubr.msk.bf16.mxu1 %vm229_vm3, %v1253_v51 }
  0x99   : > { %3301 = vmatpush3.bf16.msra.mxu0 %v2437_v47 }
  0x9a   : > { %3179 = vmatpush3.bf16.msra.mxu1 %v3518_v49  ;;  %3306 = vmatprep.subr.bf16.mxu0 %v3522_v11 }
  0x9b   : > { %3180 = vmatprep.subr.bf16.mxu1 %v1279_v34 }
  0x9c   : > { %3303 = vmatmul.mubr.msk.bf16.vlgmr.msra.gmra.mrb[0].mxu0 %vm229_vm3, %v2413_v32 }
  0x9d   : > { %3307 = vmatpush3.bf16.msra.mxu0 %v3522_v11  ;;  %3312 = vmatprep.mubr.msk.bf16.mxu0 %vm229_vm3, %v2504_v56 }
  0x9e   : > { %3181 = vmatpush3.bf16.msra.mxu1 %v1279_v34  ;;  %3308 = vmatprep.subr.bf16.mxu0 %v3523_v13 }
  0xa1   : > { %3183 = vmatmul.mubr.msk.bf16.vlgmr.msra.gmra.mrb[0].mxu1 %vm229_vm3, %v1256_v57  ;;  %3309 = vmatpush3.bf16.msra.mxu0 %v3523_v13 }
  0xa2   : > { %3310 = vmatprep.subr.bf16.mxu0 %v2527_v16 }
  0xa5   : > { %3311 = vmatpush3.bf16.msra.mxu0 %v2527_v16 }
  0xa8   : > { %3313 = vmatmul.mubr.msk.bf16.vlgmr.msra.gmra.mrb[0].mxu0 %vm229_vm3, %v2503_v53 }
 0x174   : > { %v3184_v20 = vpop.f32.mrb[0].mxu1 }
 0x175   : > { %v1315_v21 = vpop.f32.mrb[1].mxu1 }
 0x176   : > { %v3185_v58 = vpop.f32.mrb[2].mxu1 }
 0x177   : > { %v1318_v59 = vpop.f32.mrb[3].mxu1 }
 0x17b   : > { %v3314_v60 = vpop.f32.mrb[0].mxu0 }
 0x17c   : > { %v3316_v62 = vadd.f32 %v3314_v60, %v3184_v20  ;;  %v2563_v63 = vpop.f32.mrb[1].mxu0 }
 0x17d   : > { %v3317_v6 = vadd.f32 %v2563_v63, %v1315_v21  ;;  %v3315_v0 = vpop.f32.mrb[2].mxu0 }
 0x17e   : > { %v2591_v1 = vadd.f32 %v3316_v62, %v2936_v61  ;;  %v3318_v2 = vadd.f32 %v3315_v0, %v3185_v58  ;;  %v2566_v3 = vpop.f32.mrb[3].mxu0 }
 0x17f   : > { %v2589_v4 = vadd.f32 %v3317_v6, %v2936_v61  ;;  %v3319_v5 = vadd.f32 %v2566_v3, %v1318_v59 }
 0x180   : > { %2595 = vst [vmem:[%s170_s5 + $0x10] sm:$0xff] %v2591_v1  ;;  %v2592_v7 = vadd.f32 %v3318_v2, %v2936_v61 }
 0x181   : > { %2593 = vst [vmem:[%s170_s5] sm:$0xff] %v2589_v4  ;;  %v2590_v8 = vadd.f32 %v3319_v5, %v2936_v61 }
 0x182   : > { %2596 = vst [vmem:[%s170_s5 + $0x18] sm:$0xf] %v2592_v7 }
 0x183   : > { %2594 = vst [vmem:[%s170_s5 + $0x8] sm:$0xff] %v2590_v8 }
 0x184 PF: > { %s13_s12 = sadd.s32 1, %s3534_s12  }
 0x185   : > { %p10_p4 = scmp.ge.s32.totalorder %s13_s12, 4  }
 0x187   :  { %12 = sbr.rel (!%p10_p4) target bundleno = 1 (0x1), region = 86 }

// kernel: fwd.46
= control target key start
LH: loop header
LB: loop body
LE: loop exit
PB: predicated region body
PF: predicated region fallthrough
CT: control target
= control target key end

     0   :  { %s387_s0 = inlined_call_operand.vmem [shape: f32[32,128], index: 0, kind: input, shape index: {}]   ;;  %s388_s1 = inlined_call_operand.vmem [shape: f32[32,128], index: 1, kind: input, shape index: {}]   ;;  %s389_s2 = inlined_call_operand.vmem [shape: f32[32,32], index: 2, kind: input, shape index: {}]   ;;  %s390_s3 = inlined_call_operand.hbm [shape: f32[32,32], index: 3, kind: output, shape index: {0}]   ;;  %s391_s4 = inlined_call_operand.vmem [shape: f32[32,32], index: 4, kind: output, shape index: {1}]  }
   0x1   :  { %v17_v0 = vld [vmem:[%s387_s0] sm:$0xff]  ;;  %v19_v2 = vld [vmem:[%s387_s0 + $0x10] sm:$0xff]  ;;  %v18_v5 = vld [vmem:[%s387_s0 + $0x8] sm:$0xff] }
   0x2   :  { %v21_v1 = vld [vmem:[%s388_s1] sm:$0xff]  ;;  %v23_v4 = vld [vmem:[%s388_s1 + $0x10] sm:$0xff]  ;;  %v22_v6 = vld [vmem:[%s388_s1 + $0x8] sm:$0xff] }
   0x3   :  { %v25_v3 = vadd.f32 %v21_v1, %v17_v0  ;;  %v27_v7 = vadd.f32 %v23_v4, %v19_v2  ;;  %v20_v8 = vld [vmem:[%s387_s0 + $0x18] sm:$0xff]  ;;  %v26_v10 = vadd.f32 %v22_v6, %v18_v5 }
   0x4   :  { %v24_v9 = vld [vmem:[%s388_s1 + $0x18] sm:$0xff] }
   0x5   :  { %216 = vtanh.f32 %v25_v3  ;;  %v28_v11 = vadd.f32 %v24_v9, %v20_v8 }
   0x6   :  { %218 = vtanh.f32 %v27_v7 }
   0x7   :  { %10 = vsyncpa [#allocation3], 0  ;;  %220 = vtanh.f32 %v26_v10  ;;  %s272_s5 = smov 32   ;;  %v57_v16 = vld [vmem:[%s389_s2] sm:$0xff]  ;;  %v58_v17 = vld [vmem:[%s389_s2 + $0x8] sm:$0xff]  ;;  %s274_s12 = smov 64  }
   0x8   :  { %222 = vtanh.f32 %v28_v11  ;;  %v59_v18 = vld [vmem:[%s389_s2 + $0x10] sm:$0xff]  ;;  %v60_v19 = vld [vmem:[%s389_s2 + $0x18] sm:$0xff]  ;;  %v206_v20 = vmul.f32 -1.442695, %v25_v3  ;;  %v208_v21 = vmul.f32 -1.442695, %v27_v7 }
   0x9   :  { %v207_v22 = vmul.f32 -1.442695, %v26_v10  ;;  %v209_v23 = vmul.f32 -1.442695, %v28_v11  ;;  %s273_s2 = smov 96   ;;  %vm137_vm0 = vcmask 261120  }
   0xa   :  { %224 = vpow2.f32 %v206_v20  ;;  %s275_s13 = smov [#allocation2]  }
   0xb   :  { %226 = vpow2.f32 %v208_v21  ;;  %s191_s14 = sshll.u32 %s275_s13, 4  ;;  %s192_s14 = int_to_ptr.vmem [resolvable:$true] %s191_s14 }
   0xc   :  { %228 = vpow2.f32 %v207_v22  ;;  %s248_s15 = scalar_lea.vmem %s192_s14, 512  ;;  %p253_p1 = scmp.lt.s32.totalorder %s192_s14, %s192_s14 }
   0xd   :  { %230 = vpow2.f32 %v209_v23  ;;  %p249_p0 = scmp.ne.s32.totalorder %s192_s14, %s248_s15  ;;  %p254_p2 = scmp.lt.s32.totalorder %s248_s15, %s248_s15 }
   0xf   :  { %v217_v12 = vpop.eup %216  ;;  %p255_p3 = por %p254_p2, %p253_p1 }
  0x10   :  { %v219_v13 = vpop.eup %218  ;;  %85 = vrot.lane.b32.xlu0 %v217_v12, %s272_s5 }
  0x11   :  { %89 = vrot.lane.b32.xlu1 %v219_v13, %s272_s5  ;;  %v221_v14 = vpop.eup %220  ;;  %p256_p4 = pnand %p255_p3, %p249_p0 }
  0x12   :  { %v223_v15 = vpop.eup %222 }
  0x14   :  { %87 = vrot.lane.b32.xlu0 %v221_v14, %s272_s5  ;;  %v225_v24 = vpop.eup %224 }
  0x15   :  { %91 = vrot.lane.b32.xlu1 %v223_v15, %s272_s5  ;;  %v227_v25 = vpop.eup %226  ;;  %v41_v26 = vadd.f32 1.0, %v225_v24 }
  0x16   :  { %v229_v27 = vpop.eup %228  ;;  %v43_v28 = vadd.f32 1.0, %v227_v25 }
  0x17   :  { %v231_v29 = vpop.eup %230  ;;  %232 = vrcp.f32 %v41_v26  ;;  %v42_v30 = vadd.f32 1.0, %v229_v27 }
  0x18   :  { %65 = vrot.lane.b32.xlu0 %v57_v16, %s272_s5  ;;  %234 = vrcp.f32 %v43_v28  ;;  %v44_v31 = vadd.f32 1.0, %v231_v29 }
  0x19   :  { %67 = vrot.lane.b32.xlu1 %v58_v17, %s272_s5  ;;  %236 = vrcp.f32 %v42_v30 }
  0x1a   :  { %238 = vrcp.f32 %v44_v31 }
  0x1c   :  { %69 = vrot.lane.b32.xlu0 %v59_v18, %s272_s5 }
  0x1d   :  { %71 = vrot.lane.b32.xlu1 %v60_v19, %s272_s5 }
  0x21   :  { %v233_v32 = vpop.eup %232 }
  0x22   :  { %v235_v33 = vpop.eup %234 }
  0x23   :  { %v237_v37 = vpop.eup %236 }
  0x24   :  { %v239_v39 = vpop.eup %238 }
  0x82   :  { %v86_v34 = vpop.permute.xlu0 %85 }
  0x83   :  { %v97_v35 = vmul.f32 %v233_v32, %v86_v34  ;;  %v90_v36 = vpop.permute.xlu1 %89 }
  0x84   :  { %v99_v38 = vmul.f32 %v235_v33, %v90_v36 }
  0x85   :  { %105 = vrot.lane.b32.xlu0 %v97_v35, %s272_s5 }
  0x86   :  { %v88_v40 = vpop.permute.xlu0 %87 }
  0x87   :  { %v98_v41 = vmul.f32 %v237_v37, %v88_v40  ;;  %v92_v42 = vpop.permute.xlu1 %91 }
  0x88   :  { %v100_v43 = vmul.f32 %v239_v39, %v92_v42 }
  0x89   :  { %107 = vrot.lane.b32.xlu1 %v98_v41, %s272_s5  ;;  %109 = vrot.lane.b32.xlu0 %v99_v38, %s272_s5 }
  0x8a   :  { %v66_v44 = vpop.permute.xlu0 %65 }
  0x8b   :  { %v68_v45 = vpop.permute.xlu1 %67  ;;  %v77_v48 = vmul.f32 %v233_v32, %v66_v44 }
  0x8c   :  { %v78_v51 = vmul.f32 %v237_v37, %v68_v45 }
  0x8d   :  { %111 = vrot.lane.b32.xlu1 %v100_v43, %s272_s5 }
  0x8e   :  { %v70_v46 = vpop.permute.xlu0 %69 }
  0x8f   :  { %v72_v47 = vpop.permute.xlu1 %71  ;;  %v79_v52 = vmul.f32 %v235_v33, %v70_v46 }
  0x90   :  { %v80_v57 = vmul.f32 %v239_v39, %v72_v47 }
  0xf7   :  { %v106_v49 = vpop.permute.xlu0 %105 }
  0xf8   :  { %v117_v50 = vadd.f32 %v106_v49, %v77_v48 }
  0xfa   :  { %240 = vtanh.f32 %v117_v50 }
  0xfb   :  { %v108_v53 = vpop.permute.xlu1 %107  ;;  %v110_v54 = vpop.permute.xlu0 %109 }
  0xfc   :  { %v118_v55 = vadd.f32 %v108_v53, %v78_v51  ;;  %v119_v56 = vadd.f32 %v110_v54, %v79_v52 }
  0xfe   :  { %242 = vtanh.f32 %v118_v55 }
  0xff   :  { %244 = vtanh.f32 %v119_v56  ;;  %v112_v58 = vpop.permute.xlu1 %111 }
 0x100   :  { %v120_v59 = vadd.f32 %v112_v58, %v80_v57 }
 0x102   :  { %246 = vtanh.f32 %v120_v59 }
 0x104   :  { %v241_v60 = vpop.eup %240 }
 0x105   :  { %150 = vrot.lane.b32.xlu0 %v241_v60, %s272_s5 }
 0x108   :  { %v243_v61 = vpop.eup %242 }
 0x109   :  { %v245_v62 = vpop.eup %244  ;;  %152 = vrot.lane.b32.xlu1 %v243_v61, %s272_s5 }
 0x10a   :  { %154 = vrot.lane.b32.xlu0 %v245_v62, %s272_s5 }
 0x10c   :  { %v247_v63 = vpop.eup %246 }
 0x10d   :  { %156 = vrot.lane.b32.xlu1 %v247_v63, %s272_s5 }
 0x10e   :  { %125 = vrot.lane.b32.xlu0 %v117_v50, %s273_s2 }
 0x111   :  { %127 = vrot.lane.b32.xlu1 %v118_v55, %s273_s2 }
 0x112   :  { %129 = vrot.lane.b32.xlu0 %v119_v56, %s273_s2 }
 0x115   :  { %131 = vrot.lane.b32.xlu1 %v120_v59, %s273_s2 }
 0x177   :  { %v151_v0 = vpop.permute.xlu0 %150 }
 0x178   :  { %v162_v1 = vmul.f32 %v233_v32, %v151_v0 }
 0x17a   :  { %170 = vrot.lane.b32.xlu0 %v162_v1, %s274_s12 }
 0x17b   :  { %v153_v2 = vpop.permute.xlu1 %152 }
 0x17c   :  { %v163_v3 = vmul.f32 %v237_v37, %v153_v2  ;;  %v155_v4 = vpop.permute.xlu0 %154 }
 0x17d   :  { %v164_v5 = vmul.f32 %v235_v33, %v155_v4 }
 0x17e   :  { %172 = vrot.lane.b32.xlu1 %v163_v3, %s274_s12 }
 0x17f   :  { %174 = vrot.lane.b32.xlu0 %v164_v5, %s274_s12  ;;  %v157_v6 = vpop.permute.xlu1 %156 }
 0x180   :  { %v165_v7 = vmul.f32 %v239_v39, %v157_v6  ;;  %v126_v8 = vpop.permute.xlu0 %125 }
 0x181   :  { %138 = vst.msk [vmem:[#allocation2] sm:$0xff] %vm137_vm0, %v126_v8 }
 0x182   :  { %176 = vrot.lane.b32.xlu1 %v165_v7, %s274_s12 }
 0x183   :  { %v128_v9 = vpop.permute.xlu1 %127 }
 0x184   :  { %139 = vst.msk [vmem:[#allocation2 + $0x8] sm:$0xff] %vm137_vm0, %v128_v9  ;;  %v130_v10 = vpop.permute.xlu0 %129 }
 0x185   :  { %140 = vst.msk [vmem:[#allocation2 + $0x10] sm:$0xff] %vm137_vm0, %v130_v10 }
 0x187   :  { %v132_v11 = vpop.permute.xlu1 %131 }
 0x188   :  { %141 = vst.msk [vmem:[#allocation2 + $0x18] sm:$0xff] %vm137_vm0, %v132_v11 }
 0x189   :  { %259 = shalt.err (!%p256_p4)
}
 0x18a   :  { %s260_s18 = scalar_lea.hbm %s390_s3, 512 }
 0x18b   :  { %p261_p5 = scmp.ne.s32.totalorder %s390_s3, %s260_s18  ;;  %p264_p6 = scmp.lt.u32.totalorder %s260_s18, %s390_s3 }
 0x18d   :  { %p266_p7 = pnand %p264_p6, %p261_p5 }
 0x18f   :  { %269 = shalt.err (!%p266_p7)
}
 0x190   :  { %s276_s23 = smov 128   ;;  %s277_s24 = smov 8  }
 0x191   :  { %197 = dma.vmem_to_hbm [thread:$0]  %s192_s14, 512, %s390_s3, [#allocation3], %s276_s23, %s276_s23, %s277_s24  }
 0x1ec   :  { %v171_v12 = vpop.permute.xlu0 %170 }
 0x1ed   :  { %182 = vst.msk [vmem:[%s391_s4] sm:$0xff] %vm137_vm0, %v171_v12 }
 0x1f0   :  { %v173_v13 = vpop.permute.xlu1 %172 }
 0x1f1   :  { %183 = vst.msk [vmem:[%s391_s4 + $0x8] sm:$0xff] %vm137_vm0, %v173_v13  ;;  %v175_v14 = vpop.permute.xlu0 %174 }
 0x1f2   :  { %184 = vst.msk [vmem:[%s391_s4 + $0x10] sm:$0xff] %vm137_vm0, %v175_v14 }
 0x1f4   :  { %v177_v15 = vpop.permute.xlu1 %176 }
 0x1f5   :  { %185 = vst.msk [vmem:[%s391_s4 + $0x18] sm:$0xff] %vm137_vm0, %v177_v15 }
 0x1f6   :  { %270 = dma.done.wait [#allocation3], 512  }
 0x1f7   :  { %271 = vsyncadd [#allocation3], 4294966784 }
 0x1f8   :  { %205 = vsyncpa [#allocation3], 1 }

// kernel: fwd.52
= control target key start
LH: loop header
LB: loop body
LE: loop exit
PB: predicated region body
PF: predicated region fallthrough
CT: control target
= control target key end

     0   :  { %v559_v1 = vmov 0   ;;  %v418_v35 = vlaneseq  ;;  %s737_s1 = inlined_call_operand.vmem [shape: bf16[128,512], index: 1, kind: input, shape index: {}]   ;;  %s738_s0 = inlined_call_operand.vmem [shape: bf16[32,128], index: 0, kind: input, shape index: {}]   ;;  %s739_s2 = inlined_call_operand.vmem [shape: f32[1,512], index: 2, kind: input, shape index: {}]   ;;  %s740_s3 = inlined_call_operand.vmem [shape: f32[32,512], index: 3, kind: output, shape index: {}]  }
   0x1   :  { %v509_v0 = vld [vmem:[%s737_s1 + $0x4] ss:$16 sps:$4 sm:$0xff]   ;;  %291 = vmatprep.mubr.bf16.mxu0 %v559_v1  ;;  %344 = vmatprep.mubr.bf16.mxu1 %v559_v1  ;;  %v511_v2 = vld [vmem:[%s737_s1 + $0xc] ss:$16 sps:$4 sm:$0xff]   ;;  %v513_v3 = vld [vmem:[%s737_s1] ss:$16 sps:$4 sm:$0xff]  }
   0x2   :  { %259 = vmatprep.subr.bf16.mxu0 %v509_v0  ;;  %v514_v4 = vld [vmem:[%s737_s1 + $0x8] ss:$16 sps:$4 sm:$0xff]   ;;  %312 = vmatprep.subr.bf16.mxu1 %v511_v2  ;;  %v515_v5 = vld [vmem:[%s737_s1 + $0x24] ss:$16 sps:$4 sm:$0xff]   ;;  %v517_v6 = vld [vmem:[%s737_s1 + $0x2c] ss:$16 sps:$4 sm:$0xff]  }
   0x3   :  { %260 = vmatpush1.bf16.msra.mxu0 %v513_v3  ;;  %313 = vmatpush1.bf16.msra.mxu1 %v514_v4  ;;  %v519_v7 = vld [vmem:[%s737_s1 + $0x20] ss:$16 sps:$4 sm:$0xff]   ;;  %v520_v8 = vld [vmem:[%s737_s1 + $0x28] ss:$16 sps:$4 sm:$0xff]   ;;  %v521_v9 = vld [vmem:[%s737_s1 + $0x44] ss:$16 sps:$4 sm:$0xff]  }
   0x4   :  { %261 = vmatprep.subr.bf16.mxu0 %v515_v5  ;;  %314 = vmatprep.subr.bf16.mxu1 %v517_v6  ;;  %v523_v10 = vld [vmem:[%s737_s1 + $0x4c] ss:$16 sps:$4 sm:$0xff]   ;;  %v525_v11 = vld [vmem:[%s737_s1 + $0x40] ss:$16 sps:$4 sm:$0xff]   ;;  %v526_v12 = vld [vmem:[%s737_s1 + $0x48] ss:$16 sps:$4 sm:$0xff]  }
   0x5   :  { %v527_v13 = vld [vmem:[%s737_s1 + $0x64] ss:$16 sps:$4 sm:$0xff]   ;;  %v529_v14 = vld [vmem:[%s737_s1 + $0x6c] ss:$16 sps:$4 sm:$0xff]   ;;  %v531_v15 = vld [vmem:[%s737_s1 + $0x60] ss:$16 sps:$4 sm:$0xff]  }
   0x6   :  { %v532_v16 = vld [vmem:[%s737_s1 + $0x68] ss:$16 sps:$4 sm:$0xff]   ;;  %v533_v17 = vld [vmem:[%s737_s1 + $0x84] ss:$16 sps:$4 sm:$0xff]   ;;  %v535_v18 = vld [vmem:[%s737_s1 + $0x8c] ss:$16 sps:$4 sm:$0xff]  }
   0x7   :  { %262 = vmatpush1.bf16.msra.mxu0 %v519_v7  ;;  %315 = vmatpush1.bf16.msra.mxu1 %v520_v8  ;;  %v537_v19 = vld [vmem:[%s737_s1 + $0x80] ss:$16 sps:$4 sm:$0xff]   ;;  %v538_v20 = vld [vmem:[%s737_s1 + $0x88] ss:$16 sps:$4 sm:$0xff]   ;;  %v539_v21 = vld [vmem:[%s737_s1 + $0xa4] ss:$16 sps:$4 sm:$0xff]  }
   0x8   :  { %263 = vmatprep.subr.bf16.mxu0 %v521_v9  ;;  %316 = vmatprep.subr.bf16.mxu1 %v523_v10  ;;  %v541_v22 = vld [vmem:[%s737_s1 + $0xac] ss:$16 sps:$4 sm:$0xff]   ;;  %v543_v23 = vld [vmem:[%s737_s1 + $0xa0] ss:$16 sps:$4 sm:$0xff]   ;;  %v544_v24 = vld [vmem:[%s737_s1 + $0xa8] ss:$16 sps:$4 sm:$0xff]  }
   0x9   :  { %v545_v25 = vld [vmem:[%s737_s1 + $0xc4] ss:$16 sps:$4 sm:$0xff]   ;;  %v547_v26 = vld [vmem:[%s737_s1 + $0xcc] ss:$16 sps:$4 sm:$0xff]   ;;  %v549_v27 = vld [vmem:[%s737_s1 + $0xc0] ss:$16 sps:$4 sm:$0xff]  }
   0xa   :  { %v550_v28 = vld [vmem:[%s737_s1 + $0xc8] ss:$16 sps:$4 sm:$0xff]   ;;  %v551_v29 = vld [vmem:[%s737_s1 + $0xe4] ss:$16 sps:$4 sm:$0xff]   ;;  %v553_v30 = vld [vmem:[%s737_s1 + $0xec] ss:$16 sps:$4 sm:$0xff]  }
   0xb   :  { %264 = vmatpush1.bf16.msra.mxu0 %v525_v11  ;;  %317 = vmatpush1.bf16.msra.mxu1 %v526_v12  ;;  %v555_v31 = vld [vmem:[%s737_s1 + $0xe0] ss:$16 sps:$4 sm:$0xff]   ;;  %v556_v32 = vld [vmem:[%s737_s1 + $0xe8] ss:$16 sps:$4 sm:$0xff]   ;;  %v419_v36 = vshrl.u32 %v418_v35, 7 }
   0xc   :  { %265 = vmatprep.subr.bf16.mxu0 %v527_v13  ;;  %318 = vmatprep.subr.bf16.mxu1 %v529_v14  ;;  %v557_v33 = vld [vmem:[%s738_s0] sm:$0xff]   ;;  %v558_v34 = vld [vmem:[%s738_s0 + $0x8] sm:$0xff]  }
   0xd   :  { %v420_v37 = vsub.s32 0, %v419_v36  ;;  %v428_v38 = vsub.s32 2, %v419_v36  ;;  %v416_v39 = vld [vmem:[%s739_s2] sm:$0xf]  ;;  %v424_v40 = vsub.s32 1, %v419_v36  ;;  %v432_v41 = vsub.s32 3, %v419_v36 }
   0xf   :  { %266 = vmatpush1.bf16.msra.mxu0 %v531_v15  ;;  %319 = vmatpush1.bf16.msra.mxu1 %v532_v16  ;;  %v421_v42 = vrot.slane %v416_v39, %v420_v37  ;;  %v429_v43 = vrot.slane %v416_v39, %v428_v38  ;;  %v425_v44 = vrot.slane %v416_v39, %v424_v40 }
  0x10   :  { %267 = vmatprep.subr.bf16.mxu0 %v533_v17  ;;  %320 = vmatprep.subr.bf16.mxu1 %v535_v18  ;;  %v433_v45 = vrot.slane %v416_v39, %v432_v41 }
  0x13   :  { %268 = vmatpush1.bf16.msra.mxu0 %v537_v19  ;;  %321 = vmatpush1.bf16.msra.mxu1 %v538_v20 }
  0x14   :  { %269 = vmatprep.subr.bf16.mxu0 %v539_v21  ;;  %322 = vmatprep.subr.bf16.mxu1 %v541_v22 }
  0x17   :  { %270 = vmatpush1.bf16.msra.mxu0 %v543_v23  ;;  %323 = vmatpush1.bf16.msra.mxu1 %v544_v24 }
  0x18   :  { %271 = vmatprep.subr.bf16.mxu0 %v545_v25  ;;  %324 = vmatprep.subr.bf16.mxu1 %v547_v26 }
  0x1b   :  { %272 = vmatpush1.bf16.msra.mxu0 %v549_v27  ;;  %325 = vmatpush1.bf16.msra.mxu1 %v550_v28 }
  0x1c   :  { %273 = vmatprep.subr.bf16.mxu0 %v551_v29  ;;  %326 = vmatprep.subr.bf16.mxu1 %v553_v30 }
  0x1f   :  { %274 = vmatpush1.bf16.msra.mxu0 %v555_v31  ;;  %327 = vmatpush1.bf16.msra.mxu1 %v556_v32 }
  0x22   :  { %292 = vmatmul.mubr.bf16.vlgmr.msra.gmra.mrb[0].mxu0 %v557_v33  ;;  %345 = vmatmul.mubr.bf16.vlgmr.msra.gmra.mrb[0].mxu1 %v557_v33 }
  0x23   :  { %301 = vmatprep.mubr.bf16.mxu0 %v559_v1  ;;  %354 = vmatprep.mubr.bf16.mxu1 %v559_v1 }
  0x2a   :  { %302 = vmatmul.mubr.bf16.gmra.mrb[4].mxu0 %v558_v34  ;;  %355 = vmatmul.mubr.bf16.gmra.mrb[4].mxu1 %v558_v34 }
  0xf5   :  { %v293_v46 = vpop.f32.mrb[0].mxu0  ;;  %v346_v47 = vpop.f32.mrb[0].mxu1 }
  0xf6   :  { %v438_v48 = vadd.f32 %v421_v42, %v293_v46  ;;  %v440_v49 = vadd.f32 %v429_v43, %v346_v47  ;;  %v295_v50 = vpop.f32.mrb[1].mxu0  ;;  %v348_v51 = vpop.f32.mrb[1].mxu1 }
  0xf7   :  { %v439_v52 = vadd.f32 %v425_v44, %v295_v50  ;;  %v441_v53 = vadd.f32 %v433_v45, %v348_v51  ;;  %v297_v54 = vpop.f32.mrb[2].mxu0  ;;  %v350_v55 = vpop.f32.mrb[2].mxu1 }
  0xf8   :  { %454 = vst [vmem:[%s740_s3] sm:$0xff] %v438_v48  ;;  %456 = vst [vmem:[%s740_s3 + $0x10] sm:$0xff] %v440_v49  ;;  %v442_v56 = vadd.f32 %v421_v42, %v297_v54  ;;  %v444_v57 = vadd.f32 %v429_v43, %v350_v55  ;;  %v299_v58 = vpop.f32.mrb[3].mxu0  ;;  %v352_v59 = vpop.f32.mrb[3].mxu1 }
  0xf9   :  { %455 = vst [vmem:[%s740_s3 + $0x8] sm:$0xff] %v439_v52  ;;  %457 = vst [vmem:[%s740_s3 + $0x18] sm:$0xff] %v441_v53  ;;  %v443_v60 = vadd.f32 %v425_v44, %v299_v58  ;;  %v445_v61 = vadd.f32 %v433_v45, %v352_v59 }
  0xfa   :  { %458 = vst [vmem:[%s740_s3 + $0x20] sm:$0xff] %v442_v56  ;;  %460 = vst [vmem:[%s740_s3 + $0x30] sm:$0xff] %v444_v57 }
  0xfb   :  { %459 = vst [vmem:[%s740_s3 + $0x28] sm:$0xff] %v443_v60  ;;  %461 = vst [vmem:[%s740_s3 + $0x38] sm:$0xff] %v445_v61 }
  0xfd   :  { %v303_v62 = vpop.f32.mrb[4].mxu0  ;;  %v356_v63 = vpop.f32.mrb[4].mxu1 }
  0xfe   :  { %v446_v0 = vadd.f32 %v421_v42, %v303_v62  ;;  %v448_v1 = vadd.f32 %v429_v43, %v356_v63  ;;  %v305_v2 = vpop.f32.mrb[5].mxu0  ;;  %v358_v3 = vpop.f32.mrb[5].mxu1 }
  0xff   :  { %v447_v4 = vadd.f32 %v425_v44, %v305_v2  ;;  %v449_v5 = vadd.f32 %v433_v45, %v358_v3  ;;  %v307_v6 = vpop.f32.mrb[6].mxu0  ;;  %v360_v7 = vpop.f32.mrb[6].mxu1 }
 0x100   :  { %462 = vst [vmem:[%s740_s3 + $0x40] sm:$0xff] %v446_v0  ;;  %464 = vst [vmem:[%s740_s3 + $0x50] sm:$0xff] %v448_v1  ;;  %v450_v8 = vadd.f32 %v421_v42, %v307_v6  ;;  %v452_v9 = vadd.f32 %v429_v43, %v360_v7  ;;  %v309_v10 = vpop.f32.mrb[7].mxu0  ;;  %v362_v11 = vpop.f32.mrb[7].mxu1 }
 0x101   :  { %463 = vst [vmem:[%s740_s3 + $0x48] sm:$0xff] %v447_v4  ;;  %465 = vst [vmem:[%s740_s3 + $0x58] sm:$0xff] %v449_v5  ;;  %v451_v12 = vadd.f32 %v425_v44, %v309_v10  ;;  %v453_v13 = vadd.f32 %v433_v45, %v362_v11 }
 0x102   :  { %466 = vst [vmem:[%s740_s3 + $0x60] sm:$0xff] %v450_v8  ;;  %468 = vst [vmem:[%s740_s3 + $0x70] sm:$0xff] %v452_v9 }
 0x103   :  { %467 = vst [vmem:[%s740_s3 + $0x68] sm:$0xff] %v451_v12  ;;  %469 = vst [vmem:[%s740_s3 + $0x78] sm:$0xff] %v453_v13 }

// kernel: fwd.42
= control target key start
LH: loop header
LB: loop body
LE: loop exit
PB: predicated region body
PF: predicated region fallthrough
CT: control target
= control target key end

     0   :  { %s3225_s12 = smov 0   ;;  %s3704_s0 = inlined_call_operand.vmem [shape: bf16[2,64,32], index: 0, kind: input, shape index: {}]   ;;  %s3705_s1 = inlined_call_operand.vmem [shape: bf16[5,5,32,128], index: 1, kind: input, shape index: {}]   ;;  %s3706_s2 = inlined_call_operand.vmem [shape: f32[1,128], index: 2, kind: input, shape index: {}]   ;;  %s3707_s3 = inlined_call_operand.vmem [shape: f32[2,28,128], index: 3, kind: output, shape index: {}]  }
   0x1 LB: > { %s2473_s13 = sadd.s32 4294967295, %s3203_s12   ;;  %p2477_p0 = scmp.ge.s32.totalorder %s3203_s12, 1  ;;  %s3203_s12 = sphi %s3225_s12, %s13_s12  }
   0x2   : > { %p137_p1 = scmp.lt.s32.totalorder %s3203_s12, 3 }
   0x4   : > { %p138_p2 = pnand %p2477_p0, %p137_p1 }
   0x5   : > { %v3117_v0 = vld [vmem:[%s3705_s1 + $0xc0] sm:$0xff] (!%p138_p2)   ;;  %p161_p3 = scmp.lt.s32.totalorder (!%p138_p2), %s2473_s13, 1  ;;  %v3118_v1 = vld [vmem:[%s3705_s1 + $0xc8] sm:$0xff] (!%p138_p2)   ;;  %v3119_v2 = vld [vmem:[%s3705_s1 + $0x10] sm:$0xff] (!%p138_p2)   ;;  %vm224_vm0 = vcmask (!%p138_p2), 261120   ;;  %vm358_vm1 = vcmask (!%p138_p2), 1046528  }
   0x6   : > { %141 = sbr.rel (%p138_p2) target bundleno = 388 (0x184), region = 32  ;;  %2909 = vmatprep.subr.bf16.mxu0 (!%p138_p2), %v3117_v0  ;;  %v3123_v3 = vld [vmem:[%s3705_s1 + $0xd0] sm:$0xff] (!%p138_p2)   ;;  %2813 = vmatprep.subr.bf16.mxu1 (!%p138_p2), %v3119_v2  ;;  %v3124_v4 = vld [vmem:[%s3705_s1 + $0x18] sm:$0xff] (!%p138_p2)   ;;  %vm196_vm2 = vsmask.f32 (!%p138_p2), 7424  ;;  %v3129_v21 = vld [vmem:[%s3705_s1] sm:$0xff] (!%p138_p2)  }
   0x7   : > { %2910 = vmatpush3.bf16.msra.mxu0 (!%p138_p2), %v3117_v0  ;;  %2814 = vmatpush3.bf16.msra.mxu1 (!%p138_p2), %v3119_v2  ;;  %v3128_v27 = vld [vmem:[%s3705_s1 + $0xd8] sm:$0xff] (!%p138_p2)   ;;  %vm442_vm3 = vsmask.f32 (!%p138_p2), 6400  ;;  %v3130_v40 = vld [vmem:[%s3705_s1 + $0xe0] sm:$0xff] (!%p138_p2)   ;;  %v3131_v44 = vld [vmem:[%s3705_s1 + $0x8] sm:$0xff] (!%p138_p2)   ;;  %vm540_vm4 = vcmask (!%p138_p2), 1045504  }
   0x8   : > { %2911 = vmatprep.subr.bf16.mxu0 (!%p138_p2), %v3118_v1  ;;  %2815 = vmatprep.subr.bf16.mxu1 (!%p138_p2), %v3124_v4  ;;  %v3134_v52 = vld [vmem:[%s3705_s1 + $0x20] sm:$0xff] (!%p138_p2)   ;;  %v3133_v55 = vld [vmem:[%s3705_s1 + $0xe8] sm:$0xff] (!%p138_p2)   ;;  %v3136_v62 = vld [vmem:[%s3705_s1 + $0xf0] sm:$0xff] (!%p138_p2)  }
   0x9   : > { %v3137_v63 = vld [vmem:[%s3705_s1 + $0x28] sm:$0xff] (!%p138_p2)  }
   0xb   : > { %2912 = vmatpush3.bf16.msra.mxu0 (!%p138_p2), %v3118_v1  ;;  %2816 = vmatpush3.bf16.msra.mxu1 (!%p138_p2), %v3124_v4 }
   0xc   : > { %2917 = vmatprep.subr.bf16.mxu0 (!%p138_p2), %v3123_v3  ;;  %2821 = vmatprep.subr.bf16.mxu1 (!%p138_p2), %v3129_v21 }
   0xd   : > { %s3709_s13 = smov (!%p161_p3, %s2473_s13), 1 }
   0xe   : > { %s2711_s22 = sshll.u32 %s3709_s13, 5 }
   0xf   : > { %s3256_s27 = scalar_lea.vmem %s3704_s0, %s2711_s22  ;;  %s170_s28 = scalar_lea.vmem %s3707_s3, %s2711_s22 }
  0x10   : > { %v3259_v5 = vld [vmem:[%s3256_s27 + $0xc] sm:$0xf]  ;;  %v3262_v6 = vld [vmem:[%s3256_s27 + $0x10] sm:$0xf]  ;;  %v1152_v7 = vld [vmem:[%s3256_s27 + $0x14] sm:$0x7] }
  0x11   : > { %v3266_v8 = vcombine.low %v3262_v6, %v1152_v7  ;;  %v1246_v9 = vld [vmem:[%s3256_s27 + $0x8] sm:$0xe]  ;;  %v1329_v10 = vld [vmem:[%s3256_s27 + $0x14] sm:$0xf]  ;;  %v172_v11 = vld [vmem:[%s3256_s27] sm:$0xf] }
  0x12   : > { %v2593_v12 = vcombine.low %v1246_v9, %v3259_v5  ;;  %v3273_v13 = vcombine.low %v3262_v6, %v1329_v10  ;;  %v3276_v14 = vld [vmem:[%s3256_s27 + $0x4] sm:$0xf]  ;;  %v3279_v15 = vld [vmem:[%s3256_s27 + $0x8] sm:$0xf]  ;;  %v180_v16 = vld [vmem:[%s3256_s27 + $0xc] sm:$0x7] }
  0x13   : > { %v1256_v17 = vrot.slane %v3266_v8, 1  ;;  %v2486_v18 = vcombine.low %v172_v11, %v3276_v14  ;;  %v3285_v19 = vcombine.low %v3279_v15, %v180_v16  ;;  %v1426_v45 = vld [vmem:[%s3256_s27 + $0x8] sm:$0xc]  ;;  %v433_v47 = vld [vmem:[%s3256_s27 + $0xc] sm:$0xf]  ;;  %v3140_v11 = vld [vmem:[%s3705_s1 + $0x30] sm:$0xff]  }
  0x14   : > { %v1255_v20 = vrot.slane %v2593_v12, 1  ;;  %v1339_v28 = vshrl.u32 %v2593_v12, 16  ;;  %v1342_v29 = vshll.u32 %v2593_v12, 16  ;;  %v1347_v30 = vshrl.u32 %v3273_v13, 16  ;;  %v349_v49 = vld [vmem:[%s3256_s27] sm:$0xe] }
  0x15   : > { %v198_v22 = vshrl.u32 %v2486_v18, 16  ;;  %v200_v23 = vshll.u32 %v2486_v18, 16  ;;  %v205_v24 = vshll.u32 %v3285_v19, 16  ;;  %v209_v25 = vshrl.u32 %v3285_v19, 16  ;;  %v175_v56 = vld [vmem:[%s3256_s27 + $0xc] sm:$0x3] }
  0x16   : > { %v1257_v26 = vsel %vm358_vm1, %v1255_v20, %v1256_v17  ;;  %v1350_v33 = vshll.u32 %v3273_v13, 16  ;;  %v1341_v34 = vrot.slane %v1339_v28, 1  ;;  %v1344_v35 = vrot.slane %v1342_v29, 2  ;;  %v1509_v4 = vld [vmem:[%s3256_s27 + $0xc] sm:$0xf]  ;;  %v3139_v20 = vld [vmem:[%s3705_s1 + $0xf8] sm:$0xff]  }
  0x17   : > { %2913 = vmatprep.mubr.msk.bf16.mxu0 %vm224_vm0, %v1257_v26  ;;  %v202_v31 = vrot.slane %v200_v23, 1  ;;  %v207_v32 = vrot.slane %v205_v24, 1  ;;  %v1349_v36 = vrot.slane %v1347_v30, 1  ;;  %v2611_v46 = vcombine.low %v1426_v45, %v3259_v5  ;;  %v3344_v7 = vld [vmem:[%s3256_s27 + $0x10] sm:$0xf]  ;;  %v3143_v23 = vld [vmem:[%s3705_s1 + $0x100] sm:$0xff]  }
  0x18   : > { %2914 = vmatmul.mubr.msk.bf16.vlgmr.msra.gmra.mrb[0].mxu0 %vm224_vm0, %v1256_v17  ;;  %v1352_v39 = vrot.slane %v1350_v33, 2  ;;  %v1345_v41 = vor.u32 %v1344_v35, %v1341_v34  ;;  %v1436_v51 = vrot.slane %v3273_v13, 2  ;;  %v2501_v53 = vcombine.low %v349_v49, %v3276_v14  ;;  %v1599_v10 = vld [vmem:[%s3256_s27 + $0x18] sm:$0x7]  ;;  %v1511_v13 = vld [vmem:[%s3256_s27 + $0x14] sm:$0xf] }
  0x19   : > { %2918 = vmatpush3.bf16.msra.mxu0 %v3123_v3  ;;  %v203_v37 = vor.u32 %v202_v31, %v198_v22  ;;  %v211_v38 = vor.u32 %v209_v25, %v207_v32  ;;  %v1435_v50 = vrot.slane %v2611_v46, 2  ;;  %v3322_v54 = vcombine.low %v3279_v15, %v433_v47  ;;  %v799_v28 = vld [vmem:[%s3256_s27 + $0x4] sm:$0xe]  ;;  %v3144_v29 = vld [vmem:[%s3705_s1 + $0x38] sm:$0xff]   ;;  %v531_v30 = vld [vmem:[%s3256_s27] sm:$0xc] }
  0x1a   : > { %2919 = vmatprep.subr.bf16.mxu0 %v3128_v27  ;;  %v1353_v43 = vor.u32 %v1352_v39, %v1349_v36  ;;  %v359_v58 = vrot.slane %v2501_v53, 1  ;;  %v360_v59 = vrot.slane %v3285_v19, 1  ;;  %v2492_v60 = vcombine.low %v3279_v15, %v175_v56  ;;  %v705_v33 = vld [vmem:[%s3256_s27 + $0x10] sm:$0x7]  ;;  %v1512_v34 = vld [vmem:[%s3256_s27 + $0x18] sm:$0x3] }
  0x1b   : > { %v208_v42 = vsel %vm196_vm2, %v203_v37, %v207_v32  ;;  %v1437_v57 = vsel %vm540_vm4, %v1435_v50, %v1436_v51  ;;  %v452_v61 = vshrl.u32 %v3322_v54, 16  ;;  %v444_v0 = vshrl.u32 %v2501_v53, 16  ;;  %v3376_v32 = vld [vmem:[%s3256_s27 + $0x8] sm:$0xf]  ;;  %v3149_v56 = vld [vmem:[%s3705_s1 + $0x110] sm:$0xff]  }
  0x1c   : > { %2817 = vmatprep.mubr.msk.bf16.mxu1 %vm224_vm0, %v208_v42  ;;  %v1354_v48 = vsel %vm442_vm3, %v1345_v41, %v1353_v43  ;;  %v447_v1 = vshll.u32 %v2501_v53, 16  ;;  %v455_v2 = vshll.u32 %v3322_v54, 16  ;;  %v361_v3 = vsel %vm358_vm1, %v359_v58, %v360_v59  ;;  %v1776_v42 = vld [vmem:[%s3256_s27 + $0x18] sm:$0xf]  ;;  %v3146_v45 = vld [vmem:[%s3705_s1 + $0x108] sm:$0xff]  }
  0x1d   : > { %2818 = vmatmul.mubr.msk.bf16.vlgmr.msra.gmra.mrb[0].mxu1 %vm224_vm0, %v211_v38  ;;  %2920 = vmatpush3.bf16.msra.mxu0 %v3128_v27  ;;  %v454_v9 = vrot.slane %v452_v61, 1  ;;  %v2620_v12 = vcombine.low %v1509_v4, %v3344_v7  ;;  %v446_v15 = vrot.slane %v444_v0, 1  ;;  %v1693_v27 = vld [vmem:[%s3256_s27 + $0xc] sm:$0xe]  ;;  %v2547_v35 = vcombine.low %v799_v28, %v3376_v32  ;;  %v3428_v0 = vld [vmem:[%s3256_s27 + $0x14] sm:$0xf] }
  0x1e   : > { %2822 = vmatpush3.bf16.msra.mxu1 %v3129_v21  ;;  %2921 = vmatprep.mubr.msk.bf16.mxu0 %vm224_vm0, %v1354_v48  ;;  %v449_v16 = vrot.slane %v447_v1, 2  ;;  %v457_v17 = vrot.slane %v455_v2, 2  ;;  %v3383_v38 = vld [vmem:[%s3256_s27 + $0xc] sm:$0xf]  ;;  %v3386_v39 = vcombine.low %v1693_v27, %v3344_v7  ;;  %v2519_v41 = vcombine.low %v531_v30, %v3276_v14  ;;  %v2140_v2 = vld [vmem:[%s3256_s27 + $0x10] sm:$0xe] }
  0x1f   : > { %2925 = vmatprep.subr.bf16.mxu0 %v3130_v40  ;;  %2823 = vmatprep.subr.bf16.mxu1 %v3131_v44  ;;  %v1610_v19 = vshll.u32 %v2620_v12, 16  ;;  %v1608_v24 = vshrl.u32 %v2620_v12, 16  ;;  %v808_v47 = vrot.slane %v2547_v35, 1  ;;  %v542_v50 = vrot.slane %v3322_v54, 2  ;;  %v882_v4 = vld [vmem:[%s3256_s27 + $0x10] sm:$0xf] }
  0x20   : > { %2825 = vmatprep.mubr.msk.bf16.mxu1 %vm224_vm0, %v2486_v18  ;;  %v3354_v18 = vcombine.low %v1511_v13, %v1599_v10  ;;  %v450_v21 = vor.u32 %v449_v16, %v446_v15  ;;  %v3360_v22 = vor.u32 %v457_v17, %v454_v9  ;;  %v1786_v46 = vshrl.u32 %v3386_v39, 16  ;;  %v2046_v15 = vld [vmem:[%s3256_s27 + $0x1c] sm:$0x7] }
  0x21   : > { %v1612_v25 = vrot.slane %v1610_v19, 1  ;;  %v1702_v53 = vrot.slane %v3386_v39, 1  ;;  %v1789_v58 = vshll.u32 %v3386_v39, 16  ;;  %v895_v1 = vshll.u32 %v2547_v35, 16 }
  0x22   : > { %2824 = vmatpush3.bf16.msra.mxu1 %v3131_v44  ;;  %v1615_v26 = vshll.u32 %v3354_v18, 16  ;;  %v459_v31 = vsel %vm442_vm3, %v450_v21, %v3360_v22  ;;  %v2621_v44 = vcombine.low %v1511_v13, %v1512_v34  ;;  %v1619_v14 = vshrl.u32 %v3354_v18, 16  ;;  %v3153_v21 = vld [vmem:[%s3705_s1 + $0x50] sm:$0xff]  }
  0x23   : > { %2829 = vmatprep.subr.bf16.mxu1 %v3134_v52  ;;  %v1613_v36 = vor.u32 %v1612_v25, %v1608_v24  ;;  %v3424_v61 = vrot.slane %v1786_v46, 1  ;;  %v3439_v10 = vcombine.low %v3383_v38, %v882_v4  ;;  %v3468_v34 = vrot.slane %v1789_v58, 2 }
  0x24   : > { %2922 = vmatmul.mubr.msk.bf16.vlgmr.msra.gmra.mrb[0].mxu0 %vm224_vm0, %v1353_v43  ;;  %v1617_v37 = vrot.slane %v1615_v26, 1  ;;  %v3395_v43 = vcombine.low %v3383_v38, %v705_v33  ;;  %v3152_v26 = vld [vmem:[%s3705_s1 + $0x118] sm:$0xff]   ;;  %v615_v33 = vld [vmem:[%s3256_s27 + $0x4] sm:$0xf] }
  0x25   : > { %2926 = vmatpush3.bf16.msra.mxu0 %v3130_v40  ;;  %2929 = vmatprep.mubr.msk.bf16.mxu0 %vm224_vm0, %v1437_v57  ;;  %v3147_v40 = vld [vmem:[%s3705_s1 + $0x40] sm:$0xff]   ;;  %v1703_v57 = vrot.slane %v3354_v18, 1  ;;  %v900_v17 = vshrl.u32 %v3439_v10, 16  ;;  %v903_v19 = vshll.u32 %v3439_v10, 16 }
  0x26   : > { %2927 = vmatprep.subr.bf16.mxu0 %v3133_v55  ;;  %v809_v48 = vrot.slane %v3395_v43, 1  ;;  %v1618_v49 = vsel %vm196_vm2, %v1613_v36, %v1617_v37  ;;  %v1621_v16 = vor.u32 %v1619_v14, %v1617_v37  ;;  %v979_v36 = vld [vmem:[%s3256_s27 + $0x4] sm:$0xc] }
  0x27   : > { %v902_v28 = vrot.slane %v900_v17, 1  ;;  %v3160_v17 = vld [vmem:[%s3705_s1 + $0x60] sm:$0xff]  }
  0x29   : > { %2826 = vmatmul.mubr.msk.bf16.vlgmr.msra.gmra.mrb[0].mxu1 %vm224_vm0, %v2492_v60  ;;  %2928 = vmatpush3.bf16.msra.mxu0 %v3133_v55  ;;  %v3411_v55 = vsel %vm358_vm1, %v808_v47, %v809_v48  ;;  %v3150_v60 = vld [vmem:[%s3705_s1 + $0x48] sm:$0xff]   ;;  %v3154_v47 = vld [vmem:[%s3705_s1 + $0x120] sm:$0xff]  }
  0x2a   : > { %2830 = vmatpush3.bf16.msra.mxu1 %v3134_v52  ;;  %2933 = vmatprep.subr.bf16.mxu0 %v3136_v62  ;;  %v541_v52 = vrot.slane %v2519_v41, 2  ;;  %v989_v41 = vrot.slane %v3439_v10, 2  ;;  %v3193_v10 = vld [vmem:[%s3705_s1 + $0x180] sm:$0xff]  }
  0x2b   : > { %2831 = vmatprep.subr.bf16.mxu1 %v3137_v63  ;;  %2833 = vmatprep.mubr.msk.bf16.mxu1 %vm224_vm0, %v361_v3  ;;  %v3432_v3 = vld [vmem:[%s3256_s27 + $0x18] sm:$0xf] }
  0x2c   : > { %v543_v9 = vsel %vm540_vm4, %v541_v52, %v542_v50 }
  0x2e   : > { %2832 = vmatpush3.bf16.msra.mxu1 %v3137_v63 }
  0x2f   : > { %2837 = vmatprep.subr.bf16.mxu1 %v3140_v11 }
  0x30   : > { %2930 = vmatmul.mubr.msk.bf16.vlgmr.msra.gmra.mrb[0].mxu0 %vm224_vm0, %v1436_v51  ;;  %v3405_v51 = vcombine.low %v1511_v13, %v1776_v42 }
  0x31   : > { %2934 = vmatpush3.bf16.msra.mxu0 %v3136_v62  ;;  %2937 = vmatprep.mubr.msk.bf16.mxu0 %vm224_vm0, %v2620_v12  ;;  %v892_v62 = vshrl.u32 %v2547_v35, 16  ;;  %v897_v12 = vrot.slane %v895_v1, 2  ;;  %v3155_v1 = vld [vmem:[%s3705_s1 + $0x58] sm:$0xff]  }
  0x32   : > { %2935 = vmatprep.subr.bf16.mxu0 %v3139_v20  ;;  %v1794_v63 = vshrl.u32 %v3405_v51, 16 }
  0x34   : > { %v1796_v42 = vrot.slane %v1794_v63, 1  ;;  %v3507_v63 = vld [vmem:[%s3256_s27 + $0x14] sm:$0x3] }
  0x35   : > { %2834 = vmatmul.mubr.msk.bf16.vlgmr.msra.gmra.mrb[0].mxu1 %vm224_vm0, %v360_v59  ;;  %2936 = vmatpush3.bf16.msra.mxu0 %v3139_v20  ;;  %v1956_v59 = vld [vmem:[%s3256_s27 + $0x10] sm:$0xf]  ;;  %v3450_v20 = vcombine.low %v3432_v3, %v2046_v15 }
  0x36   : > { %2838 = vmatpush3.bf16.msra.mxu1 %v3140_v11  ;;  %2941 = vmatprep.subr.bf16.mxu0 %v3143_v23  ;;  %v894_v11 = vrot.slane %v892_v62, 1  ;;  %v3444_v13 = vcombine.low %v1956_v59, %v3428_v0  ;;  %v1062_v59 = vld [vmem:[%s3256_s27 + $0x8] sm:$0xf] }
  0x37   : > { %2839 = vmatprep.subr.bf16.mxu1 %v3144_v29  ;;  %2841 = vmatprep.mubr.msk.bf16.mxu1 %vm224_vm0, %v459_v31  ;;  %v2062_v30 = vshll.u32 %v3450_v20, 16  ;;  %v1704_v31 = vsel %vm358_vm1, %v1702_v53, %v1703_v57  ;;  %v2150_v46 = vrot.slane %v3450_v20, 1 }
  0x38   : > { %v2055_v24 = vshrl.u32 %v3444_v13, 16  ;;  %v2057_v25 = vshll.u32 %v3444_v13, 16  ;;  %v898_v27 = vor.u32 %v897_v12, %v894_v11 }
  0x39   : > { %v3473_v39 = vrot.slane %v2062_v30, 1 }
  0x3a   : > { %2840 = vmatpush3.bf16.msra.mxu1 %v3144_v29  ;;  %v905_v29 = vrot.slane %v903_v19, 2  ;;  %v2059_v35 = vrot.slane %v2057_v25, 1 }
  0x3b   : > { %2845 = vmatprep.subr.bf16.mxu1 %v3147_v40 }
  0x3c   : > { %2938 = vmatmul.mubr.msk.bf16.vlgmr.msra.gmra.mrb[0].mxu0 %vm224_vm0, %v2621_v44  ;;  %v3471_v37 = vor.u32 %v905_v29, %v902_v28  ;;  %v2060_v44 = vor.u32 %v2059_v35, %v2055_v24  ;;  %v1168_v24 = vshll.u32 %v3266_v8, 16  ;;  %v2320_v28 = vld [vmem:[%s3256_s27 + $0x10] sm:$0xc]  ;;  %v3159_v35 = vld [vmem:[%s3705_s1 + $0x128] sm:$0xff]  }
  0x3d   : > { %2942 = vmatpush3.bf16.msra.mxu0 %v3143_v23  ;;  %2945 = vmatprep.mubr.msk.bf16.mxu0 %vm224_vm0, %v1618_v49  ;;  %v2685_v23 = vcombine.low %v2140_v2, %v3428_v0  ;;  %v2575_v2 = vcombine.low %v3262_v6, %v3507_v63 }
  0x3e   : > { %2943 = vmatprep.subr.bf16.mxu0 %v3146_v45  ;;  %v3484_v14 = vsel %vm442_vm3, %v898_v27, %v3471_v37  ;;  %v3489_v53 = vsel %vm196_vm2, %v2060_v44, %v3473_v39  ;;  %v1873_v44 = vld [vmem:[%s3256_s27 + $0xc] sm:$0xc] }
  0x3f   : > { %v2233_v4 = vshrl.u32 %v2685_v23, 16  ;;  %v2236_v11 = vshll.u32 %v2685_v23, 16 }
  0x41   : > { %2842 = vmatmul.mubr.msk.bf16.vlgmr.msra.gmra.mrb[0].mxu1 %vm224_vm0, %v3360_v22  ;;  %2944 = vmatpush3.bf16.msra.mxu0 %v3146_v45  ;;  %v1797_v22 = vshll.u32 %v3405_v51, 16  ;;  %v2149_v45 = vrot.slane %v2685_v23, 1  ;;  %v2238_v54 = vrot.slane %v2236_v11, 2  ;;  %v725_v11 = vshrl.u32 %v3395_v43, 16 }
  0x42   : > { %2846 = vmatpush3.bf16.msra.mxu1 %v3147_v40  ;;  %2949 = vmatprep.subr.bf16.mxu0 %v3149_v56  ;;  %v2565_v40 = vcombine.low %v979_v36, %v3376_v32 }
  0x43   : > { %2847 = vmatprep.subr.bf16.mxu1 %v3150_v60  ;;  %2849 = vmatprep.mubr.msk.bf16.mxu1 %vm224_vm0, %v543_v9  ;;  %v1799_v49 = vrot.slane %v1797_v22, 2  ;;  %v3494_v58 = vsel %vm358_vm1, %v2149_v45, %v2150_v46 }
  0x44   : > { %v988_v52 = vrot.slane %v2565_v40, 2 }
  0x45   : > { %v1800_v19 = vor.u32 %v1799_v49, %v1796_v42 }
  0x46   : > { %2848 = vmatpush3.bf16.msra.mxu1 %v3150_v60  ;;  %v2528_v60 = vcombine.low %v615_v33, %v3376_v32  ;;  %v3501_v62 = vsel %vm540_vm4, %v988_v52, %v989_v41  ;;  %v2223_v32 = vld [vmem:[%s3256_s27 + $0x1c] sm:$0xf]  ;;  %v2703_v33 = vcombine.low %v2320_v28, %v3428_v0 }
  0x47   : > { %2853 = vmatprep.subr.bf16.mxu1 %v3153_v21  ;;  %v3521_v15 = vcombine.low %v3432_v3, %v2223_v32  ;;  %v1883_v32 = vrot.slane %v3405_v51, 2 }
  0x48   : > { %2946 = vmatmul.mubr.msk.bf16.vlgmr.msra.gmra.mrb[0].mxu0 %vm224_vm0, %v1621_v16  ;;  %v716_v9 = vshll.u32 %v2528_v60, 16  ;;  %v714_v12 = vshrl.u32 %v2528_v60, 16  ;;  %v2235_v16 = vrot.slane %v2233_v4, 1  ;;  %v2329_v49 = vrot.slane %v2703_v33, 2 }
  0x49   : > { %2950 = vmatpush3.bf16.msra.mxu0 %v3149_v56  ;;  %2953 = vmatprep.mubr.msk.bf16.mxu0 %vm224_vm0, %v1704_v31  ;;  %v3504_v56 = vcombine.low %v1062_v59, %v3259_v5  ;;  %v1792_v5 = vor.u32 %v3468_v34, %v3424_v61  ;;  %v721_v61 = vshll.u32 %v3395_v43, 16  ;;  %v2244_v23 = vshll.u32 %v3521_v15, 16  ;;  %v618_v34 = vld [vmem:[%s3256_s27 + $0x10] sm:$0x3]  ;;  %v3178_v43 = vld [vmem:[%s3705_s1 + $0x158] sm:$0xff]  }
  0x4a   : > { %2951 = vmatprep.subr.bf16.mxu0 %v3152_v26  ;;  %v718_v25 = vrot.slane %v716_v9, 1  ;;  %v3534_v31 = vrot.slane %v1168_v24, 1  ;;  %v2330_v42 = vrot.slane %v3521_v15, 2 }
  0x4b   : > { %v1163_v22 = vshll.u32 %v3504_v56, 16  ;;  %v2246_v30 = vrot.slane %v2244_v23, 2  ;;  %v1801_v36 = vsel %vm442_vm3, %v1792_v5, %v1800_v19  ;;  %v723_v52 = vrot.slane %v721_v61, 1  ;;  %v3165_v5 = vld [vmem:[%s3705_s1 + $0x138] sm:$0xff]   ;;  %v3184_v23 = vld [vmem:[%s3705_s1 + $0x168] sm:$0xff]  }
  0x4c   : > { %v719_v0 = vor.u32 %v718_v25, %v714_v12  ;;  %v3562_v18 = vsel %vm540_vm4, %v2329_v49, %v2330_v42  ;;  %v2708_v25 = vld [vmem:[%s3706_s2] ss:$0 sm:$0xff] }
  0x4d   : > { %2850 = vmatmul.mubr.msk.bf16.vlgmr.msra.gmra.mrb[0].mxu1 %vm224_vm0, %v542_v50  ;;  %2952 = vmatpush3.bf16.msra.mxu0 %v3152_v26  ;;  %v1161_v50 = vshrl.u32 %v3504_v56, 16  ;;  %v2239_v26 = vor.u32 %v2238_v54, %v2235_v16  ;;  %v1165_v27 = vrot.slane %v1163_v22, 1  ;;  %v727_v51 = vor.u32 %v725_v11, %v723_v52  ;;  %v3168_v16 = vld [vmem:[%s3705_s1 + $0x140] sm:$0xff]   ;;  %v3170_v54 = vld [vmem:[%s3705_s1 + $0x148] sm:$0xff]   ;;  %v1959_v22 = vld [vmem:[%s3256_s27 + $0x1c] sm:$0x3] }
  0x4e   : > { %2854 = vmatpush3.bf16.msra.mxu1 %v3153_v21  ;;  %2957 = vmatprep.subr.bf16.mxu0 %v3154_v47  ;;  %v2241_v21 = vshrl.u32 %v3521_v15, 16  ;;  %v724_v4 = vsel %vm196_vm2, %v719_v0, %v723_v52  ;;  %v2667_v61 = vcombine.low %v3432_v3, %v1959_v22  ;;  %v3182_v3 = vld [vmem:[%s3705_s1 + $0x98] sm:$0xff]  }
  0x4f   : > { %2855 = vmatprep.subr.bf16.mxu1 %v3155_v1  ;;  %2857 = vmatprep.mubr.msk.bf16.mxu1 %vm224_vm0, %v2528_v60  ;;  %v1166_v40 = vor.u32 %v1165_v27, %v1161_v50  ;;  %v2529_v60 = vcombine.low %v3383_v38, %v618_v34  ;;  %v3163_v38 = vld [vmem:[%s3705_s1 + $0x68] sm:$0xff]  }
  0x50   : > { %v2243_v29 = vrot.slane %v2241_v21, 1  ;;  %v3175_v50 = vld [vmem:[%s3705_s1 + $0x88] sm:$0xff]  }
  0x51   : > { %v3551_v59 = vsel %vm196_vm2, %v1166_v40, %v3534_v31 }
  0x52   : > { %2856 = vmatpush3.bf16.msra.mxu1 %v3155_v1  ;;  %v3544_v45 = vor.u32 %v2246_v30, %v2243_v29 }
  0x53   : > { %2861 = vmatprep.subr.bf16.mxu1 %v3160_v17 }
  0x54   : > { %2954 = vmatmul.mubr.msk.bf16.vlgmr.msra.gmra.mrb[0].mxu0 %vm224_vm0, %v1703_v57  ;;  %v3557_v1 = vsel %vm442_vm3, %v2239_v26, %v3544_v45  ;;  %v3162_v57 = vld [vmem:[%s3705_s1 + $0x130] sm:$0xff]  }
  0x55   : > { %2958 = vmatpush3.bf16.msra.mxu0 %v3154_v47  ;;  %2961 = vmatprep.mubr.msk.bf16.mxu0 %vm224_vm0, %v1801_v36  ;;  %v2657_v47 = vcombine.low %v1873_v44, %v3344_v7  ;;  %v3166_v7 = vld [vmem:[%s3705_s1 + $0x70] sm:$0xff]  }
  0x56   : > { %2959 = vmatprep.subr.bf16.mxu0 %v3159_v35 }
  0x57   : > { %v1882_v9 = vrot.slane %v2657_v47, 2 }
  0x59   : > { %2858 = vmatmul.mubr.msk.bf16.vlgmr.msra.gmra.mrb[0].mxu1 %vm224_vm0, %v2529_v60  ;;  %2960 = vmatpush3.bf16.msra.mxu0 %v3159_v35  ;;  %v1884_v12 = vsel %vm540_vm4, %v1882_v9, %v1883_v32 }
  0x5a   : > { %2862 = vmatpush3.bf16.msra.mxu1 %v3160_v17  ;;  %2965 = vmatprep.subr.bf16.mxu0 %v3162_v57  ;;  %v3169_v17 = vld [vmem:[%s3705_s1 + $0x78] sm:$0xff]  }
  0x5b   : > { %2863 = vmatprep.subr.bf16.mxu1 %v3163_v38  ;;  %2865 = vmatprep.mubr.msk.bf16.mxu1 %vm224_vm0, %v724_v4 }
  0x5e   : > { %2864 = vmatpush3.bf16.msra.mxu1 %v3163_v38 }
  0x5f   : > { %2869 = vmatprep.subr.bf16.mxu1 %v3166_v7 }
  0x60   : > { %2962 = vmatmul.mubr.msk.bf16.vlgmr.msra.gmra.mrb[0].mxu0 %vm224_vm0, %v1800_v19  ;;  %v3171_v19 = vld [vmem:[%s3705_s1 + $0x80] sm:$0xff]  }
  0x61   : > { %2966 = vmatpush3.bf16.msra.mxu0 %v3162_v57  ;;  %2969 = vmatprep.mubr.msk.bf16.mxu0 %vm224_vm0, %v1884_v12 }
  0x62   : > { %2967 = vmatprep.subr.bf16.mxu0 %v3165_v5 }
  0x65   : > { %2866 = vmatmul.mubr.msk.bf16.vlgmr.msra.gmra.mrb[0].mxu1 %vm224_vm0, %v727_v51  ;;  %2968 = vmatpush3.bf16.msra.mxu0 %v3165_v5 }
  0x66   : > { %2870 = vmatpush3.bf16.msra.mxu1 %v3166_v7  ;;  %2973 = vmatprep.subr.bf16.mxu0 %v3168_v16 }
  0x67   : > { %2871 = vmatprep.subr.bf16.mxu1 %v3169_v17  ;;  %2873 = vmatprep.mubr.msk.bf16.mxu1 %vm224_vm0, %v3411_v55  ;;  %v3174_v55 = vld [vmem:[%s3705_s1 + $0x150] sm:$0xff]  }
  0x6a   : > { %2872 = vmatpush3.bf16.msra.mxu1 %v3169_v17 }
  0x6b   : > { %2877 = vmatprep.subr.bf16.mxu1 %v3171_v19 }
  0x6c   : > { %2970 = vmatmul.mubr.msk.bf16.vlgmr.msra.gmra.mrb[0].mxu0 %vm224_vm0, %v1883_v32 }
  0x6d   : > { %2974 = vmatpush3.bf16.msra.mxu0 %v3168_v16  ;;  %2977 = vmatprep.mubr.msk.bf16.mxu0 %vm224_vm0, %v3444_v13  ;;  %v3179_v13 = vld [vmem:[%s3705_s1 + $0x90] sm:$0xff]  }
  0x6e   : > { %2975 = vmatprep.subr.bf16.mxu0 %v3170_v54 }
  0x71   : > { %2874 = vmatmul.mubr.msk.bf16.vlgmr.msra.gmra.mrb[0].mxu1 %vm224_vm0, %v809_v48  ;;  %2976 = vmatpush3.bf16.msra.mxu0 %v3170_v54  ;;  %v3181_v48 = vld [vmem:[%s3705_s1 + $0x160] sm:$0xff]  }
  0x72   : > { %2878 = vmatpush3.bf16.msra.mxu1 %v3171_v19  ;;  %2981 = vmatprep.subr.bf16.mxu0 %v3174_v55 }
  0x73   : > { %2879 = vmatprep.subr.bf16.mxu1 %v3175_v50  ;;  %2881 = vmatprep.mubr.msk.bf16.mxu1 %vm224_vm0, %v3484_v14  ;;  %v2066_v14 = vshrl.u32 %v3450_v20, 16  ;;  %v1172_v20 = vshrl.u32 %v3266_v8, 16 }
  0x75   : > { %v2068_v21 = vor.u32 %v2066_v14, %v3473_v39  ;;  %v3187_v39 = vld [vmem:[%s3705_s1 + $0xa8] sm:$0xff]   ;;  %v1174_v6 = vor.u32 %v1172_v20, %v3534_v31 }
  0x76   : > { %2880 = vmatpush3.bf16.msra.mxu1 %v3175_v50 }
  0x77   : > { %2885 = vmatprep.subr.bf16.mxu1 %v3179_v13 }
  0x78   : > { %2978 = vmatmul.mubr.msk.bf16.vlgmr.msra.gmra.mrb[0].mxu0 %vm224_vm0, %v2667_v61 }
  0x79   : > { %2982 = vmatpush3.bf16.msra.mxu0 %v3174_v55  ;;  %2985 = vmatprep.mubr.msk.bf16.mxu0 %vm224_vm0, %v3489_v53  ;;  %v3185_v53 = vld [vmem:[%s3705_s1 + $0xa0] sm:$0xff]  }
  0x7a   : > { %2983 = vmatprep.subr.bf16.mxu0 %v3178_v43 }
  0x7d   : > { %2882 = vmatmul.mubr.msk.bf16.vlgmr.msra.gmra.mrb[0].mxu1 %vm224_vm0, %v3471_v37  ;;  %2984 = vmatpush3.bf16.msra.mxu0 %v3178_v43  ;;  %v3186_v37 = vld [vmem:[%s3705_s1 + $0x170] sm:$0xff]  }
  0x7e   : > { %2886 = vmatpush3.bf16.msra.mxu1 %v3179_v13  ;;  %2989 = vmatprep.subr.bf16.mxu0 %v3181_v48 }
  0x7f   : > { %2887 = vmatprep.subr.bf16.mxu1 %v3182_v3  ;;  %2889 = vmatprep.mubr.msk.bf16.mxu1 %vm224_vm0, %v3501_v62  ;;  %v3190_v62 = vld [vmem:[%s3705_s1 + $0x178] sm:$0xff]  }
  0x82   : > { %2888 = vmatpush3.bf16.msra.mxu1 %v3182_v3 }
  0x83   : > { %2893 = vmatprep.subr.bf16.mxu1 %v3185_v53 }
  0x84   : > { %2986 = vmatmul.mubr.msk.bf16.vlgmr.msra.gmra.mrb[0].mxu0 %vm224_vm0, %v2068_v21 }
  0x85   : > { %2990 = vmatpush3.bf16.msra.mxu0 %v3181_v48  ;;  %2993 = vmatprep.mubr.msk.bf16.mxu0 %vm224_vm0, %v3494_v58  ;;  %v3191_v58 = vld [vmem:[%s3705_s1 + $0xb0] sm:$0xff]  }
  0x86   : > { %2991 = vmatprep.subr.bf16.mxu0 %v3184_v23 }
  0x89   : > { %2890 = vmatmul.mubr.msk.bf16.vlgmr.msra.gmra.mrb[0].mxu1 %vm224_vm0, %v989_v41  ;;  %2992 = vmatpush3.bf16.msra.mxu0 %v3184_v23  ;;  %v3194_v41 = vld [vmem:[%s3705_s1 + $0xb8] sm:$0xff]  }
  0x8a   : > { %2894 = vmatpush3.bf16.msra.mxu1 %v3185_v53  ;;  %2997 = vmatprep.subr.bf16.mxu0 %v3186_v37 }
  0x8b   : > { %2895 = vmatprep.subr.bf16.mxu1 %v3187_v39  ;;  %2897 = vmatprep.mubr.msk.bf16.mxu1 %vm224_vm0, %v3504_v56 }
  0x8e   : > { %2896 = vmatpush3.bf16.msra.mxu1 %v3187_v39 }
  0x8f   : > { %2901 = vmatprep.subr.bf16.mxu1 %v3191_v58 }
  0x90   : > { %2994 = vmatmul.mubr.msk.bf16.vlgmr.msra.gmra.mrb[0].mxu0 %vm224_vm0, %v2150_v46  ;;  %v3195_v46 = vld [vmem:[%s3705_s1 + $0x188] sm:$0xff]  }
  0x91   : > { %2998 = vmatpush3.bf16.msra.mxu0 %v3186_v37  ;;  %3001 = vmatprep.mubr.msk.bf16.mxu0 %vm224_vm0, %v3557_v1 }
  0x92   : > { %2999 = vmatprep.subr.bf16.mxu0 %v3190_v62 }
  0x95   : > { %2898 = vmatmul.mubr.msk.bf16.vlgmr.msra.gmra.mrb[0].mxu1 %vm224_vm0, %v2575_v2  ;;  %3000 = vmatpush3.bf16.msra.mxu0 %v3190_v62 }
  0x96   : > { %2902 = vmatpush3.bf16.msra.mxu1 %v3191_v58  ;;  %3005 = vmatprep.subr.bf16.mxu0 %v3193_v10 }
  0x97   : > { %2903 = vmatprep.subr.bf16.mxu1 %v3194_v41  ;;  %2905 = vmatprep.mubr.msk.bf16.mxu1 %vm224_vm0, %v3551_v59 }
  0x9a   : > { %2904 = vmatpush3.bf16.msra.mxu1 %v3194_v41 }
  0x9c   : > { %3002 = vmatmul.mubr.msk.bf16.vlgmr.msra.gmra.mrb[0].mxu0 %vm224_vm0, %v3544_v45 }
  0x9d   : > { %3006 = vmatpush3.bf16.msra.mxu0 %v3193_v10  ;;  %3009 = vmatprep.mubr.msk.bf16.mxu0 %vm224_vm0, %v3562_v18 }
  0x9e   : > { %3007 = vmatprep.subr.bf16.mxu0 %v3195_v46 }
  0xa1   : > { %2906 = vmatmul.mubr.msk.bf16.vlgmr.msra.gmra.mrb[0].mxu1 %vm224_vm0, %v1174_v6  ;;  %3008 = vmatpush3.bf16.msra.mxu0 %v3195_v46 }
  0xa8   : > { %3010 = vmatmul.mubr.msk.bf16.vlgmr.msra.gmra.mrb[0].mxu0 %vm224_vm0, %v2330_v42 }
 0x174   : > { %v2907_v8 = vpop.f32.mrb[0].mxu1 }
 0x175   : > { %v1227_v56 = vpop.f32.mrb[1].mxu1 }
 0x176   : > { %v2908_v63 = vpop.f32.mrb[2].mxu1 }
 0x177   : > { %v1230_v2 = vpop.f32.mrb[3].mxu1 }
 0x17b   : > { %v3011_v24 = vpop.f32.mrb[0].mxu0 }
 0x17c   : > { %v3013_v26 = vadd.f32 %v3011_v24, %v2907_v8  ;;  %v2384_v27 = vpop.f32.mrb[1].mxu0 }
 0x17d   : > { %v3014_v28 = vadd.f32 %v2384_v27, %v1227_v56  ;;  %v3012_v15 = vpop.f32.mrb[2].mxu0 }
 0x17e   : > { %v2412_v29 = vadd.f32 %v3013_v26, %v2708_v25  ;;  %v3015_v30 = vadd.f32 %v3012_v15, %v2908_v63  ;;  %v2387_v31 = vpop.f32.mrb[3].mxu0 }
 0x17f   : > { %v2410_v33 = vadd.f32 %v3014_v28, %v2708_v25  ;;  %v3016_v34 = vadd.f32 %v2387_v31, %v1230_v2 }
 0x180   : > { %2416 = vst [vmem:[%s170_s28 + $0x10] sm:$0xff] %v2412_v29  ;;  %v2413_v35 = vadd.f32 %v3015_v30, %v2708_v25 }
 0x181   : > { %2414 = vst [vmem:[%s170_s28] sm:$0xff] %v2410_v33  ;;  %v2411_v36 = vadd.f32 %v3016_v34, %v2708_v25 }
 0x182   : > { %2417 = vst [vmem:[%s170_s28 + $0x18] sm:$0xf] %v2413_v35 }
 0x183   : > { %2415 = vst [vmem:[%s170_s28 + $0x8] sm:$0xff] %v2411_v36 }
 0x184 PF: > { %s13_s12 = sadd.s32 1, %s3203_s12  }
 0x185   : > { %p10_p4 = scmp.ge.s32.totalorder %s13_s12, 4  }
 0x187   :  { %12 = sbr.rel (!%p10_p4) target bundleno = 1 (0x1), region = 86 }

// kernel: fwd.53
= control target key start
LH: loop header
LB: loop body
LE: loop exit
PB: predicated region body
PF: predicated region fallthrough
CT: control target
= control target key end

     0   :  { %s1708_s1 = inlined_call_operand.vmem [shape: bf16[128,128], index: 1, kind: input, shape index: {}]   ;;  %s1709_s0 = inlined_call_operand.vmem [shape: bf16[512,128], index: 0, kind: input, shape index: {}]   ;;  %s1710_s2 = inlined_call_operand.vmem [shape: f32[1,128], index: 2, kind: input, shape index: {}]   ;;  %s1711_s3 = inlined_call_operand.vmem [shape: f32[512,128], index: 3, kind: output, shape index: {}]  }
   0x1   :  { %v1267_v0 = vld [vmem:[%s1708_s1] sm:$0xff]   ;;  %v1268_v1 = vld [vmem:[%s1708_s1 + $0x8] sm:$0xff]   ;;  %v1269_v2 = vld [vmem:[%s1708_s1 + $0x10] sm:$0xff]  }
   0x2   :  { %1171 = vmatprep.subr.bf16.mxu0 %v1267_v0  ;;  %1251 = vmatprep.subr.bf16.mxu1 %v1267_v0  ;;  %v1270_v3 = vld [vmem:[%s1708_s1 + $0x18] sm:$0xff]   ;;  %v1275_v4 = vld [vmem:[%s1709_s0] sm:$0xff]   ;;  %v1272_v7 = vld [vmem:[%s1708_s1 + $0x28] sm:$0xff]  }
   0x3   :  { %1172 = vmatpush3.bf16.msra.mxu0 %v1267_v0  ;;  %1259 = vmatpush3.bf16.msra.mxu1 %v1267_v0  ;;  %v1276_v5 = vld [vmem:[%s1709_s0 + $0x80] sm:$0xff]   ;;  %v1273_v8 = vld [vmem:[%s1708_s1 + $0x30] sm:$0xff]   ;;  %v1274_v9 = vld [vmem:[%s1708_s1 + $0x38] sm:$0xff]  }
   0x4   :  { %1173 = vmatprep.subr.bf16.mxu0 %v1268_v1  ;;  %1252 = vmatprep.subr.bf16.mxu1 %v1268_v1  ;;  %v1271_v6 = vld [vmem:[%s1708_s1 + $0x20] sm:$0xff]   ;;  %v1277_v10 = vld [vmem:[%s1709_s0 + $0x8] sm:$0xff]   ;;  %v1279_v12 = vld [vmem:[%s1709_s0 + $0x10] sm:$0xff]  }
   0x5   :  { %1187 = vmatprep.mubr.bf16.mxu0 %v1275_v4  ;;  %1219 = vmatprep.mubr.bf16.mxu1 %v1276_v5  ;;  %v1278_v11 = vld [vmem:[%s1709_s0 + $0x88] sm:$0xff]   ;;  %v1280_v13 = vld [vmem:[%s1709_s0 + $0x90] sm:$0xff]   ;;  %v1281_v14 = vld [vmem:[%s1709_s0 + $0x18] sm:$0xff]  }
   0x6   :  { %v1282_v15 = vld [vmem:[%s1709_s0 + $0x98] sm:$0xff]   ;;  %v1283_v16 = vld [vmem:[%s1709_s0 + $0x20] sm:$0xff]   ;;  %v1285_v18 = vld [vmem:[%s1709_s0 + $0x28] sm:$0xff]  }
   0x7   :  { %1174 = vmatpush3.bf16.msra.mxu0 %v1268_v1  ;;  %1260 = vmatpush3.bf16.msra.mxu1 %v1268_v1  ;;  %v1284_v17 = vld [vmem:[%s1709_s0 + $0xa0] sm:$0xff]   ;;  %v1286_v19 = vld [vmem:[%s1709_s0 + $0xa8] sm:$0xff]   ;;  %v1287_v20 = vld [vmem:[%s1709_s0 + $0x30] sm:$0xff]  }
   0x8   :  { %1175 = vmatprep.subr.bf16.mxu0 %v1269_v2  ;;  %1253 = vmatprep.subr.bf16.mxu1 %v1269_v2  ;;  %v1288_v21 = vld [vmem:[%s1709_s0 + $0xb0] sm:$0xff]   ;;  %v1289_v22 = vld [vmem:[%s1709_s0 + $0x38] sm:$0xff]   ;;  %v1291_v24 = vld [vmem:[%s1709_s0 + $0x40] sm:$0xff]  }
   0x9   :  { %v1290_v23 = vld [vmem:[%s1709_s0 + $0xb8] sm:$0xff]   ;;  %v1292_v25 = vld [vmem:[%s1709_s0 + $0xc0] sm:$0xff]   ;;  %v1293_v26 = vld [vmem:[%s1709_s0 + $0x48] sm:$0xff]  }
   0xa   :  { %v1294_v27 = vld [vmem:[%s1709_s0 + $0xc8] sm:$0xff]   ;;  %v1295_v28 = vld [vmem:[%s1709_s0 + $0x50] sm:$0xff]   ;;  %v1297_v30 = vld [vmem:[%s1709_s0 + $0x58] sm:$0xff]  }
   0xb   :  { %1176 = vmatpush3.bf16.msra.mxu0 %v1269_v2  ;;  %1261 = vmatpush3.bf16.msra.mxu1 %v1269_v2  ;;  %v1296_v29 = vld [vmem:[%s1709_s0 + $0xd0] sm:$0xff]   ;;  %v1298_v31 = vld [vmem:[%s1709_s0 + $0xd8] sm:$0xff]   ;;  %v1299_v32 = vld [vmem:[%s1709_s0 + $0x60] sm:$0xff]  }
   0xc   :  { %1177 = vmatprep.subr.bf16.mxu0 %v1270_v3  ;;  %1254 = vmatprep.subr.bf16.mxu1 %v1270_v3  ;;  %v1300_v33 = vld [vmem:[%s1709_s0 + $0xe0] sm:$0xff]   ;;  %v1301_v34 = vld [vmem:[%s1709_s0 + $0x68] sm:$0xff]   ;;  %v1303_v36 = vld [vmem:[%s1709_s0 + $0x70] sm:$0xff]  }
   0xd   :  { %v1302_v35 = vld [vmem:[%s1709_s0 + $0xe8] sm:$0xff]   ;;  %v1304_v37 = vld [vmem:[%s1709_s0 + $0xf0] sm:$0xff]   ;;  %v1305_v38 = vld [vmem:[%s1709_s0 + $0x78] sm:$0xff]  }
   0xe   :  { %v1306_v39 = vld [vmem:[%s1709_s0 + $0xf8] sm:$0xff]   ;;  %v1450_v40 = vld [vmem:[%s1710_s2] ss:$0 sm:$0xff] }
   0xf   :  { %1178 = vmatpush3.bf16.msra.mxu0 %v1270_v3  ;;  %1262 = vmatpush3.bf16.msra.mxu1 %v1270_v3 }
  0x10   :  { %1179 = vmatprep.subr.bf16.mxu0 %v1271_v6  ;;  %1255 = vmatprep.subr.bf16.mxu1 %v1271_v6 }
  0x13   :  { %1180 = vmatpush3.bf16.msra.mxu0 %v1271_v6  ;;  %1263 = vmatpush3.bf16.msra.mxu1 %v1271_v6 }
  0x14   :  { %1181 = vmatprep.subr.bf16.mxu0 %v1272_v7  ;;  %1256 = vmatprep.subr.bf16.mxu1 %v1272_v7 }
  0x17   :  { %1182 = vmatpush3.bf16.msra.mxu0 %v1272_v7  ;;  %1264 = vmatpush3.bf16.msra.mxu1 %v1272_v7 }
  0x18   :  { %1183 = vmatprep.subr.bf16.mxu0 %v1273_v8  ;;  %1257 = vmatprep.subr.bf16.mxu1 %v1273_v8 }
  0x1b   :  { %1184 = vmatpush3.bf16.msra.mxu0 %v1273_v8  ;;  %1265 = vmatpush3.bf16.msra.mxu1 %v1273_v8 }
  0x1c   :  { %1185 = vmatprep.subr.bf16.mxu0 %v1274_v9  ;;  %1258 = vmatprep.subr.bf16.mxu1 %v1274_v9 }
  0x1f   :  { %1186 = vmatpush3.bf16.msra.mxu0 %v1274_v9  ;;  %1266 = vmatpush3.bf16.msra.mxu1 %v1274_v9 }
  0x22   :  { %1188 = vmatmul.mubr.bf16.vlgmr.msra.gmra.mrb[0].mxu0 %v1277_v10  ;;  %1220 = vmatmul.mubr.bf16.vlgmr.msra.gmra.mrb[0].mxu1 %v1278_v11 }
  0x23   :  { %1191 = vmatprep.mubr.bf16.mxu0 %v1279_v12  ;;  %1223 = vmatprep.mubr.bf16.mxu1 %v1280_v13 }
  0x2a   :  { %1192 = vmatmul.mubr.bf16.gmra.mrb[4].mxu0 %v1281_v14  ;;  %1224 = vmatmul.mubr.bf16.gmra.mrb[4].mxu1 %v1282_v15 }
  0x2b   :  { %1195 = vmatprep.mubr.bf16.mxu0 %v1283_v16  ;;  %1227 = vmatprep.mubr.bf16.mxu1 %v1284_v17 }
  0x32   :  { %1196 = vmatmul.mubr.bf16.gmra.mrb[8].mxu0 %v1285_v18  ;;  %1228 = vmatmul.mubr.bf16.gmra.mrb[8].mxu1 %v1286_v19 }
  0x33   :  { %1199 = vmatprep.mubr.bf16.mxu0 %v1287_v20  ;;  %1231 = vmatprep.mubr.bf16.mxu1 %v1288_v21 }
  0x3a   :  { %1200 = vmatmul.mubr.bf16.gmra.mrb[12].mxu0 %v1289_v22  ;;  %1232 = vmatmul.mubr.bf16.gmra.mrb[12].mxu1 %v1290_v23 }
  0x3b   :  { %1203 = vmatprep.mubr.bf16.mxu0 %v1291_v24  ;;  %1235 = vmatprep.mubr.bf16.mxu1 %v1292_v25 }
  0x42   :  { %1204 = vmatmul.mubr.bf16.gmra.mrb[16].mxu0 %v1293_v26  ;;  %1236 = vmatmul.mubr.bf16.gmra.mrb[16].mxu1 %v1294_v27 }
  0x43   :  { %1207 = vmatprep.mubr.bf16.mxu0 %v1295_v28  ;;  %1239 = vmatprep.mubr.bf16.mxu1 %v1296_v29 }
  0x4a   :  { %1208 = vmatmul.mubr.bf16.gmra.mrb[20].mxu0 %v1297_v30  ;;  %1240 = vmatmul.mubr.bf16.gmra.mrb[20].mxu1 %v1298_v31 }
  0x4b   :  { %1211 = vmatprep.mubr.bf16.mxu0 %v1299_v32  ;;  %1243 = vmatprep.mubr.bf16.mxu1 %v1300_v33 }
  0x52   :  { %1212 = vmatmul.mubr.bf16.gmra.mrb[24].mxu0 %v1301_v34  ;;  %1244 = vmatmul.mubr.bf16.gmra.mrb[24].mxu1 %v1302_v35 }
  0x53   :  { %1215 = vmatprep.mubr.bf16.mxu0 %v1303_v36  ;;  %1247 = vmatprep.mubr.bf16.mxu1 %v1304_v37 }
  0x5a   :  { %1216 = vmatmul.mubr.bf16.gmra.mrb[28].mxu0 %v1305_v38  ;;  %1248 = vmatmul.mubr.bf16.gmra.mrb[28].mxu1 %v1306_v39 }
  0xf5   :  { %v1189_v41 = vpop.f32.mrb[0].mxu0  ;;  %v1221_v42 = vpop.f32.mrb[0].mxu1 }
  0xf6   :  { %v960_v43 = vadd.f32 %v1189_v41, %v1450_v40  ;;  %v992_v44 = vadd.f32 %v1221_v42, %v1450_v40  ;;  %v501_v45 = vpop.f32.mrb[1].mxu0  ;;  %v629_v46 = vpop.f32.mrb[1].mxu1 }
  0xf7   :  { %v958_v47 = vadd.f32 %v1450_v40, %v501_v45  ;;  %v990_v48 = vadd.f32 %v1450_v40, %v629_v46  ;;  %v1190_v49 = vpop.f32.mrb[2].mxu0  ;;  %v1222_v50 = vpop.f32.mrb[2].mxu1 }
  0xf8   :  { %1024 = vst [vmem:[%s1711_s3 + $0x10] sm:$0xff] %v960_v43  ;;  %1056 = vst [vmem:[%s1711_s3 + $0x110] sm:$0xff] %v992_v44  ;;  %v961_v51 = vadd.f32 %v1190_v49, %v1450_v40  ;;  %v993_v52 = vadd.f32 %v1222_v50, %v1450_v40  ;;  %v504_v53 = vpop.f32.mrb[3].mxu0  ;;  %v632_v54 = vpop.f32.mrb[3].mxu1 }
  0xf9   :  { %1022 = vst [vmem:[%s1711_s3] sm:$0xff] %v958_v47  ;;  %1054 = vst [vmem:[%s1711_s3 + $0x100] sm:$0xff] %v990_v48  ;;  %v959_v55 = vadd.f32 %v1450_v40, %v504_v53  ;;  %v991_v56 = vadd.f32 %v1450_v40, %v632_v54 }
  0xfa   :  { %1025 = vst [vmem:[%s1711_s3 + $0x18] sm:$0xff] %v961_v51  ;;  %1057 = vst [vmem:[%s1711_s3 + $0x118] sm:$0xff] %v993_v52 }
  0xfb   :  { %1023 = vst [vmem:[%s1711_s3 + $0x8] sm:$0xff] %v959_v55  ;;  %1055 = vst [vmem:[%s1711_s3 + $0x108] sm:$0xff] %v991_v56 }
  0xfd   :  { %v1193_v57 = vpop.f32.mrb[4].mxu0  ;;  %v1225_v58 = vpop.f32.mrb[4].mxu1 }
  0xfe   :  { %v964_v59 = vadd.f32 %v1193_v57, %v1450_v40  ;;  %v996_v60 = vadd.f32 %v1225_v58, %v1450_v40  ;;  %v517_v61 = vpop.f32.mrb[5].mxu0  ;;  %v645_v62 = vpop.f32.mrb[5].mxu1 }
  0xff   :  { %v962_v63 = vadd.f32 %v1450_v40, %v517_v61  ;;  %v994_v0 = vadd.f32 %v1450_v40, %v645_v62  ;;  %v1194_v1 = vpop.f32.mrb[6].mxu0  ;;  %v1226_v2 = vpop.f32.mrb[6].mxu1 }
 0x100   :  { %1028 = vst [vmem:[%s1711_s3 + $0x30] sm:$0xff] %v964_v59  ;;  %1060 = vst [vmem:[%s1711_s3 + $0x130] sm:$0xff] %v996_v60  ;;  %v965_v3 = vadd.f32 %v1194_v1, %v1450_v40  ;;  %v997_v4 = vadd.f32 %v1226_v2, %v1450_v40  ;;  %v520_v5 = vpop.f32.mrb[7].mxu0  ;;  %v648_v6 = vpop.f32.mrb[7].mxu1 }
 0x101   :  { %1026 = vst [vmem:[%s1711_s3 + $0x20] sm:$0xff] %v962_v63  ;;  %1058 = vst [vmem:[%s1711_s3 + $0x120] sm:$0xff] %v994_v0  ;;  %v963_v7 = vadd.f32 %v1450_v40, %v520_v5  ;;  %v995_v8 = vadd.f32 %v1450_v40, %v648_v6 }
 0x102   :  { %1029 = vst [vmem:[%s1711_s3 + $0x38] sm:$0xff] %v965_v3  ;;  %1061 = vst [vmem:[%s1711_s3 + $0x138] sm:$0xff] %v997_v4 }
 0x103   :  { %1027 = vst [vmem:[%s1711_s3 + $0x28] sm:$0xff] %v963_v7  ;;  %1059 = vst [vmem:[%s1711_s3 + $0x128] sm:$0xff] %v995_v8 }
 0x105   :  { %v1197_v9 = vpop.f32.mrb[8].mxu0  ;;  %v1229_v10 = vpop.f32.mrb[8].mxu1 }
 0x106   :  { %v968_v11 = vadd.f32 %v1197_v9, %v1450_v40  ;;  %v1000_v12 = vadd.f32 %v1229_v10, %v1450_v40  ;;  %v533_v13 = vpop.f32.mrb[9].mxu0  ;;  %v661_v14 = vpop.f32.mrb[9].mxu1 }
 0x107   :  { %v966_v15 = vadd.f32 %v1450_v40, %v533_v13  ;;  %v998_v16 = vadd.f32 %v1450_v40, %v661_v14  ;;  %v1198_v17 = vpop.f32.mrb[10].mxu0  ;;  %v1230_v18 = vpop.f32.mrb[10].mxu1 }
 0x108   :  { %1032 = vst [vmem:[%s1711_s3 + $0x50] sm:$0xff] %v968_v11  ;;  %1064 = vst [vmem:[%s1711_s3 + $0x150] sm:$0xff] %v1000_v12  ;;  %v969_v19 = vadd.f32 %v1198_v17, %v1450_v40  ;;  %v1001_v20 = vadd.f32 %v1230_v18, %v1450_v40  ;;  %v536_v21 = vpop.f32.mrb[11].mxu0  ;;  %v664_v22 = vpop.f32.mrb[11].mxu1 }
 0x109   :  { %1030 = vst [vmem:[%s1711_s3 + $0x40] sm:$0xff] %v966_v15  ;;  %1062 = vst [vmem:[%s1711_s3 + $0x140] sm:$0xff] %v998_v16  ;;  %v967_v23 = vadd.f32 %v1450_v40, %v536_v21  ;;  %v999_v24 = vadd.f32 %v1450_v40, %v664_v22 }
 0x10a   :  { %1033 = vst [vmem:[%s1711_s3 + $0x58] sm:$0xff] %v969_v19  ;;  %1065 = vst [vmem:[%s1711_s3 + $0x158] sm:$0xff] %v1001_v20 }
 0x10b   :  { %1031 = vst [vmem:[%s1711_s3 + $0x48] sm:$0xff] %v967_v23  ;;  %1063 = vst [vmem:[%s1711_s3 + $0x148] sm:$0xff] %v999_v24 }
 0x10d   :  { %v1201_v25 = vpop.f32.mrb[12].mxu0  ;;  %v1233_v26 = vpop.f32.mrb[12].mxu1 }
 0x10e   :  { %v972_v27 = vadd.f32 %v1201_v25, %v1450_v40  ;;  %v1004_v28 = vadd.f32 %v1233_v26, %v1450_v40  ;;  %v549_v29 = vpop.f32.mrb[13].mxu0  ;;  %v677_v30 = vpop.f32.mrb[13].mxu1 }
 0x10f   :  { %v970_v31 = vadd.f32 %v1450_v40, %v549_v29  ;;  %v1002_v32 = vadd.f32 %v1450_v40, %v677_v30  ;;  %v1202_v33 = vpop.f32.mrb[14].mxu0  ;;  %v1234_v34 = vpop.f32.mrb[14].mxu1 }
 0x110   :  { %1036 = vst [vmem:[%s1711_s3 + $0x70] sm:$0xff] %v972_v27  ;;  %1068 = vst [vmem:[%s1711_s3 + $0x170] sm:$0xff] %v1004_v28  ;;  %v973_v35 = vadd.f32 %v1202_v33, %v1450_v40  ;;  %v1005_v36 = vadd.f32 %v1234_v34, %v1450_v40  ;;  %v552_v37 = vpop.f32.mrb[15].mxu0  ;;  %v680_v38 = vpop.f32.mrb[15].mxu1 }
 0x111   :  { %1034 = vst [vmem:[%s1711_s3 + $0x60] sm:$0xff] %v970_v31  ;;  %1066 = vst [vmem:[%s1711_s3 + $0x160] sm:$0xff] %v1002_v32  ;;  %v971_v39 = vadd.f32 %v1450_v40, %v552_v37  ;;  %v1003_v41 = vadd.f32 %v1450_v40, %v680_v38 }
 0x112   :  { %1037 = vst [vmem:[%s1711_s3 + $0x78] sm:$0xff] %v973_v35  ;;  %1069 = vst [vmem:[%s1711_s3 + $0x178] sm:$0xff] %v1005_v36 }
 0x113   :  { %1035 = vst [vmem:[%s1711_s3 + $0x68] sm:$0xff] %v971_v39  ;;  %1067 = vst [vmem:[%s1711_s3 + $0x168] sm:$0xff] %v1003_v41 }
 0x115   :  { %v1205_v42 = vpop.f32.mrb[16].mxu0  ;;  %v1237_v43 = vpop.f32.mrb[16].mxu1 }
 0x116   :  { %v976_v44 = vadd.f32 %v1205_v42, %v1450_v40  ;;  %v1008_v45 = vadd.f32 %v1237_v43, %v1450_v40  ;;  %v565_v46 = vpop.f32.mrb[17].mxu0  ;;  %v693_v47 = vpop.f32.mrb[17].mxu1 }
 0x117   :  { %v974_v48 = vadd.f32 %v1450_v40, %v565_v46  ;;  %v1006_v49 = vadd.f32 %v1450_v40, %v693_v47  ;;  %v1206_v50 = vpop.f32.mrb[18].mxu0  ;;  %v1238_v51 = vpop.f32.mrb[18].mxu1 }
 0x118   :  { %1040 = vst [vmem:[%s1711_s3 + $0x90] sm:$0xff] %v976_v44  ;;  %1072 = vst [vmem:[%s1711_s3 + $0x190] sm:$0xff] %v1008_v45  ;;  %v977_v52 = vadd.f32 %v1206_v50, %v1450_v40  ;;  %v1009_v53 = vadd.f32 %v1238_v51, %v1450_v40  ;;  %v568_v54 = vpop.f32.mrb[19].mxu0  ;;  %v696_v55 = vpop.f32.mrb[19].mxu1 }
 0x119   :  { %1038 = vst [vmem:[%s1711_s3 + $0x80] sm:$0xff] %v974_v48  ;;  %1070 = vst [vmem:[%s1711_s3 + $0x180] sm:$0xff] %v1006_v49  ;;  %v975_v56 = vadd.f32 %v1450_v40, %v568_v54  ;;  %v1007_v57 = vadd.f32 %v1450_v40, %v696_v55 }
 0x11a   :  { %1041 = vst [vmem:[%s1711_s3 + $0x98] sm:$0xff] %v977_v52  ;;  %1073 = vst [vmem:[%s1711_s3 + $0x198] sm:$0xff] %v1009_v53 }
 0x11b   :  { %1039 = vst [vmem:[%s1711_s3 + $0x88] sm:$0xff] %v975_v56  ;;  %1071 = vst [vmem:[%s1711_s3 + $0x188] sm:$0xff] %v1007_v57 }
 0x11d   :  { %v1209_v58 = vpop.f32.mrb[20].mxu0  ;;  %v1241_v59 = vpop.f32.mrb[20].mxu1 }
 0x11e   :  { %v980_v60 = vadd.f32 %v1209_v58, %v1450_v40  ;;  %v1012_v61 = vadd.f32 %v1241_v59, %v1450_v40  ;;  %v581_v62 = vpop.f32.mrb[21].mxu0  ;;  %v709_v63 = vpop.f32.mrb[21].mxu1 }
 0x11f   :  { %v978_v0 = vadd.f32 %v1450_v40, %v581_v62  ;;  %v1010_v1 = vadd.f32 %v1450_v40, %v709_v63  ;;  %v1210_v2 = vpop.f32.mrb[22].mxu0  ;;  %v1242_v3 = vpop.f32.mrb[22].mxu1 }
 0x120   :  { %1044 = vst [vmem:[%s1711_s3 + $0xb0] sm:$0xff] %v980_v60  ;;  %1076 = vst [vmem:[%s1711_s3 + $0x1b0] sm:$0xff] %v1012_v61  ;;  %v981_v4 = vadd.f32 %v1210_v2, %v1450_v40  ;;  %v1013_v5 = vadd.f32 %v1242_v3, %v1450_v40  ;;  %v584_v6 = vpop.f32.mrb[23].mxu0  ;;  %v712_v7 = vpop.f32.mrb[23].mxu1 }
 0x121   :  { %1042 = vst [vmem:[%s1711_s3 + $0xa0] sm:$0xff] %v978_v0  ;;  %1074 = vst [vmem:[%s1711_s3 + $0x1a0] sm:$0xff] %v1010_v1  ;;  %v979_v8 = vadd.f32 %v1450_v40, %v584_v6  ;;  %v1011_v9 = vadd.f32 %v1450_v40, %v712_v7 }
 0x122   :  { %1045 = vst [vmem:[%s1711_s3 + $0xb8] sm:$0xff] %v981_v4  ;;  %1077 = vst [vmem:[%s1711_s3 + $0x1b8] sm:$0xff] %v1013_v5 }
 0x123   :  { %1043 = vst [vmem:[%s1711_s3 + $0xa8] sm:$0xff] %v979_v8  ;;  %1075 = vst [vmem:[%s1711_s3 + $0x1a8] sm:$0xff] %v1011_v9 }
 0x125   :  { %v1213_v10 = vpop.f32.mrb[24].mxu0  ;;  %v1245_v11 = vpop.f32.mrb[24].mxu1 }
 0x126   :  { %v984_v12 = vadd.f32 %v1213_v10, %v1450_v40  ;;  %v1016_v13 = vadd.f32 %v1245_v11, %v1450_v40  ;;  %v597_v14 = vpop.f32.mrb[25].mxu0  ;;  %v725_v15 = vpop.f32.mrb[25].mxu1 }
 0x127   :  { %v982_v16 = vadd.f32 %v1450_v40, %v597_v14  ;;  %v1014_v17 = vadd.f32 %v1450_v40, %v725_v15  ;;  %v1214_v18 = vpop.f32.mrb[26].mxu0  ;;  %v1246_v19 = vpop.f32.mrb[26].mxu1 }
 0x128   :  { %1048 = vst [vmem:[%s1711_s3 + $0xd0] sm:$0xff] %v984_v12  ;;  %1080 = vst [vmem:[%s1711_s3 + $0x1d0] sm:$0xff] %v1016_v13  ;;  %v985_v20 = vadd.f32 %v1214_v18, %v1450_v40  ;;  %v1017_v21 = vadd.f32 %v1246_v19, %v1450_v40  ;;  %v600_v22 = vpop.f32.mrb[27].mxu0  ;;  %v728_v23 = vpop.f32.mrb[27].mxu1 }
 0x129   :  { %1046 = vst [vmem:[%s1711_s3 + $0xc0] sm:$0xff] %v982_v16  ;;  %1078 = vst [vmem:[%s1711_s3 + $0x1c0] sm:$0xff] %v1014_v17  ;;  %v983_v24 = vadd.f32 %v1450_v40, %v600_v22  ;;  %v1015_v25 = vadd.f32 %v1450_v40, %v728_v23 }
 0x12a   :  { %1049 = vst [vmem:[%s1711_s3 + $0xd8] sm:$0xff] %v985_v20  ;;  %1081 = vst [vmem:[%s1711_s3 + $0x1d8] sm:$0xff] %v1017_v21 }
 0x12b   :  { %1047 = vst [vmem:[%s1711_s3 + $0xc8] sm:$0xff] %v983_v24  ;;  %1079 = vst [vmem:[%s1711_s3 + $0x1c8] sm:$0xff] %v1015_v25 }
 0x12d   :  { %v1217_v26 = vpop.f32.mrb[28].mxu0  ;;  %v1249_v27 = vpop.f32.mrb[28].mxu1 }
 0x12e   :  { %v988_v28 = vadd.f32 %v1217_v26, %v1450_v40  ;;  %v1020_v29 = vadd.f32 %v1249_v27, %v1450_v40  ;;  %v613_v30 = vpop.f32.mrb[29].mxu0  ;;  %v741_v31 = vpop.f32.mrb[29].mxu1 }
 0x12f   :  { %v986_v32 = vadd.f32 %v1450_v40, %v613_v30  ;;  %v1018_v33 = vadd.f32 %v1450_v40, %v741_v31  ;;  %v1218_v34 = vpop.f32.mrb[30].mxu0  ;;  %v1250_v35 = vpop.f32.mrb[30].mxu1 }
 0x130   :  { %1052 = vst [vmem:[%s1711_s3 + $0xf0] sm:$0xff] %v988_v28  ;;  %1084 = vst [vmem:[%s1711_s3 + $0x1f0] sm:$0xff] %v1020_v29  ;;  %v989_v36 = vadd.f32 %v1218_v34, %v1450_v40  ;;  %v1021_v37 = vadd.f32 %v1250_v35, %v1450_v40  ;;  %v616_v38 = vpop.f32.mrb[31].mxu0  ;;  %v744_v39 = vpop.f32.mrb[31].mxu1 }
 0x131   :  { %1050 = vst [vmem:[%s1711_s3 + $0xe0] sm:$0xff] %v986_v32  ;;  %1082 = vst [vmem:[%s1711_s3 + $0x1e0] sm:$0xff] %v1018_v33  ;;  %v987_v41 = vadd.f32 %v1450_v40, %v616_v38  ;;  %v1019_v42 = vadd.f32 %v1450_v40, %v744_v39 }
 0x132   :  { %1053 = vst [vmem:[%s1711_s3 + $0xf8] sm:$0xff] %v989_v36  ;;  %1085 = vst [vmem:[%s1711_s3 + $0x1f8] sm:$0xff] %v1021_v37 }
 0x133   :  { %1051 = vst [vmem:[%s1711_s3 + $0xe8] sm:$0xff] %v987_v41  ;;  %1083 = vst [vmem:[%s1711_s3 + $0x1e8] sm:$0xff] %v1019_v42 }

</bundles_post_ra>
